<compile_context>
chip_gen: v7x
topology: tpu7x:2x2x1
jax: 0.10.0
libtpu: 0.0.40
codegen_flags: <defaults>
</compile_context>

<pallas_src>
import functools

import jax
import jax.numpy as jnp
from jax.experimental import pallas as pl
from jax.experimental.pallas import tpu as pltpu


def _round_up(x, m):
    return (x + m - 1) // m * m


@functools.lru_cache(maxsize=1)
def _vmem_limit_bytes():
    """Generation-aware scoped-VMEM limit (safe on v5e/v6e 128 MiB and v7x 64 MiB)."""
    cap = 64 * 1024 * 1024
    try:
        info = pltpu.get_tpu_info()
        cap = int(getattr(info, "vmem_capacity_bytes", cap) or cap)
    except Exception:
        pass
    return int(min(cap * 3 // 4, 96 * 1024 * 1024))


def _pick_tm(mp8, tn, tk, has_residual, budget):
    """Largest M tile whose (double-buffered) working set fits the VMEM budget."""
    for cand in (512, 256, 128, 64, 32, 16, 8):
        est = (2 * cand * tk * 2          # A tile, bf16, double-buffered
               + 2 * tk * tn * 2          # W tile, bf16, double-buffered
               + 2 * cand * tn * 4        # output tile, f32, double-buffered
               + cand * tn * 4            # f32 accumulator scratch
               + (2 * cand * tn * 4 if has_residual else 0)
               + 4 * tn * 4)              # scale / bias rows
        if est <= budget:
            return max(8, min(cand, mp8))
    return 8


# ---------------------------------------------------------------------------
# Pallas kernel: tiled GEMM + folded-BN affine (+ fused residual add) (+ ReLU)
# ---------------------------------------------------------------------------
def _gemm_bn_kernel(a_ref, w_ref, s_ref, b_ref, *rest, relu, has_residual):
    if has_residual:
        r_ref, o_ref, acc_ref = rest
    else:
        o_ref, acc_ref = rest
        r_ref = None

    kk = pl.program_id(2)

    @pl.when(kk == 0)
    def _init():
        acc_ref[...] = jnp.zeros_like(acc_ref)

    acc_ref[...] += jnp.dot(a_ref[...], w_ref[...],
                            preferred_element_type=jnp.float32)

    @pl.when(kk == pl.num_programs(2) - 1)
    def _epilogue():
        out = acc_ref[...] * s_ref[...] + b_ref[...]
        if has_residual:
            out = out + r_ref[...]
        if relu:
            out = jnp.maximum(out, 0.0)
        o_ref[...] = out


def gemm_bn(patches, w2d, scale, bias, *, relu, residual=None):
    """(M, K) @ (K, Cout) with fused per-channel scale/bias (+residual) (+ReLU).

    patches / w2d are cast to bf16 for the MXU; accumulation stays f32.
    """
    m, k = patches.shape
    k2, cout = w2d.shape
    assert k == k2
    has_residual = residual is not None

    # ---- tile sizes -------------------------------------------------------
    cp = _round_up(cout, 128)                  # lane-dense output (no vst.msk)
    tn = 256 if cp % 256 == 0 else 128

    kp = _round_up(k, 128)                     # pad K only to a 128 multiple
    if kp <= 2048:
        tk = kp                                # single K step for small K
    else:
        tk = 512
        kp = _round_up(k, tk)

    mp8 = _round_up(m, 8)
    tm = _pick_tm(mp8, tn, tk, has_residual, _vmem_limit_bytes() // 2)
    mp = _round_up(mp8, tm)

    # ---- pad + cast operands ---------------------------------------------
    a = jnp.pad(patches.astype(jnp.bfloat16), ((0, mp - m), (0, kp - k)))
    w = jnp.pad(w2d.astype(jnp.bfloat16), ((0, kp - k), (0, cp - cout)))
    s2 = jnp.pad(scale.astype(jnp.float32).reshape(1, cout),
                 ((0, 0), (0, cp - cout)))
    b2 = jnp.pad(bias.astype(jnp.float32).reshape(1, cout),
                 ((0, 0), (0, cp - cout)))

    in_specs = [
        pl.BlockSpec((tm, tk), lambda i, j, kk: (i, kk)),
        pl.BlockSpec((tk, tn), lambda i, j, kk: (kk, j)),
        pl.BlockSpec((1, tn), lambda i, j, kk: (0, j)),
        pl.BlockSpec((1, tn), lambda i, j, kk: (0, j)),
    ]
    args = [a, w, s2, b2]

    if has_residual:
        assert residual.shape == (m, cout), residual.shape
        r = jnp.pad(residual.astype(jnp.float32),
                    ((0, mp - m), (0, cp - cout)))
        in_specs.append(pl.BlockSpec((tm, tn), lambda i, j, kk: (i, j)))
        args.append(r)

    grid = (mp // tm, cp // tn, kp // tk)
    y = pl.pallas_call(
        functools.partial(_gemm_bn_kernel, relu=relu, has_residual=has_residual),
        out_shape=jax.ShapeDtypeStruct((mp, cp), jnp.float32),
        grid=grid,
        in_specs=in_specs,
        out_specs=pl.BlockSpec((tm, tn), lambda i, j, kk: (i, j)),
        scratch_shapes=[pltpu.VMEM((tm, tn), jnp.float32)],
        compiler_params=pltpu.CompilerParams(
            dimension_semantics=("parallel", "parallel", "arbitrary"),
            vmem_limit_bytes=_vmem_limit_bytes()),
    )(*args)
    return y[:m, :cout]


# ---------------------------------------------------------------------------
# Glue: channels-last im2col, conv wrapper, BasicBlock
# ---------------------------------------------------------------------------
def _im2col_3d_cl(x_cl, k, stride, dilation, padding):
    """x_cl: (N, D, H, W, C) -> patches (N*Do*Ho*Wo, k^3*C), K-order (kd,kh,kw,Cin)."""
    n, d, h, w, c = x_cl.shape
    xp = jnp.pad(x_cl, ((0, 0), (padding, padding), (padding, padding),
                        (padding, padding), (0, 0)))

    def out_dim(s):
        return (s + 2 * padding - dilation * (k - 1) - 1) // stride + 1

    do, ho, wo = out_dim(d), out_dim(h), out_dim(w)
    taps = []
    for kd in range(k):
        for kh in range(k):
            for kw in range(k):
                d0, h0, w0 = kd * dilation, kh * dilation, kw * dilation
                taps.append(xp[:, d0:d0 + stride * do:stride,
                                  h0:h0 + stride * ho:stride,
                                  w0:w0 + stride * wo:stride, :])
    cols = jnp.stack(taps, axis=4)                       # (N, Do, Ho, Wo, k^3, C)
    patches = cols.reshape(n * do * ho * wo, (k ** 3) * c)
    return patches, (do, ho, wo)


def conv3d_bn_cl(x_cl, w, scale, bias, *, stride, dilation, padding, relu,
                 residual_2d=None, return_2d=False):
    """3-D conv (PyTorch weight layout (Cout,Cin,kd,kh,kw)) + folded BN, channels-last."""
    n = x_cl.shape[0]
    cout, cin, k = w.shape[0], w.shape[1], w.shape[2]
    patches, (do, ho, wo) = _im2col_3d_cl(x_cl, k, stride, dilation, padding)
    # Match patches' K-order (kd, kh, kw, Cin):
    w2d = jnp.transpose(w, (2, 3, 4, 1, 0)).reshape((k ** 3) * cin, cout)
    y2d = gemm_bn(patches, w2d, scale, bias, relu=relu, residual=residual_2d)
    if return_2d:
        return y2d, (do, ho, wo)
    return y2d.reshape(n, do, ho, wo, cout)


def basic_block(x, bp, *, stride):
    """BasicBlock.forward: x NCDHW f32 -> NCDHW f32 (eval-mode BN folded)."""
    x_cl = jnp.transpose(x, (0, 2, 3, 4, 1))             # (N, D, H, W, C)
    n, d, h, w, c = x_cl.shape

    # conv1 -> bn1 -> relu   (k=3, padding=2, dilation=2, stride=stride)
    out = conv3d_bn_cl(x_cl, bp['conv1_w'], bp['bn1_s'], bp['bn1_b'],
                       stride=stride, dilation=2, padding=2, relu=True)

    # residual branch, already in (M, Cout) channels-last form for fusion
    if 'ds_w' in bp:
        # downsample: 1x1x1 conv, stride=2 (hard-coded in the reference), + BN
        res2d, ds_dims = conv3d_bn_cl(x_cl, bp['ds_w'], bp['ds_s'], bp['ds_b'],
                                      stride=2, dilation=1, padding=0,
                                      relu=False, return_2d=True)
        assert ds_dims == out.shape[1:4], (ds_dims, out.shape)
    else:
        res2d = x_cl.reshape(n * d * h * w, c)            # identity

    # conv2 -> bn2 -> (+residual) -> relu, all fused in the GEMM epilogue
    out = conv3d_bn_cl(out, bp['conv2_w'], bp['bn2_s'], bp['bn2_b'],
                       stride=1, dilation=2, padding=2, relu=True,
                       residual_2d=res2d)
    return jnp.transpose(out, (0, 4, 1, 2, 3))            # back to NCDHW


def init_block_params(key, chn_in, chn_out, downsample):
    keys = jax.random.split(key, 12)
    it = iter(keys)

    def conv_w(cout, cin, k):
        fan_in = cin * k ** 3
        return jax.random.normal(next(it), (cout, cin, k, k, k),
                                 jnp.float32) / (fan_in ** 0.5)

    def bn(cn):  # eval-mode BatchNorm folded into per-channel scale / bias
        s = 1.0 + 0.1 * jax.random.normal(next(it), (cn,), jnp.float32)
        b = 0.05 * jax.random.normal(next(it), (cn,), jnp.float32)
        return s, b

    p = {'conv1_w': conv_w(chn_out, chn_in, 3)}
    p['bn1_s'], p['bn1_b'] = bn(chn_out)
    p['conv2_w'] = conv_w(chn_out, chn_out, 3)
    p['bn2_s'], p['bn2_b'] = bn(chn_out)
    if downsample:
        p['ds_w'] = conv_w(chn_out, chn_in, 1)
        p['ds_s'], p['ds_b'] = bn(chn_out)
    return p


if __name__ == "__main__":
    key = jax.random.PRNGKey(0)
    kx, ka, kb = jax.random.split(key, 3)

    N, C_IN, C_OUT, D, H, W = 2, 16, 32, 16, 16, 16
    x = jax.random.normal(kx, (N, C_IN, D, H, W), jnp.float32)

    params_a = init_block_params(ka, C_IN, C_OUT, downsample=True)    # stride=2 + 1x1 downsample
    params_b = init_block_params(kb, C_OUT, C_OUT, downsample=False)  # stride=1, identity residual

    @jax.jit
    def fwd(xin, pa, pb):
        y = basic_block(xin, pa, stride=2)
        y = basic_block(y, pb, stride=1)
        return y

    out = jax.block_until_ready(fwd(x, params_a, params_b))

    assert out.shape == (N, C_OUT, 8, 8, 8), out.shape
    assert out.dtype == jnp.float32
    assert bool(jnp.all(jnp.isfinite(out)))
    assert bool(jnp.all(out >= 0.0))          # final ReLU invariant
    print("KERNEL_OK")
</pallas_src>

<mosaic_0001>
module attributes {stable_mosaic.version = 11 : i64} {
  func.func @_gemm_bn_kernel(%arg0: i32, %arg1: i32, %arg2: i32, %arg3: memref<512x512xbf16, #tpu.memory_space<vmem>>, %arg4: memref<512x128xbf16, #tpu.memory_space<vmem>>, %arg5: memref<1x128xf32, #tpu.memory_space<vmem>>, %arg6: memref<1x128xf32, #tpu.memory_space<vmem>>, %arg7: memref<512x128xf32, #tpu.memory_space<vmem>>, %arg8: memref<512x128xf32, #tpu.memory_space<vmem>>) attributes {dimension_semantics = [#tpu.dimension_semantics<parallel>, #tpu.dimension_semantics<parallel>, #tpu.dimension_semantics<arbitrary>], iteration_bounds = array<i64: 2, 1, 1>, scalar_prefetch = 0 : i64, scratch_operands = 1 : i64, tpu.core_type = #tpu.core_type<tc>, window_params = [{transform_indices = @transform_0, window_bounds = array<i64: 512, 512>}, {transform_indices = @transform_1, window_bounds = array<i64: 512, 128>}, {transform_indices = @transform_2, window_bounds = array<i64: 1, 128>}, {transform_indices = @transform_3, window_bounds = array<i64: 1, 128>}, {transform_indices = @transform_4, window_bounds = array<i64: 512, 128>}]} {
    %c0_i32 = arith.constant 0 : i32
    %0 = arith.cmpi eq, %arg2, %c0_i32 : i32
    %1 = arith.extui %0 : i1 to i32
    %c0_i32_0 = arith.constant 0 : i32
    %2 = arith.cmpi ne, %1, %c0_i32_0 : i32
    scf.if %2 {
      %cst_10 = arith.constant 0.000000e+00 : f32
      %12 = vector.broadcast %cst_10 : f32 to vector<512x128xf32>
      %c0_11 = arith.constant 0 : index
      %c0_12 = arith.constant 0 : index
      %13 = vector.load %arg8[%c0_11, %c0_12] : memref<512x128xf32, #tpu.memory_space<vmem>>, vector<512x128xf32>
      tpu.vector_store %arg8[%c0_11, %c0_12], %12 {strides = array<i32>} : memref<512x128xf32, #tpu.memory_space<vmem>>, vector<512x128xf32>,
    } else {
    }
    %c0 = arith.constant 0 : index
    %c0_1 = arith.constant 0 : index
    %3 = vector.load %arg8[%c0, %c0_1] : memref<512x128xf32, #tpu.memory_space<vmem>>, vector<512x128xf32>
    %c0_2 = arith.constant 0 : index
    %c0_3 = arith.constant 0 : index
    %4 = vector.load %arg3[%c0_2, %c0_3] : memref<512x512xbf16, #tpu.memory_space<vmem>>, vector<512x512xbf16>
    %c0_4 = arith.constant 0 : index
    %c0_5 = arith.constant 0 : index
    %5 = vector.load %arg4[%c0_4, %c0_5] : memref<512x128xbf16, #tpu.memory_space<vmem>>, vector<512x128xbf16>
    %cst = arith.constant dense<0.000000e+00> : vector<512x128xf32>
    %6 = tpu.matmul %4, %5, %cst {dimension_numbers = #tpu.dot_dimension_numbers<[1], [0], [0], [1], [0, 0, 1, 1], [], []>} : vector<512x512xbf16>, vector<512x128xbf16>, vector<512x128xf32> -> vector<512x128xf32>
    %7 = arith.addf %3, %6 : vector<512x128xf32>
    %c0_6 = arith.constant 0 : index
    %c0_7 = arith.constant 0 : index
    %8 = vector.load %arg8[%c0_6, %c0_7] : memref<512x128xf32, #tpu.memory_space<vmem>>, vector<512x128xf32>
    tpu.vector_store %arg8[%c0_6, %c0_7], %7 {strides = array<i32>} : memref<512x128xf32, #tpu.memory_space<vmem>>, vector<512x128xf32>,
    %c0_i32_8 = arith.constant 0 : i32
    %9 = arith.cmpi eq, %arg2, %c0_i32_8 : i32
    %10 = arith.extui %9 : i1 to i32
    %c0_i32_9 = arith.constant 0 : i32
    %11 = arith.cmpi ne, %10, %c0_i32_9 : i32
    scf.if %11 {
      %c0_10 = arith.constant 0 : index
      %c0_11 = arith.constant 0 : index
      %12 = vector.load %arg8[%c0_10, %c0_11] : memref<512x128xf32, #tpu.memory_space<vmem>>, vector<512x128xf32>
      %c0_12 = arith.constant 0 : index
      %c0_13 = arith.constant 0 : index
      %13 = vector.load %arg5[%c0_12, %c0_13] : memref<1x128xf32, #tpu.memory_space<vmem>>, vector<1x128xf32>
      %14 = vector.broadcast %13 : vector<1x128xf32> to vector<512x128xf32>
      %15 = arith.mulf %12, %14 : vector<512x128xf32>
      %c0_14 = arith.constant 0 : index
      %c0_15 = arith.constant 0 : index
      %16 = vector.load %arg6[%c0_14, %c0_15] : memref<1x128xf32, #tpu.memory_space<vmem>>, vector<1x128xf32>
      %17 = vector.broadcast %16 : vector<1x128xf32> to vector<512x128xf32>
      %18 = arith.addf %15, %17 : vector<512x128xf32>
      %cst_16 = arith.constant 0.000000e+00 : f32
      %19 = vector.broadcast %cst_16 : f32 to vector<512x128xf32>
      %20 = arith.maximumf %18, %19 : vector<512x128xf32>
      %c0_17 = arith.constant 0 : index
      %c0_18 = arith.constant 0 : index
      %21 = vector.load %arg7[%c0_17, %c0_18] : memref<512x128xf32, #tpu.memory_space<vmem>>, vector<512x128xf32>
      tpu.vector_store %arg7[%c0_17, %c0_18], %20 {strides = array<i32>} : memref<512x128xf32, #tpu.memory_space<vmem>>, vector<512x128xf32>,
    } else {
    }
    return
  }
  func.func @transform_0(%arg0: i32, %arg1: i32, %arg2: i32) -> (i32, i32) {
    %c0_i32 = arith.constant 0 : i32
    return %arg0, %arg2 : i32, i32
  }
  func.func @transform_1(%arg0: i32, %arg1: i32, %arg2: i32) -> (i32, i32) {
    %c0_i32 = arith.constant 0 : i32
    return %arg2, %arg1 : i32, i32
  }
  func.func @transform_2(%arg0: i32, %arg1: i32, %arg2: i32) -> (i32, i32) {
    %c0_i32 = arith.constant 0 : i32
    %c0_i32_0 = arith.constant 0 : i32
    return %c0_i32, %arg1 : i32, i32
  }
  func.func @transform_3(%arg0: i32, %arg1: i32, %arg2: i32) -> (i32, i32) {
    %c0_i32 = arith.constant 0 : i32
    %c0_i32_0 = arith.constant 0 : i32
    return %c0_i32, %arg1 : i32, i32
  }
  func.func @transform_4(%arg0: i32, %arg1: i32, %arg2: i32) -> (i32, i32) {
    %c0_i32 = arith.constant 0 : i32
    return %arg0, %arg1 : i32, i32
  }
}

module attributes {stable_mosaic.version = 11 : i64} {
  func.func @_gemm_bn_kernel(%arg0: i32, %arg1: i32, %arg2: i32, %arg3: memref<512x128xbf16, #tpu.memory_space<vmem>>, %arg4: memref<128x128xbf16, #tpu.memory_space<vmem>>, %arg5: memref<1x128xf32, #tpu.memory_space<vmem>>, %arg6: memref<1x128xf32, #tpu.memory_space<vmem>>, %arg7: memref<512x128xf32, #tpu.memory_space<vmem>>, %arg8: memref<512x128xf32, #tpu.memory_space<vmem>>) attributes {dimension_semantics = [#tpu.dimension_semantics<parallel>, #tpu.dimension_semantics<parallel>, #tpu.dimension_semantics<arbitrary>], iteration_bounds = array<i64: 2, 1, 1>, scalar_prefetch = 0 : i64, scratch_operands = 1 : i64, tpu.core_type = #tpu.core_type<tc>, window_params = [{transform_indices = @transform_0, window_bounds = array<i64: 512, 128>}, {transform_indices = @transform_1, window_bounds = array<i64: 128, 128>}, {transform_indices = @transform_2, window_bounds = array<i64: 1, 128>}, {transform_indices = @transform_3, window_bounds = array<i64: 1, 128>}, {transform_indices = @transform_4, window_bounds = array<i64: 512, 128>}]} {
    %c0_i32 = arith.constant 0 : i32
    %0 = arith.cmpi eq, %arg2, %c0_i32 : i32
    %1 = arith.extui %0 : i1 to i32
    %c0_i32_0 = arith.constant 0 : i32
    %2 = arith.cmpi ne, %1, %c0_i32_0 : i32
    scf.if %2 {
      %cst_10 = arith.constant 0.000000e+00 : f32
      %12 = vector.broadcast %cst_10 : f32 to vector<512x128xf32>
      %c0_11 = arith.constant 0 : index
      %c0_12 = arith.constant 0 : index
      %13 = vector.load %arg8[%c0_11, %c0_12] : memref<512x128xf32, #tpu.memory_space<vmem>>, vector<512x128xf32>
      tpu.vector_store %arg8[%c0_11, %c0_12], %12 {strides = array<i32>} : memref<512x128xf32, #tpu.memory_space<vmem>>, vector<512x128xf32>,
    } else {
    }
    %c0 = arith.constant 0 : index
    %c0_1 = arith.constant 0 : index
    %3 = vector.load %arg8[%c0, %c0_1] : memref<512x128xf32, #tpu.memory_space<vmem>>, vector<512x128xf32>
    %c0_2 = arith.constant 0 : index
    %c0_3 = arith.constant 0 : index
    %4 = vector.load %arg3[%c0_2, %c0_3] : memref<512x128xbf16, #tpu.memory_space<vmem>>, vector<512x128xbf16>
    %c0_4 = arith.constant 0 : index
    %c0_5 = arith.constant 0 : index
    %5 = vector.load %arg4[%c0_4, %c0_5] : memref<128x128xbf16, #tpu.memory_space<vmem>>, vector<128x128xbf16>
    %cst = arith.constant dense<0.000000e+00> : vector<512x128xf32>
    %6 = tpu.matmul %4, %5, %cst {dimension_numbers = #tpu.dot_dimension_numbers<[1], [0], [0], [1], [0, 0, 1, 1], [], []>} : vector<512x128xbf16>, vector<128x128xbf16>, vector<512x128xf32> -> vector<512x128xf32>
    %7 = arith.addf %3, %6 : vector<512x128xf32>
    %c0_6 = arith.constant 0 : index
    %c0_7 = arith.constant 0 : index
    %8 = vector.load %arg8[%c0_6, %c0_7] : memref<512x128xf32, #tpu.memory_space<vmem>>, vector<512x128xf32>
    tpu.vector_store %arg8[%c0_6, %c0_7], %7 {strides = array<i32>} : memref<512x128xf32, #tpu.memory_space<vmem>>, vector<512x128xf32>,
    %c0_i32_8 = arith.constant 0 : i32
    %9 = arith.cmpi eq, %arg2, %c0_i32_8 : i32
    %10 = arith.extui %9 : i1 to i32
    %c0_i32_9 = arith.constant 0 : i32
    %11 = arith.cmpi ne, %10, %c0_i32_9 : i32
    scf.if %11 {
      %c0_10 = arith.constant 0 : index
      %c0_11 = arith.constant 0 : index
      %12 = vector.load %arg8[%c0_10, %c0_11] : memref<512x128xf32, #tpu.memory_space<vmem>>, vector<512x128xf32>
      %c0_12 = arith.constant 0 : index
      %c0_13 = arith.constant 0 : index
      %13 = vector.load %arg5[%c0_12, %c0_13] : memref<1x128xf32, #tpu.memory_space<vmem>>, vector<1x128xf32>
      %14 = vector.broadcast %13 : vector<1x128xf32> to vector<512x128xf32>
      %15 = arith.mulf %12, %14 : vector<512x128xf32>
      %c0_14 = arith.constant 0 : index
      %c0_15 = arith.constant 0 : index
      %16 = vector.load %arg6[%c0_14, %c0_15] : memref<1x128xf32, #tpu.memory_space<vmem>>, vector<1x128xf32>
      %17 = vector.broadcast %16 : vector<1x128xf32> to vector<512x128xf32>
      %18 = arith.addf %15, %17 : vector<512x128xf32>
      %c0_16 = arith.constant 0 : index
      %c0_17 = arith.constant 0 : index
      %19 = vector.load %arg7[%c0_16, %c0_17] : memref<512x128xf32, #tpu.memory_space<vmem>>, vector<512x128xf32>
      tpu.vector_store %arg7[%c0_16, %c0_17], %18 {strides = array<i32>} : memref<512x128xf32, #tpu.memory_space<vmem>>, vector<512x128xf32>,
    } else {
    }
    return
  }
  func.func @transform_0(%arg0: i32, %arg1: i32, %arg2: i32) -> (i32, i32) {
    %c0_i32 = arith.constant 0 : i32
    return %arg0, %arg2 : i32, i32
  }
  func.func @transform_1(%arg0: i32, %arg1: i32, %arg2: i32) -> (i32, i32) {
    %c0_i32 = arith.constant 0 : i32
    return %arg2, %arg1 : i32, i32
  }
  func.func @transform_2(%arg0: i32, %arg1: i32, %arg2: i32) -> (i32, i32) {
    %c0_i32 = arith.constant 0 : i32
    %c0_i32_0 = arith.constant 0 : i32
    return %c0_i32, %arg1 : i32, i32
  }
  func.func @transform_3(%arg0: i32, %arg1: i32, %arg2: i32) -> (i32, i32) {
    %c0_i32 = arith.constant 0 : i32
    %c0_i32_0 = arith.constant 0 : i32
    return %c0_i32, %arg1 : i32, i32
  }
  func.func @transform_4(%arg0: i32, %arg1: i32, %arg2: i32) -> (i32, i32) {
    %c0_i32 = arith.constant 0 : i32
    return %arg0, %arg1 : i32, i32
  }
}

module attributes {stable_mosaic.version = 11 : i64} {
  func.func @_gemm_bn_kernel(%arg0: i32, %arg1: i32, %arg2: i32, %arg3: memref<512x896xbf16, #tpu.memory_space<vmem>>, %arg4: memref<896x128xbf16, #tpu.memory_space<vmem>>, %arg5: memref<1x128xf32, #tpu.memory_space<vmem>>, %arg6: memref<1x128xf32, #tpu.memory_space<vmem>>, %arg7: memref<512x128xf32, #tpu.memory_space<vmem>>, %arg8: memref<512x128xf32, #tpu.memory_space<vmem>>, %arg9: memref<512x128xf32, #tpu.memory_space<vmem>>) attributes {dimension_semantics = [#tpu.dimension_semantics<parallel>, #tpu.dimension_semantics<parallel>, #tpu.dimension_semantics<arbitrary>], iteration_bounds = array<i64: 2, 1, 1>, scalar_prefetch = 0 : i64, scratch_operands = 1 : i64, tpu.core_type = #tpu.core_type<tc>, window_params = [{transform_indices = @transform_0, window_bounds = array<i64: 512, 896>}, {transform_indices = @transform_1, window_bounds = array<i64: 896, 128>}, {transform_indices = @transform_2, window_bounds = array<i64: 1, 128>}, {transform_indices = @transform_3, window_bounds = array<i64: 1, 128>}, {transform_indices = @transform_4, window_bounds = array<i64: 512, 128>}, {transform_indices = @transform_5, window_bounds = array<i64: 512, 128>}]} {
    %c0_i32 = arith.constant 0 : i32
    %0 = arith.cmpi eq, %arg2, %c0_i32 : i32
    %1 = arith.extui %0 : i1 to i32
    %c0_i32_0 = arith.constant 0 : i32
    %2 = arith.cmpi ne, %1, %c0_i32_0 : i32
    scf.if %2 {
      %cst_10 = arith.constant 0.000000e+00 : f32
      %12 = vector.broadcast %cst_10 : f32 to vector<512x128xf32>
      %c0_11 = arith.constant 0 : index
      %c0_12 = arith.constant 0 : index
      %13 = vector.load %arg9[%c0_11, %c0_12] : memref<512x128xf32, #tpu.memory_space<vmem>>, vector<512x128xf32>
      tpu.vector_store %arg9[%c0_11, %c0_12], %12 {strides = array<i32>} : memref<512x128xf32, #tpu.memory_space<vmem>>, vector<512x128xf32>,
    } else {
    }
    %c0 = arith.constant 0 : index
    %c0_1 = arith.constant 0 : index
    %3 = vector.load %arg9[%c0, %c0_1] : memref<512x128xf32, #tpu.memory_space<vmem>>, vector<512x128xf32>
    %c0_2 = arith.constant 0 : index
    %c0_3 = arith.constant 0 : index
    %4 = vector.load %arg3[%c0_2, %c0_3] : memref<512x896xbf16, #tpu.memory_space<vmem>>, vector<512x896xbf16>
    %c0_4 = arith.constant 0 : index
    %c0_5 = arith.constant 0 : index
    %5 = vector.load %arg4[%c0_4, %c0_5] : memref<896x128xbf16, #tpu.memory_space<vmem>>, vector<896x128xbf16>
    %cst = arith.constant dense<0.000000e+00> : vector<512x128xf32>
    %6 = tpu.matmul %4, %5, %cst {dimension_numbers = #tpu.dot_dimension_numbers<[1], [0], [0], [1], [0, 0, 1, 1], [], []>} : vector<512x896xbf16>, vector<896x128xbf16>, vector<512x128xf32> -> vector<512x128xf32>
    %7 = arith.addf %3, %6 : vector<512x128xf32>
    %c0_6 = arith.constant 0 : index
    %c0_7 = arith.constant 0 : index
    %8 = vector.load %arg9[%c0_6, %c0_7] : memref<512x128xf32, #tpu.memory_space<vmem>>, vector<512x128xf32>
    tpu.vector_store %arg9[%c0_6, %c0_7], %7 {strides = array<i32>} : memref<512x128xf32, #tpu.memory_space<vmem>>, vector<512x128xf32>,
    %c0_i32_8 = arith.constant 0 : i32
    %9 = arith.cmpi eq, %arg2, %c0_i32_8 : i32
    %10 = arith.extui %9 : i1 to i32
    %c0_i32_9 = arith.constant 0 : i32
    %11 = arith.cmpi ne, %10, %c0_i32_9 : i32
    scf.if %11 {
      %c0_10 = arith.constant 0 : index
      %c0_11 = arith.constant 0 : index
      %12 = vector.load %arg9[%c0_10, %c0_11] : memref<512x128xf32, #tpu.memory_space<vmem>>, vector<512x128xf32>
      %c0_12 = arith.constant 0 : index
      %c0_13 = arith.constant 0 : index
      %13 = vector.load %arg5[%c0_12, %c0_13] : memref<1x128xf32, #tpu.memory_space<vmem>>, vector<1x128xf32>
      %14 = vector.broadcast %13 : vector<1x128xf32> to vector<512x128xf32>
      %15 = arith.mulf %12, %14 : vector<512x128xf32>
      %c0_14 = arith.constant 0 : index
      %c0_15 = arith.constant 0 : index
      %16 = vector.load %arg6[%c0_14, %c0_15] : memref<1x128xf32, #tpu.memory_space<vmem>>, vector<1x128xf32>
      %17 = vector.broadcast %16 : vector<1x128xf32> to vector<512x128xf32>
      %18 = arith.addf %15, %17 : vector<512x128xf32>
      %c0_16 = arith.constant 0 : index
      %c0_17 = arith.constant 0 : index
      %19 = vector.load %arg7[%c0_16, %c0_17] : memref<512x128xf32, #tpu.memory_space<vmem>>, vector<512x128xf32>
      %20 = arith.addf %18, %19 : vector<512x128xf32>
      %cst_18 = arith.constant 0.000000e+00 : f32
      %21 = vector.broadcast %cst_18 : f32 to vector<512x128xf32>
      %22 = arith.maximumf %20, %21 : vector<512x128xf32>
      %c0_19 = arith.constant 0 : index
      %c0_20 = arith.constant 0 : index
      %23 = vector.load %arg8[%c0_19, %c0_20] : memref<512x128xf32, #tpu.memory_space<vmem>>, vector<512x128xf32>
      tpu.vector_store %arg8[%c0_19, %c0_20], %22 {strides = array<i32>} : memref<512x128xf32, #tpu.memory_space<vmem>>, vector<512x128xf32>,
    } else {
    }
    return
  }
  func.func @transform_0(%arg0: i32, %arg1: i32, %arg2: i32) -> (i32, i32) {
    %c0_i32 = arith.constant 0 : i32
    return %arg0, %arg2 : i32, i32
  }
  func.func @transform_1(%arg0: i32, %arg1: i32, %arg2: i32) -> (i32, i32) {
    %c0_i32 = arith.constant 0 : i32
    return %arg2, %arg1 : i32, i32
  }
  func.func @transform_2(%arg0: i32, %arg1: i32, %arg2: i32) -> (i32, i32) {
    %c0_i32 = arith.constant 0 : i32
    %c0_i32_0 = arith.constant 0 : i32
    return %c0_i32, %arg1 : i32, i32
  }
  func.func @transform_3(%arg0: i32, %arg1: i32, %arg2: i32) -> (i32, i32) {
    %c0_i32 = arith.constant 0 : i32
    %c0_i32_0 = arith.constant 0 : i32
    return %c0_i32, %arg1 : i32, i32
  }
  func.func @transform_4(%arg0: i32, %arg1: i32, %arg2: i32) -> (i32, i32) {
    %c0_i32 = arith.constant 0 : i32
    return %arg0, %arg1 : i32, i32
  }
  func.func @transform_5(%arg0: i32, %arg1: i32, %arg2: i32) -> (i32, i32) {
    %c0_i32 = arith.constant 0 : i32
    return %arg0, %arg1 : i32, i32
  }
}

module attributes {stable_mosaic.version = 11 : i64} {
  func.func @_gemm_bn_kernel(%arg0: i32, %arg1: i32, %arg2: i32, %arg3: memref<512x896xbf16, #tpu.memory_space<vmem>>, %arg4: memref<896x128xbf16, #tpu.memory_space<vmem>>, %arg5: memref<1x128xf32, #tpu.memory_space<vmem>>, %arg6: memref<1x128xf32, #tpu.memory_space<vmem>>, %arg7: memref<512x128xf32, #tpu.memory_space<vmem>>, %arg8: memref<512x128xf32, #tpu.memory_space<vmem>>) attributes {dimension_semantics = [#tpu.dimension_semantics<parallel>, #tpu.dimension_semantics<parallel>, #tpu.dimension_semantics<arbitrary>], iteration_bounds = array<i64: 2, 1, 1>, scalar_prefetch = 0 : i64, scratch_operands = 1 : i64, tpu.core_type = #tpu.core_type<tc>, window_params = [{transform_indices = @transform_0, window_bounds = array<i64: 512, 896>}, {transform_indices = @transform_1, window_bounds = array<i64: 896, 128>}, {transform_indices = @transform_2, window_bounds = array<i64: 1, 128>}, {transform_indices = @transform_3, window_bounds = array<i64: 1, 128>}, {transform_indices = @transform_4, window_bounds = array<i64: 512, 128>}]} {
    %c0_i32 = arith.constant 0 : i32
    %0 = arith.cmpi eq, %arg2, %c0_i32 : i32
    %1 = arith.extui %0 : i1 to i32
    %c0_i32_0 = arith.constant 0 : i32
    %2 = arith.cmpi ne, %1, %c0_i32_0 : i32
    scf.if %2 {
      %cst_10 = arith.constant 0.000000e+00 : f32
      %12 = vector.broadcast %cst_10 : f32 to vector<512x128xf32>
      %c0_11 = arith.constant 0 : index
      %c0_12 = arith.constant 0 : index
      %13 = vector.load %arg8[%c0_11, %c0_12] : memref<512x128xf32, #tpu.memory_space<vmem>>, vector<512x128xf32>
      tpu.vector_store %arg8[%c0_11, %c0_12], %12 {strides = array<i32>} : memref<512x128xf32, #tpu.memory_space<vmem>>, vector<512x128xf32>,
    } else {
    }
    %c0 = arith.constant 0 : index
    %c0_1 = arith.constant 0 : index
    %3 = vector.load %arg8[%c0, %c0_1] : memref<512x128xf32, #tpu.memory_space<vmem>>, vector<512x128xf32>
    %c0_2 = arith.constant 0 : index
    %c0_3 = arith.constant 0 : index
    %4 = vector.load %arg3[%c0_2, %c0_3] : memref<512x896xbf16, #tpu.memory_space<vmem>>, vector<512x896xbf16>
    %c0_4 = arith.constant 0 : index
    %c0_5 = arith.constant 0 : index
    %5 = vector.load %arg4[%c0_4, %c0_5] : memref<896x128xbf16, #tpu.memory_space<vmem>>, vector<896x128xbf16>
    %cst = arith.constant dense<0.000000e+00> : vector<512x128xf32>
    %6 = tpu.matmul %4, %5, %cst {dimension_numbers = #tpu.dot_dimension_numbers<[1], [0], [0], [1], [0, 0, 1, 1], [], []>} : vector<512x896xbf16>, vector<896x128xbf16>, vector<512x128xf32> -> vector<512x128xf32>
    %7 = arith.addf %3, %6 : vector<512x128xf32>
    %c0_6 = arith.constant 0 : index
    %c0_7 = arith.constant 0 : index
    %8 = vector.load %arg8[%c0_6, %c0_7] : memref<512x128xf32, #tpu.memory_space<vmem>>, vector<512x128xf32>
    tpu.vector_store %arg8[%c0_6, %c0_7], %7 {strides = array<i32>} : memref<512x128xf32, #tpu.memory_space<vmem>>, vector<512x128xf32>,
    %c0_i32_8 = arith.constant 0 : i32
    %9 = arith.cmpi eq, %arg2, %c0_i32_8 : i32
    %10 = arith.extui %9 : i1 to i32
    %c0_i32_9 = arith.constant 0 : i32
    %11 = arith.cmpi ne, %10, %c0_i32_9 : i32
    scf.if %11 {
      %c0_10 = arith.constant 0 : index
      %c0_11 = arith.constant 0 : index
      %12 = vector.load %arg8[%c0_10, %c0_11] : memref<512x128xf32, #tpu.memory_space<vmem>>, vector<512x128xf32>
      %c0_12 = arith.constant 0 : index
      %c0_13 = arith.constant 0 : index
      %13 = vector.load %arg5[%c0_12, %c0_13] : memref<1x128xf32, #tpu.memory_space<vmem>>, vector<1x128xf32>
      %14 = vector.broadcast %13 : vector<1x128xf32> to vector<512x128xf32>
      %15 = arith.mulf %12, %14 : vector<512x128xf32>
      %c0_14 = arith.constant 0 : index
      %c0_15 = arith.constant 0 : index
      %16 = vector.load %arg6[%c0_14, %c0_15] : memref<1x128xf32, #tpu.memory_space<vmem>>, vector<1x128xf32>
      %17 = vector.broadcast %16 : vector<1x128xf32> to vector<512x128xf32>
      %18 = arith.addf %15, %17 : vector<512x128xf32>
      %cst_16 = arith.constant 0.000000e+00 : f32
      %19 = vector.broadcast %cst_16 : f32 to vector<512x128xf32>
      %20 = arith.maximumf %18, %19 : vector<512x128xf32>
      %c0_17 = arith.constant 0 : index
      %c0_18 = arith.constant 0 : index
      %21 = vector.load %arg7[%c0_17, %c0_18] : memref<512x128xf32, #tpu.memory_space<vmem>>, vector<512x128xf32>
      tpu.vector_store %arg7[%c0_17, %c0_18], %20 {strides = array<i32>} : memref<512x128xf32, #tpu.memory_space<vmem>>, vector<512x128xf32>,
    } else {
    }
    return
  }
  func.func @transform_0(%arg0: i32, %arg1: i32, %arg2: i32) -> (i32, i32) {
    %c0_i32 = arith.constant 0 : i32
    return %arg0, %arg2 : i32, i32
  }
  func.func @transform_1(%arg0: i32, %arg1: i32, %arg2: i32) -> (i32, i32) {
    %c0_i32 = arith.constant 0 : i32
    return %arg2, %arg1 : i32, i32
  }
  func.func @transform_2(%arg0: i32, %arg1: i32, %arg2: i32) -> (i32, i32) {
    %c0_i32 = arith.constant 0 : i32
    %c0_i32_0 = arith.constant 0 : i32
    return %c0_i32, %arg1 : i32, i32
  }
  func.func @transform_3(%arg0: i32, %arg1: i32, %arg2: i32) -> (i32, i32) {
    %c0_i32 = arith.constant 0 : i32
    %c0_i32_0 = arith.constant 0 : i32
    return %c0_i32, %arg1 : i32, i32
  }
  func.func @transform_4(%arg0: i32, %arg1: i32, %arg2: i32) -> (i32, i32) {
    %c0_i32 = arith.constant 0 : i32
    return %arg0, %arg1 : i32, i32
  }
}

module attributes {stable_mosaic.version = 11 : i64} {
  func.func @_gemm_bn_kernel(%arg0: i32, %arg1: i32, %arg2: i32, %arg3: memref<512x896xbf16, #tpu.memory_space<vmem>>, %arg4: memref<896x128xbf16, #tpu.memory_space<vmem>>, %arg5: memref<1x128xf32, #tpu.memory_space<vmem>>, %arg6: memref<1x128xf32, #tpu.memory_space<vmem>>, %arg7: memref<512x128xf32, #tpu.memory_space<vmem>>, %arg8: memref<512x128xf32, #tpu.memory_space<vmem>>, %arg9: memref<512x128xf32, #tpu.memory_space<vmem>>) attributes {dimension_semantics = [#tpu.dimension_semantics<parallel>, #tpu.dimension_semantics<parallel>, #tpu.dimension_semantics<arbitrary>], iteration_bounds = array<i64: 2, 1, 1>, scalar_prefetch = 0 : i64, scratch_operands = 1 : i64, tpu.core_type = #tpu.core_type<tc>, window_params = [{transform_indices = @transform_0, window_bounds = array<i64: 512, 896>}, {transform_indices = @transform_1, window_bounds = array<i64: 896, 128>}, {transform_indices = @transform_2, window_bounds = array<i64: 1, 128>}, {transform_indices = @transform_3, window_bounds = array<i64: 1, 128>}, {transform_indices = @transform_4, window_bounds = array<i64: 512, 128>}, {transform_indices = @transform_5, window_bounds = array<i64: 512, 128>}]} {
    %c0_i32 = arith.constant 0 : i32
    %0 = arith.cmpi eq, %arg2, %c0_i32 : i32
    %1 = arith.extui %0 : i1 to i32
    %c0_i32_0 = arith.constant 0 : i32
    %2 = arith.cmpi ne, %1, %c0_i32_0 : i32
    scf.if %2 {
      %cst_10 = arith.constant 0.000000e+00 : f32
      %12 = vector.broadcast %cst_10 : f32 to vector<512x128xf32>
      %c0_11 = arith.constant 0 : index
      %c0_12 = arith.constant 0 : index
      %13 = vector.load %arg9[%c0_11, %c0_12] : memref<512x128xf32, #tpu.memory_space<vmem>>, vector<512x128xf32>
      tpu.vector_store %arg9[%c0_11, %c0_12], %12 {strides = array<i32>} : memref<512x128xf32, #tpu.memory_space<vmem>>, vector<512x128xf32>,
    } else {
    }
    %c0 = arith.constant 0 : index
    %c0_1 = arith.constant 0 : index
    %3 = vector.load %arg9[%c0, %c0_1] : memref<512x128xf32, #tpu.memory_space<vmem>>, vector<512x128xf32>
    %c0_2 = arith.constant 0 : index
    %c0_3 = arith.constant 0 : index
    %4 = vector.load %arg3[%c0_2, %c0_3] : memref<512x896xbf16, #tpu.memory_space<vmem>>, vector<512x896xbf16>
    %c0_4 = arith.constant 0 : index
    %c0_5 = arith.constant 0 : index
    %5 = vector.load %arg4[%c0_4, %c0_5] : memref<896x128xbf16, #tpu.memory_space<vmem>>, vector<896x128xbf16>
    %cst = arith.constant dense<0.000000e+00> : vector<512x128xf32>
    %6 = tpu.matmul %4, %5, %cst {dimension_numbers = #tpu.dot_dimension_numbers<[1], [0], [0], [1], [0, 0, 1, 1], [], []>} : vector<512x896xbf16>, vector<896x128xbf16>, vector<512x128xf32> -> vector<512x128xf32>
    %7 = arith.addf %3, %6 : vector<512x128xf32>
    %c0_6 = arith.constant 0 : index
    %c0_7 = arith.constant 0 : index
    %8 = vector.load %arg9[%c0_6, %c0_7] : memref<512x128xf32, #tpu.memory_space<vmem>>, vector<512x128xf32>
    tpu.vector_store %arg9[%c0_6, %c0_7], %7 {strides = array<i32>} : memref<512x128xf32, #tpu.memory_space<vmem>>, vector<512x128xf32>,
    %c0_i32_8 = arith.constant 0 : i32
    %9 = arith.cmpi eq, %arg2, %c0_i32_8 : i32
    %10 = arith.extui %9 : i1 to i32
    %c0_i32_9 = arith.constant 0 : i32
    %11 = arith.cmpi ne, %10, %c0_i32_9 : i32
    scf.if %11 {
      %c0_10 = arith.constant 0 : index
      %c0_11 = arith.constant 0 : index
      %12 = vector.load %arg9[%c0_10, %c0_11] : memref<512x128xf32, #tpu.memory_space<vmem>>, vector<512x128xf32>
      %c0_12 = arith.constant 0 : index
      %c0_13 = arith.constant 0 : index
      %13 = vector.load %arg5[%c0_12, %c0_13] : memref<1x128xf32, #tpu.memory_space<vmem>>, vector<1x128xf32>
      %14 = vector.broadcast %13 : vector<1x128xf32> to vector<512x128xf32>
      %15 = arith.mulf %12, %14 : vector<512x128xf32>
      %c0_14 = arith.constant 0 : index
      %c0_15 = arith.constant 0 : index
      %16 = vector.load %arg6[%c0_14, %c0_15] : memref<1x128xf32, #tpu.memory_space<vmem>>, vector<1x128xf32>
      %17 = vector.broadcast %16 : vector<1x128xf32> to vector<512x128xf32>
      %18 = arith.addf %15, %17 : vector<512x128xf32>
      %c0_16 = arith.constant 0 : index
      %c0_17 = arith.constant 0 : index
      %19 = vector.load %arg7[%c0_16, %c0_17] : memref<512x128xf32, #tpu.memory_space<vmem>>, vector<512x128xf32>
      %20 = arith.addf %18, %19 : vector<512x128xf32>
      %cst_18 = arith.constant 0.000000e+00 : f32
      %21 = vector.broadcast %cst_18 : f32 to vector<512x128xf32>
      %22 = arith.maximumf %20, %21 : vector<512x128xf32>
      %c0_19 = arith.constant 0 : index
      %c0_20 = arith.constant 0 : index
      %23 = vector.load %arg8[%c0_19, %c0_20] : memref<512x128xf32, #tpu.memory_space<vmem>>, vector<512x128xf32>
      tpu.vector_store %arg8[%c0_19, %c0_20], %22 {strides = array<i32>} : memref<512x128xf32, #tpu.memory_space<vmem>>, vector<512x128xf32>,
    } else {
    }
    return
  }
  func.func @transform_0(%arg0: i32, %arg1: i32, %arg2: i32) -> (i32, i32) {
    %c0_i32 = arith.constant 0 : i32
    return %arg0, %arg2 : i32, i32
  }
  func.func @transform_1(%arg0: i32, %arg1: i32, %arg2: i32) -> (i32, i32) {
    %c0_i32 = arith.constant 0 : i32
    return %arg2, %arg1 : i32, i32
  }
  func.func @transform_2(%arg0: i32, %arg1: i32, %arg2: i32) -> (i32, i32) {
    %c0_i32 = arith.constant 0 : i32
    %c0_i32_0 = arith.constant 0 : i32
    return %c0_i32, %arg1 : i32, i32
  }
  func.func @transform_3(%arg0: i32, %arg1: i32, %arg2: i32) -> (i32, i32) {
    %c0_i32 = arith.constant 0 : i32
    %c0_i32_0 = arith.constant 0 : i32
    return %c0_i32, %arg1 : i32, i32
  }
  func.func @transform_4(%arg0: i32, %arg1: i32, %arg2: i32) -> (i32, i32) {
    %c0_i32 = arith.constant 0 : i32
    return %arg0, %arg1 : i32, i32
  }
  func.func @transform_5(%arg0: i32, %arg1: i32, %arg2: i32) -> (i32, i32) {
    %c0_i32 = arith.constant 0 : i32
    return %arg0, %arg1 : i32, i32
  }
}

</mosaic_0001>

<bundles_post_ra>
// kernel: fwd.5
= control target key start
LH: loop header
LB: loop body
LE: loop exit
PB: predicated region body
PF: predicated region fallthrough
CT: control target
= control target key end

     0   :  { %s3177_s15 = smov 0   ;;  %s3179_s16 = smov 0   ;;  %s3689_s0 = inlined_call_operand.vmem [shape: bf16[1024,512], index: 0, kind: input, shape index: {}]   ;;  %s3690_s1 = inlined_call_operand.vmem [shape: bf16[512,128], index: 1, kind: input, shape index: {}]   ;;  %s3691_s2 = inlined_call_operand.vmem [shape: f32[1,128], index: 2, kind: input, shape index: {}]   ;;  %s3692_s3 = inlined_call_operand.vmem [shape: f32[1,128], index: 3, kind: input, shape index: {}]   ;;  %s3693_s4 = inlined_call_operand.vmem [shape: f32[1024,128], index: 4, kind: output, shape index: {}]  }
   0x1   :  { %s3181_s17 = smov 0  }
   0x2 LB: > { %s33_s18 = sadd.s32 1, %s3145_s16  ;;  %p2641_p0 = scmp.ge.s32.totalorder %s3149_s17, 1  ;;  %s3149_s17 = sphi %s3181_s17, %s14_s17   ;;  %s3145_s16 = sphi %s3179_s16, %s3695_s16   ;;  %s3141_s15 = sphi %s3177_s15, %s3694_s15  }
   0x3   : > { %p35_p1 = scmp.ge.s32.totalorder %s33_s18, 2  ;;  %p224_p2 = scmp.lt.s32.totalorder %s3149_s17, 3 }
   0x5   : > { %s3697_s18 = smov (%p35_p1, %s33_s18), 0  ;;  %p225_p3 = pnand %p2641_p0, %p224_p2 }
   0x6   : > { %v2901_v0 = vld [vmem:[%s3690_s1] sm:$0xff] (!%p225_p3)   ;;  %v3151_v1 = vmov (!%p225_p3), 0   ;;  %v2903_v3 = vld [vmem:[%s3690_s1 + $0x8] sm:$0xff] (!%p225_p3)   ;;  %v2905_v5 = vld [vmem:[%s3690_s1 + $0x10] sm:$0xff] (!%p225_p3)   ;;  %s2642_s13 = sshll.u32 (!%p225_p3), %s3141_s15, 6 }
   0x7   : > { %228 = sbr.rel (%p225_p3) target bundleno = 542 (0x21e), region = 36  ;;  %1465 = vmatprep.subr.bf16.mxu1 (!%p225_p3), %v3151_v1  ;;  %1754 = vmatprep.subr.bf16.mxu0 (!%p225_p3), %v3151_v1  ;;  %v2902_v2 = vld [vmem:[%s3690_s1 + $0x80] sm:$0xff] (!%p225_p3)   ;;  %v2904_v4 = vld [vmem:[%s3690_s1 + $0x88] sm:$0xff] (!%p225_p3)   ;;  %v2906_v6 = vld [vmem:[%s3690_s1 + $0x90] sm:$0xff] (!%p225_p3)   ;;  %p274_p4 = scmp.lt.s32.totalorder (!%p225_p3), %s2642_s13, 127 }
   0x8   : > { %1466 = vmatpush1.bf16.msra.mxu1 (!%p225_p3), %v2901_v0  ;;  %1755 = vmatpush1.bf16.msra.mxu0 (!%p225_p3), %v2902_v2  ;;  %v2907_v7 = vld [vmem:[%s3690_s1 + $0x18] sm:$0xff] (!%p225_p3)   ;;  %v2909_v9 = vld [vmem:[%s3690_s1 + $0x20] sm:$0xff] (!%p225_p3)   ;;  %v2911_v11 = vld [vmem:[%s3690_s1 + $0x28] sm:$0xff] (!%p225_p3)  }
   0x9   : > { %1467 = vmatprep.subr.bf16.mxu1 (!%p225_p3), %v3151_v1  ;;  %1756 = vmatprep.subr.bf16.mxu0 (!%p225_p3), %v3151_v1  ;;  %v2908_v8 = vld [vmem:[%s3690_s1 + $0x98] sm:$0xff] (!%p225_p3)   ;;  %v2910_v10 = vld [vmem:[%s3690_s1 + $0xa0] sm:$0xff] (!%p225_p3)   ;;  %v2912_v12 = vld [vmem:[%s3690_s1 + $0xa8] sm:$0xff] (!%p225_p3)  }
   0xa   : > { %v2913_v13 = vld [vmem:[%s3690_s1 + $0x30] sm:$0xff] (!%p225_p3)   ;;  %v2915_v15 = vld [vmem:[%s3690_s1 + $0x38] sm:$0xff] (!%p225_p3)   ;;  %v2917_v17 = vld [vmem:[%s3690_s1 + $0x40] sm:$0xff] (!%p225_p3)  }
   0xb   : > { %v2914_v14 = vld [vmem:[%s3690_s1 + $0xb0] sm:$0xff] (!%p225_p3)   ;;  %v2916_v16 = vld [vmem:[%s3690_s1 + $0xb8] sm:$0xff] (!%p225_p3)   ;;  %v2918_v18 = vld [vmem:[%s3690_s1 + $0xc0] sm:$0xff] (!%p225_p3)  }
   0xc   : > { %1468 = vmatpush1.bf16.msra.mxu1 (!%p225_p3), %v2903_v3  ;;  %1757 = vmatpush1.bf16.msra.mxu0 (!%p225_p3), %v2904_v4  ;;  %v2919_v20 = vld [vmem:[%s3690_s1 + $0x48] sm:$0xff] (!%p225_p3)   ;;  %v2921_v23 = vld [vmem:[%s3690_s1 + $0x50] sm:$0xff] (!%p225_p3)   ;;  %v2923_v25 = vld [vmem:[%s3690_s1 + $0x58] sm:$0xff] (!%p225_p3)  }
   0xd   : > { %1469 = vmatprep.subr.bf16.mxu1 (!%p225_p3), %v3151_v1  ;;  %1758 = vmatprep.subr.bf16.mxu0 (!%p225_p3), %v3151_v1  ;;  %v2920_v22 = vld [vmem:[%s3690_s1 + $0xc8] sm:$0xff] (!%p225_p3)   ;;  %v2922_v24 = vld [vmem:[%s3690_s1 + $0xd0] sm:$0xff] (!%p225_p3)   ;;  %v2924_v26 = vld [vmem:[%s3690_s1 + $0xd8] sm:$0xff] (!%p225_p3)  }
   0xe   : > { %s3699_s13 = smov (!%p274_p4, %s2642_s13), 127  ;;  %v2925_v27 = vld [vmem:[%s3690_s1 + $0x60] sm:$0xff]   ;;  %v2927_v29 = vld [vmem:[%s3690_s1 + $0x68] sm:$0xff]   ;;  %v2929_v31 = vld [vmem:[%s3690_s1 + $0x70] sm:$0xff]  }
   0xf   : > { %s2811_s29 = sshll.u32 %s3699_s13, 4  ;;  %v2926_v28 = vld [vmem:[%s3690_s1 + $0xe0] sm:$0xff]   ;;  %v2928_v30 = vld [vmem:[%s3690_s1 + $0xe8] sm:$0xff]   ;;  %v2930_v32 = vld [vmem:[%s3690_s1 + $0xf0] sm:$0xff]   ;;  %s2646_s26 = sshll.u32 %s3699_s13, 3 }
  0x10   : > { %1470 = vmatpush1.bf16.msra.mxu1 %v2905_v5  ;;  %1759 = vmatpush1.bf16.msra.mxu0 %v2906_v6  ;;  %s3271_s8 = scalar_lea.vmem %s3689_s0, %s2811_s29  ;;  %v2931_v33 = vld [vmem:[%s3690_s1 + $0x78] sm:$0xff]   ;;  %s3465_s29 = scalar_lea.vmem %s3693_s4, %s2646_s26 }
  0x11   : > { %1471 = vmatprep.subr.bf16.mxu1 %v3151_v1  ;;  %1760 = vmatprep.subr.bf16.mxu0 %v3151_v1  ;;  %v2935_v19 = vld [vmem:[%s3271_s8 + $0x4] ss:$16 sps:$4 sm:$0xff]   ;;  %v2938_v21 = vld [vmem:[%s3271_s8 + $0xc] ss:$16 sps:$4 sm:$0xff]   ;;  %v2933_v35 = vld [vmem:[%s3271_s8] ss:$16 sps:$4 sm:$0xff]  }
  0x12   : > { %1497 = vmatprep.mubr.bf16.mxu1 %v2935_v19  ;;  %1786 = vmatprep.mubr.bf16.mxu0 %v2938_v21  ;;  %v2932_v34 = vld [vmem:[%s3690_s1 + $0xf8] sm:$0xff]   ;;  %v2939_v37 = vld [vmem:[%s3271_s8 + $0x24] ss:$16 sps:$4 sm:$0xff]   ;;  %v2943_v39 = vld [vmem:[%s3271_s8 + $0x20] ss:$16 sps:$4 sm:$0xff]  }
  0x13   : > { %v2936_v36 = vld [vmem:[%s3271_s8 + $0x8] ss:$16 sps:$4 sm:$0xff]   ;;  %v2941_v38 = vld [vmem:[%s3271_s8 + $0x2c] ss:$16 sps:$4 sm:$0xff]   ;;  %v2945_v41 = vld [vmem:[%s3271_s8 + $0x44] ss:$16 sps:$4 sm:$0xff]  }
  0x14   : > { %1472 = vmatpush1.bf16.msra.mxu1 %v2907_v7  ;;  %1761 = vmatpush1.bf16.msra.mxu0 %v2908_v8  ;;  %v2944_v40 = vld [vmem:[%s3271_s8 + $0x28] ss:$16 sps:$4 sm:$0xff]   ;;  %v2947_v42 = vld [vmem:[%s3271_s8 + $0x4c] ss:$16 sps:$4 sm:$0xff]   ;;  %v2949_v43 = vld [vmem:[%s3271_s8 + $0x40] ss:$16 sps:$4 sm:$0xff]  }
  0x15   : > { %1473 = vmatprep.subr.bf16.mxu1 %v3151_v1  ;;  %1762 = vmatprep.subr.bf16.mxu0 %v3151_v1  ;;  %v2950_v44 = vld [vmem:[%s3271_s8 + $0x48] ss:$16 sps:$4 sm:$0xff]   ;;  %v2951_v45 = vld [vmem:[%s3271_s8 + $0x64] ss:$16 sps:$4 sm:$0xff]   ;;  %v2953_v46 = vld [vmem:[%s3271_s8 + $0x6c] ss:$16 sps:$4 sm:$0xff]  }
  0x16   : > { %v2955_v47 = vld [vmem:[%s3271_s8 + $0x60] ss:$16 sps:$4 sm:$0xff]   ;;  %v2956_v48 = vld [vmem:[%s3271_s8 + $0x68] ss:$16 sps:$4 sm:$0xff]   ;;  %v2957_v49 = vld [vmem:[%s3271_s8 + $0x84] ss:$16 sps:$4 sm:$0xff]  }
  0x17   : > { %v2959_v50 = vld [vmem:[%s3271_s8 + $0x8c] ss:$16 sps:$4 sm:$0xff]   ;;  %v2961_v51 = vld [vmem:[%s3271_s8 + $0x80] ss:$16 sps:$4 sm:$0xff]   ;;  %v2962_v52 = vld [vmem:[%s3271_s8 + $0x88] ss:$16 sps:$4 sm:$0xff]  }
  0x18   : > { %1474 = vmatpush1.bf16.msra.mxu1 %v2909_v9  ;;  %1763 = vmatpush1.bf16.msra.mxu0 %v2910_v10  ;;  %v2963_v53 = vld [vmem:[%s3271_s8 + $0xa4] ss:$16 sps:$4 sm:$0xff]   ;;  %v2965_v54 = vld [vmem:[%s3271_s8 + $0xac] ss:$16 sps:$4 sm:$0xff]   ;;  %v2967_v55 = vld [vmem:[%s3271_s8 + $0xa0] ss:$16 sps:$4 sm:$0xff]  }
  0x19   : > { %1475 = vmatprep.subr.bf16.mxu1 %v3151_v1  ;;  %1764 = vmatprep.subr.bf16.mxu0 %v3151_v1  ;;  %v2968_v56 = vld [vmem:[%s3271_s8 + $0xa8] ss:$16 sps:$4 sm:$0xff]   ;;  %v2969_v57 = vld [vmem:[%s3271_s8 + $0xc4] ss:$16 sps:$4 sm:$0xff]   ;;  %v2971_v58 = vld [vmem:[%s3271_s8 + $0xcc] ss:$16 sps:$4 sm:$0xff]  }
  0x1a   : > { %v2973_v59 = vld [vmem:[%s3271_s8 + $0xc0] ss:$16 sps:$4 sm:$0xff]   ;;  %v2974_v60 = vld [vmem:[%s3271_s8 + $0xc8] ss:$16 sps:$4 sm:$0xff]   ;;  %v2975_v61 = vld [vmem:[%s3271_s8 + $0xe4] ss:$16 sps:$4 sm:$0xff]  }
  0x1b   : > { %v2977_v62 = vld [vmem:[%s3271_s8 + $0xec] ss:$16 sps:$4 sm:$0xff]   ;;  %v2979_v63 = vld [vmem:[%s3271_s8 + $0xe0] ss:$16 sps:$4 sm:$0xff]   ;;  %v2980_v0 = vld [vmem:[%s3271_s8 + $0xe8] ss:$16 sps:$4 sm:$0xff]  }
  0x1c   : > { %1476 = vmatpush1.bf16.msra.mxu1 %v2911_v11  ;;  %1765 = vmatpush1.bf16.msra.mxu0 %v2912_v12  ;;  %v2983_v2 = vld [vmem:[%s3271_s8 + $0x10c] ss:$16 sps:$4 sm:$0xff]   ;;  %v2985_v3 = vld [vmem:[%s3271_s8 + $0x100] ss:$16 sps:$4 sm:$0xff]   ;;  %v2986_v4 = vld [vmem:[%s3271_s8 + $0x108] ss:$16 sps:$4 sm:$0xff]  }
  0x1d   : > { %1477 = vmatprep.subr.bf16.mxu1 %v3151_v1  ;;  %1766 = vmatprep.subr.bf16.mxu0 %v3151_v1  ;;  %v2987_v5 = vld [vmem:[%s3271_s8 + $0x124] ss:$16 sps:$4 sm:$0xff]   ;;  %v2989_v6 = vld [vmem:[%s3271_s8 + $0x12c] ss:$16 sps:$4 sm:$0xff]   ;;  %v2991_v7 = vld [vmem:[%s3271_s8 + $0x120] ss:$16 sps:$4 sm:$0xff]  }
  0x1e   : > { %v2992_v8 = vld [vmem:[%s3271_s8 + $0x128] ss:$16 sps:$4 sm:$0xff]   ;;  %v2993_v9 = vld [vmem:[%s3271_s8 + $0x144] ss:$16 sps:$4 sm:$0xff]   ;;  %v2995_v10 = vld [vmem:[%s3271_s8 + $0x14c] ss:$16 sps:$4 sm:$0xff]  }
  0x1f   : > { %v2997_v11 = vld [vmem:[%s3271_s8 + $0x140] ss:$16 sps:$4 sm:$0xff]   ;;  %v2998_v12 = vld [vmem:[%s3271_s8 + $0x148] ss:$16 sps:$4 sm:$0xff]   ;;  %v3011_v21 = vld [vmem:[%s3271_s8 + $0x1a4] ss:$16 sps:$4 sm:$0xff]  }
  0x20   : > { %1478 = vmatpush1.bf16.msra.mxu1 %v2913_v13  ;;  %1767 = vmatpush1.bf16.msra.mxu0 %v2914_v14  ;;  %v2999_v13 = vld [vmem:[%s3271_s8 + $0x164] ss:$16 sps:$4 sm:$0xff]   ;;  %v3001_v14 = vld [vmem:[%s3271_s8 + $0x16c] ss:$16 sps:$4 sm:$0xff]   ;;  %v3009_v19 = vld [vmem:[%s3271_s8 + $0x180] ss:$16 sps:$4 sm:$0xff]  }
  0x21   : > { %1479 = vmatprep.subr.bf16.mxu1 %v3151_v1  ;;  %1768 = vmatprep.subr.bf16.mxu0 %v3151_v1 }
  0x24   : > { %1480 = vmatpush1.bf16.msra.mxu1 %v2915_v15  ;;  %1769 = vmatpush1.bf16.msra.mxu0 %v2916_v16  ;;  %v3003_v15 = vld [vmem:[%s3271_s8 + $0x160] ss:$16 sps:$4 sm:$0xff]   ;;  %v3004_v16 = vld [vmem:[%s3271_s8 + $0x168] ss:$16 sps:$4 sm:$0xff]  }
  0x25   : > { %1481 = vmatprep.subr.bf16.mxu1 %v3151_v1  ;;  %1770 = vmatprep.subr.bf16.mxu0 %v3151_v1 }
  0x28   : > { %1482 = vmatpush1.bf16.msra.mxu1 %v2917_v17  ;;  %1771 = vmatpush1.bf16.msra.mxu0 %v2918_v18  ;;  %v3005_v17 = vld [vmem:[%s3271_s8 + $0x184] ss:$16 sps:$4 sm:$0xff]   ;;  %v3007_v18 = vld [vmem:[%s3271_s8 + $0x18c] ss:$16 sps:$4 sm:$0xff]  }
  0x29   : > { %1483 = vmatprep.subr.bf16.mxu1 %v3151_v1  ;;  %1772 = vmatprep.subr.bf16.mxu0 %v3151_v1 }
  0x2c   : > { %1484 = vmatpush1.bf16.msra.mxu1 %v2919_v20  ;;  %1773 = vmatpush1.bf16.msra.mxu0 %v2920_v22  ;;  %v3010_v20 = vld [vmem:[%s3271_s8 + $0x188] ss:$16 sps:$4 sm:$0xff]   ;;  %v3013_v22 = vld [vmem:[%s3271_s8 + $0x1ac] ss:$16 sps:$4 sm:$0xff]  }
  0x2d   : > { %1485 = vmatprep.subr.bf16.mxu1 %v3151_v1  ;;  %1774 = vmatprep.subr.bf16.mxu0 %v3151_v1 }
  0x30   : > { %1486 = vmatpush1.bf16.msra.mxu1 %v2921_v23  ;;  %1775 = vmatpush1.bf16.msra.mxu0 %v2922_v24  ;;  %v3015_v23 = vld [vmem:[%s3271_s8 + $0x1a0] ss:$16 sps:$4 sm:$0xff]   ;;  %v3016_v24 = vld [vmem:[%s3271_s8 + $0x1a8] ss:$16 sps:$4 sm:$0xff]  }
  0x31   : > { %1487 = vmatprep.subr.bf16.mxu1 %v3151_v1  ;;  %1776 = vmatprep.subr.bf16.mxu0 %v3151_v1 }
  0x34   : > { %1488 = vmatpush1.bf16.msra.mxu1 %v2923_v25  ;;  %1777 = vmatpush1.bf16.msra.mxu0 %v2924_v26  ;;  %v3017_v25 = vld [vmem:[%s3271_s8 + $0x1c4] ss:$16 sps:$4 sm:$0xff]   ;;  %v3019_v26 = vld [vmem:[%s3271_s8 + $0x1cc] ss:$16 sps:$4 sm:$0xff]  }
  0x35   : > { %1489 = vmatprep.subr.bf16.mxu1 %v3151_v1  ;;  %1778 = vmatprep.subr.bf16.mxu0 %v3151_v1 }
  0x38   : > { %1490 = vmatpush1.bf16.msra.mxu1 %v2925_v27  ;;  %1779 = vmatpush1.bf16.msra.mxu0 %v2926_v28  ;;  %v3021_v27 = vld [vmem:[%s3271_s8 + $0x1c0] ss:$16 sps:$4 sm:$0xff]   ;;  %v3022_v28 = vld [vmem:[%s3271_s8 + $0x1c8] ss:$16 sps:$4 sm:$0xff]  }
  0x39   : > { %1491 = vmatprep.subr.bf16.mxu1 %v3151_v1  ;;  %1780 = vmatprep.subr.bf16.mxu0 %v3151_v1 }
  0x3c   : > { %1492 = vmatpush1.bf16.msra.mxu1 %v2927_v29  ;;  %1781 = vmatpush1.bf16.msra.mxu0 %v2928_v30  ;;  %v3023_v29 = vld [vmem:[%s3271_s8 + $0x1e4] ss:$16 sps:$4 sm:$0xff]   ;;  %v3025_v30 = vld [vmem:[%s3271_s8 + $0x1ec] ss:$16 sps:$4 sm:$0xff]  }
  0x3d   : > { %1493 = vmatprep.subr.bf16.mxu1 %v3151_v1  ;;  %1782 = vmatprep.subr.bf16.mxu0 %v3151_v1 }
  0x40   : > { %1494 = vmatpush1.bf16.msra.mxu1 %v2929_v31  ;;  %1783 = vmatpush1.bf16.msra.mxu0 %v2930_v32  ;;  %v3027_v31 = vld [vmem:[%s3271_s8 + $0x1e0] ss:$16 sps:$4 sm:$0xff]   ;;  %v3028_v32 = vld [vmem:[%s3271_s8 + $0x1e8] ss:$16 sps:$4 sm:$0xff]  }
  0x41   : > { %1495 = vmatprep.subr.bf16.mxu1 %v3151_v1  ;;  %1784 = vmatprep.subr.bf16.mxu0 %v3151_v1  ;;  %v2981_v1 = vld [vmem:[%s3271_s8 + $0x104] ss:$16 sps:$4 sm:$0xff]  }
  0x44   : > { %1496 = vmatpush1.bf16.msra.mxu1 %v2931_v33  ;;  %1785 = vmatpush1.bf16.msra.mxu0 %v2932_v34  ;;  %v3029_v33 = vld [vmem:[%s3271_s8 + $0x204] ss:$16 sps:$4 sm:$0xff]   ;;  %v3031_v34 = vld [vmem:[%s3271_s8 + $0x20c] ss:$16 sps:$4 sm:$0xff]  }
  0x47   : > { %1498 = vmatmul.mubr.bf16.vlgmr.msra.gmra.mrb[0].mxu1 %v2933_v35  ;;  %1787 = vmatmul.mubr.bf16.vlgmr.msra.gmra.mrb[0].mxu0 %v2936_v36  ;;  %v3033_v35 = vld [vmem:[%s3271_s8 + $0x200] ss:$16 sps:$4 sm:$0xff]   ;;  %v3034_v36 = vld [vmem:[%s3271_s8 + $0x208] ss:$16 sps:$4 sm:$0xff]  }
  0x48   : > { %1505 = vmatprep.mubr.bf16.mxu1 %v2939_v37  ;;  %1794 = vmatprep.mubr.bf16.mxu0 %v2941_v38  ;;  %v3035_v37 = vld [vmem:[%s3271_s8 + $0x224] ss:$16 sps:$4 sm:$0xff]   ;;  %v3037_v38 = vld [vmem:[%s3271_s8 + $0x22c] ss:$16 sps:$4 sm:$0xff]  }
  0x4f   : > { %1506 = vmatmul.mubr.bf16.gmra.mrb[4].mxu1 %v2943_v39  ;;  %1795 = vmatmul.mubr.bf16.gmra.mrb[4].mxu0 %v2944_v40  ;;  %v3039_v39 = vld [vmem:[%s3271_s8 + $0x220] ss:$16 sps:$4 sm:$0xff]   ;;  %v3040_v40 = vld [vmem:[%s3271_s8 + $0x228] ss:$16 sps:$4 sm:$0xff]  }
  0x50   : > { %1513 = vmatprep.mubr.bf16.mxu1 %v2945_v41  ;;  %1802 = vmatprep.mubr.bf16.mxu0 %v2947_v42  ;;  %v3041_v41 = vld [vmem:[%s3271_s8 + $0x244] ss:$16 sps:$4 sm:$0xff]   ;;  %v3043_v42 = vld [vmem:[%s3271_s8 + $0x24c] ss:$16 sps:$4 sm:$0xff]  }
  0x57   : > { %1514 = vmatmul.mubr.bf16.gmra.mrb[8].mxu1 %v2949_v43  ;;  %1803 = vmatmul.mubr.bf16.gmra.mrb[8].mxu0 %v2950_v44  ;;  %v3045_v43 = vld [vmem:[%s3271_s8 + $0x240] ss:$16 sps:$4 sm:$0xff]   ;;  %v3046_v44 = vld [vmem:[%s3271_s8 + $0x248] ss:$16 sps:$4 sm:$0xff]  }
  0x58   : > { %1521 = vmatprep.mubr.bf16.mxu1 %v2951_v45  ;;  %1810 = vmatprep.mubr.bf16.mxu0 %v2953_v46  ;;  %v3047_v45 = vld [vmem:[%s3271_s8 + $0x264] ss:$16 sps:$4 sm:$0xff]   ;;  %v3049_v46 = vld [vmem:[%s3271_s8 + $0x26c] ss:$16 sps:$4 sm:$0xff]  }
  0x5f   : > { %1522 = vmatmul.mubr.bf16.gmra.mrb[12].mxu1 %v2955_v47  ;;  %1811 = vmatmul.mubr.bf16.gmra.mrb[12].mxu0 %v2956_v48  ;;  %v3051_v47 = vld [vmem:[%s3271_s8 + $0x260] ss:$16 sps:$4 sm:$0xff]   ;;  %v3052_v48 = vld [vmem:[%s3271_s8 + $0x268] ss:$16 sps:$4 sm:$0xff]  }
  0x60   : > { %1529 = vmatprep.mubr.bf16.mxu1 %v2957_v49  ;;  %1818 = vmatprep.mubr.bf16.mxu0 %v2959_v50  ;;  %v3053_v49 = vld [vmem:[%s3271_s8 + $0x284] ss:$16 sps:$4 sm:$0xff]   ;;  %v3055_v50 = vld [vmem:[%s3271_s8 + $0x28c] ss:$16 sps:$4 sm:$0xff]  }
  0x67   : > { %1530 = vmatmul.mubr.bf16.gmra.mrb[16].mxu1 %v2961_v51  ;;  %1819 = vmatmul.mubr.bf16.gmra.mrb[16].mxu0 %v2962_v52  ;;  %v3057_v51 = vld [vmem:[%s3271_s8 + $0x280] ss:$16 sps:$4 sm:$0xff]   ;;  %v3058_v52 = vld [vmem:[%s3271_s8 + $0x288] ss:$16 sps:$4 sm:$0xff]  }
  0x68   : > { %1537 = vmatprep.mubr.bf16.mxu1 %v2963_v53  ;;  %1826 = vmatprep.mubr.bf16.mxu0 %v2965_v54  ;;  %v3059_v53 = vld [vmem:[%s3271_s8 + $0x2a4] ss:$16 sps:$4 sm:$0xff]   ;;  %v3061_v54 = vld [vmem:[%s3271_s8 + $0x2ac] ss:$16 sps:$4 sm:$0xff]  }
  0x6f   : > { %1538 = vmatmul.mubr.bf16.gmra.mrb[20].mxu1 %v2967_v55  ;;  %1827 = vmatmul.mubr.bf16.gmra.mrb[20].mxu0 %v2968_v56  ;;  %v3063_v55 = vld [vmem:[%s3271_s8 + $0x2a0] ss:$16 sps:$4 sm:$0xff]   ;;  %v3064_v56 = vld [vmem:[%s3271_s8 + $0x2a8] ss:$16 sps:$4 sm:$0xff]  }
  0x70   : > { %1545 = vmatprep.mubr.bf16.mxu1 %v2969_v57  ;;  %1834 = vmatprep.mubr.bf16.mxu0 %v2971_v58  ;;  %v3065_v57 = vld [vmem:[%s3271_s8 + $0x2c4] ss:$16 sps:$4 sm:$0xff]   ;;  %v3067_v58 = vld [vmem:[%s3271_s8 + $0x2cc] ss:$16 sps:$4 sm:$0xff]  }
  0x77   : > { %1546 = vmatmul.mubr.bf16.gmra.mrb[24].mxu1 %v2973_v59  ;;  %1835 = vmatmul.mubr.bf16.gmra.mrb[24].mxu0 %v2974_v60  ;;  %v3069_v59 = vld [vmem:[%s3271_s8 + $0x2c0] ss:$16 sps:$4 sm:$0xff]   ;;  %v3070_v60 = vld [vmem:[%s3271_s8 + $0x2c8] ss:$16 sps:$4 sm:$0xff]  }
  0x78   : > { %1553 = vmatprep.mubr.bf16.mxu1 %v2975_v61  ;;  %1842 = vmatprep.mubr.bf16.mxu0 %v2977_v62  ;;  %v3071_v61 = vld [vmem:[%s3271_s8 + $0x2e4] ss:$16 sps:$4 sm:$0xff]   ;;  %v3073_v62 = vld [vmem:[%s3271_s8 + $0x2ec] ss:$16 sps:$4 sm:$0xff]  }
  0x7f   : > { %1554 = vmatmul.mubr.bf16.gmra.mrb[28].mxu1 %v2979_v63  ;;  %1843 = vmatmul.mubr.bf16.gmra.mrb[28].mxu0 %v2980_v0  ;;  %v3075_v63 = vld [vmem:[%s3271_s8 + $0x2e0] ss:$16 sps:$4 sm:$0xff]   ;;  %v3076_v0 = vld [vmem:[%s3271_s8 + $0x2e8] ss:$16 sps:$4 sm:$0xff]  }
  0x80   : > { %1561 = vmatprep.mubr.bf16.mxu1 %v2981_v1  ;;  %1850 = vmatprep.mubr.bf16.mxu0 %v2983_v2  ;;  %v3077_v1 = vld [vmem:[%s3271_s8 + $0x304] ss:$16 sps:$4 sm:$0xff]   ;;  %v3079_v2 = vld [vmem:[%s3271_s8 + $0x30c] ss:$16 sps:$4 sm:$0xff]  }
  0x87   : > { %1562 = vmatmul.mubr.bf16.gmra.mrb[32].mxu1 %v2985_v3  ;;  %1851 = vmatmul.mubr.bf16.gmra.mrb[32].mxu0 %v2986_v4  ;;  %v3081_v3 = vld [vmem:[%s3271_s8 + $0x300] ss:$16 sps:$4 sm:$0xff]   ;;  %v3082_v4 = vld [vmem:[%s3271_s8 + $0x308] ss:$16 sps:$4 sm:$0xff]  }
  0x88   : > { %1569 = vmatprep.mubr.bf16.mxu1 %v2987_v5  ;;  %1858 = vmatprep.mubr.bf16.mxu0 %v2989_v6  ;;  %v3083_v5 = vld [vmem:[%s3271_s8 + $0x324] ss:$16 sps:$4 sm:$0xff]   ;;  %v3085_v6 = vld [vmem:[%s3271_s8 + $0x32c] ss:$16 sps:$4 sm:$0xff]  }
  0x8f   : > { %1570 = vmatmul.mubr.bf16.gmra.mrb[36].mxu1 %v2991_v7  ;;  %1859 = vmatmul.mubr.bf16.gmra.mrb[36].mxu0 %v2992_v8  ;;  %v3087_v7 = vld [vmem:[%s3271_s8 + $0x320] ss:$16 sps:$4 sm:$0xff]   ;;  %v3088_v8 = vld [vmem:[%s3271_s8 + $0x328] ss:$16 sps:$4 sm:$0xff]  }
  0x90   : > { %1577 = vmatprep.mubr.bf16.mxu1 %v2993_v9  ;;  %1866 = vmatprep.mubr.bf16.mxu0 %v2995_v10  ;;  %v3089_v9 = vld [vmem:[%s3271_s8 + $0x344] ss:$16 sps:$4 sm:$0xff]   ;;  %v3091_v10 = vld [vmem:[%s3271_s8 + $0x34c] ss:$16 sps:$4 sm:$0xff]  }
  0x97   : > { %1578 = vmatmul.mubr.bf16.gmra.mrb[40].mxu1 %v2997_v11  ;;  %1867 = vmatmul.mubr.bf16.gmra.mrb[40].mxu0 %v2998_v12  ;;  %v3093_v11 = vld [vmem:[%s3271_s8 + $0x340] ss:$16 sps:$4 sm:$0xff]   ;;  %v3094_v12 = vld [vmem:[%s3271_s8 + $0x348] ss:$16 sps:$4 sm:$0xff]  }
  0x98   : > { %1585 = vmatprep.mubr.bf16.mxu1 %v2999_v13  ;;  %1874 = vmatprep.mubr.bf16.mxu0 %v3001_v14  ;;  %v3095_v13 = vld [vmem:[%s3271_s8 + $0x364] ss:$16 sps:$4 sm:$0xff]   ;;  %v3097_v14 = vld [vmem:[%s3271_s8 + $0x36c] ss:$16 sps:$4 sm:$0xff]  }
  0x9f   : > { %1586 = vmatmul.mubr.bf16.gmra.mrb[44].mxu1 %v3003_v15  ;;  %1875 = vmatmul.mubr.bf16.gmra.mrb[44].mxu0 %v3004_v16 }
  0xa0   : > { %1593 = vmatprep.mubr.bf16.mxu1 %v3005_v17  ;;  %1882 = vmatprep.mubr.bf16.mxu0 %v3007_v18  ;;  %v3447_v17 = vld [vmem:[%s3691_s2] ss:$0 sm:$0xff] }
  0xa7   : > { %1594 = vmatmul.mubr.bf16.gmra.mrb[48].mxu1 %v3009_v19  ;;  %1883 = vmatmul.mubr.bf16.gmra.mrb[48].mxu0 %v3010_v20  ;;  %v3099_v19 = vld [vmem:[%s3271_s8 + $0x360] ss:$16 sps:$4 sm:$0xff]  }
  0xa8   : > { %1601 = vmatprep.mubr.bf16.mxu1 %v3011_v21  ;;  %1890 = vmatprep.mubr.bf16.mxu0 %v3013_v22 }
  0xaf   : > { %1602 = vmatmul.mubr.bf16.gmra.mrb[52].mxu1 %v3015_v23  ;;  %1891 = vmatmul.mubr.bf16.gmra.mrb[52].mxu0 %v3016_v24  ;;  %v3100_v23 = vld [vmem:[%s3271_s8 + $0x368] ss:$16 sps:$4 sm:$0xff]   ;;  %v3101_v24 = vld [vmem:[%s3271_s8 + $0x384] ss:$16 sps:$4 sm:$0xff]  }
  0xb0   : > { %1609 = vmatprep.mubr.bf16.mxu1 %v3017_v25  ;;  %1898 = vmatprep.mubr.bf16.mxu0 %v3019_v26  ;;  %v3455_v25 = vld [vmem:[%s3692_s3] ss:$0 sm:$0xff] }
  0xb7   : > { %1610 = vmatmul.mubr.bf16.gmra.mrb[56].mxu1 %v3021_v27  ;;  %1899 = vmatmul.mubr.bf16.gmra.mrb[56].mxu0 %v3022_v28  ;;  %v3103_v28 = vld [vmem:[%s3271_s8 + $0x38c] ss:$16 sps:$4 sm:$0xff]  }
  0xb8   : > { %1617 = vmatprep.mubr.bf16.mxu1 %v3023_v29  ;;  %1906 = vmatprep.mubr.bf16.mxu0 %v3025_v30 }
  0xbf   : > { %1618 = vmatmul.mubr.bf16.gmra.mrb[60].mxu1 %v3027_v31  ;;  %1907 = vmatmul.mubr.bf16.gmra.mrb[60].mxu0 %v3028_v32 }
  0xc0   : > { %1625 = vmatprep.mubr.bf16.mxu1 %v3029_v33  ;;  %1914 = vmatprep.mubr.bf16.mxu0 %v3031_v34 }
  0xc7   : > { %1626 = vmatmul.mubr.bf16.gmra.mrb[64].mxu1 %v3033_v35  ;;  %1915 = vmatmul.mubr.bf16.gmra.mrb[64].mxu0 %v3034_v36 }
  0xc8   : > { %1633 = vmatprep.mubr.bf16.mxu1 %v3035_v37  ;;  %1922 = vmatprep.mubr.bf16.mxu0 %v3037_v38 }
  0xcf   : > { %1634 = vmatmul.mubr.bf16.gmra.mrb[68].mxu1 %v3039_v39  ;;  %1923 = vmatmul.mubr.bf16.gmra.mrb[68].mxu0 %v3040_v40  ;;  %v3105_v39 = vld [vmem:[%s3271_s8 + $0x380] ss:$16 sps:$4 sm:$0xff]   ;;  %v3106_v40 = vld [vmem:[%s3271_s8 + $0x388] ss:$16 sps:$4 sm:$0xff]  }
  0xd0   : > { %1641 = vmatprep.mubr.bf16.mxu1 %v3041_v41  ;;  %1930 = vmatprep.mubr.bf16.mxu0 %v3043_v42 }
  0xd7   : > { %1642 = vmatmul.mubr.bf16.gmra.mrb[72].mxu1 %v3045_v43  ;;  %1931 = vmatmul.mubr.bf16.gmra.mrb[72].mxu0 %v3046_v44 }
  0xd8   : > { %1649 = vmatprep.mubr.bf16.mxu1 %v3047_v45  ;;  %1938 = vmatprep.mubr.bf16.mxu0 %v3049_v46  ;;  %v3107_v45 = vld [vmem:[%s3271_s8 + $0x3a4] ss:$16 sps:$4 sm:$0xff]  }
  0xdf   : > { %1650 = vmatmul.mubr.bf16.gmra.mrb[76].mxu1 %v3051_v47  ;;  %1939 = vmatmul.mubr.bf16.gmra.mrb[76].mxu0 %v3052_v48  ;;  %v3109_v48 = vld [vmem:[%s3271_s8 + $0x3ac] ss:$16 sps:$4 sm:$0xff]  }
  0xe0   : > { %1657 = vmatprep.mubr.bf16.mxu1 %v3053_v49  ;;  %1946 = vmatprep.mubr.bf16.mxu0 %v3055_v50 }
  0xe7   : > { %1658 = vmatmul.mubr.bf16.gmra.mrb[80].mxu1 %v3057_v51  ;;  %1947 = vmatmul.mubr.bf16.gmra.mrb[80].mxu0 %v3058_v52 }
  0xe8   : > { %1665 = vmatprep.mubr.bf16.mxu1 %v3059_v53  ;;  %1954 = vmatprep.mubr.bf16.mxu0 %v3061_v54 }
  0xef   : > { %1666 = vmatmul.mubr.bf16.gmra.mrb[84].mxu1 %v3063_v55  ;;  %1955 = vmatmul.mubr.bf16.gmra.mrb[84].mxu0 %v3064_v56 }
  0xf0   : > { %1673 = vmatprep.mubr.bf16.mxu1 %v3065_v57  ;;  %1962 = vmatprep.mubr.bf16.mxu0 %v3067_v58 }
  0xf7   : > { %1674 = vmatmul.mubr.bf16.gmra.mrb[88].mxu1 %v3069_v59  ;;  %1963 = vmatmul.mubr.bf16.gmra.mrb[88].mxu0 %v3070_v60  ;;  %v3111_v59 = vld [vmem:[%s3271_s8 + $0x3a0] ss:$16 sps:$4 sm:$0xff]   ;;  %v3112_v60 = vld [vmem:[%s3271_s8 + $0x3a8] ss:$16 sps:$4 sm:$0xff]  }
  0xf8   : > { %1681 = vmatprep.mubr.bf16.mxu1 %v3071_v61  ;;  %1970 = vmatprep.mubr.bf16.mxu0 %v3073_v62 }
  0xff   : > { %1682 = vmatmul.mubr.bf16.gmra.mrb[92].mxu1 %v3075_v63  ;;  %1971 = vmatmul.mubr.bf16.gmra.mrb[92].mxu0 %v3076_v0 }
 0x100   : > { %1689 = vmatprep.mubr.bf16.mxu1 %v3077_v1  ;;  %1978 = vmatprep.mubr.bf16.mxu0 %v3079_v2  ;;  %v3113_v1 = vld [vmem:[%s3271_s8 + $0x3c4] ss:$16 sps:$4 sm:$0xff]  }
 0x107   : > { %1690 = vmatmul.mubr.bf16.gmra.mrb[96].mxu1 %v3081_v3  ;;  %1979 = vmatmul.mubr.bf16.gmra.mrb[96].mxu0 %v3082_v4  ;;  %v3115_v4 = vld [vmem:[%s3271_s8 + $0x3cc] ss:$16 sps:$4 sm:$0xff]  }
 0x108   : > { %1697 = vmatprep.mubr.bf16.mxu1 %v3083_v5  ;;  %1986 = vmatprep.mubr.bf16.mxu0 %v3085_v6 }
 0x10f   : > { %1698 = vmatmul.mubr.bf16.gmra.mrb[100].mxu1 %v3087_v7  ;;  %1987 = vmatmul.mubr.bf16.gmra.mrb[100].mxu0 %v3088_v8 }
 0x110   : > { %1705 = vmatprep.mubr.bf16.mxu1 %v3089_v9  ;;  %1994 = vmatprep.mubr.bf16.mxu0 %v3091_v10 }
 0x117   : > { %1706 = vmatmul.mubr.bf16.gmra.mrb[104].mxu1 %v3093_v11  ;;  %1995 = vmatmul.mubr.bf16.gmra.mrb[104].mxu0 %v3094_v12 }
 0x118   : > { %1713 = vmatprep.mubr.bf16.mxu1 %v3095_v13  ;;  %2002 = vmatprep.mubr.bf16.mxu0 %v3097_v14 }
 0x11a   : > { %v1499_v15 = vpop.f32.mrb[0].mxu1  ;;  %v1788_v16 = vpop.f32.mrb[0].mxu0 }
 0x11b   : > { %v1501_v18 = vpop.f32.mrb[1].mxu1  ;;  %v1789_v20 = vadd.f32 %v1788_v16, %v1499_v15  ;;  %v1790_v21 = vpop.f32.mrb[1].mxu0  ;;  %v3117_v15 = vld [vmem:[%s3271_s8 + $0x3c0] ss:$16 sps:$4 sm:$0xff]   ;;  %v3118_v16 = vld [vmem:[%s3271_s8 + $0x3c8] ss:$16 sps:$4 sm:$0xff]  }
 0x11c   : > { %v1502_v22 = vpop.f32.mrb[2].mxu1  ;;  %v1791_v26 = vpop.f32.mrb[2].mxu0 }
 0x11d   : > { %v1504_v27 = vpop.f32.mrb[3].mxu1  ;;  %v2245_v29 = vmul.f32 %v3447_v17, %v1789_v20  ;;  %v1792_v30 = vadd.f32 %v1791_v26, %v1502_v22  ;;  %v1793_v31 = vpop.f32.mrb[3].mxu0  ;;  %v3119_v22 = vld [vmem:[%s3271_s8 + $0x3e4] ss:$16 sps:$4 sm:$0xff]   ;;  %v3121_v26 = vld [vmem:[%s3271_s8 + $0x3ec] ss:$16 sps:$4 sm:$0xff]  }
 0x11f   : > { %1714 = vmatmul.mubr.bf16.gmra.mrb[108].mxu1 %v3099_v19  ;;  %v2316_v32 = vadd.f32 %v3455_v25, %v2245_v29  ;;  %v2246_v33 = vmul.f32 %v3447_v17, %v1792_v30  ;;  %2003 = vmatmul.mubr.bf16.gmra.mrb[108].mxu0 %v3100_v23 }
 0x120   : > { %1721 = vmatprep.mubr.bf16.mxu1 %v3101_v24  ;;  %2010 = vmatprep.mubr.bf16.mxu0 %v3103_v28 }
 0x121   : > { %v2380_v34 = vmax.f32 %v2316_v32, 0.0  ;;  %v2317_v35 = vadd.f32 %v3455_v25, %v2246_v33 }
 0x122   : > { %v1507_v36 = vpop.f32.mrb[4].mxu1  ;;  %v1796_v37 = vpop.f32.mrb[4].mxu0 }
 0x123   : > { %v1509_v38 = vpop.f32.mrb[5].mxu1  ;;  %2444 = vst [vmem:[%s3465_s29] sm:$0xff] %v2380_v34  ;;  %v2381_v41 = vmax.f32 %v2317_v35, 0.0  ;;  %v1797_v42 = vadd.f32 %v1796_v37, %v1507_v36  ;;  %v1798_v43 = vpop.f32.mrb[5].mxu0  ;;  %v3123_v37 = vld [vmem:[%s3271_s8 + $0x3e0] ss:$16 sps:$4 sm:$0xff]  }
 0x124   : > { %v1510_v44 = vpop.f32.mrb[6].mxu1  ;;  %v1799_v46 = vpop.f32.mrb[6].mxu0 }
 0x125   : > { %v1512_v47 = vpop.f32.mrb[7].mxu1  ;;  %2445 = vst [vmem:[%s3465_s29 + $0x8] sm:$0xff] %v2381_v41  ;;  %v2247_v49 = vmul.f32 %v3447_v17, %v1797_v42  ;;  %v1800_v50 = vadd.f32 %v1799_v46, %v1510_v44  ;;  %v1801_v51 = vpop.f32.mrb[7].mxu0  ;;  %v3124_v42 = vld [vmem:[%s3271_s8 + $0x3e8] ss:$16 sps:$4 sm:$0xff]  }
 0x127   : > { %1722 = vmatmul.mubr.bf16.gmra.mrb[112].mxu1 %v3105_v39  ;;  %v2318_v52 = vadd.f32 %v3455_v25, %v2247_v49  ;;  %v2248_v53 = vmul.f32 %v3447_v17, %v1800_v50  ;;  %2011 = vmatmul.mubr.bf16.gmra.mrb[112].mxu0 %v3106_v40 }
 0x128   : > { %1729 = vmatprep.mubr.bf16.mxu1 %v3107_v45  ;;  %2018 = vmatprep.mubr.bf16.mxu0 %v3109_v48 }
 0x129   : > { %v2382_v54 = vmax.f32 %v2318_v52, 0.0  ;;  %v2319_v55 = vadd.f32 %v3455_v25, %v2248_v53 }
 0x12a   : > { %v1515_v56 = vpop.f32.mrb[8].mxu1  ;;  %v1804_v57 = vpop.f32.mrb[8].mxu0 }
 0x12b   : > { %v1517_v58 = vpop.f32.mrb[9].mxu1  ;;  %2446 = vst [vmem:[%s3465_s29 + $0x10] sm:$0xff] %v2382_v54  ;;  %v2383_v61 = vmax.f32 %v2319_v55, 0.0  ;;  %v1805_v62 = vadd.f32 %v1804_v57, %v1515_v56  ;;  %v1806_v63 = vpop.f32.mrb[9].mxu0 }
 0x12c   : > { %v1518_v0 = vpop.f32.mrb[10].mxu1  ;;  %v1807_v2 = vpop.f32.mrb[10].mxu0 }
 0x12d   : > { %v1520_v3 = vpop.f32.mrb[11].mxu1  ;;  %2447 = vst [vmem:[%s3465_s29 + $0x18] sm:$0xff] %v2383_v61  ;;  %v2249_v5 = vmul.f32 %v3447_v17, %v1805_v62  ;;  %v1808_v6 = vadd.f32 %v1807_v2, %v1518_v0  ;;  %v1809_v7 = vpop.f32.mrb[11].mxu0 }
 0x12f   : > { %1730 = vmatmul.mubr.bf16.gmra.mrb[116].mxu1 %v3111_v59  ;;  %v2320_v8 = vadd.f32 %v3455_v25, %v2249_v5  ;;  %v2250_v9 = vmul.f32 %v3447_v17, %v1808_v6  ;;  %2019 = vmatmul.mubr.bf16.gmra.mrb[116].mxu0 %v3112_v60 }
 0x130   : > { %1737 = vmatprep.mubr.bf16.mxu1 %v3113_v1  ;;  %2026 = vmatprep.mubr.bf16.mxu0 %v3115_v4 }
 0x131   : > { %v2384_v10 = vmax.f32 %v2320_v8, 0.0  ;;  %v2321_v11 = vadd.f32 %v3455_v25, %v2250_v9 }
 0x132   : > { %v1523_v12 = vpop.f32.mrb[12].mxu1  ;;  %v1812_v13 = vpop.f32.mrb[12].mxu0 }
 0x133   : > { %v1525_v14 = vpop.f32.mrb[13].mxu1  ;;  %2448 = vst [vmem:[%s3465_s29 + $0x20] sm:$0xff] %v2384_v10  ;;  %v2385_v18 = vmax.f32 %v2321_v11, 0.0  ;;  %v1813_v19 = vadd.f32 %v1812_v13, %v1523_v12  ;;  %v1814_v20 = vpop.f32.mrb[13].mxu0 }
 0x134   : > { %v1526_v21 = vpop.f32.mrb[14].mxu1  ;;  %v1815_v23 = vpop.f32.mrb[14].mxu0 }
 0x135   : > { %v1528_v24 = vpop.f32.mrb[15].mxu1  ;;  %2449 = vst [vmem:[%s3465_s29 + $0x28] sm:$0xff] %v2385_v18  ;;  %v2251_v27 = vmul.f32 %v3447_v17, %v1813_v19  ;;  %v1816_v28 = vadd.f32 %v1815_v23, %v1526_v21  ;;  %v1817_v29 = vpop.f32.mrb[15].mxu0 }
 0x137   : > { %1738 = vmatmul.mubr.bf16.gmra.mrb[120].mxu1 %v3117_v15  ;;  %v2322_v30 = vadd.f32 %v3455_v25, %v2251_v27  ;;  %v2252_v31 = vmul.f32 %v3447_v17, %v1816_v28  ;;  %2027 = vmatmul.mubr.bf16.gmra.mrb[120].mxu0 %v3118_v16 }
 0x138   : > { %1745 = vmatprep.mubr.bf16.mxu1 %v3119_v22  ;;  %2034 = vmatprep.mubr.bf16.mxu0 %v3121_v26 }
 0x139   : > { %v2386_v32 = vmax.f32 %v2322_v30, 0.0  ;;  %v2323_v33 = vadd.f32 %v3455_v25, %v2252_v31 }
 0x13a   : > { %v1531_v34 = vpop.f32.mrb[16].mxu1  ;;  %v1820_v35 = vpop.f32.mrb[16].mxu0 }
 0x13b   : > { %v1533_v36 = vpop.f32.mrb[17].mxu1  ;;  %2450 = vst [vmem:[%s3465_s29 + $0x30] sm:$0xff] %v2386_v32  ;;  %v2387_v38 = vmax.f32 %v2323_v33, 0.0  ;;  %v1821_v39 = vadd.f32 %v1820_v35, %v1531_v34  ;;  %v1822_v40 = vpop.f32.mrb[17].mxu0 }
 0x13c   : > { %v1534_v41 = vpop.f32.mrb[18].mxu1  ;;  %v1823_v43 = vpop.f32.mrb[18].mxu0 }
 0x13d   : > { %v1536_v44 = vpop.f32.mrb[19].mxu1  ;;  %2451 = vst [vmem:[%s3465_s29 + $0x38] sm:$0xff] %v2387_v38  ;;  %v2253_v45 = vmul.f32 %v3447_v17, %v1821_v39  ;;  %v1824_v46 = vadd.f32 %v1823_v43, %v1534_v41  ;;  %v1825_v47 = vpop.f32.mrb[19].mxu0 }
 0x13f   : > { %1746 = vmatmul.mubr.bf16.gmra.mrb[124].mxu1 %v3123_v37  ;;  %v2324_v48 = vadd.f32 %v3455_v25, %v2253_v45  ;;  %v2254_v49 = vmul.f32 %v3447_v17, %v1824_v46  ;;  %2035 = vmatmul.mubr.bf16.gmra.mrb[124].mxu0 %v3124_v42 }
 0x141   : > { %v2388_v50 = vmax.f32 %v2324_v48, 0.0  ;;  %v2325_v51 = vadd.f32 %v3455_v25, %v2254_v49 }
 0x142   : > { %v1539_v52 = vpop.f32.mrb[20].mxu1  ;;  %v1828_v53 = vpop.f32.mrb[20].mxu0 }
 0x143   : > { %v1541_v54 = vpop.f32.mrb[21].mxu1  ;;  %2452 = vst [vmem:[%s3465_s29 + $0x40] sm:$0xff] %v2388_v50  ;;  %v2389_v55 = vmax.f32 %v2325_v51, 0.0  ;;  %v1829_v56 = vadd.f32 %v1828_v53, %v1539_v52  ;;  %v1830_v57 = vpop.f32.mrb[21].mxu0 }
 0x144   : > { %v1542_v58 = vpop.f32.mrb[22].mxu1  ;;  %v1831_v59 = vpop.f32.mrb[22].mxu0 }
 0x145   : > { %v1544_v60 = vpop.f32.mrb[23].mxu1  ;;  %2453 = vst [vmem:[%s3465_s29 + $0x48] sm:$0xff] %v2389_v55  ;;  %v2255_v61 = vmul.f32 %v3447_v17, %v1829_v56  ;;  %v1832_v62 = vadd.f32 %v1831_v59, %v1542_v58  ;;  %v1833_v63 = vpop.f32.mrb[23].mxu0 }
 0x147   : > { %v2326_v0 = vadd.f32 %v3455_v25, %v2255_v61  ;;  %v2256_v1 = vmul.f32 %v3447_v17, %v1832_v62 }
 0x149   : > { %v2390_v2 = vmax.f32 %v2326_v0, 0.0  ;;  %v2327_v3 = vadd.f32 %v3455_v25, %v2256_v1 }
 0x14a   : > { %v1547_v4 = vpop.f32.mrb[24].mxu1  ;;  %v1836_v5 = vpop.f32.mrb[24].mxu0 }
 0x14b   : > { %v1549_v6 = vpop.f32.mrb[25].mxu1  ;;  %2454 = vst [vmem:[%s3465_s29 + $0x50] sm:$0xff] %v2390_v2  ;;  %v2391_v7 = vmax.f32 %v2327_v3, 0.0  ;;  %v1837_v8 = vadd.f32 %v1836_v5, %v1547_v4  ;;  %v1838_v9 = vpop.f32.mrb[25].mxu0 }
 0x14c   : > { %v1550_v10 = vpop.f32.mrb[26].mxu1  ;;  %v1839_v11 = vpop.f32.mrb[26].mxu0 }
 0x14d   : > { %v1552_v12 = vpop.f32.mrb[27].mxu1  ;;  %2455 = vst [vmem:[%s3465_s29 + $0x58] sm:$0xff] %v2391_v7  ;;  %v2257_v13 = vmul.f32 %v3447_v17, %v1837_v8  ;;  %v1840_v14 = vadd.f32 %v1839_v11, %v1550_v10  ;;  %v1841_v15 = vpop.f32.mrb[27].mxu0 }
 0x14f   : > { %v2328_v16 = vadd.f32 %v3455_v25, %v2257_v13  ;;  %v2258_v18 = vmul.f32 %v3447_v17, %v1840_v14 }
 0x151   : > { %v2392_v19 = vmax.f32 %v2328_v16, 0.0  ;;  %v2329_v20 = vadd.f32 %v3455_v25, %v2258_v18 }
 0x152   : > { %v1555_v21 = vpop.f32.mrb[28].mxu1  ;;  %v1844_v22 = vpop.f32.mrb[28].mxu0 }
 0x153   : > { %v1557_v23 = vpop.f32.mrb[29].mxu1  ;;  %2456 = vst [vmem:[%s3465_s29 + $0x60] sm:$0xff] %v2392_v19  ;;  %v2393_v24 = vmax.f32 %v2329_v20, 0.0  ;;  %v1845_v26 = vadd.f32 %v1844_v22, %v1555_v21  ;;  %v1846_v27 = vpop.f32.mrb[29].mxu0 }
 0x154   : > { %v1558_v28 = vpop.f32.mrb[30].mxu1  ;;  %v1847_v29 = vpop.f32.mrb[30].mxu0 }
 0x155   : > { %v1560_v30 = vpop.f32.mrb[31].mxu1  ;;  %2457 = vst [vmem:[%s3465_s29 + $0x68] sm:$0xff] %v2393_v24  ;;  %v2259_v31 = vmul.f32 %v3447_v17, %v1845_v26  ;;  %v1848_v32 = vadd.f32 %v1847_v29, %v1558_v28  ;;  %v1849_v33 = vpop.f32.mrb[31].mxu0 }
 0x157   : > { %v2330_v34 = vadd.f32 %v3455_v25, %v2259_v31  ;;  %v2260_v35 = vmul.f32 %v3447_v17, %v1848_v32 }
 0x159   : > { %v2394_v36 = vmax.f32 %v2330_v34, 0.0  ;;  %v2331_v37 = vadd.f32 %v3455_v25, %v2260_v35 }
 0x15a   : > { %v1563_v38 = vpop.f32.mrb[32].mxu1  ;;  %v1852_v39 = vpop.f32.mrb[32].mxu0 }
 0x15b   : > { %v1565_v40 = vpop.f32.mrb[33].mxu1  ;;  %2458 = vst [vmem:[%s3465_s29 + $0x70] sm:$0xff] %v2394_v36  ;;  %v2395_v41 = vmax.f32 %v2331_v37, 0.0  ;;  %v1853_v42 = vadd.f32 %v1852_v39, %v1563_v38  ;;  %v1854_v43 = vpop.f32.mrb[33].mxu0 }
 0x15c   : > { %v1566_v44 = vpop.f32.mrb[34].mxu1  ;;  %v1855_v45 = vpop.f32.mrb[34].mxu0 }
 0x15d   : > { %v1568_v46 = vpop.f32.mrb[35].mxu1  ;;  %2459 = vst [vmem:[%s3465_s29 + $0x78] sm:$0xff] %v2395_v41  ;;  %v2261_v47 = vmul.f32 %v3447_v17, %v1853_v42  ;;  %v1856_v48 = vadd.f32 %v1855_v45, %v1566_v44  ;;  %v1857_v49 = vpop.f32.mrb[35].mxu0 }
 0x15f   : > { %v2332_v50 = vadd.f32 %v3455_v25, %v2261_v47  ;;  %v2262_v51 = vmul.f32 %v3447_v17, %v1856_v48 }
 0x161   : > { %v2396_v52 = vmax.f32 %v2332_v50, 0.0  ;;  %v2333_v53 = vadd.f32 %v3455_v25, %v2262_v51 }
 0x162   : > { %v1571_v54 = vpop.f32.mrb[36].mxu1  ;;  %v1860_v55 = vpop.f32.mrb[36].mxu0 }
 0x163   : > { %v1573_v56 = vpop.f32.mrb[37].mxu1  ;;  %2460 = vst [vmem:[%s3465_s29 + $0x80] sm:$0xff] %v2396_v52  ;;  %v2397_v57 = vmax.f32 %v2333_v53, 0.0  ;;  %v1861_v58 = vadd.f32 %v1860_v55, %v1571_v54  ;;  %v1862_v59 = vpop.f32.mrb[37].mxu0 }
 0x164   : > { %v1574_v60 = vpop.f32.mrb[38].mxu1  ;;  %v1863_v61 = vpop.f32.mrb[38].mxu0 }
 0x165   : > { %v1576_v62 = vpop.f32.mrb[39].mxu1  ;;  %2461 = vst [vmem:[%s3465_s29 + $0x88] sm:$0xff] %v2397_v57  ;;  %v2263_v63 = vmul.f32 %v3447_v17, %v1861_v58  ;;  %v1864_v0 = vadd.f32 %v1863_v61, %v1574_v60  ;;  %v1865_v1 = vpop.f32.mrb[39].mxu0 }
 0x167   : > { %v2334_v2 = vadd.f32 %v3455_v25, %v2263_v63  ;;  %v2264_v3 = vmul.f32 %v3447_v17, %v1864_v0 }
 0x169   : > { %v2398_v4 = vmax.f32 %v2334_v2, 0.0  ;;  %v2335_v5 = vadd.f32 %v3455_v25, %v2264_v3 }
 0x16a   : > { %v1579_v6 = vpop.f32.mrb[40].mxu1  ;;  %v1868_v7 = vpop.f32.mrb[40].mxu0 }
 0x16b   : > { %v1581_v8 = vpop.f32.mrb[41].mxu1  ;;  %2462 = vst [vmem:[%s3465_s29 + $0x90] sm:$0xff] %v2398_v4  ;;  %v2399_v9 = vmax.f32 %v2335_v5, 0.0  ;;  %v1869_v10 = vadd.f32 %v1868_v7, %v1579_v6  ;;  %v1870_v11 = vpop.f32.mrb[41].mxu0 }
 0x16c   : > { %v1582_v12 = vpop.f32.mrb[42].mxu1  ;;  %v1871_v13 = vpop.f32.mrb[42].mxu0 }
 0x16d   : > { %v1584_v14 = vpop.f32.mrb[43].mxu1  ;;  %2463 = vst [vmem:[%s3465_s29 + $0x98] sm:$0xff] %v2399_v9  ;;  %v2265_v15 = vmul.f32 %v3447_v17, %v1869_v10  ;;  %v1872_v16 = vadd.f32 %v1871_v13, %v1582_v12  ;;  %v1873_v18 = vpop.f32.mrb[43].mxu0 }
 0x16f   : > { %v2336_v19 = vadd.f32 %v3455_v25, %v2265_v15  ;;  %v2266_v20 = vmul.f32 %v3447_v17, %v1872_v16 }
 0x171   : > { %v2400_v21 = vmax.f32 %v2336_v19, 0.0  ;;  %v2337_v22 = vadd.f32 %v3455_v25, %v2266_v20 }
 0x172   : > { %v1587_v23 = vpop.f32.mrb[44].mxu1  ;;  %v1876_v24 = vpop.f32.mrb[44].mxu0 }
 0x173   : > { %v1589_v26 = vpop.f32.mrb[45].mxu1  ;;  %2464 = vst [vmem:[%s3465_s29 + $0xa0] sm:$0xff] %v2400_v21  ;;  %v2401_v27 = vmax.f32 %v2337_v22, 0.0  ;;  %v1877_v28 = vadd.f32 %v1876_v24, %v1587_v23  ;;  %v1878_v29 = vpop.f32.mrb[45].mxu0 }
 0x174   : > { %v1590_v30 = vpop.f32.mrb[46].mxu1  ;;  %v1879_v31 = vpop.f32.mrb[46].mxu0 }
 0x175   : > { %v1592_v32 = vpop.f32.mrb[47].mxu1  ;;  %2465 = vst [vmem:[%s3465_s29 + $0xa8] sm:$0xff] %v2401_v27  ;;  %v2267_v33 = vmul.f32 %v3447_v17, %v1877_v28  ;;  %v1880_v34 = vadd.f32 %v1879_v31, %v1590_v30  ;;  %v1881_v35 = vpop.f32.mrb[47].mxu0 }
 0x177   : > { %v2338_v36 = vadd.f32 %v3455_v25, %v2267_v33  ;;  %v2268_v37 = vmul.f32 %v3447_v17, %v1880_v34 }
 0x179   : > { %v2402_v38 = vmax.f32 %v2338_v36, 0.0  ;;  %v2339_v39 = vadd.f32 %v3455_v25, %v2268_v37 }
 0x17a   : > { %v1595_v40 = vpop.f32.mrb[48].mxu1  ;;  %v1884_v41 = vpop.f32.mrb[48].mxu0 }
 0x17b   : > { %v1597_v42 = vpop.f32.mrb[49].mxu1  ;;  %2466 = vst [vmem:[%s3465_s29 + $0xb0] sm:$0xff] %v2402_v38  ;;  %v2403_v43 = vmax.f32 %v2339_v39, 0.0  ;;  %v1885_v44 = vadd.f32 %v1884_v41, %v1595_v40  ;;  %v1886_v45 = vpop.f32.mrb[49].mxu0 }
 0x17c   : > { %v1598_v46 = vpop.f32.mrb[50].mxu1  ;;  %v1887_v47 = vpop.f32.mrb[50].mxu0 }
 0x17d   : > { %v1600_v48 = vpop.f32.mrb[51].mxu1  ;;  %2467 = vst [vmem:[%s3465_s29 + $0xb8] sm:$0xff] %v2403_v43  ;;  %v2269_v49 = vmul.f32 %v3447_v17, %v1885_v44  ;;  %v1888_v50 = vadd.f32 %v1887_v47, %v1598_v46  ;;  %v1889_v51 = vpop.f32.mrb[51].mxu0 }
 0x17f   : > { %v2340_v52 = vadd.f32 %v3455_v25, %v2269_v49  ;;  %v2270_v53 = vmul.f32 %v3447_v17, %v1888_v50 }
 0x181   : > { %v2404_v54 = vmax.f32 %v2340_v52, 0.0  ;;  %v2341_v55 = vadd.f32 %v3455_v25, %v2270_v53 }
 0x182   : > { %v1603_v56 = vpop.f32.mrb[52].mxu1  ;;  %v1892_v57 = vpop.f32.mrb[52].mxu0 }
 0x183   : > { %v1605_v58 = vpop.f32.mrb[53].mxu1  ;;  %2468 = vst [vmem:[%s3465_s29 + $0xc0] sm:$0xff] %v2404_v54  ;;  %v2405_v59 = vmax.f32 %v2341_v55, 0.0  ;;  %v1893_v60 = vadd.f32 %v1892_v57, %v1603_v56  ;;  %v1894_v61 = vpop.f32.mrb[53].mxu0 }
 0x184   : > { %v1606_v62 = vpop.f32.mrb[54].mxu1  ;;  %v1895_v63 = vpop.f32.mrb[54].mxu0 }
 0x185   : > { %v1608_v0 = vpop.f32.mrb[55].mxu1  ;;  %2469 = vst [vmem:[%s3465_s29 + $0xc8] sm:$0xff] %v2405_v59  ;;  %v2271_v1 = vmul.f32 %v3447_v17, %v1893_v60  ;;  %v1896_v2 = vadd.f32 %v1895_v63, %v1606_v62  ;;  %v1897_v3 = vpop.f32.mrb[55].mxu0 }
 0x187   : > { %v2342_v4 = vadd.f32 %v3455_v25, %v2271_v1  ;;  %v2272_v5 = vmul.f32 %v3447_v17, %v1896_v2 }
 0x189   : > { %v2406_v6 = vmax.f32 %v2342_v4, 0.0  ;;  %v2343_v7 = vadd.f32 %v3455_v25, %v2272_v5 }
 0x18a   : > { %v1611_v8 = vpop.f32.mrb[56].mxu1  ;;  %v1900_v9 = vpop.f32.mrb[56].mxu0 }
 0x18b   : > { %v1613_v10 = vpop.f32.mrb[57].mxu1  ;;  %2470 = vst [vmem:[%s3465_s29 + $0xd0] sm:$0xff] %v2406_v6  ;;  %v2407_v11 = vmax.f32 %v2343_v7, 0.0  ;;  %v1901_v12 = vadd.f32 %v1900_v9, %v1611_v8  ;;  %v1902_v13 = vpop.f32.mrb[57].mxu0 }
 0x18c   : > { %v1614_v14 = vpop.f32.mrb[58].mxu1  ;;  %v1903_v15 = vpop.f32.mrb[58].mxu0 }
 0x18d   : > { %v1616_v16 = vpop.f32.mrb[59].mxu1  ;;  %2471 = vst [vmem:[%s3465_s29 + $0xd8] sm:$0xff] %v2407_v11  ;;  %v2273_v18 = vmul.f32 %v3447_v17, %v1901_v12  ;;  %v1904_v19 = vadd.f32 %v1903_v15, %v1614_v14  ;;  %v1905_v20 = vpop.f32.mrb[59].mxu0 }
 0x18f   : > { %v2344_v21 = vadd.f32 %v3455_v25, %v2273_v18  ;;  %v2274_v22 = vmul.f32 %v3447_v17, %v1904_v19 }
 0x191   : > { %v2408_v23 = vmax.f32 %v2344_v21, 0.0  ;;  %v2345_v24 = vadd.f32 %v3455_v25, %v2274_v22 }
 0x192   : > { %v1619_v26 = vpop.f32.mrb[60].mxu1  ;;  %v1908_v27 = vpop.f32.mrb[60].mxu0 }
 0x193   : > { %v1621_v28 = vpop.f32.mrb[61].mxu1  ;;  %2472 = vst [vmem:[%s3465_s29 + $0xe0] sm:$0xff] %v2408_v23  ;;  %v2409_v29 = vmax.f32 %v2345_v24, 0.0  ;;  %v1909_v30 = vadd.f32 %v1908_v27, %v1619_v26  ;;  %v1910_v31 = vpop.f32.mrb[61].mxu0 }
 0x194   : > { %v1622_v32 = vpop.f32.mrb[62].mxu1  ;;  %v1911_v33 = vpop.f32.mrb[62].mxu0 }
 0x195   : > { %v1624_v34 = vpop.f32.mrb[63].mxu1  ;;  %2473 = vst [vmem:[%s3465_s29 + $0xe8] sm:$0xff] %v2409_v29  ;;  %v2275_v35 = vmul.f32 %v3447_v17, %v1909_v30  ;;  %v1912_v36 = vadd.f32 %v1911_v33, %v1622_v32  ;;  %v1913_v37 = vpop.f32.mrb[63].mxu0 }
 0x197   : > { %v2346_v38 = vadd.f32 %v3455_v25, %v2275_v35  ;;  %v2276_v39 = vmul.f32 %v3447_v17, %v1912_v36 }
 0x199   : > { %v2410_v40 = vmax.f32 %v2346_v38, 0.0  ;;  %v2347_v41 = vadd.f32 %v3455_v25, %v2276_v39 }
 0x19a   : > { %v1627_v42 = vpop.f32.mrb[64].mxu1  ;;  %v1916_v43 = vpop.f32.mrb[64].mxu0 }
 0x19b   : > { %v1629_v44 = vpop.f32.mrb[65].mxu1  ;;  %2474 = vst [vmem:[%s3465_s29 + $0xf0] sm:$0xff] %v2410_v40  ;;  %v2411_v45 = vmax.f32 %v2347_v41, 0.0  ;;  %v1917_v46 = vadd.f32 %v1916_v43, %v1627_v42  ;;  %v1918_v47 = vpop.f32.mrb[65].mxu0 }
 0x19c   : > { %v1630_v48 = vpop.f32.mrb[66].mxu1  ;;  %v1919_v49 = vpop.f32.mrb[66].mxu0 }
 0x19d   : > { %v1632_v50 = vpop.f32.mrb[67].mxu1  ;;  %2475 = vst [vmem:[%s3465_s29 + $0xf8] sm:$0xff] %v2411_v45  ;;  %v2277_v51 = vmul.f32 %v3447_v17, %v1917_v46  ;;  %v1920_v52 = vadd.f32 %v1919_v49, %v1630_v48  ;;  %v1921_v53 = vpop.f32.mrb[67].mxu0 }
 0x19f   : > { %v2348_v54 = vadd.f32 %v3455_v25, %v2277_v51  ;;  %v2278_v55 = vmul.f32 %v3447_v17, %v1920_v52 }
 0x1a1   : > { %v2412_v56 = vmax.f32 %v2348_v54, 0.0  ;;  %v2349_v57 = vadd.f32 %v3455_v25, %v2278_v55 }
 0x1a2   : > { %v1635_v58 = vpop.f32.mrb[68].mxu1  ;;  %v1924_v59 = vpop.f32.mrb[68].mxu0 }
 0x1a3   : > { %v1637_v60 = vpop.f32.mrb[69].mxu1  ;;  %2476 = vst [vmem:[%s3465_s29 + $0x100] sm:$0xff] %v2412_v56  ;;  %v2413_v61 = vmax.f32 %v2349_v57, 0.0  ;;  %v1925_v62 = vadd.f32 %v1924_v59, %v1635_v58  ;;  %v1926_v63 = vpop.f32.mrb[69].mxu0 }
 0x1a4   : > { %v1638_v0 = vpop.f32.mrb[70].mxu1  ;;  %v1927_v1 = vpop.f32.mrb[70].mxu0 }
 0x1a5   : > { %v1640_v2 = vpop.f32.mrb[71].mxu1  ;;  %2477 = vst [vmem:[%s3465_s29 + $0x108] sm:$0xff] %v2413_v61  ;;  %v2279_v3 = vmul.f32 %v3447_v17, %v1925_v62  ;;  %v1928_v4 = vadd.f32 %v1927_v1, %v1638_v0  ;;  %v1929_v5 = vpop.f32.mrb[71].mxu0 }
 0x1a7   : > { %v2350_v6 = vadd.f32 %v3455_v25, %v2279_v3  ;;  %v2280_v7 = vmul.f32 %v3447_v17, %v1928_v4 }
 0x1a9   : > { %v2414_v8 = vmax.f32 %v2350_v6, 0.0  ;;  %v2351_v9 = vadd.f32 %v3455_v25, %v2280_v7 }
 0x1aa   : > { %v1643_v10 = vpop.f32.mrb[72].mxu1  ;;  %v1932_v11 = vpop.f32.mrb[72].mxu0 }
 0x1ab   : > { %v1645_v12 = vpop.f32.mrb[73].mxu1  ;;  %2478 = vst [vmem:[%s3465_s29 + $0x110] sm:$0xff] %v2414_v8  ;;  %v2415_v13 = vmax.f32 %v2351_v9, 0.0  ;;  %v1933_v14 = vadd.f32 %v1932_v11, %v1643_v10  ;;  %v1934_v15 = vpop.f32.mrb[73].mxu0 }
 0x1ac   : > { %v1646_v16 = vpop.f32.mrb[74].mxu1  ;;  %v1935_v18 = vpop.f32.mrb[74].mxu0 }
 0x1ad   : > { %v1648_v19 = vpop.f32.mrb[75].mxu1  ;;  %2479 = vst [vmem:[%s3465_s29 + $0x118] sm:$0xff] %v2415_v13  ;;  %v2281_v20 = vmul.f32 %v3447_v17, %v1933_v14  ;;  %v1936_v21 = vadd.f32 %v1935_v18, %v1646_v16  ;;  %v1937_v22 = vpop.f32.mrb[75].mxu0 }
 0x1af   : > { %v2352_v23 = vadd.f32 %v3455_v25, %v2281_v20  ;;  %v2282_v24 = vmul.f32 %v3447_v17, %v1936_v21 }
 0x1b1   : > { %v2416_v26 = vmax.f32 %v2352_v23, 0.0  ;;  %v2353_v27 = vadd.f32 %v3455_v25, %v2282_v24 }
 0x1b2   : > { %v1651_v28 = vpop.f32.mrb[76].mxu1  ;;  %v1940_v29 = vpop.f32.mrb[76].mxu0 }
 0x1b3   : > { %v1653_v30 = vpop.f32.mrb[77].mxu1  ;;  %2480 = vst [vmem:[%s3465_s29 + $0x120] sm:$0xff] %v2416_v26  ;;  %v2417_v31 = vmax.f32 %v2353_v27, 0.0  ;;  %v1941_v32 = vadd.f32 %v1940_v29, %v1651_v28  ;;  %v1942_v33 = vpop.f32.mrb[77].mxu0 }
 0x1b4   : > { %v1654_v34 = vpop.f32.mrb[78].mxu1  ;;  %v1943_v35 = vpop.f32.mrb[78].mxu0 }
 0x1b5   : > { %v1656_v36 = vpop.f32.mrb[79].mxu1  ;;  %2481 = vst [vmem:[%s3465_s29 + $0x128] sm:$0xff] %v2417_v31  ;;  %v2283_v37 = vmul.f32 %v3447_v17, %v1941_v32  ;;  %v1944_v38 = vadd.f32 %v1943_v35, %v1654_v34  ;;  %v1945_v39 = vpop.f32.mrb[79].mxu0 }
 0x1b7   : > { %v2354_v40 = vadd.f32 %v3455_v25, %v2283_v37  ;;  %v2284_v41 = vmul.f32 %v3447_v17, %v1944_v38 }
 0x1b9   : > { %v2418_v42 = vmax.f32 %v2354_v40, 0.0  ;;  %v2355_v43 = vadd.f32 %v3455_v25, %v2284_v41 }
 0x1ba   : > { %v1659_v44 = vpop.f32.mrb[80].mxu1  ;;  %v1948_v45 = vpop.f32.mrb[80].mxu0 }
 0x1bb   : > { %v1661_v46 = vpop.f32.mrb[81].mxu1  ;;  %2482 = vst [vmem:[%s3465_s29 + $0x130] sm:$0xff] %v2418_v42  ;;  %v2419_v47 = vmax.f32 %v2355_v43, 0.0  ;;  %v1949_v48 = vadd.f32 %v1948_v45, %v1659_v44  ;;  %v1950_v49 = vpop.f32.mrb[81].mxu0 }
 0x1bc   : > { %v1662_v50 = vpop.f32.mrb[82].mxu1  ;;  %v1951_v51 = vpop.f32.mrb[82].mxu0 }
 0x1bd   : > { %v1664_v52 = vpop.f32.mrb[83].mxu1  ;;  %2483 = vst [vmem:[%s3465_s29 + $0x138] sm:$0xff] %v2419_v47  ;;  %v2285_v53 = vmul.f32 %v3447_v17, %v1949_v48  ;;  %v1952_v54 = vadd.f32 %v1951_v51, %v1662_v50  ;;  %v1953_v55 = vpop.f32.mrb[83].mxu0 }
 0x1bf   : > { %v2356_v56 = vadd.f32 %v3455_v25, %v2285_v53  ;;  %v2286_v57 = vmul.f32 %v3447_v17, %v1952_v54 }
 0x1c1   : > { %v2420_v58 = vmax.f32 %v2356_v56, 0.0  ;;  %v2357_v59 = vadd.f32 %v3455_v25, %v2286_v57 }
 0x1c2   : > { %v1667_v60 = vpop.f32.mrb[84].mxu1  ;;  %v1956_v61 = vpop.f32.mrb[84].mxu0 }
 0x1c3   : > { %v1669_v62 = vpop.f32.mrb[85].mxu1  ;;  %2484 = vst [vmem:[%s3465_s29 + $0x140] sm:$0xff] %v2420_v58  ;;  %v2421_v63 = vmax.f32 %v2357_v59, 0.0  ;;  %v1957_v0 = vadd.f32 %v1956_v61, %v1667_v60  ;;  %v1958_v1 = vpop.f32.mrb[85].mxu0 }
 0x1c4   : > { %v1670_v2 = vpop.f32.mrb[86].mxu1  ;;  %v1959_v3 = vpop.f32.mrb[86].mxu0 }
 0x1c5   : > { %v1672_v4 = vpop.f32.mrb[87].mxu1  ;;  %2485 = vst [vmem:[%s3465_s29 + $0x148] sm:$0xff] %v2421_v63  ;;  %v2287_v5 = vmul.f32 %v3447_v17, %v1957_v0  ;;  %v1960_v6 = vadd.f32 %v1959_v3, %v1670_v2  ;;  %v1961_v7 = vpop.f32.mrb[87].mxu0 }
 0x1c7   : > { %v2358_v8 = vadd.f32 %v3455_v25, %v2287_v5  ;;  %v2288_v9 = vmul.f32 %v3447_v17, %v1960_v6 }
 0x1c9   : > { %v2422_v10 = vmax.f32 %v2358_v8, 0.0  ;;  %v2359_v11 = vadd.f32 %v3455_v25, %v2288_v9 }
 0x1ca   : > { %v1675_v12 = vpop.f32.mrb[88].mxu1  ;;  %v1964_v13 = vpop.f32.mrb[88].mxu0 }
 0x1cb   : > { %v1677_v14 = vpop.f32.mrb[89].mxu1  ;;  %2486 = vst [vmem:[%s3465_s29 + $0x150] sm:$0xff] %v2422_v10  ;;  %v2423_v15 = vmax.f32 %v2359_v11, 0.0  ;;  %v1965_v16 = vadd.f32 %v1964_v13, %v1675_v12  ;;  %v1966_v18 = vpop.f32.mrb[89].mxu0 }
 0x1cc   : > { %v1678_v19 = vpop.f32.mrb[90].mxu1  ;;  %v1967_v20 = vpop.f32.mrb[90].mxu0 }
 0x1cd   : > { %v1680_v21 = vpop.f32.mrb[91].mxu1  ;;  %2487 = vst [vmem:[%s3465_s29 + $0x158] sm:$0xff] %v2423_v15  ;;  %v2289_v22 = vmul.f32 %v3447_v17, %v1965_v16  ;;  %v1968_v23 = vadd.f32 %v1967_v20, %v1678_v19  ;;  %v1969_v24 = vpop.f32.mrb[91].mxu0 }
 0x1ce   : > { %v3637_v24 = vld [vmem:[%s3691_s2] ss:$0 sm:$0xff] }
 0x1cf   : > { %v2360_v26 = vadd.f32 %v3455_v25, %v2289_v22  ;;  %v2290_v27 = vmul.f32 %v3447_v17, %v1968_v23 }
 0x1d1   : > { %v2424_v28 = vmax.f32 %v2360_v26, 0.0  ;;  %v2361_v29 = vadd.f32 %v3455_v25, %v2290_v27 }
 0x1d2   : > { %v1683_v30 = vpop.f32.mrb[92].mxu1  ;;  %v1972_v31 = vpop.f32.mrb[92].mxu0 }
 0x1d3   : > { %v1685_v32 = vpop.f32.mrb[93].mxu1  ;;  %2488 = vst [vmem:[%s3465_s29 + $0x160] sm:$0xff] %v2424_v28  ;;  %v2425_v33 = vmax.f32 %v2361_v29, 0.0  ;;  %v1973_v34 = vadd.f32 %v1972_v31, %v1683_v30  ;;  %v1974_v35 = vpop.f32.mrb[93].mxu0  ;;  %v3645_v31 = vld [vmem:[%s3692_s3] ss:$0 sm:$0xff] }
 0x1d4   : > { %v1686_v36 = vpop.f32.mrb[94].mxu1  ;;  %v1975_v37 = vpop.f32.mrb[94].mxu0 }
 0x1d5   : > { %v1688_v38 = vpop.f32.mrb[95].mxu1  ;;  %2489 = vst [vmem:[%s3465_s29 + $0x168] sm:$0xff] %v2425_v33  ;;  %v2291_v39 = vmul.f32 %v3447_v17, %v1973_v34  ;;  %v1976_v40 = vadd.f32 %v1975_v37, %v1686_v36  ;;  %v1977_v41 = vpop.f32.mrb[95].mxu0 }
 0x1d7   : > { %v2362_v42 = vadd.f32 %v3455_v25, %v2291_v39  ;;  %v2292_v43 = vmul.f32 %v3447_v17, %v1976_v40 }
 0x1d9   : > { %v2426_v44 = vmax.f32 %v2362_v42, 0.0  ;;  %v2363_v45 = vadd.f32 %v3455_v25, %v2292_v43 }
 0x1da   : > { %v1691_v46 = vpop.f32.mrb[96].mxu1  ;;  %v1980_v47 = vpop.f32.mrb[96].mxu0 }
 0x1db   : > { %v1693_v48 = vpop.f32.mrb[97].mxu1  ;;  %2490 = vst [vmem:[%s3465_s29 + $0x170] sm:$0xff] %v2426_v44  ;;  %v2427_v49 = vmax.f32 %v2363_v45, 0.0  ;;  %v1981_v50 = vadd.f32 %v1980_v47, %v1691_v46  ;;  %v1982_v51 = vpop.f32.mrb[97].mxu0 }
 0x1dc   : > { %v1694_v52 = vpop.f32.mrb[98].mxu1  ;;  %v1983_v53 = vpop.f32.mrb[98].mxu0 }
 0x1dd   : > { %v1696_v54 = vpop.f32.mrb[99].mxu1  ;;  %2491 = vst [vmem:[%s3465_s29 + $0x178] sm:$0xff] %v2427_v49  ;;  %v2293_v55 = vmul.f32 %v3447_v17, %v1981_v50  ;;  %v1984_v56 = vadd.f32 %v1983_v53, %v1694_v52  ;;  %v1985_v57 = vpop.f32.mrb[99].mxu0 }
 0x1df   : > { %v2364_v58 = vadd.f32 %v3455_v25, %v2293_v55  ;;  %v2294_v59 = vmul.f32 %v3447_v17, %v1984_v56 }
 0x1e1   : > { %v2428_v60 = vmax.f32 %v2364_v58, 0.0  ;;  %v2365_v61 = vadd.f32 %v3455_v25, %v2294_v59 }
 0x1e2   : > { %v1699_v62 = vpop.f32.mrb[100].mxu1  ;;  %v1988_v63 = vpop.f32.mrb[100].mxu0 }
 0x1e3   : > { %v1701_v0 = vpop.f32.mrb[101].mxu1  ;;  %2492 = vst [vmem:[%s3465_s29 + $0x180] sm:$0xff] %v2428_v60  ;;  %v2429_v1 = vmax.f32 %v2365_v61, 0.0  ;;  %v1989_v2 = vadd.f32 %v1988_v63, %v1699_v62  ;;  %v1990_v3 = vpop.f32.mrb[101].mxu0 }
 0x1e4   : > { %v1702_v4 = vpop.f32.mrb[102].mxu1  ;;  %v1991_v5 = vpop.f32.mrb[102].mxu0 }
 0x1e5   : > { %v1704_v6 = vpop.f32.mrb[103].mxu1  ;;  %2493 = vst [vmem:[%s3465_s29 + $0x188] sm:$0xff] %v2429_v1  ;;  %v2295_v7 = vmul.f32 %v3447_v17, %v1989_v2  ;;  %v1992_v8 = vadd.f32 %v1991_v5, %v1702_v4  ;;  %v1993_v9 = vpop.f32.mrb[103].mxu0 }
 0x1e7   : > { %v2366_v10 = vadd.f32 %v3455_v25, %v2295_v7  ;;  %v2296_v11 = vmul.f32 %v3447_v17, %v1992_v8 }
 0x1e9   : > { %v2430_v12 = vmax.f32 %v2366_v10, 0.0  ;;  %v2367_v13 = vadd.f32 %v3455_v25, %v2296_v11 }
 0x1ea   : > { %v1707_v14 = vpop.f32.mrb[104].mxu1  ;;  %v1996_v15 = vpop.f32.mrb[104].mxu0 }
 0x1eb   : > { %v1709_v16 = vpop.f32.mrb[105].mxu1  ;;  %2494 = vst [vmem:[%s3465_s29 + $0x190] sm:$0xff] %v2430_v12  ;;  %v2431_v18 = vmax.f32 %v2367_v13, 0.0  ;;  %v1997_v19 = vadd.f32 %v1996_v15, %v1707_v14  ;;  %v1998_v20 = vpop.f32.mrb[105].mxu0 }
 0x1ec   : > { %v1710_v21 = vpop.f32.mrb[106].mxu1  ;;  %v1999_v22 = vpop.f32.mrb[106].mxu0 }
 0x1ed   : > { %v1712_v23 = vpop.f32.mrb[107].mxu1  ;;  %2495 = vst [vmem:[%s3465_s29 + $0x198] sm:$0xff] %v2431_v18  ;;  %v2297_v17 = vmul.f32 %v3637_v24, %v1997_v19  ;;  %v2000_v26 = vadd.f32 %v1999_v22, %v1710_v21  ;;  %v2001_v27 = vpop.f32.mrb[107].mxu0 }
 0x1ef   : > { %v2368_v28 = vadd.f32 %v3455_v25, %v2297_v17  ;;  %v2298_v29 = vmul.f32 %v3637_v24, %v2000_v26 }
 0x1f1   : > { %v2432_v30 = vmax.f32 %v2368_v28, 0.0  ;;  %v2369_v32 = vadd.f32 %v3645_v31, %v2298_v29 }
 0x1f2   : > { %v1715_v33 = vpop.f32.mrb[108].mxu1  ;;  %v2004_v34 = vpop.f32.mrb[108].mxu0 }
 0x1f3   : > { %v1717_v35 = vpop.f32.mrb[109].mxu1  ;;  %2496 = vst [vmem:[%s3465_s29 + $0x1a0] sm:$0xff] %v2432_v30  ;;  %v2433_v36 = vmax.f32 %v2369_v32, 0.0  ;;  %v2005_v37 = vadd.f32 %v2004_v34, %v1715_v33  ;;  %v2006_v38 = vpop.f32.mrb[109].mxu0 }
 0x1f4   : > { %v1718_v39 = vpop.f32.mrb[110].mxu1  ;;  %v2007_v25 = vpop.f32.mrb[110].mxu0 }
 0x1f5   : > { %v1720_v40 = vpop.f32.mrb[111].mxu1  ;;  %2497 = vst [vmem:[%s3465_s29 + $0x1a8] sm:$0xff] %v2433_v36  ;;  %v2299_v41 = vmul.f32 %v3637_v24, %v2005_v37  ;;  %v2008_v42 = vadd.f32 %v2007_v25, %v1718_v39  ;;  %v2009_v43 = vpop.f32.mrb[111].mxu0 }
 0x1f7   : > { %v2370_v44 = vadd.f32 %v3645_v31, %v2299_v41  ;;  %v2300_v45 = vmul.f32 %v3637_v24, %v2008_v42 }
 0x1f9   : > { %v2434_v46 = vmax.f32 %v2370_v44, 0.0  ;;  %v2371_v47 = vadd.f32 %v3645_v31, %v2300_v45 }
 0x1fa   : > { %v1723_v48 = vpop.f32.mrb[112].mxu1  ;;  %v2012_v49 = vpop.f32.mrb[112].mxu0 }
 0x1fb   : > { %v1725_v50 = vpop.f32.mrb[113].mxu1  ;;  %2498 = vst [vmem:[%s3465_s29 + $0x1b0] sm:$0xff] %v2434_v46  ;;  %v2435_v51 = vmax.f32 %v2371_v47, 0.0  ;;  %v2013_v52 = vadd.f32 %v2012_v49, %v1723_v48  ;;  %v2014_v53 = vpop.f32.mrb[113].mxu0 }
 0x1fc   : > { %v1726_v54 = vpop.f32.mrb[114].mxu1  ;;  %v2015_v55 = vpop.f32.mrb[114].mxu0 }
 0x1fd   : > { %v1728_v56 = vpop.f32.mrb[115].mxu1  ;;  %2499 = vst [vmem:[%s3465_s29 + $0x1b8] sm:$0xff] %v2435_v51  ;;  %v2301_v57 = vmul.f32 %v3637_v24, %v2013_v52  ;;  %v2016_v58 = vadd.f32 %v2015_v55, %v1726_v54  ;;  %v2017_v59 = vpop.f32.mrb[115].mxu0 }
 0x1ff   : > { %v2372_v60 = vadd.f32 %v3645_v31, %v2301_v57  ;;  %v2302_v61 = vmul.f32 %v3637_v24, %v2016_v58 }
 0x201   : > { %v2436_v62 = vmax.f32 %v2372_v60, 0.0  ;;  %v2373_v63 = vadd.f32 %v3645_v31, %v2302_v61 }
 0x202   : > { %v1731_v0 = vpop.f32.mrb[116].mxu1  ;;  %v2020_v1 = vpop.f32.mrb[116].mxu0 }
 0x203   : > { %v1733_v2 = vpop.f32.mrb[117].mxu1  ;;  %2500 = vst [vmem:[%s3465_s29 + $0x1c0] sm:$0xff] %v2436_v62  ;;  %v2437_v3 = vmax.f32 %v2373_v63, 0.0  ;;  %v2021_v4 = vadd.f32 %v2020_v1, %v1731_v0  ;;  %v2022_v5 = vpop.f32.mrb[117].mxu0 }
 0x204   : > { %v1734_v6 = vpop.f32.mrb[118].mxu1  ;;  %v2023_v7 = vpop.f32.mrb[118].mxu0 }
 0x205   : > { %v1736_v8 = vpop.f32.mrb[119].mxu1  ;;  %2501 = vst [vmem:[%s3465_s29 + $0x1c8] sm:$0xff] %v2437_v3  ;;  %v2303_v9 = vmul.f32 %v3637_v24, %v2021_v4  ;;  %v2024_v10 = vadd.f32 %v2023_v7, %v1734_v6  ;;  %v2025_v11 = vpop.f32.mrb[119].mxu0 }
 0x207   : > { %v2374_v12 = vadd.f32 %v3645_v31, %v2303_v9  ;;  %v2304_v13 = vmul.f32 %v3637_v24, %v2024_v10 }
 0x209   : > { %v2438_v14 = vmax.f32 %v2374_v12, 0.0  ;;  %v2375_v15 = vadd.f32 %v3645_v31, %v2304_v13 }
 0x20a   : > { %v1739_v16 = vpop.f32.mrb[120].mxu1  ;;  %v2028_v18 = vpop.f32.mrb[120].mxu0 }
 0x20b   : > { %v1741_v19 = vpop.f32.mrb[121].mxu1  ;;  %2502 = vst [vmem:[%s3465_s29 + $0x1d0] sm:$0xff] %v2438_v14  ;;  %v2439_v20 = vmax.f32 %v2375_v15, 0.0  ;;  %v2029_v21 = vadd.f32 %v2028_v18, %v1739_v16  ;;  %v2030_v22 = vpop.f32.mrb[121].mxu0 }
 0x20c   : > { %v1742_v23 = vpop.f32.mrb[122].mxu1  ;;  %v2031_v17 = vpop.f32.mrb[122].mxu0 }
 0x20d   : > { %v1744_v26 = vpop.f32.mrb[123].mxu1  ;;  %2503 = vst [vmem:[%s3465_s29 + $0x1d8] sm:$0xff] %v2439_v20  ;;  %v2305_v27 = vmul.f32 %v3637_v24, %v2029_v21  ;;  %v2032_v28 = vadd.f32 %v2031_v17, %v1742_v23  ;;  %v2033_v29 = vpop.f32.mrb[123].mxu0 }
 0x20f   : > { %v2376_v30 = vadd.f32 %v3645_v31, %v2305_v27  ;;  %v2306_v32 = vmul.f32 %v3637_v24, %v2032_v28 }
 0x211   : > { %v2440_v33 = vmax.f32 %v2376_v30, 0.0  ;;  %v2377_v34 = vadd.f32 %v3645_v31, %v2306_v32 }
 0x212   : > { %v1747_v35 = vpop.f32.mrb[124].mxu1  ;;  %v2036_v36 = vpop.f32.mrb[124].mxu0 }
 0x213   : > { %v1749_v37 = vpop.f32.mrb[125].mxu1  ;;  %2504 = vst [vmem:[%s3465_s29 + $0x1e0] sm:$0xff] %v2440_v33  ;;  %v2441_v38 = vmax.f32 %v2377_v34, 0.0  ;;  %v2037_v39 = vadd.f32 %v2036_v36, %v1747_v35  ;;  %v2038_v25 = vpop.f32.mrb[125].mxu0 }
 0x214   : > { %v1750_v40 = vpop.f32.mrb[126].mxu1  ;;  %v2039_v41 = vpop.f32.mrb[126].mxu0 }
 0x215   : > { %v1752_v42 = vpop.f32.mrb[127].mxu1  ;;  %2505 = vst [vmem:[%s3465_s29 + $0x1e8] sm:$0xff] %v2441_v38  ;;  %v2307_v43 = vmul.f32 %v3637_v24, %v2037_v39  ;;  %v2040_v44 = vadd.f32 %v2039_v41, %v1750_v40  ;;  %v2041_v45 = vpop.f32.mrb[127].mxu0 }
 0x217   : > { %v2378_v46 = vadd.f32 %v3645_v31, %v2307_v43  ;;  %v2308_v47 = vmul.f32 %v3637_v24, %v2040_v44 }
 0x219   : > { %v2442_v48 = vmax.f32 %v2378_v46, 0.0  ;;  %v2379_v49 = vadd.f32 %v3645_v31, %v2308_v47 }
 0x21b   : > { %2506 = vst [vmem:[%s3465_s29 + $0x1f0] sm:$0xff] %v2442_v48  ;;  %v2443_v50 = vmax.f32 %v2379_v49, 0.0 }
 0x21d   : > { %2507 = vst [vmem:[%s3465_s29 + $0x1f8] sm:$0xff] %v2443_v50 }
 0x21e PF: > { %s14_s17 = sadd.s32 1, %s3149_s17   ;;  %s3694_s15 = smov %s3145_s16 }
 0x21f   : > { %p11_p5 = scmp.ge.s32.totalorder %s14_s17, 4   ;;  %s3695_s16 = smov %s3697_s18 }
 0x221   :  { %13 = sbr.rel (!%p11_p5) target bundleno = 2 (0x2), region = 83 }

// kernel: fwd.6
= control target key start
LH: loop header
LB: loop body
LE: loop exit
PB: predicated region body
PF: predicated region fallthrough
CT: control target
= control target key end

     0   :  { %s1871_s15 = smov 0   ;;  %s1873_s16 = smov 0   ;;  %s2170_s0 = inlined_call_operand.vmem [shape: bf16[1024,128], index: 0, kind: input, shape index: {}]   ;;  %s2171_s1 = inlined_call_operand.vmem [shape: bf16[128,128], index: 1, kind: input, shape index: {}]   ;;  %s2172_s2 = inlined_call_operand.vmem [shape: f32[1,128], index: 2, kind: input, shape index: {}]   ;;  %s2173_s3 = inlined_call_operand.vmem [shape: f32[1,128], index: 3, kind: input, shape index: {}]   ;;  %s2174_s4 = inlined_call_operand.vmem [shape: f32[1024,128], index: 4, kind: output, shape index: {}]  }
   0x1   :  { %s1875_s17 = smov 0  }
   0x2 LB: > { %s33_s18 = sadd.s32 1, %s1840_s16  ;;  %p1573_p0 = scmp.ge.s32.totalorder %s1844_s17, 1  ;;  %s1844_s17 = sphi %s1875_s17, %s14_s17   ;;  %s1840_s16 = sphi %s1873_s16, %s2176_s16   ;;  %s1836_s15 = sphi %s1871_s15, %s2175_s15  }
   0x3   : > { %p35_p1 = scmp.ge.s32.totalorder %s33_s18, 2  ;;  %p221_p2 = scmp.lt.s32.totalorder %s1844_s17, 3 }
   0x5   : > { %s2178_s18 = smov (%p35_p1, %s33_s18), 0  ;;  %p222_p3 = pnand %p1573_p0, %p221_p2 }
   0x6   : > { %v1782_v0 = vld [vmem:[%s2171_s1] sm:$0xff] (!%p222_p3)   ;;  %s1574_s21 = sshll.u32 (!%p222_p3), %s1836_s15, 6  ;;  %v1783_v1 = vld [vmem:[%s2171_s1 + $0x8] sm:$0xff] (!%p222_p3)   ;;  %v1784_v2 = vld [vmem:[%s2171_s1 + $0x10] sm:$0xff] (!%p222_p3)  }
   0x7   : > { %225 = sbr.rel (%p222_p3) target bundleno = 315 (0x13b), region = 36  ;;  %p268_p4 = scmp.lt.s32.totalorder (!%p222_p3), %s1574_s21, 127  ;;  %1662 = vmatprep.subr.bf16.mxu0 (!%p222_p3), %v1782_v0  ;;  %1742 = vmatprep.subr.bf16.mxu1 (!%p222_p3), %v1782_v0  ;;  %v1785_v3 = vld [vmem:[%s2171_s1 + $0x18] sm:$0xff] (!%p222_p3)   ;;  %v1786_v6 = vld [vmem:[%s2171_s1 + $0x20] sm:$0xff] (!%p222_p3)   ;;  %v1787_v7 = vld [vmem:[%s2171_s1 + $0x28] sm:$0xff] (!%p222_p3)  }
   0x8   : > { %1663 = vmatpush3.bf16.msra.mxu0 (!%p222_p3), %v1782_v0  ;;  %1750 = vmatpush3.bf16.msra.mxu1 (!%p222_p3), %v1782_v0  ;;  %v1788_v8 = vld [vmem:[%s2171_s1 + $0x30] sm:$0xff] (!%p222_p3)   ;;  %v1789_v9 = vld [vmem:[%s2171_s1 + $0x38] sm:$0xff] (!%p222_p3)   ;;  %v1956_v40 = vld [vmem:[%s2172_s2] ss:$0 sm:$0xff] (!%p222_p3) }
   0x9   : > { %1664 = vmatprep.subr.bf16.mxu0 (!%p222_p3), %v1783_v1  ;;  %1743 = vmatprep.subr.bf16.mxu1 (!%p222_p3), %v1783_v1  ;;  %v1962_v42 = vld [vmem:[%s2173_s3] ss:$0 sm:$0xff] (!%p222_p3) }
   0xc   : > { %1665 = vmatpush3.bf16.msra.mxu0 (!%p222_p3), %v1783_v1  ;;  %1751 = vmatpush3.bf16.msra.mxu1 (!%p222_p3), %v1783_v1 }
   0xd   : > { %1666 = vmatprep.subr.bf16.mxu0 (!%p222_p3), %v1784_v2  ;;  %1744 = vmatprep.subr.bf16.mxu1 (!%p222_p3), %v1784_v2 }
   0xe   : > { %s2180_s21 = smov (!%p268_p4, %s1574_s21), 127 }
   0xf   : > { %s1575_s26 = sshll.u32 %s2180_s21, 2  ;;  %s1577_s19 = sshll.u32 %s2180_s21, 3 }
  0x10   : > { %s1904_s29 = scalar_lea.vmem %s2170_s0, %s1575_s26  ;;  %1667 = vmatpush3.bf16.msra.mxu0 %v1784_v2  ;;  %1752 = vmatpush3.bf16.msra.mxu1 %v1784_v2  ;;  %s1969_s25 = scalar_lea.vmem %s2174_s4, %s1577_s19 }
  0x11   : > { %v1790_v4 = vld [vmem:[%s1904_s29] sm:$0xff]   ;;  %1668 = vmatprep.subr.bf16.mxu0 %v1785_v3  ;;  %1745 = vmatprep.subr.bf16.mxu1 %v1785_v3  ;;  %v1792_v10 = vld [vmem:[%s1904_s29 + $0x8] sm:$0xff]   ;;  %v1794_v12 = vld [vmem:[%s1904_s29 + $0x10] sm:$0xff]  }
  0x12   : > { %v1791_v5 = vld [vmem:[%s1904_s29 + $0x80] sm:$0xff]   ;;  %1678 = vmatprep.mubr.bf16.mxu0 %v1790_v4  ;;  %v1793_v11 = vld [vmem:[%s1904_s29 + $0x88] sm:$0xff]   ;;  %v1795_v13 = vld [vmem:[%s1904_s29 + $0x90] sm:$0xff]  }
  0x13   : > { %1710 = vmatprep.mubr.bf16.mxu1 %v1791_v5  ;;  %v1796_v14 = vld [vmem:[%s1904_s29 + $0x18] sm:$0xff]   ;;  %v1798_v16 = vld [vmem:[%s1904_s29 + $0x20] sm:$0xff]   ;;  %v1800_v18 = vld [vmem:[%s1904_s29 + $0x28] sm:$0xff]  }
  0x14   : > { %1669 = vmatpush3.bf16.msra.mxu0 %v1785_v3  ;;  %1753 = vmatpush3.bf16.msra.mxu1 %v1785_v3  ;;  %v1797_v15 = vld [vmem:[%s1904_s29 + $0x98] sm:$0xff]   ;;  %v1799_v17 = vld [vmem:[%s1904_s29 + $0xa0] sm:$0xff]   ;;  %v1801_v19 = vld [vmem:[%s1904_s29 + $0xa8] sm:$0xff]  }
  0x15   : > { %1670 = vmatprep.subr.bf16.mxu0 %v1786_v6  ;;  %1746 = vmatprep.subr.bf16.mxu1 %v1786_v6  ;;  %v1802_v20 = vld [vmem:[%s1904_s29 + $0x30] sm:$0xff]   ;;  %v1804_v22 = vld [vmem:[%s1904_s29 + $0x38] sm:$0xff]   ;;  %v1806_v24 = vld [vmem:[%s1904_s29 + $0x40] sm:$0xff]  }
  0x16   : > { %v1803_v21 = vld [vmem:[%s1904_s29 + $0xb0] sm:$0xff]   ;;  %v1805_v23 = vld [vmem:[%s1904_s29 + $0xb8] sm:$0xff]   ;;  %v1807_v25 = vld [vmem:[%s1904_s29 + $0xc0] sm:$0xff]  }
  0x17   : > { %v1808_v26 = vld [vmem:[%s1904_s29 + $0x48] sm:$0xff]   ;;  %v1810_v28 = vld [vmem:[%s1904_s29 + $0x50] sm:$0xff]   ;;  %v1812_v30 = vld [vmem:[%s1904_s29 + $0x58] sm:$0xff]  }
  0x18   : > { %1671 = vmatpush3.bf16.msra.mxu0 %v1786_v6  ;;  %1754 = vmatpush3.bf16.msra.mxu1 %v1786_v6  ;;  %v1809_v27 = vld [vmem:[%s1904_s29 + $0xc8] sm:$0xff]   ;;  %v1811_v29 = vld [vmem:[%s1904_s29 + $0xd0] sm:$0xff]   ;;  %v1813_v31 = vld [vmem:[%s1904_s29 + $0xd8] sm:$0xff]  }
  0x19   : > { %1672 = vmatprep.subr.bf16.mxu0 %v1787_v7  ;;  %1747 = vmatprep.subr.bf16.mxu1 %v1787_v7  ;;  %v1814_v32 = vld [vmem:[%s1904_s29 + $0x60] sm:$0xff]   ;;  %v1816_v34 = vld [vmem:[%s1904_s29 + $0x68] sm:$0xff]   ;;  %v1818_v36 = vld [vmem:[%s1904_s29 + $0x70] sm:$0xff]  }
  0x1a   : > { %v1815_v33 = vld [vmem:[%s1904_s29 + $0xe0] sm:$0xff]   ;;  %v1817_v35 = vld [vmem:[%s1904_s29 + $0xe8] sm:$0xff]   ;;  %v1819_v37 = vld [vmem:[%s1904_s29 + $0xf0] sm:$0xff]  }
  0x1b   : > { %v1820_v38 = vld [vmem:[%s1904_s29 + $0x78] sm:$0xff]  }
  0x1c   : > { %1673 = vmatpush3.bf16.msra.mxu0 %v1787_v7  ;;  %1755 = vmatpush3.bf16.msra.mxu1 %v1787_v7  ;;  %v1821_v39 = vld [vmem:[%s1904_s29 + $0xf8] sm:$0xff]  }
  0x1d   : > { %1674 = vmatprep.subr.bf16.mxu0 %v1788_v8  ;;  %1748 = vmatprep.subr.bf16.mxu1 %v1788_v8 }
  0x20   : > { %1675 = vmatpush3.bf16.msra.mxu0 %v1788_v8  ;;  %1756 = vmatpush3.bf16.msra.mxu1 %v1788_v8 }
  0x21   : > { %1676 = vmatprep.subr.bf16.mxu0 %v1789_v9  ;;  %1749 = vmatprep.subr.bf16.mxu1 %v1789_v9 }
  0x24   : > { %1677 = vmatpush3.bf16.msra.mxu0 %v1789_v9  ;;  %1757 = vmatpush3.bf16.msra.mxu1 %v1789_v9 }
  0x27   : > { %1679 = vmatmul.mubr.bf16.vlgmr.msra.gmra.mrb[0].mxu0 %v1792_v10  ;;  %1711 = vmatmul.mubr.bf16.vlgmr.msra.gmra.mrb[0].mxu1 %v1793_v11 }
  0x28   : > { %1682 = vmatprep.mubr.bf16.mxu0 %v1794_v12  ;;  %1714 = vmatprep.mubr.bf16.mxu1 %v1795_v13 }
  0x2f   : > { %1683 = vmatmul.mubr.bf16.gmra.mrb[4].mxu0 %v1796_v14  ;;  %1715 = vmatmul.mubr.bf16.gmra.mrb[4].mxu1 %v1797_v15 }
  0x30   : > { %1686 = vmatprep.mubr.bf16.mxu0 %v1798_v16  ;;  %1718 = vmatprep.mubr.bf16.mxu1 %v1799_v17 }
  0x37   : > { %1687 = vmatmul.mubr.bf16.gmra.mrb[8].mxu0 %v1800_v18  ;;  %1719 = vmatmul.mubr.bf16.gmra.mrb[8].mxu1 %v1801_v19 }
  0x38   : > { %1690 = vmatprep.mubr.bf16.mxu0 %v1802_v20  ;;  %1722 = vmatprep.mubr.bf16.mxu1 %v1803_v21 }
  0x3f   : > { %1691 = vmatmul.mubr.bf16.gmra.mrb[12].mxu0 %v1804_v22  ;;  %1723 = vmatmul.mubr.bf16.gmra.mrb[12].mxu1 %v1805_v23 }
  0x40   : > { %1694 = vmatprep.mubr.bf16.mxu0 %v1806_v24  ;;  %1726 = vmatprep.mubr.bf16.mxu1 %v1807_v25 }
  0x47   : > { %1695 = vmatmul.mubr.bf16.gmra.mrb[16].mxu0 %v1808_v26  ;;  %1727 = vmatmul.mubr.bf16.gmra.mrb[16].mxu1 %v1809_v27 }
  0x48   : > { %1698 = vmatprep.mubr.bf16.mxu0 %v1810_v28  ;;  %1730 = vmatprep.mubr.bf16.mxu1 %v1811_v29 }
  0x4f   : > { %1699 = vmatmul.mubr.bf16.gmra.mrb[20].mxu0 %v1812_v30  ;;  %1731 = vmatmul.mubr.bf16.gmra.mrb[20].mxu1 %v1813_v31 }
  0x50   : > { %1702 = vmatprep.mubr.bf16.mxu0 %v1814_v32  ;;  %1734 = vmatprep.mubr.bf16.mxu1 %v1815_v33 }
  0x57   : > { %1703 = vmatmul.mubr.bf16.gmra.mrb[24].mxu0 %v1816_v34  ;;  %1735 = vmatmul.mubr.bf16.gmra.mrb[24].mxu1 %v1817_v35 }
  0x58   : > { %1706 = vmatprep.mubr.bf16.mxu0 %v1818_v36  ;;  %1738 = vmatprep.mubr.bf16.mxu1 %v1819_v37 }
  0x5f   : > { %1707 = vmatmul.mubr.bf16.gmra.mrb[28].mxu0 %v1820_v38  ;;  %1739 = vmatmul.mubr.bf16.gmra.mrb[28].mxu1 %v1821_v39 }
  0xfa   : > { %v1680_v41 = vpop.f32.mrb[0].mxu0  ;;  %v1712_v43 = vpop.f32.mrb[0].mxu1 }
  0xfb   : > { %v1246_v44 = vmul.f32 %v1680_v41, %v1956_v40  ;;  %v1278_v45 = vmul.f32 %v1712_v43, %v1956_v40  ;;  %v787_v46 = vpop.f32.mrb[1].mxu0  ;;  %v915_v47 = vpop.f32.mrb[1].mxu1 }
  0xfc   : > { %v1244_v48 = vmul.f32 %v1956_v40, %v787_v46  ;;  %v1276_v49 = vmul.f32 %v1956_v40, %v915_v47  ;;  %v1681_v50 = vpop.f32.mrb[2].mxu0  ;;  %v1713_v51 = vpop.f32.mrb[2].mxu1 }
  0xfd   : > { %v1317_v52 = vadd.f32 %v1962_v42, %v1246_v44  ;;  %v1349_v53 = vadd.f32 %v1962_v42, %v1278_v45  ;;  %v1247_v54 = vmul.f32 %v1681_v50, %v1956_v40  ;;  %v1279_v55 = vmul.f32 %v1713_v51, %v1956_v40  ;;  %v790_v56 = vpop.f32.mrb[3].mxu0  ;;  %v918_v57 = vpop.f32.mrb[3].mxu1 }
  0xfe   : > { %v1315_v58 = vadd.f32 %v1962_v42, %v1244_v48  ;;  %v1347_v59 = vadd.f32 %v1962_v42, %v1276_v49  ;;  %v1245_v60 = vmul.f32 %v1956_v40, %v790_v56  ;;  %v1277_v61 = vmul.f32 %v1956_v40, %v918_v57 }
  0xff   : > { %1381 = vst [vmem:[%s1969_s25 + $0x10] sm:$0xff] %v1317_v52  ;;  %1413 = vst [vmem:[%s1969_s25 + $0x110] sm:$0xff] %v1349_v53  ;;  %v1318_v62 = vadd.f32 %v1962_v42, %v1247_v54  ;;  %v1350_v63 = vadd.f32 %v1962_v42, %v1279_v55 }
 0x100   : > { %1379 = vst [vmem:[%s1969_s25] sm:$0xff] %v1315_v58  ;;  %1411 = vst [vmem:[%s1969_s25 + $0x100] sm:$0xff] %v1347_v59  ;;  %v1316_v0 = vadd.f32 %v1962_v42, %v1245_v60  ;;  %v1348_v1 = vadd.f32 %v1962_v42, %v1277_v61 }
 0x101   : > { %1382 = vst [vmem:[%s1969_s25 + $0x18] sm:$0xff] %v1318_v62  ;;  %1414 = vst [vmem:[%s1969_s25 + $0x118] sm:$0xff] %v1350_v63 }
 0x102   : > { %1380 = vst [vmem:[%s1969_s25 + $0x8] sm:$0xff] %v1316_v0  ;;  %1412 = vst [vmem:[%s1969_s25 + $0x108] sm:$0xff] %v1348_v1  ;;  %v1684_v2 = vpop.f32.mrb[4].mxu0  ;;  %v1716_v3 = vpop.f32.mrb[4].mxu1 }
 0x103   : > { %v1250_v4 = vmul.f32 %v1684_v2, %v1956_v40  ;;  %v1282_v5 = vmul.f32 %v1716_v3, %v1956_v40  ;;  %v803_v6 = vpop.f32.mrb[5].mxu0  ;;  %v931_v7 = vpop.f32.mrb[5].mxu1 }
 0x104   : > { %v1248_v8 = vmul.f32 %v1956_v40, %v803_v6  ;;  %v1280_v9 = vmul.f32 %v1956_v40, %v931_v7  ;;  %v1685_v10 = vpop.f32.mrb[6].mxu0  ;;  %v1717_v11 = vpop.f32.mrb[6].mxu1 }
 0x105   : > { %v1321_v12 = vadd.f32 %v1962_v42, %v1250_v4  ;;  %v1353_v13 = vadd.f32 %v1962_v42, %v1282_v5  ;;  %v1251_v14 = vmul.f32 %v1685_v10, %v1956_v40  ;;  %v1283_v15 = vmul.f32 %v1717_v11, %v1956_v40  ;;  %v806_v16 = vpop.f32.mrb[7].mxu0  ;;  %v934_v17 = vpop.f32.mrb[7].mxu1 }
 0x106   : > { %v1319_v18 = vadd.f32 %v1962_v42, %v1248_v8  ;;  %v1351_v19 = vadd.f32 %v1962_v42, %v1280_v9  ;;  %v1249_v20 = vmul.f32 %v1956_v40, %v806_v16  ;;  %v1281_v21 = vmul.f32 %v1956_v40, %v934_v17 }
 0x107   : > { %1385 = vst [vmem:[%s1969_s25 + $0x30] sm:$0xff] %v1321_v12  ;;  %1417 = vst [vmem:[%s1969_s25 + $0x130] sm:$0xff] %v1353_v13  ;;  %v1322_v22 = vadd.f32 %v1962_v42, %v1251_v14  ;;  %v1354_v23 = vadd.f32 %v1962_v42, %v1283_v15 }
 0x108   : > { %1383 = vst [vmem:[%s1969_s25 + $0x20] sm:$0xff] %v1319_v18  ;;  %1415 = vst [vmem:[%s1969_s25 + $0x120] sm:$0xff] %v1351_v19  ;;  %v1320_v24 = vadd.f32 %v1962_v42, %v1249_v20  ;;  %v1352_v25 = vadd.f32 %v1962_v42, %v1281_v21 }
 0x109   : > { %1386 = vst [vmem:[%s1969_s25 + $0x38] sm:$0xff] %v1322_v22  ;;  %1418 = vst [vmem:[%s1969_s25 + $0x138] sm:$0xff] %v1354_v23 }
 0x10a   : > { %1384 = vst [vmem:[%s1969_s25 + $0x28] sm:$0xff] %v1320_v24  ;;  %1416 = vst [vmem:[%s1969_s25 + $0x128] sm:$0xff] %v1352_v25  ;;  %v1688_v26 = vpop.f32.mrb[8].mxu0  ;;  %v1720_v27 = vpop.f32.mrb[8].mxu1 }
 0x10b   : > { %v1254_v28 = vmul.f32 %v1688_v26, %v1956_v40  ;;  %v1286_v29 = vmul.f32 %v1720_v27, %v1956_v40  ;;  %v819_v30 = vpop.f32.mrb[9].mxu0  ;;  %v947_v31 = vpop.f32.mrb[9].mxu1 }
 0x10c   : > { %v1252_v32 = vmul.f32 %v1956_v40, %v819_v30  ;;  %v1284_v33 = vmul.f32 %v1956_v40, %v947_v31  ;;  %v1689_v34 = vpop.f32.mrb[10].mxu0  ;;  %v1721_v35 = vpop.f32.mrb[10].mxu1 }
 0x10d   : > { %v1325_v36 = vadd.f32 %v1962_v42, %v1254_v28  ;;  %v1357_v37 = vadd.f32 %v1962_v42, %v1286_v29  ;;  %v1255_v38 = vmul.f32 %v1689_v34, %v1956_v40  ;;  %v1287_v39 = vmul.f32 %v1721_v35, %v1956_v40  ;;  %v822_v41 = vpop.f32.mrb[11].mxu0  ;;  %v950_v43 = vpop.f32.mrb[11].mxu1 }
 0x10e   : > { %v1323_v44 = vadd.f32 %v1962_v42, %v1252_v32  ;;  %v1355_v45 = vadd.f32 %v1962_v42, %v1284_v33  ;;  %v1253_v46 = vmul.f32 %v1956_v40, %v822_v41  ;;  %v1285_v47 = vmul.f32 %v1956_v40, %v950_v43 }
 0x10f   : > { %1389 = vst [vmem:[%s1969_s25 + $0x50] sm:$0xff] %v1325_v36  ;;  %1421 = vst [vmem:[%s1969_s25 + $0x150] sm:$0xff] %v1357_v37  ;;  %v1326_v48 = vadd.f32 %v1962_v42, %v1255_v38  ;;  %v1358_v49 = vadd.f32 %v1962_v42, %v1287_v39 }
 0x110   : > { %1387 = vst [vmem:[%s1969_s25 + $0x40] sm:$0xff] %v1323_v44  ;;  %1419 = vst [vmem:[%s1969_s25 + $0x140] sm:$0xff] %v1355_v45  ;;  %v1324_v50 = vadd.f32 %v1962_v42, %v1253_v46  ;;  %v1356_v51 = vadd.f32 %v1962_v42, %v1285_v47 }
 0x111   : > { %1390 = vst [vmem:[%s1969_s25 + $0x58] sm:$0xff] %v1326_v48  ;;  %1422 = vst [vmem:[%s1969_s25 + $0x158] sm:$0xff] %v1358_v49 }
 0x112   : > { %1388 = vst [vmem:[%s1969_s25 + $0x48] sm:$0xff] %v1324_v50  ;;  %1420 = vst [vmem:[%s1969_s25 + $0x148] sm:$0xff] %v1356_v51  ;;  %v1692_v52 = vpop.f32.mrb[12].mxu0  ;;  %v1724_v53 = vpop.f32.mrb[12].mxu1 }
 0x113   : > { %v1258_v54 = vmul.f32 %v1692_v52, %v1956_v40  ;;  %v1290_v55 = vmul.f32 %v1724_v53, %v1956_v40  ;;  %v835_v56 = vpop.f32.mrb[13].mxu0  ;;  %v963_v57 = vpop.f32.mrb[13].mxu1 }
 0x114   : > { %v1256_v58 = vmul.f32 %v1956_v40, %v835_v56  ;;  %v1288_v59 = vmul.f32 %v1956_v40, %v963_v57  ;;  %v1693_v60 = vpop.f32.mrb[14].mxu0  ;;  %v1725_v61 = vpop.f32.mrb[14].mxu1 }
 0x115   : > { %v1329_v62 = vadd.f32 %v1962_v42, %v1258_v54  ;;  %v1361_v63 = vadd.f32 %v1962_v42, %v1290_v55  ;;  %v1259_v0 = vmul.f32 %v1693_v60, %v1956_v40  ;;  %v1291_v1 = vmul.f32 %v1725_v61, %v1956_v40  ;;  %v838_v2 = vpop.f32.mrb[15].mxu0  ;;  %v966_v3 = vpop.f32.mrb[15].mxu1 }
 0x116   : > { %v1327_v4 = vadd.f32 %v1962_v42, %v1256_v58  ;;  %v1359_v5 = vadd.f32 %v1962_v42, %v1288_v59  ;;  %v1257_v6 = vmul.f32 %v1956_v40, %v838_v2  ;;  %v1289_v7 = vmul.f32 %v1956_v40, %v966_v3 }
 0x117   : > { %1393 = vst [vmem:[%s1969_s25 + $0x70] sm:$0xff] %v1329_v62  ;;  %1425 = vst [vmem:[%s1969_s25 + $0x170] sm:$0xff] %v1361_v63  ;;  %v1330_v8 = vadd.f32 %v1962_v42, %v1259_v0  ;;  %v1362_v9 = vadd.f32 %v1962_v42, %v1291_v1 }
 0x118   : > { %1391 = vst [vmem:[%s1969_s25 + $0x60] sm:$0xff] %v1327_v4  ;;  %1423 = vst [vmem:[%s1969_s25 + $0x160] sm:$0xff] %v1359_v5  ;;  %v1328_v10 = vadd.f32 %v1962_v42, %v1257_v6  ;;  %v1360_v11 = vadd.f32 %v1962_v42, %v1289_v7 }
 0x119   : > { %1394 = vst [vmem:[%s1969_s25 + $0x78] sm:$0xff] %v1330_v8  ;;  %1426 = vst [vmem:[%s1969_s25 + $0x178] sm:$0xff] %v1362_v9 }
 0x11a   : > { %1392 = vst [vmem:[%s1969_s25 + $0x68] sm:$0xff] %v1328_v10  ;;  %1424 = vst [vmem:[%s1969_s25 + $0x168] sm:$0xff] %v1360_v11  ;;  %v1696_v12 = vpop.f32.mrb[16].mxu0  ;;  %v1728_v13 = vpop.f32.mrb[16].mxu1 }
 0x11b   : > { %v1262_v14 = vmul.f32 %v1696_v12, %v1956_v40  ;;  %v1294_v15 = vmul.f32 %v1728_v13, %v1956_v40  ;;  %v851_v16 = vpop.f32.mrb[17].mxu0  ;;  %v979_v17 = vpop.f32.mrb[17].mxu1 }
 0x11c   : > { %v1260_v18 = vmul.f32 %v1956_v40, %v851_v16  ;;  %v1292_v19 = vmul.f32 %v1956_v40, %v979_v17  ;;  %v1697_v20 = vpop.f32.mrb[18].mxu0  ;;  %v1729_v21 = vpop.f32.mrb[18].mxu1 }
 0x11d   : > { %v1333_v22 = vadd.f32 %v1962_v42, %v1262_v14  ;;  %v1365_v23 = vadd.f32 %v1962_v42, %v1294_v15  ;;  %v1263_v24 = vmul.f32 %v1697_v20, %v1956_v40  ;;  %v1295_v25 = vmul.f32 %v1729_v21, %v1956_v40  ;;  %v854_v26 = vpop.f32.mrb[19].mxu0  ;;  %v982_v27 = vpop.f32.mrb[19].mxu1 }
 0x11e   : > { %v1331_v28 = vadd.f32 %v1962_v42, %v1260_v18  ;;  %v1363_v29 = vadd.f32 %v1962_v42, %v1292_v19  ;;  %v1261_v30 = vmul.f32 %v1956_v40, %v854_v26  ;;  %v1293_v31 = vmul.f32 %v1956_v40, %v982_v27 }
 0x11f   : > { %1397 = vst [vmem:[%s1969_s25 + $0x90] sm:$0xff] %v1333_v22  ;;  %1429 = vst [vmem:[%s1969_s25 + $0x190] sm:$0xff] %v1365_v23  ;;  %v1334_v32 = vadd.f32 %v1962_v42, %v1263_v24  ;;  %v1366_v33 = vadd.f32 %v1962_v42, %v1295_v25 }
 0x120   : > { %1395 = vst [vmem:[%s1969_s25 + $0x80] sm:$0xff] %v1331_v28  ;;  %1427 = vst [vmem:[%s1969_s25 + $0x180] sm:$0xff] %v1363_v29  ;;  %v1332_v34 = vadd.f32 %v1962_v42, %v1261_v30  ;;  %v1364_v35 = vadd.f32 %v1962_v42, %v1293_v31 }
 0x121   : > { %1398 = vst [vmem:[%s1969_s25 + $0x98] sm:$0xff] %v1334_v32  ;;  %1430 = vst [vmem:[%s1969_s25 + $0x198] sm:$0xff] %v1366_v33 }
 0x122   : > { %1396 = vst [vmem:[%s1969_s25 + $0x88] sm:$0xff] %v1332_v34  ;;  %1428 = vst [vmem:[%s1969_s25 + $0x188] sm:$0xff] %v1364_v35  ;;  %v1700_v36 = vpop.f32.mrb[20].mxu0  ;;  %v1732_v37 = vpop.f32.mrb[20].mxu1 }
 0x123   : > { %v1266_v38 = vmul.f32 %v1700_v36, %v1956_v40  ;;  %v1298_v39 = vmul.f32 %v1732_v37, %v1956_v40  ;;  %v867_v41 = vpop.f32.mrb[21].mxu0  ;;  %v995_v43 = vpop.f32.mrb[21].mxu1 }
 0x124   : > { %v1264_v44 = vmul.f32 %v1956_v40, %v867_v41  ;;  %v1296_v45 = vmul.f32 %v1956_v40, %v995_v43  ;;  %v1701_v46 = vpop.f32.mrb[22].mxu0  ;;  %v1733_v47 = vpop.f32.mrb[22].mxu1 }
 0x125   : > { %v1337_v48 = vadd.f32 %v1962_v42, %v1266_v38  ;;  %v1369_v49 = vadd.f32 %v1962_v42, %v1298_v39  ;;  %v1267_v50 = vmul.f32 %v1701_v46, %v1956_v40  ;;  %v1299_v51 = vmul.f32 %v1733_v47, %v1956_v40  ;;  %v870_v52 = vpop.f32.mrb[23].mxu0  ;;  %v998_v53 = vpop.f32.mrb[23].mxu1 }
 0x126   : > { %v1335_v54 = vadd.f32 %v1962_v42, %v1264_v44  ;;  %v1367_v55 = vadd.f32 %v1962_v42, %v1296_v45  ;;  %v1265_v56 = vmul.f32 %v1956_v40, %v870_v52  ;;  %v1297_v57 = vmul.f32 %v1956_v40, %v998_v53 }
 0x127   : > { %1401 = vst [vmem:[%s1969_s25 + $0xb0] sm:$0xff] %v1337_v48  ;;  %1433 = vst [vmem:[%s1969_s25 + $0x1b0] sm:$0xff] %v1369_v49  ;;  %v1338_v58 = vadd.f32 %v1962_v42, %v1267_v50  ;;  %v1370_v59 = vadd.f32 %v1962_v42, %v1299_v51 }
 0x128   : > { %1399 = vst [vmem:[%s1969_s25 + $0xa0] sm:$0xff] %v1335_v54  ;;  %1431 = vst [vmem:[%s1969_s25 + $0x1a0] sm:$0xff] %v1367_v55  ;;  %v1336_v60 = vadd.f32 %v1962_v42, %v1265_v56  ;;  %v1368_v61 = vadd.f32 %v1962_v42, %v1297_v57 }
 0x129   : > { %1402 = vst [vmem:[%s1969_s25 + $0xb8] sm:$0xff] %v1338_v58  ;;  %1434 = vst [vmem:[%s1969_s25 + $0x1b8] sm:$0xff] %v1370_v59 }
 0x12a   : > { %1400 = vst [vmem:[%s1969_s25 + $0xa8] sm:$0xff] %v1336_v60  ;;  %1432 = vst [vmem:[%s1969_s25 + $0x1a8] sm:$0xff] %v1368_v61  ;;  %v1704_v62 = vpop.f32.mrb[24].mxu0  ;;  %v1736_v63 = vpop.f32.mrb[24].mxu1 }
 0x12b   : > { %v1270_v0 = vmul.f32 %v1704_v62, %v1956_v40  ;;  %v1302_v1 = vmul.f32 %v1736_v63, %v1956_v40  ;;  %v883_v2 = vpop.f32.mrb[25].mxu0  ;;  %v1011_v3 = vpop.f32.mrb[25].mxu1 }
 0x12c   : > { %v1268_v4 = vmul.f32 %v1956_v40, %v883_v2  ;;  %v1300_v5 = vmul.f32 %v1956_v40, %v1011_v3  ;;  %v1705_v6 = vpop.f32.mrb[26].mxu0  ;;  %v1737_v7 = vpop.f32.mrb[26].mxu1 }
 0x12d   : > { %v1341_v8 = vadd.f32 %v1962_v42, %v1270_v0  ;;  %v1373_v9 = vadd.f32 %v1962_v42, %v1302_v1  ;;  %v1271_v10 = vmul.f32 %v1705_v6, %v1956_v40  ;;  %v1303_v11 = vmul.f32 %v1737_v7, %v1956_v40  ;;  %v886_v12 = vpop.f32.mrb[27].mxu0  ;;  %v1014_v13 = vpop.f32.mrb[27].mxu1 }
 0x12e   : > { %v1339_v14 = vadd.f32 %v1962_v42, %v1268_v4  ;;  %v1371_v15 = vadd.f32 %v1962_v42, %v1300_v5  ;;  %v1269_v16 = vmul.f32 %v1956_v40, %v886_v12  ;;  %v1301_v17 = vmul.f32 %v1956_v40, %v1014_v13 }
 0x12f   : > { %1405 = vst [vmem:[%s1969_s25 + $0xd0] sm:$0xff] %v1341_v8  ;;  %1437 = vst [vmem:[%s1969_s25 + $0x1d0] sm:$0xff] %v1373_v9  ;;  %v1342_v18 = vadd.f32 %v1962_v42, %v1271_v10  ;;  %v1374_v19 = vadd.f32 %v1962_v42, %v1303_v11 }
 0x130   : > { %1403 = vst [vmem:[%s1969_s25 + $0xc0] sm:$0xff] %v1339_v14  ;;  %1435 = vst [vmem:[%s1969_s25 + $0x1c0] sm:$0xff] %v1371_v15  ;;  %v1340_v20 = vadd.f32 %v1962_v42, %v1269_v16  ;;  %v1372_v21 = vadd.f32 %v1962_v42, %v1301_v17 }
 0x131   : > { %1406 = vst [vmem:[%s1969_s25 + $0xd8] sm:$0xff] %v1342_v18  ;;  %1438 = vst [vmem:[%s1969_s25 + $0x1d8] sm:$0xff] %v1374_v19 }
 0x132   : > { %1404 = vst [vmem:[%s1969_s25 + $0xc8] sm:$0xff] %v1340_v20  ;;  %1436 = vst [vmem:[%s1969_s25 + $0x1c8] sm:$0xff] %v1372_v21  ;;  %v1708_v22 = vpop.f32.mrb[28].mxu0  ;;  %v1740_v23 = vpop.f32.mrb[28].mxu1 }
 0x133   : > { %v1274_v24 = vmul.f32 %v1708_v22, %v1956_v40  ;;  %v1306_v25 = vmul.f32 %v1740_v23, %v1956_v40  ;;  %v899_v26 = vpop.f32.mrb[29].mxu0  ;;  %v1027_v27 = vpop.f32.mrb[29].mxu1 }
 0x134   : > { %v1272_v28 = vmul.f32 %v1956_v40, %v899_v26  ;;  %v1304_v29 = vmul.f32 %v1956_v40, %v1027_v27  ;;  %v1709_v30 = vpop.f32.mrb[30].mxu0  ;;  %v1741_v31 = vpop.f32.mrb[30].mxu1 }
 0x135   : > { %v1345_v32 = vadd.f32 %v1962_v42, %v1274_v24  ;;  %v1377_v33 = vadd.f32 %v1962_v42, %v1306_v25  ;;  %v1275_v34 = vmul.f32 %v1709_v30, %v1956_v40  ;;  %v1307_v35 = vmul.f32 %v1741_v31, %v1956_v40  ;;  %v902_v36 = vpop.f32.mrb[31].mxu0  ;;  %v1030_v37 = vpop.f32.mrb[31].mxu1 }
 0x136   : > { %v1343_v38 = vadd.f32 %v1962_v42, %v1272_v28  ;;  %v1375_v39 = vadd.f32 %v1962_v42, %v1304_v29  ;;  %v1273_v41 = vmul.f32 %v1956_v40, %v902_v36  ;;  %v1305_v43 = vmul.f32 %v1956_v40, %v1030_v37 }
 0x137   : > { %1409 = vst [vmem:[%s1969_s25 + $0xf0] sm:$0xff] %v1345_v32  ;;  %1441 = vst [vmem:[%s1969_s25 + $0x1f0] sm:$0xff] %v1377_v33  ;;  %v1346_v44 = vadd.f32 %v1962_v42, %v1275_v34  ;;  %v1378_v45 = vadd.f32 %v1962_v42, %v1307_v35 }
 0x138   : > { %1407 = vst [vmem:[%s1969_s25 + $0xe0] sm:$0xff] %v1343_v38  ;;  %1439 = vst [vmem:[%s1969_s25 + $0x1e0] sm:$0xff] %v1375_v39  ;;  %v1344_v46 = vadd.f32 %v1962_v42, %v1273_v41  ;;  %v1376_v47 = vadd.f32 %v1962_v42, %v1305_v43 }
 0x139   : > { %1410 = vst [vmem:[%s1969_s25 + $0xf8] sm:$0xff] %v1346_v44  ;;  %1442 = vst [vmem:[%s1969_s25 + $0x1f8] sm:$0xff] %v1378_v45 }
 0x13a   : > { %1408 = vst [vmem:[%s1969_s25 + $0xe8] sm:$0xff] %v1344_v46  ;;  %1440 = vst [vmem:[%s1969_s25 + $0x1e8] sm:$0xff] %v1376_v47 }
 0x13b PF: > { %s14_s17 = sadd.s32 1, %s1844_s17   ;;  %s2175_s15 = smov %s1840_s16 }
 0x13c   : > { %p11_p5 = scmp.ge.s32.totalorder %s14_s17, 4   ;;  %s2176_s16 = smov %s2178_s18 }
 0x13e   :  { %13 = sbr.rel (!%p11_p5) target bundleno = 2 (0x2), region = 83 }

// kernel: fwd.8
= control target key start
LH: loop header
LB: loop body
LE: loop exit
PB: predicated region body
PF: predicated region fallthrough
CT: control target
= control target key end

     0   :  { %s5136_s15 = smov 0   ;;  %s5138_s16 = smov 0   ;;  %s6260_s0 = inlined_call_operand.vmem [shape: bf16[1024,896], index: 0, kind: input, shape index: {}]   ;;  %s6261_s1 = inlined_call_operand.vmem [shape: bf16[896,128], index: 1, kind: input, shape index: {}]   ;;  %s6262_s2 = inlined_call_operand.vmem [shape: f32[1,128], index: 2, kind: input, shape index: {}]   ;;  %s6263_s3 = inlined_call_operand.vmem [shape: f32[1,128], index: 3, kind: input, shape index: {}]   ;;  %s6264_s4 = inlined_call_operand.vmem [shape: f32[1024,128], index: 4, kind: output, shape index: {}]  }
   0x1   :  { %s5140_s17 = smov 0  }
   0x2 LB: > { %s33_s18 = sadd.s32 1, %s5104_s16  ;;  %p4051_p0 = scmp.ge.s32.totalorder %s5108_s17, 1  ;;  %s5108_s17 = sphi %s5140_s17, %s14_s17   ;;  %s5104_s16 = sphi %s5138_s16, %s6294_s16   ;;  %s5100_s15 = sphi %s5136_s15, %s6293_s15  }
   0x3   : > { %p35_p1 = scmp.ge.s32.totalorder %s33_s18, 2  ;;  %p224_p2 = scmp.lt.s32.totalorder %s5108_s17, 3 }
   0x5   : > { %s6296_s18 = smov (%p35_p1, %s33_s18), 0  ;;  %p225_p3 = pnand %p4051_p0, %p224_p2 }
   0x7   : > { %228 = sbr.rel (%p225_p3) target bundleno = 744 (0x2e8), region = 36 }
   0xe   : > { %v4710_v0 = vld [vmem:[%s6261_s1] sm:$0xff]   ;;  %v5110_v1 = vmov 0   ;;  %v4712_v3 = vld [vmem:[%s6261_s1 + $0x8] sm:$0xff]   ;;  %v4714_v5 = vld [vmem:[%s6261_s1 + $0x10] sm:$0xff]   ;;  %s4052_s13 = sshll.u32 %s5100_s15, 6 }
   0xf   : > { %2297 = vmatprep.subr.bf16.mxu1 %v5110_v1  ;;  %2586 = vmatprep.subr.bf16.mxu0 %v5110_v1  ;;  %v5164_v2 = vld [vmem:[%s6261_s1 + $0x80] sm:$0xff]   ;;  %v5174_v4 = vld [vmem:[%s6261_s1 + $0x88] sm:$0xff]   ;;  %v5185_v6 = vld [vmem:[%s6261_s1 + $0x90] sm:$0xff]   ;;  %p274_p4 = scmp.lt.s32.totalorder %s4052_s13, 127 }
  0x10   : > { %2298 = vmatpush1.bf16.msra.mxu1 %v4710_v0  ;;  %2587 = vmatpush1.bf16.msra.mxu0 %v5164_v2  ;;  %v4716_v7 = vld [vmem:[%s6261_s1 + $0x18] sm:$0xff]   ;;  %v4718_v9 = vld [vmem:[%s6261_s1 + $0x20] sm:$0xff]   ;;  %v4720_v11 = vld [vmem:[%s6261_s1 + $0x28] sm:$0xff]  }
  0x11   : > { %2299 = vmatprep.subr.bf16.mxu1 %v5110_v1  ;;  %2588 = vmatprep.subr.bf16.mxu0 %v5110_v1  ;;  %v5196_v8 = vld [vmem:[%s6261_s1 + $0x98] sm:$0xff]   ;;  %v5207_v10 = vld [vmem:[%s6261_s1 + $0xa0] sm:$0xff]   ;;  %v5219_v12 = vld [vmem:[%s6261_s1 + $0xa8] sm:$0xff]   ;;  %s6298_s13 = smov (!%p274_p4, %s4052_s13), 127 }
  0x12   : > { %v4722_v13 = vld [vmem:[%s6261_s1 + $0x30] sm:$0xff]   ;;  %v4724_v15 = vld [vmem:[%s6261_s1 + $0x38] sm:$0xff]   ;;  %s4684_s27 = smul.u32 28, %s6298_s13  ;;  %v4726_v17 = vld [vmem:[%s6261_s1 + $0x40] sm:$0xff]   ;;  %s4055_s5 = sshll.u32 %s6298_s13, 3 }
  0x13   : > { %v5232_v14 = vld [vmem:[%s6261_s1 + $0xb0] sm:$0xff]   ;;  %v5244_v16 = vld [vmem:[%s6261_s1 + $0xb8] sm:$0xff]   ;;  %v5260_v18 = vld [vmem:[%s6261_s1 + $0xc0] sm:$0xff]   ;;  %s5941_s7 = scalar_lea.vmem %s6264_s4, %s4055_s5 }
  0x14   : > { %2300 = vmatpush1.bf16.msra.mxu1 %v4712_v3  ;;  %2589 = vmatpush1.bf16.msra.mxu0 %v5174_v4  ;;  %s5253_s8 = scalar_lea.vmem %s6260_s0, %s4684_s27  ;;  %v4728_v20 = vld [vmem:[%s6261_s1 + $0x48] sm:$0xff]   ;;  %v4730_v23 = vld [vmem:[%s6261_s1 + $0x50] sm:$0xff]   ;;  %v4732_v25 = vld [vmem:[%s6261_s1 + $0x58] sm:$0xff]  }
  0x15   : > { %2301 = vmatprep.subr.bf16.mxu1 %v5110_v1  ;;  %2590 = vmatprep.subr.bf16.mxu0 %v5110_v1  ;;  %v4744_v19 = vld [vmem:[%s5253_s8 + $0x4] ss:$28 sps:$4 sm:$0xff]   ;;  %v4747_v21 = vld [vmem:[%s5253_s8 + $0xc] ss:$28 sps:$4 sm:$0xff]   ;;  %v5284_v24 = vld [vmem:[%s6261_s1 + $0xd0] sm:$0xff]  }
  0x16   : > { %v5273_v22 = vld [vmem:[%s6261_s1 + $0xc8] sm:$0xff]   ;;  %2329 = vmatprep.mubr.bf16.mxu1 %v4744_v19  ;;  %2618 = vmatprep.mubr.bf16.mxu0 %v4747_v21  ;;  %v5295_v26 = vld [vmem:[%s6261_s1 + $0xd8] sm:$0xff]   ;;  %v4734_v27 = vld [vmem:[%s6261_s1 + $0x60] sm:$0xff]  }
  0x17   : > { %v5306_v28 = vld [vmem:[%s6261_s1 + $0xe0] sm:$0xff]   ;;  %v4736_v29 = vld [vmem:[%s6261_s1 + $0x68] sm:$0xff]   ;;  %v4738_v31 = vld [vmem:[%s6261_s1 + $0x70] sm:$0xff]  }
  0x18   : > { %2302 = vmatpush1.bf16.msra.mxu1 %v4714_v5  ;;  %2591 = vmatpush1.bf16.msra.mxu0 %v5185_v6  ;;  %v5317_v30 = vld [vmem:[%s6261_s1 + $0xe8] sm:$0xff]   ;;  %v5328_v32 = vld [vmem:[%s6261_s1 + $0xf0] sm:$0xff]   ;;  %v4740_v33 = vld [vmem:[%s6261_s1 + $0x78] sm:$0xff]  }
  0x19   : > { %2303 = vmatprep.subr.bf16.mxu1 %v5110_v1  ;;  %2592 = vmatprep.subr.bf16.mxu0 %v5110_v1  ;;  %v5339_v34 = vld [vmem:[%s6261_s1 + $0xf8] sm:$0xff]   ;;  %v4745_v36 = vld [vmem:[%s5253_s8 + $0x8] ss:$28 sps:$4 sm:$0xff]   ;;  %v4756_v43 = vld [vmem:[%s5253_s8 + $0x74] ss:$28 sps:$4 sm:$0xff]  }
  0x1a   : > { %v4742_v35 = vld [vmem:[%s5253_s8] ss:$28 sps:$4 sm:$0xff]   ;;  %v4755_v40 = vld [vmem:[%s6261_s1 + $0x108] sm:$0xff]   ;;  %v4753_v41 = vld [vmem:[%s5253_s8 + $0x38] ss:$28 sps:$4 sm:$0xff]  }
  0x1b   : > { %v4748_v37 = vld [vmem:[%s6261_s1 + $0x100] sm:$0xff]   ;;  %v4749_v38 = vld [vmem:[%s5253_s8 + $0x3c] ss:$28 sps:$4 sm:$0xff]   ;;  %v4768_v45 = vld [vmem:[%s6261_s1 + $0x110] sm:$0xff]  }
  0x1c   : > { %2304 = vmatpush1.bf16.msra.mxu1 %v4716_v7  ;;  %2593 = vmatpush1.bf16.msra.mxu0 %v5196_v8  ;;  %v4751_v39 = vld [vmem:[%s5253_s8 + $0x44] ss:$28 sps:$4 sm:$0xff]   ;;  %v4758_v44 = vld [vmem:[%s5253_s8 + $0x7c] ss:$28 sps:$4 sm:$0xff]   ;;  %v4760_v47 = vld [vmem:[%s5253_s8 + $0x70] ss:$28 sps:$4 sm:$0xff]  }
  0x1d   : > { %2305 = vmatprep.subr.bf16.mxu1 %v5110_v1  ;;  %2594 = vmatprep.subr.bf16.mxu0 %v5110_v1  ;;  %v4754_v42 = vld [vmem:[%s5253_s8 + $0x40] ss:$28 sps:$4 sm:$0xff]   ;;  %v4761_v48 = vld [vmem:[%s5253_s8 + $0x78] ss:$28 sps:$4 sm:$0xff]   ;;  %v4762_v49 = vld [vmem:[%s5253_s8 + $0xac] ss:$28 sps:$4 sm:$0xff]  }
  0x1e   : > { %v4775_v46 = vld [vmem:[%s6261_s1 + $0x118] sm:$0xff]   ;;  %v4764_v50 = vld [vmem:[%s5253_s8 + $0xb4] ss:$28 sps:$4 sm:$0xff]   ;;  %v4788_v51 = vld [vmem:[%s6261_s1 + $0x120] sm:$0xff]  }
  0x1f   : > { %v4795_v52 = vld [vmem:[%s6261_s1 + $0x128] sm:$0xff]   ;;  %v4769_v55 = vld [vmem:[%s5253_s8 + $0xe4] ss:$28 sps:$4 sm:$0xff]   ;;  %v4808_v57 = vld [vmem:[%s6261_s1 + $0x130] sm:$0xff]  }
  0x20   : > { %2306 = vmatpush1.bf16.msra.mxu1 %v4718_v9  ;;  %2595 = vmatpush1.bf16.msra.mxu0 %v5207_v10  ;;  %v4766_v53 = vld [vmem:[%s5253_s8 + $0xa8] ss:$28 sps:$4 sm:$0xff]   ;;  %v4767_v54 = vld [vmem:[%s5253_s8 + $0xb0] ss:$28 sps:$4 sm:$0xff]   ;;  %v4815_v58 = vld [vmem:[%s6261_s1 + $0x138] sm:$0xff]  }
  0x21   : > { %2307 = vmatprep.subr.bf16.mxu1 %v5110_v1  ;;  %2596 = vmatprep.subr.bf16.mxu0 %v5110_v1  ;;  %v4771_v56 = vld [vmem:[%s5253_s8 + $0xec] ss:$28 sps:$4 sm:$0xff]   ;;  %v4773_v59 = vld [vmem:[%s5253_s8 + $0xe0] ss:$28 sps:$4 sm:$0xff]   ;;  %v4787_v9 = vld [vmem:[%s5253_s8 + $0x158] ss:$28 sps:$4 sm:$0xff]  }
  0x22   : > { %v4774_v60 = vld [vmem:[%s5253_s8 + $0xe8] ss:$28 sps:$4 sm:$0xff]   ;;  %v4776_v61 = vld [vmem:[%s5253_s8 + $0x11c] ss:$28 sps:$4 sm:$0xff]   ;;  %v4786_v7 = vld [vmem:[%s5253_s8 + $0x150] ss:$28 sps:$4 sm:$0xff]  }
  0x23   : > { %v4778_v62 = vld [vmem:[%s5253_s8 + $0x124] ss:$28 sps:$4 sm:$0xff]   ;;  %v4835_v0 = vld [vmem:[%s6261_s1 + $0x148] sm:$0xff]   ;;  %v4784_v5 = vld [vmem:[%s5253_s8 + $0x15c] ss:$28 sps:$4 sm:$0xff]  }
  0x24   : > { %2308 = vmatpush1.bf16.msra.mxu1 %v4720_v11  ;;  %2597 = vmatpush1.bf16.msra.mxu0 %v5219_v12  ;;  %v4828_v63 = vld [vmem:[%s6261_s1 + $0x140] sm:$0xff]   ;;  %v4791_v11 = vld [vmem:[%s5253_s8 + $0x194] ss:$28 sps:$4 sm:$0xff]  }
  0x25   : > { %2309 = vmatprep.subr.bf16.mxu1 %v5110_v1  ;;  %2598 = vmatprep.subr.bf16.mxu0 %v5110_v1  ;;  %v4781_v3 = vld [vmem:[%s5253_s8 + $0x120] ss:$28 sps:$4 sm:$0xff]   ;;  %v4801_v21 = vld [vmem:[%s5253_s8 + $0x1c8] ss:$28 sps:$4 sm:$0xff]  }
  0x26   : > { %v4800_v19 = vld [vmem:[%s5253_s8 + $0x1c0] ss:$28 sps:$4 sm:$0xff]  }
  0x28   : > { %2310 = vmatpush1.bf16.msra.mxu1 %v4722_v13  ;;  %2599 = vmatpush1.bf16.msra.mxu0 %v5232_v14  ;;  %v4793_v13 = vld [vmem:[%s5253_s8 + $0x188] ss:$28 sps:$4 sm:$0xff]  }
  0x29   : > { %2311 = vmatprep.subr.bf16.mxu1 %v5110_v1  ;;  %2600 = vmatprep.subr.bf16.mxu0 %v5110_v1 }
  0x2c   : > { %2312 = vmatpush1.bf16.msra.mxu1 %v4724_v15  ;;  %2601 = vmatpush1.bf16.msra.mxu0 %v5244_v16  ;;  %v4794_v15 = vld [vmem:[%s5253_s8 + $0x190] ss:$28 sps:$4 sm:$0xff]  }
  0x2d   : > { %2313 = vmatprep.subr.bf16.mxu1 %v5110_v1  ;;  %2602 = vmatprep.subr.bf16.mxu0 %v5110_v1 }
  0x30   : > { %2314 = vmatpush1.bf16.msra.mxu1 %v4726_v17  ;;  %2603 = vmatpush1.bf16.msra.mxu0 %v5260_v18  ;;  %v4798_v17 = vld [vmem:[%s5253_s8 + $0x1cc] ss:$28 sps:$4 sm:$0xff]  }
  0x31   : > { %2315 = vmatprep.subr.bf16.mxu1 %v5110_v1  ;;  %2604 = vmatprep.subr.bf16.mxu0 %v5110_v1 }
  0x34   : > { %2316 = vmatpush1.bf16.msra.mxu1 %v4728_v20  ;;  %2605 = vmatpush1.bf16.msra.mxu0 %v5273_v22  ;;  %v4895_v20 = vld [vmem:[%s6261_s1 + $0x178] sm:$0xff]  }
  0x35   : > { %2317 = vmatprep.subr.bf16.mxu1 %v5110_v1  ;;  %2606 = vmatprep.subr.bf16.mxu0 %v5110_v1 }
  0x38   : > { %2318 = vmatpush1.bf16.msra.mxu1 %v4730_v23  ;;  %2607 = vmatpush1.bf16.msra.mxu0 %v5284_v24  ;;  %v4804_v23 = vld [vmem:[%s5253_s8 + $0x204] ss:$28 sps:$4 sm:$0xff]  }
  0x39   : > { %2319 = vmatprep.subr.bf16.mxu1 %v5110_v1  ;;  %2608 = vmatprep.subr.bf16.mxu0 %v5110_v1 }
  0x3c   : > { %2320 = vmatpush1.bf16.msra.mxu1 %v4732_v25  ;;  %2609 = vmatpush1.bf16.msra.mxu0 %v5295_v26  ;;  %v4807_v25 = vld [vmem:[%s5253_s8 + $0x200] ss:$28 sps:$4 sm:$0xff]  }
  0x3d   : > { %2321 = vmatprep.subr.bf16.mxu1 %v5110_v1  ;;  %2610 = vmatprep.subr.bf16.mxu0 %v5110_v1 }
  0x40   : > { %2322 = vmatpush1.bf16.msra.mxu1 %v4734_v27  ;;  %2611 = vmatpush1.bf16.msra.mxu0 %v5306_v28  ;;  %v4811_v27 = vld [vmem:[%s5253_s8 + $0x23c] ss:$28 sps:$4 sm:$0xff]  }
  0x41   : > { %2323 = vmatprep.subr.bf16.mxu1 %v5110_v1  ;;  %2612 = vmatprep.subr.bf16.mxu0 %v5110_v1 }
  0x44   : > { %2324 = vmatpush1.bf16.msra.mxu1 %v4736_v29  ;;  %2613 = vmatpush1.bf16.msra.mxu0 %v5317_v30  ;;  %v4816_v29 = vld [vmem:[%s5253_s8 + $0x26c] ss:$28 sps:$4 sm:$0xff]  }
  0x45   : > { %2325 = vmatprep.subr.bf16.mxu1 %v5110_v1  ;;  %2614 = vmatprep.subr.bf16.mxu0 %v5110_v1 }
  0x48   : > { %2326 = vmatpush1.bf16.msra.mxu1 %v4738_v31  ;;  %2615 = vmatpush1.bf16.msra.mxu0 %v5328_v32  ;;  %v4820_v31 = vld [vmem:[%s5253_s8 + $0x268] ss:$28 sps:$4 sm:$0xff]  }
  0x49   : > { %2327 = vmatprep.subr.bf16.mxu1 %v5110_v1  ;;  %2616 = vmatprep.subr.bf16.mxu0 %v5110_v1 }
  0x4c   : > { %2328 = vmatpush1.bf16.msra.mxu1 %v4740_v33  ;;  %2617 = vmatpush1.bf16.msra.mxu0 %v5339_v34  ;;  %v4822_v33 = vld [vmem:[%s5253_s8 + $0x2a4] ss:$28 sps:$4 sm:$0xff]  }
  0x4d   : > { %4460 = vmatprep.subr.bf16.mxu1 %v5110_v1  ;;  %2875 = vmatprep.subr.bf16.mxu0 %v5110_v1 }
  0x4f   : > { %2330 = vmatmul.mubr.bf16.vlgmr.msra.gmra.mrb[0].mxu1 %v4742_v35  ;;  %2619 = vmatmul.mubr.bf16.vlgmr.msra.gmra.mrb[0].mxu0 %v4745_v36  ;;  %v4826_v35 = vld [vmem:[%s5253_s8 + $0x2a0] ss:$28 sps:$4 sm:$0xff]   ;;  %v4827_v36 = vld [vmem:[%s5253_s8 + $0x2a8] ss:$28 sps:$4 sm:$0xff]  }
  0x50   : > { %4476 = vmatpush1.bf16.msra.mxu1 %v5164_v2  ;;  %2876 = vmatpush1.bf16.msra.mxu0 %v4748_v37  ;;  %v4780_v2 = vld [vmem:[%s5253_s8 + $0x118] ss:$28 sps:$4 sm:$0xff]  }
  0x51   : > { %2337 = vmatprep.mubr.bf16.mxu1 %v4749_v38  ;;  %2626 = vmatprep.mubr.bf16.mxu0 %v4751_v39  ;;  %v4829_v37 = vld [vmem:[%s5253_s8 + $0x2dc] ss:$28 sps:$4 sm:$0xff]   ;;  %v4831_v38 = vld [vmem:[%s5253_s8 + $0x2e4] ss:$28 sps:$4 sm:$0xff]  }
  0x52   : > { %2877 = vmatprep.subr.bf16.mxu0 %v5110_v1  ;;  %4461 = vmatprep.subr.bf16.mxu1 %v5110_v1  ;;  %v4833_v39 = vld [vmem:[%s5253_s8 + $0x2d8] ss:$28 sps:$4 sm:$0xff]  }
  0x54   : > { %4477 = vmatpush1.bf16.msra.mxu1 %v5174_v4  ;;  %2878 = vmatpush1.bf16.msra.mxu0 %v4755_v40  ;;  %v4782_v4 = vld [vmem:[%s5253_s8 + $0x154] ss:$28 sps:$4 sm:$0xff]   ;;  %v4834_v40 = vld [vmem:[%s5253_s8 + $0x2e0] ss:$28 sps:$4 sm:$0xff]  }
  0x55   : > { %4462 = vmatprep.subr.bf16.mxu1 %v5110_v1  ;;  %2879 = vmatprep.subr.bf16.mxu0 %v5110_v1 }
  0x57   : > { %2338 = vmatmul.mubr.bf16.gmra.mrb[4].mxu1 %v4753_v41  ;;  %2627 = vmatmul.mubr.bf16.gmra.mrb[4].mxu0 %v4754_v42  ;;  %v4836_v41 = vld [vmem:[%s5253_s8 + $0x314] ss:$28 sps:$4 sm:$0xff]   ;;  %v4838_v42 = vld [vmem:[%s5253_s8 + $0x31c] ss:$28 sps:$4 sm:$0xff]  }
  0x58   : > { %2345 = vmatprep.mubr.bf16.mxu1 %v4756_v43  ;;  %2634 = vmatprep.mubr.bf16.mxu0 %v4758_v44  ;;  %v4840_v43 = vld [vmem:[%s5253_s8 + $0x310] ss:$28 sps:$4 sm:$0xff]   ;;  %v4841_v44 = vld [vmem:[%s5253_s8 + $0x318] ss:$28 sps:$4 sm:$0xff]  }
  0x59   : > { %2880 = vmatpush1.bf16.msra.mxu0 %v4768_v45  ;;  %4478 = vmatpush1.bf16.msra.mxu1 %v5185_v6  ;;  %v4848_v6 = vld [vmem:[%s6261_s1 + $0x150] sm:$0xff]   ;;  %v4842_v45 = vld [vmem:[%s5253_s8 + $0x34c] ss:$28 sps:$4 sm:$0xff]  }
  0x5a   : > { %2881 = vmatprep.subr.bf16.mxu0 %v5110_v1  ;;  %4463 = vmatprep.subr.bf16.mxu1 %v5110_v1 }
  0x5d   : > { %2882 = vmatpush1.bf16.msra.mxu0 %v4775_v46  ;;  %4479 = vmatpush1.bf16.msra.mxu1 %v5196_v8  ;;  %v4855_v8 = vld [vmem:[%s6261_s1 + $0x158] sm:$0xff]   ;;  %v4844_v46 = vld [vmem:[%s5253_s8 + $0x354] ss:$28 sps:$4 sm:$0xff]  }
  0x5e   : > { %2883 = vmatprep.subr.bf16.mxu0 %v5110_v1  ;;  %4464 = vmatprep.subr.bf16.mxu1 %v5110_v1 }
  0x5f   : > { %2346 = vmatmul.mubr.bf16.gmra.mrb[8].mxu1 %v4760_v47  ;;  %2635 = vmatmul.mubr.bf16.gmra.mrb[8].mxu0 %v4761_v48  ;;  %v4846_v47 = vld [vmem:[%s5253_s8 + $0x348] ss:$28 sps:$4 sm:$0xff]   ;;  %v4847_v48 = vld [vmem:[%s5253_s8 + $0x350] ss:$28 sps:$4 sm:$0xff]  }
  0x60   : > { %2353 = vmatprep.mubr.bf16.mxu1 %v4762_v49  ;;  %2642 = vmatprep.mubr.bf16.mxu0 %v4764_v50  ;;  %v4849_v49 = vld [vmem:[%s5253_s8 + $0x384] ss:$28 sps:$4 sm:$0xff]   ;;  %v4851_v50 = vld [vmem:[%s5253_s8 + $0x38c] ss:$28 sps:$4 sm:$0xff]  }
  0x61   : > { %2884 = vmatpush1.bf16.msra.mxu0 %v4788_v51  ;;  %4480 = vmatpush1.bf16.msra.mxu1 %v5207_v10  ;;  %v4789_v10 = vld [vmem:[%s5253_s8 + $0x18c] ss:$28 sps:$4 sm:$0xff]   ;;  %v4853_v51 = vld [vmem:[%s5253_s8 + $0x380] ss:$28 sps:$4 sm:$0xff]  }
  0x62   : > { %2885 = vmatprep.subr.bf16.mxu0 %v5110_v1  ;;  %4465 = vmatprep.subr.bf16.mxu1 %v5110_v1 }
  0x65   : > { %2886 = vmatpush1.bf16.msra.mxu0 %v4795_v52  ;;  %4481 = vmatpush1.bf16.msra.mxu1 %v5219_v12  ;;  %v4868_v12 = vld [vmem:[%s6261_s1 + $0x160] sm:$0xff]  }
  0x66   : > { %2887 = vmatprep.subr.bf16.mxu0 %v5110_v1  ;;  %4466 = vmatprep.subr.bf16.mxu1 %v5110_v1  ;;  %v4854_v52 = vld [vmem:[%s5253_s8 + $0x388] ss:$28 sps:$4 sm:$0xff]  }
  0x67   : > { %2354 = vmatmul.mubr.bf16.gmra.mrb[12].mxu1 %v4766_v53  ;;  %2643 = vmatmul.mubr.bf16.gmra.mrb[12].mxu0 %v4767_v54  ;;  %v4856_v53 = vld [vmem:[%s5253_s8 + $0x3bc] ss:$28 sps:$4 sm:$0xff]   ;;  %v4858_v54 = vld [vmem:[%s5253_s8 + $0x3c4] ss:$28 sps:$4 sm:$0xff]  }
  0x68   : > { %2361 = vmatprep.mubr.bf16.mxu1 %v4769_v55  ;;  %2650 = vmatprep.mubr.bf16.mxu0 %v4771_v56  ;;  %v5510_v55 = vld [vmem:[%s6261_s1 + $0x180] sm:$0xff]   ;;  %v4860_v56 = vld [vmem:[%s5253_s8 + $0x3b8] ss:$28 sps:$4 sm:$0xff]  }
  0x69   : > { %2888 = vmatpush1.bf16.msra.mxu0 %v4808_v57  ;;  %4482 = vmatpush1.bf16.msra.mxu1 %v5232_v14  ;;  %v4875_v14 = vld [vmem:[%s6261_s1 + $0x168] sm:$0xff]   ;;  %v4861_v57 = vld [vmem:[%s5253_s8 + $0x3c0] ss:$28 sps:$4 sm:$0xff]  }
  0x6a   : > { %2889 = vmatprep.subr.bf16.mxu0 %v5110_v1  ;;  %4467 = vmatprep.subr.bf16.mxu1 %v5110_v1 }
  0x6d   : > { %2890 = vmatpush1.bf16.msra.mxu0 %v4815_v58  ;;  %4483 = vmatpush1.bf16.msra.mxu1 %v5244_v16  ;;  %v4796_v16 = vld [vmem:[%s5253_s8 + $0x1c4] ss:$28 sps:$4 sm:$0xff]   ;;  %v4862_v58 = vld [vmem:[%s5253_s8 + $0x3f4] ss:$28 sps:$4 sm:$0xff]  }
  0x6e   : > { %2891 = vmatprep.subr.bf16.mxu0 %v5110_v1  ;;  %4468 = vmatprep.subr.bf16.mxu1 %v5110_v1 }
  0x6f   : > { %2362 = vmatmul.mubr.bf16.gmra.mrb[16].mxu1 %v4773_v59  ;;  %2651 = vmatmul.mubr.bf16.gmra.mrb[16].mxu0 %v4774_v60  ;;  %v4864_v59 = vld [vmem:[%s5253_s8 + $0x3fc] ss:$28 sps:$4 sm:$0xff]   ;;  %v4866_v60 = vld [vmem:[%s5253_s8 + $0x3f0] ss:$28 sps:$4 sm:$0xff]  }
  0x70   : > { %2369 = vmatprep.mubr.bf16.mxu1 %v4776_v61  ;;  %2658 = vmatprep.mubr.bf16.mxu0 %v4778_v62  ;;  %v4867_v61 = vld [vmem:[%s5253_s8 + $0x3f8] ss:$28 sps:$4 sm:$0xff]   ;;  %v4869_v62 = vld [vmem:[%s5253_s8 + $0x42c] ss:$28 sps:$4 sm:$0xff]  }
  0x71   : > { %2892 = vmatpush1.bf16.msra.mxu0 %v4828_v63  ;;  %4484 = vmatpush1.bf16.msra.mxu1 %v5260_v18  ;;  %v4888_v18 = vld [vmem:[%s6261_s1 + $0x170] sm:$0xff]  }
  0x72   : > { %2893 = vmatprep.subr.bf16.mxu0 %v5110_v1  ;;  %4469 = vmatprep.subr.bf16.mxu1 %v5110_v1  ;;  %v4871_v63 = vld [vmem:[%s5253_s8 + $0x434] ss:$28 sps:$4 sm:$0xff]  }
  0x75   : > { %2894 = vmatpush1.bf16.msra.mxu0 %v4835_v0  ;;  %4485 = vmatpush1.bf16.msra.mxu1 %v5273_v22  ;;  %v4802_v22 = vld [vmem:[%s5253_s8 + $0x1fc] ss:$28 sps:$4 sm:$0xff]   ;;  %v4873_v0 = vld [vmem:[%s5253_s8 + $0x428] ss:$28 sps:$4 sm:$0xff]  }
  0x76   : > { %2895 = vmatprep.subr.bf16.mxu0 %v5110_v1  ;;  %4470 = vmatprep.subr.bf16.mxu1 %v5110_v1 }
  0x77   : > { %2370 = vmatmul.mubr.bf16.gmra.mrb[20].mxu1 %v4780_v2  ;;  %2659 = vmatmul.mubr.bf16.gmra.mrb[20].mxu0 %v4781_v3  ;;  %v4874_v2 = vld [vmem:[%s5253_s8 + $0x430] ss:$28 sps:$4 sm:$0xff]   ;;  %v4876_v3 = vld [vmem:[%s5253_s8 + $0x464] ss:$28 sps:$4 sm:$0xff]  }
  0x78   : > { %2377 = vmatprep.mubr.bf16.mxu1 %v4782_v4  ;;  %2666 = vmatprep.mubr.bf16.mxu0 %v4784_v5  ;;  %v4878_v4 = vld [vmem:[%s5253_s8 + $0x46c] ss:$28 sps:$4 sm:$0xff]   ;;  %v4880_v5 = vld [vmem:[%s5253_s8 + $0x460] ss:$28 sps:$4 sm:$0xff]  }
  0x79   : > { %2896 = vmatpush1.bf16.msra.mxu0 %v4848_v6  ;;  %4486 = vmatpush1.bf16.msra.mxu1 %v5284_v24  ;;  %v4806_v24 = vld [vmem:[%s5253_s8 + $0x1f8] ss:$28 sps:$4 sm:$0xff]   ;;  %v4881_v6 = vld [vmem:[%s5253_s8 + $0x468] ss:$28 sps:$4 sm:$0xff]  }
  0x7a   : > { %2897 = vmatprep.subr.bf16.mxu0 %v5110_v1  ;;  %4471 = vmatprep.subr.bf16.mxu1 %v5110_v1 }
  0x7d   : > { %2898 = vmatpush1.bf16.msra.mxu0 %v4855_v8  ;;  %4487 = vmatpush1.bf16.msra.mxu1 %v5295_v26  ;;  %v4809_v26 = vld [vmem:[%s5253_s8 + $0x234] ss:$28 sps:$4 sm:$0xff]   ;;  %v4884_v8 = vld [vmem:[%s5253_s8 + $0x4a4] ss:$28 sps:$4 sm:$0xff]  }
  0x7e   : > { %2899 = vmatprep.subr.bf16.mxu0 %v5110_v1  ;;  %4472 = vmatprep.subr.bf16.mxu1 %v5110_v1 }
  0x7f   : > { %2378 = vmatmul.mubr.bf16.gmra.mrb[24].mxu1 %v4786_v7  ;;  %2667 = vmatmul.mubr.bf16.gmra.mrb[24].mxu0 %v4787_v9  ;;  %v4882_v7 = vld [vmem:[%s5253_s8 + $0x49c] ss:$28 sps:$4 sm:$0xff]  }
  0x80   : > { %2385 = vmatprep.mubr.bf16.mxu1 %v4789_v10  ;;  %2674 = vmatprep.mubr.bf16.mxu0 %v4791_v11  ;;  %v4886_v9 = vld [vmem:[%s5253_s8 + $0x498] ss:$28 sps:$4 sm:$0xff]   ;;  %v4887_v10 = vld [vmem:[%s5253_s8 + $0x4a0] ss:$28 sps:$4 sm:$0xff]  }
  0x81   : > { %2900 = vmatpush1.bf16.msra.mxu0 %v4868_v12  ;;  %4488 = vmatpush1.bf16.msra.mxu1 %v5306_v28  ;;  %v4814_v28 = vld [vmem:[%s5253_s8 + $0x238] ss:$28 sps:$4 sm:$0xff]  }
  0x82   : > { %2901 = vmatprep.subr.bf16.mxu0 %v5110_v1  ;;  %4473 = vmatprep.subr.bf16.mxu1 %v5110_v1  ;;  %v4889_v11 = vld [vmem:[%s5253_s8 + $0x4d4] ss:$28 sps:$4 sm:$0xff]   ;;  %v4891_v12 = vld [vmem:[%s5253_s8 + $0x4dc] ss:$28 sps:$4 sm:$0xff]  }
  0x85   : > { %2902 = vmatpush1.bf16.msra.mxu0 %v4875_v14  ;;  %4489 = vmatpush1.bf16.msra.mxu1 %v5317_v30  ;;  %v4818_v30 = vld [vmem:[%s5253_s8 + $0x274] ss:$28 sps:$4 sm:$0xff]  }
  0x86   : > { %2903 = vmatprep.subr.bf16.mxu0 %v5110_v1  ;;  %4474 = vmatprep.subr.bf16.mxu1 %v5110_v1  ;;  %v4894_v14 = vld [vmem:[%s5253_s8 + $0x4d8] ss:$28 sps:$4 sm:$0xff]  }
  0x87   : > { %2386 = vmatmul.mubr.bf16.gmra.mrb[28].mxu1 %v4793_v13  ;;  %2675 = vmatmul.mubr.bf16.gmra.mrb[28].mxu0 %v4794_v15  ;;  %v4893_v13 = vld [vmem:[%s5253_s8 + $0x4d0] ss:$28 sps:$4 sm:$0xff]  }
  0x88   : > { %2393 = vmatprep.mubr.bf16.mxu1 %v4796_v16  ;;  %2682 = vmatprep.mubr.bf16.mxu0 %v4798_v17  ;;  %v4896_v15 = vld [vmem:[%s5253_s8 + $0x50c] ss:$28 sps:$4 sm:$0xff]   ;;  %v4898_v16 = vld [vmem:[%s5253_s8 + $0x514] ss:$28 sps:$4 sm:$0xff]  }
  0x89   : > { %2904 = vmatpush1.bf16.msra.mxu0 %v4888_v18  ;;  %4490 = vmatpush1.bf16.msra.mxu1 %v5328_v32  ;;  %v4821_v32 = vld [vmem:[%s5253_s8 + $0x270] ss:$28 sps:$4 sm:$0xff]   ;;  %v4900_v17 = vld [vmem:[%s5253_s8 + $0x508] ss:$28 sps:$4 sm:$0xff]  }
  0x8a   : > { %2905 = vmatprep.subr.bf16.mxu0 %v5110_v1  ;;  %4475 = vmatprep.subr.bf16.mxu1 %v5110_v1  ;;  %v4813_v1 = vld [vmem:[%s5253_s8 + $0x230] ss:$28 sps:$4 sm:$0xff]  }
  0x8b   : > { %v4901_v18 = vld [vmem:[%s5253_s8 + $0x510] ss:$28 sps:$4 sm:$0xff]  }
  0x8d   : > { %2906 = vmatpush1.bf16.msra.mxu0 %v4895_v20  ;;  %4491 = vmatpush1.bf16.msra.mxu1 %v5339_v34  ;;  %v4824_v34 = vld [vmem:[%s5253_s8 + $0x2ac] ss:$28 sps:$4 sm:$0xff]   ;;  %v4906_v20 = vld [vmem:[%s5253_s8 + $0x14] ss:$28 sps:$4 sm:$0xff]  }
  0x8e   : > { %4380 = vmatprep.subr.bf16.mxu1 %v5510_v55 }
  0x8f   : > { %2394 = vmatmul.mubr.bf16.gmra.mrb[32].mxu1 %v4800_v19  ;;  %2683 = vmatmul.mubr.bf16.gmra.mrb[32].mxu0 %v4801_v21  ;;  %v4902_v19 = vld [vmem:[%s5253_s8 + $0x544] ss:$28 sps:$4 sm:$0xff]  }
  0x90   : > { %2401 = vmatprep.mubr.bf16.mxu1 %v4802_v22  ;;  %2690 = vmatprep.mubr.bf16.mxu0 %v4804_v23  ;;  %v4907_v21 = vld [vmem:[%s5253_s8 + $0x540] ss:$28 sps:$4 sm:$0xff]   ;;  %v4904_v22 = vld [vmem:[%s5253_s8 + $0x10] ss:$28 sps:$4 sm:$0xff]  }
  0x91   : > { %v4908_v23 = vld [vmem:[%s5253_s8 + $0x57c] ss:$28 sps:$4 sm:$0xff]  }
  0x97   : > { %2402 = vmatmul.mubr.bf16.gmra.mrb[36].mxu1 %v4806_v24  ;;  %2691 = vmatmul.mubr.bf16.gmra.mrb[36].mxu0 %v4807_v25  ;;  %v4910_v24 = vld [vmem:[%s5253_s8 + $0x4c] ss:$28 sps:$4 sm:$0xff]   ;;  %v4912_v25 = vld [vmem:[%s5253_s8 + $0x578] ss:$28 sps:$4 sm:$0xff]  }
  0x98   : > { %2409 = vmatprep.mubr.bf16.mxu1 %v4809_v26  ;;  %2698 = vmatprep.mubr.bf16.mxu0 %v4811_v27  ;;  %v4913_v26 = vld [vmem:[%s5253_s8 + $0x48] ss:$28 sps:$4 sm:$0xff]   ;;  %v4914_v27 = vld [vmem:[%s5253_s8 + $0x5b4] ss:$28 sps:$4 sm:$0xff]  }
  0x9f   : > { %2410 = vmatmul.mubr.bf16.gmra.mrb[40].mxu1 %v4813_v1  ;;  %2699 = vmatmul.mubr.bf16.gmra.mrb[40].mxu0 %v4814_v28  ;;  %v4916_v1 = vld [vmem:[%s5253_s8 + $0x84] ss:$28 sps:$4 sm:$0xff]   ;;  %v4918_v28 = vld [vmem:[%s5253_s8 + $0x5b0] ss:$28 sps:$4 sm:$0xff]  }
  0xa0   : > { %2417 = vmatprep.mubr.bf16.mxu1 %v4816_v29  ;;  %2706 = vmatprep.mubr.bf16.mxu0 %v4818_v30  ;;  %v4919_v29 = vld [vmem:[%s5253_s8 + $0x80] ss:$28 sps:$4 sm:$0xff]   ;;  %v4920_v30 = vld [vmem:[%s5253_s8 + $0x5ec] ss:$28 sps:$4 sm:$0xff]  }
  0xa7   : > { %2418 = vmatmul.mubr.bf16.gmra.mrb[44].mxu1 %v4820_v31  ;;  %2707 = vmatmul.mubr.bf16.gmra.mrb[44].mxu0 %v4821_v32  ;;  %v4922_v31 = vld [vmem:[%s5253_s8 + $0xbc] ss:$28 sps:$4 sm:$0xff]  }
  0xa8   : > { %2425 = vmatprep.mubr.bf16.mxu1 %v4822_v33  ;;  %2714 = vmatprep.mubr.bf16.mxu0 %v4824_v34  ;;  %v4924_v34 = vld [vmem:[%s5253_s8 + $0x5e8] ss:$28 sps:$4 sm:$0xff]  }
  0xaf   : > { %2426 = vmatmul.mubr.bf16.gmra.mrb[48].mxu1 %v4826_v35  ;;  %2715 = vmatmul.mubr.bf16.gmra.mrb[48].mxu0 %v4827_v36  ;;  %v4925_v36 = vld [vmem:[%s5253_s8 + $0xb8] ss:$28 sps:$4 sm:$0xff]  }
  0xb0   : > { %2433 = vmatprep.mubr.bf16.mxu1 %v4829_v37  ;;  %2722 = vmatprep.mubr.bf16.mxu0 %v4831_v38  ;;  %v4926_v37 = vld [vmem:[%s5253_s8 + $0x624] ss:$28 sps:$4 sm:$0xff]  }
  0xb7   : > { %2434 = vmatmul.mubr.bf16.gmra.mrb[52].mxu1 %v4833_v39  ;;  %2723 = vmatmul.mubr.bf16.gmra.mrb[52].mxu0 %v4834_v40  ;;  %v4928_v39 = vld [vmem:[%s5253_s8 + $0xf4] ss:$28 sps:$4 sm:$0xff]  }
  0xb8   : > { %2441 = vmatprep.mubr.bf16.mxu1 %v4836_v41  ;;  %2730 = vmatprep.mubr.bf16.mxu0 %v4838_v42  ;;  %v4930_v42 = vld [vmem:[%s5253_s8 + $0x620] ss:$28 sps:$4 sm:$0xff]  }
  0xbf   : > { %2442 = vmatmul.mubr.bf16.gmra.mrb[56].mxu1 %v4840_v43  ;;  %2731 = vmatmul.mubr.bf16.gmra.mrb[56].mxu0 %v4841_v44  ;;  %v4931_v44 = vld [vmem:[%s5253_s8 + $0xf0] ss:$28 sps:$4 sm:$0xff]  }
  0xc0   : > { %2449 = vmatprep.mubr.bf16.mxu1 %v4842_v45  ;;  %2738 = vmatprep.mubr.bf16.mxu0 %v4844_v46  ;;  %v4932_v45 = vld [vmem:[%s5253_s8 + $0x65c] ss:$28 sps:$4 sm:$0xff]  }
  0xc7   : > { %2450 = vmatmul.mubr.bf16.gmra.mrb[60].mxu1 %v4846_v47  ;;  %2739 = vmatmul.mubr.bf16.gmra.mrb[60].mxu0 %v4847_v48  ;;  %v4934_v47 = vld [vmem:[%s5253_s8 + $0x12c] ss:$28 sps:$4 sm:$0xff]  }
  0xc8   : > { %2457 = vmatprep.mubr.bf16.mxu1 %v4849_v49  ;;  %2746 = vmatprep.mubr.bf16.mxu0 %v4851_v50  ;;  %v4936_v50 = vld [vmem:[%s5253_s8 + $0x658] ss:$28 sps:$4 sm:$0xff]  }
  0xcf   : > { %2458 = vmatmul.mubr.bf16.gmra.mrb[64].mxu1 %v4853_v51  ;;  %2747 = vmatmul.mubr.bf16.gmra.mrb[64].mxu0 %v4854_v52  ;;  %v4937_v52 = vld [vmem:[%s5253_s8 + $0x128] ss:$28 sps:$4 sm:$0xff]  }
  0xd0   : > { %2465 = vmatprep.mubr.bf16.mxu1 %v4856_v53  ;;  %2754 = vmatprep.mubr.bf16.mxu0 %v4858_v54  ;;  %v4938_v53 = vld [vmem:[%s5253_s8 + $0x694] ss:$28 sps:$4 sm:$0xff]  }
  0xd7   : > { %2466 = vmatmul.mubr.bf16.gmra.mrb[68].mxu1 %v4860_v56  ;;  %2755 = vmatmul.mubr.bf16.gmra.mrb[68].mxu0 %v4861_v57  ;;  %v4940_v56 = vld [vmem:[%s5253_s8 + $0x164] ss:$28 sps:$4 sm:$0xff]  }
  0xd8   : > { %2473 = vmatprep.mubr.bf16.mxu1 %v4862_v58  ;;  %2762 = vmatprep.mubr.bf16.mxu0 %v4864_v59  ;;  %v4942_v59 = vld [vmem:[%s5253_s8 + $0x690] ss:$28 sps:$4 sm:$0xff]  }
  0xdf   : > { %2474 = vmatmul.mubr.bf16.gmra.mrb[72].mxu1 %v4866_v60  ;;  %2763 = vmatmul.mubr.bf16.gmra.mrb[72].mxu0 %v4867_v61  ;;  %v4943_v61 = vld [vmem:[%s5253_s8 + $0x160] ss:$28 sps:$4 sm:$0xff]  }
  0xe0   : > { %2481 = vmatprep.mubr.bf16.mxu1 %v4869_v62  ;;  %2770 = vmatprep.mubr.bf16.mxu0 %v4871_v63  ;;  %v4944_v62 = vld [vmem:[%s5253_s8 + $0x6cc] ss:$28 sps:$4 sm:$0xff]  }
  0xe7   : > { %2482 = vmatmul.mubr.bf16.gmra.mrb[76].mxu1 %v4873_v0  ;;  %2771 = vmatmul.mubr.bf16.gmra.mrb[76].mxu0 %v4874_v2  ;;  %v4946_v0 = vld [vmem:[%s5253_s8 + $0x19c] ss:$28 sps:$4 sm:$0xff]  }
  0xe8   : > { %2489 = vmatprep.mubr.bf16.mxu1 %v4876_v3  ;;  %2778 = vmatprep.mubr.bf16.mxu0 %v4878_v4  ;;  %v4948_v4 = vld [vmem:[%s5253_s8 + $0x6c8] ss:$28 sps:$4 sm:$0xff]  }
  0xef   : > { %2490 = vmatmul.mubr.bf16.gmra.mrb[80].mxu1 %v4880_v5  ;;  %2779 = vmatmul.mubr.bf16.gmra.mrb[80].mxu0 %v4881_v6  ;;  %v4949_v6 = vld [vmem:[%s5253_s8 + $0x198] ss:$28 sps:$4 sm:$0xff]  }
  0xf0   : > { %2497 = vmatprep.mubr.bf16.mxu1 %v4882_v7  ;;  %2786 = vmatprep.mubr.bf16.mxu0 %v4884_v8  ;;  %v4952_v7 = vld [vmem:[%s5253_s8 + $0x54c] ss:$28 sps:$4 sm:$0xff]  }
  0xf7   : > { %2498 = vmatmul.mubr.bf16.gmra.mrb[84].mxu1 %v4886_v9  ;;  %2787 = vmatmul.mubr.bf16.gmra.mrb[84].mxu0 %v4887_v10  ;;  %v4953_v9 = vld [vmem:[%s5253_s8 + $0x1d4] ss:$28 sps:$4 sm:$0xff]  }
  0xf8   : > { %2505 = vmatprep.mubr.bf16.mxu1 %v4889_v11  ;;  %2794 = vmatprep.mubr.bf16.mxu0 %v4891_v12  ;;  %v4950_v12 = vld [vmem:[%s5253_s8 + $0x548] ss:$28 sps:$4 sm:$0xff]  }
  0xff   : > { %2506 = vmatmul.mubr.bf16.gmra.mrb[88].mxu1 %v4893_v13  ;;  %2795 = vmatmul.mubr.bf16.gmra.mrb[88].mxu0 %v4894_v14  ;;  %v4955_v14 = vld [vmem:[%s5253_s8 + $0x1d0] ss:$28 sps:$4 sm:$0xff]  }
 0x100   : > { %2513 = vmatprep.mubr.bf16.mxu1 %v4896_v15  ;;  %2802 = vmatprep.mubr.bf16.mxu0 %v4898_v16  ;;  %v4957_v16 = vld [vmem:[%s5253_s8 + $0x584] ss:$28 sps:$4 sm:$0xff]  }
 0x107   : > { %2514 = vmatmul.mubr.bf16.gmra.mrb[92].mxu1 %v4900_v17  ;;  %2803 = vmatmul.mubr.bf16.gmra.mrb[92].mxu0 %v4901_v18  ;;  %v4959_v17 = vld [vmem:[%s5253_s8 + $0x20c] ss:$28 sps:$4 sm:$0xff]  }
 0x108   : > { %2521 = vmatprep.mubr.bf16.mxu1 %v4902_v19  ;;  %2907 = vmatprep.mubr.bf16.mxu0 %v4906_v20  ;;  %v4963_v18 = vld [vmem:[%s6261_s1 + $0x188] sm:$0xff]   ;;  %v4970_v19 = vld [vmem:[%s6261_s1 + $0x190] sm:$0xff]  }
 0x10f   : > { %2522 = vmatmul.mubr.bf16.gmra.mrb[96].mxu1 %v4907_v21  ;;  %2908 = vmatmul.mubr.bf16.vlgmr.msra.gmra.mrb[0].mxu0 %v4904_v22  ;;  %v4961_v22 = vld [vmem:[%s5253_s8 + $0x580] ss:$28 sps:$4 sm:$0xff]  }
 0x110   : > { %2529 = vmatprep.mubr.bf16.mxu1 %v4908_v23  ;;  %2915 = vmatprep.mubr.bf16.mxu0 %v4910_v24  ;;  %v4962_v24 = vld [vmem:[%s5253_s8 + $0x208] ss:$28 sps:$4 sm:$0xff]  }
 0x117   : > { %2530 = vmatmul.mubr.bf16.gmra.mrb[100].mxu1 %v4912_v25  ;;  %2916 = vmatmul.mubr.bf16.gmra.mrb[4].mxu0 %v4913_v26  ;;  %v4964_v25 = vld [vmem:[%s5253_s8 + $0x5bc] ss:$28 sps:$4 sm:$0xff]  }
 0x118   : > { %2537 = vmatprep.mubr.bf16.mxu1 %v4914_v27  ;;  %2923 = vmatprep.mubr.bf16.mxu0 %v4916_v1  ;;  %v4977_v27 = vld [vmem:[%s6261_s1 + $0x198] sm:$0xff]  }
 0x11f   : > { %2538 = vmatmul.mubr.bf16.gmra.mrb[104].mxu1 %v4918_v28  ;;  %2924 = vmatmul.mubr.bf16.gmra.mrb[8].mxu0 %v4919_v29  ;;  %v4984_v28 = vld [vmem:[%s6261_s1 + $0x1a0] sm:$0xff]  }
 0x120   : > { %2545 = vmatprep.mubr.bf16.mxu1 %v4920_v30  ;;  %2931 = vmatprep.mubr.bf16.mxu0 %v4922_v31  ;;  %v4968_v30 = vld [vmem:[%s5253_s8 + $0x5b8] ss:$28 sps:$4 sm:$0xff]  }
 0x122   : > { %v5553_v32 = vpop.f32.mrb[0].mxu1 }
 0x123   : > { %v2333_v33 = vpop.f32.mrb[1].mxu1 }
 0x124   : > { %v5556_v35 = vpop.f32.mrb[2].mxu1  ;;  %v4969_v33 = vld [vmem:[%s5253_s8 + $0x240] ss:$28 sps:$4 sm:$0xff]  }
 0x125   : > { %v2336_v38 = vpop.f32.mrb[3].mxu1 }
 0x126   : > { %v4991_v38 = vld [vmem:[%s6261_s1 + $0x1a8] sm:$0xff]  }
 0x127   : > { %2546 = vmatmul.mubr.bf16.gmra.mrb[108].mxu1 %v4924_v34  ;;  %2932 = vmatmul.mubr.bf16.gmra.mrb[12].mxu0 %v4925_v36  ;;  %v4971_v34 = vld [vmem:[%s5253_s8 + $0x5f4] ss:$28 sps:$4 sm:$0xff]  }
 0x128   : > { %2553 = vmatprep.mubr.bf16.mxu1 %v4926_v37  ;;  %2939 = vmatprep.mubr.bf16.mxu0 %v4928_v39  ;;  %v4973_v37 = vld [vmem:[%s5253_s8 + $0x27c] ss:$28 sps:$4 sm:$0xff]  }
 0x12a   : > { %v5561_v40 = vpop.f32.mrb[4].mxu1 }
 0x12b   : > { %v2341_v41 = vpop.f32.mrb[5].mxu1 }
 0x12c   : > { %v5564_v43 = vpop.f32.mrb[6].mxu1  ;;  %v4998_v41 = vld [vmem:[%s6261_s1 + $0x1b0] sm:$0xff]  }
 0x12d   : > { %v2344_v46 = vpop.f32.mrb[7].mxu1 }
 0x12e   : > { %v4976_v46 = vld [vmem:[%s5253_s8 + $0x278] ss:$28 sps:$4 sm:$0xff]  }
 0x12f   : > { %2554 = vmatmul.mubr.bf16.gmra.mrb[112].mxu1 %v4930_v42  ;;  %2940 = vmatmul.mubr.bf16.gmra.mrb[16].mxu0 %v4931_v44  ;;  %v4975_v44 = vld [vmem:[%s5253_s8 + $0x5f0] ss:$28 sps:$4 sm:$0xff]  }
 0x130   : > { %2561 = vmatprep.mubr.bf16.mxu1 %v4932_v45  ;;  %2947 = vmatprep.mubr.bf16.mxu0 %v4934_v47  ;;  %v4978_v47 = vld [vmem:[%s5253_s8 + $0x62c] ss:$28 sps:$4 sm:$0xff]  }
 0x132   : > { %v5569_v48 = vpop.f32.mrb[8].mxu1 }
 0x133   : > { %v2349_v49 = vpop.f32.mrb[9].mxu1 }
 0x134   : > { %v5572_v51 = vpop.f32.mrb[10].mxu1 }
 0x135   : > { %v2352_v54 = vpop.f32.mrb[11].mxu1 }
 0x137   : > { %2562 = vmatmul.mubr.bf16.gmra.mrb[116].mxu1 %v4936_v50  ;;  %2948 = vmatmul.mubr.bf16.gmra.mrb[20].mxu0 %v4937_v52  ;;  %v4980_v50 = vld [vmem:[%s5253_s8 + $0x2b4] ss:$28 sps:$4 sm:$0xff]   ;;  %v5005_v52 = vld [vmem:[%s6261_s1 + $0x1b8] sm:$0xff]  }
 0x138   : > { %2569 = vmatprep.mubr.bf16.mxu1 %v4938_v53  ;;  %2955 = vmatprep.mubr.bf16.mxu0 %v4940_v56  ;;  %v4982_v56 = vld [vmem:[%s5253_s8 + $0x628] ss:$28 sps:$4 sm:$0xff]  }
 0x13a   : > { %v5577_v57 = vpop.f32.mrb[12].mxu1 }
 0x13b   : > { %v2357_v58 = vpop.f32.mrb[13].mxu1 }
 0x13c   : > { %v5580_v60 = vpop.f32.mrb[14].mxu1 }
 0x13d   : > { %v2360_v63 = vpop.f32.mrb[15].mxu1 }
 0x13e   : > { %v4987_v63 = vld [vmem:[%s5253_s8 + $0x2ec] ss:$28 sps:$4 sm:$0xff]  }
 0x13f   : > { %2570 = vmatmul.mubr.bf16.gmra.mrb[120].mxu1 %v4942_v59  ;;  %2956 = vmatmul.mubr.bf16.gmra.mrb[24].mxu0 %v4943_v61  ;;  %v4983_v59 = vld [vmem:[%s5253_s8 + $0x2b0] ss:$28 sps:$4 sm:$0xff]   ;;  %v4985_v61 = vld [vmem:[%s5253_s8 + $0x664] ss:$28 sps:$4 sm:$0xff]  }
 0x140   : > { %2577 = vmatprep.mubr.bf16.mxu1 %v4944_v62  ;;  %2963 = vmatprep.mubr.bf16.mxu0 %v4946_v0 }
 0x142   : > { %v5585_v2 = vpop.f32.mrb[16].mxu1 }
 0x143   : > { %v2365_v3 = vpop.f32.mrb[17].mxu1 }
 0x144   : > { %v5588_v5 = vpop.f32.mrb[18].mxu1 }
 0x145   : > { %v2368_v8 = vpop.f32.mrb[19].mxu1 }
 0x146   : > { %v4992_v8 = vld [vmem:[%s5253_s8 + $0x69c] ss:$28 sps:$4 sm:$0xff]  }
 0x147   : > { %2578 = vmatmul.mubr.bf16.gmra.mrb[124].mxu1 %v4948_v4  ;;  %2964 = vmatmul.mubr.bf16.gmra.mrb[28].mxu0 %v4949_v6  ;;  %v4989_v4 = vld [vmem:[%s5253_s8 + $0x660] ss:$28 sps:$4 sm:$0xff]  }
 0x148   : > { %2810 = vmatprep.mubr.bf16.mxu1 %v4952_v7  ;;  %2971 = vmatprep.mubr.bf16.mxu0 %v4953_v9  ;;  %v4990_v7 = vld [vmem:[%s5253_s8 + $0x2e8] ss:$28 sps:$4 sm:$0xff]  }
 0x14a   : > { %v5593_v10 = vpop.f32.mrb[20].mxu1 }
 0x14b   : > { %v2373_v11 = vpop.f32.mrb[21].mxu1 }
 0x14c   : > { %v5596_v13 = vpop.f32.mrb[22].mxu1  ;;  %v4994_v11 = vld [vmem:[%s5253_s8 + $0x324] ss:$28 sps:$4 sm:$0xff]  }
 0x14d   : > { %v2376_v15 = vpop.f32.mrb[23].mxu1 }
 0x14e   : > { %v4996_v15 = vld [vmem:[%s5253_s8 + $0x698] ss:$28 sps:$4 sm:$0xff]  }
 0x14f   : > { %2811 = vmatmul.mubr.bf16.vlgmr.msra.gmra.mrb[96].mxu1 %v4950_v12  ;;  %2972 = vmatmul.mubr.bf16.gmra.mrb[32].mxu0 %v4955_v14 }
 0x150   : > { %4381 = vmatpush3.bf16.msra.mxu1 %v5510_v55  ;;  %2818 = vmatprep.mubr.bf16.mxu1 %v4957_v16  ;;  %v4966_v55 = vld [vmem:[%s5253_s8 + $0x244] ss:$28 sps:$4 sm:$0xff]  }
 0x151   : > { %2979 = vmatprep.mubr.bf16.mxu0 %v4959_v17  ;;  %4382 = vmatprep.subr.bf16.mxu1 %v4963_v18  ;;  %v4997_v17 = vld [vmem:[%s5253_s8 + $0x320] ss:$28 sps:$4 sm:$0xff]  }
 0x152   : > { %v5608_v20 = vpop.f32.mrb[24].mxu1 }
 0x153   : > { %v2381_v21 = vpop.f32.mrb[25].mxu1 }
 0x154   : > { %v5611_v23 = vpop.f32.mrb[26].mxu1  ;;  %4383 = vmatpush3.bf16.msra.mxu1 %v4963_v18  ;;  %v4999_v18 = vld [vmem:[%s5253_s8 + $0x6d4] ss:$28 sps:$4 sm:$0xff]   ;;  %v5001_v21 = vld [vmem:[%s5253_s8 + $0x35c] ss:$28 sps:$4 sm:$0xff]  }
 0x155   : > { %v2384_v26 = vpop.f32.mrb[27].mxu1  ;;  %4384 = vmatprep.subr.bf16.mxu1 %v4970_v19 }
 0x157   : > { %2819 = vmatmul.mubr.bf16.gmra.mrb[100].mxu1 %v4961_v22  ;;  %2980 = vmatmul.mubr.bf16.gmra.mrb[36].mxu0 %v4962_v24 }
 0x158   : > { %2826 = vmatprep.mubr.bf16.mxu1 %v4964_v25  ;;  %2987 = vmatprep.mubr.bf16.mxu0 %v4966_v55  ;;  %v5003_v25 = vld [vmem:[%s5253_s8 + $0x6d0] ss:$28 sps:$4 sm:$0xff]   ;;  %v5004_v55 = vld [vmem:[%s5253_s8 + $0x358] ss:$28 sps:$4 sm:$0xff]  }
 0x159   : > { %4385 = vmatpush3.bf16.msra.mxu1 %v4970_v19 }
 0x15a   : > { %v5619_v1 = vpop.f32.mrb[28].mxu1  ;;  %4386 = vmatprep.subr.bf16.mxu1 %v4977_v27 }
 0x15b   : > { %v2389_v29 = vpop.f32.mrb[29].mxu1 }
 0x15c   : > { %v5625_v31 = vpop.f32.mrb[30].mxu1  ;;  %v5006_v29 = vld [vmem:[%s5253_s8 + $0x394] ss:$28 sps:$4 sm:$0xff]  }
 0x15d   : > { %v2392_v36 = vpop.f32.mrb[31].mxu1  ;;  %4387 = vmatpush3.bf16.msra.mxu1 %v4977_v27  ;;  %v5008_v27 = vld [vmem:[%s5253_s8 + $0x18] ss:$28 sps:$4 sm:$0xff]  }
 0x15e   : > { %4388 = vmatprep.subr.bf16.mxu1 %v4984_v28 }
 0x15f   : > { %2827 = vmatmul.mubr.bf16.gmra.mrb[104].mxu1 %v4968_v30  ;;  %2988 = vmatmul.mubr.bf16.gmra.mrb[40].mxu0 %v4969_v33 }
 0x160   : > { %2834 = vmatprep.mubr.bf16.mxu1 %v4971_v34  ;;  %2995 = vmatprep.mubr.bf16.mxu0 %v4973_v37  ;;  %v5010_v34 = vld [vmem:[%s5253_s8 + $0x50] ss:$28 sps:$4 sm:$0xff]  }
 0x161   : > { %4389 = vmatpush3.bf16.msra.mxu1 %v4984_v28  ;;  %v5009_v37 = vld [vmem:[%s5253_s8 + $0x390] ss:$28 sps:$4 sm:$0xff]  }
 0x162   : > { %v5633_v39 = vpop.f32.mrb[32].mxu1  ;;  %4390 = vmatprep.subr.bf16.mxu1 %v4991_v38 }
 0x163   : > { %v2397_v42 = vpop.f32.mrb[33].mxu1 }
 0x164   : > { %v5639_v45 = vpop.f32.mrb[34].mxu1  ;;  %v5011_v42 = vld [vmem:[%s5253_s8 + $0x3cc] ss:$28 sps:$4 sm:$0xff]  }
 0x165   : > { %v2400_v49 = vpop.f32.mrb[35].mxu1  ;;  %4391 = vmatpush3.bf16.msra.mxu1 %v4991_v38  ;;  %v5013_v38 = vld [vmem:[%s5253_s8 + $0x88] ss:$28 sps:$4 sm:$0xff]  }
 0x166   : > { %4392 = vmatprep.subr.bf16.mxu1 %v4998_v41 }
 0x167   : > { %2835 = vmatmul.mubr.bf16.gmra.mrb[108].mxu1 %v4975_v44  ;;  %2996 = vmatmul.mubr.bf16.gmra.mrb[44].mxu0 %v4976_v46 }
 0x168   : > { %2842 = vmatprep.mubr.bf16.mxu1 %v4978_v47  ;;  %3003 = vmatprep.mubr.bf16.mxu0 %v4980_v50  ;;  %v5015_v47 = vld [vmem:[%s5253_s8 + $0xc0] ss:$28 sps:$4 sm:$0xff]   ;;  %v5014_v50 = vld [vmem:[%s5253_s8 + $0x3c8] ss:$28 sps:$4 sm:$0xff]  }
 0x169   : > { %4393 = vmatpush3.bf16.msra.mxu1 %v4998_v41 }
 0x16a   : > { %v5647_v53 = vpop.f32.mrb[36].mxu1  ;;  %4394 = vmatprep.subr.bf16.mxu1 %v5005_v52 }
 0x16b   : > { %v2405_v54 = vpop.f32.mrb[37].mxu1 }
 0x16c   : > { %v5650_v58 = vpop.f32.mrb[38].mxu1 }
 0x16d   : > { %v2408_v62 = vpop.f32.mrb[39].mxu1  ;;  %4395 = vmatpush3.bf16.msra.mxu1 %v5005_v52  ;;  %v5018_v52 = vld [vmem:[%s5253_s8 + $0xf8] ss:$28 sps:$4 sm:$0xff]  }
 0x16e   : > { %v5020_v62 = vld [vmem:[%s5253_s8 + $0x130] ss:$28 sps:$4 sm:$0xff]  }
 0x16f   : > { %2843 = vmatmul.mubr.bf16.gmra.mrb[112].mxu1 %v4982_v56  ;;  %3004 = vmatmul.mubr.bf16.gmra.mrb[48].mxu0 %v4983_v59  ;;  %v5016_v56 = vld [vmem:[%s5253_s8 + $0x404] ss:$28 sps:$4 sm:$0xff]  }
 0x170   : > { %2850 = vmatprep.mubr.bf16.mxu1 %v4985_v61  ;;  %3011 = vmatprep.mubr.bf16.mxu0 %v4987_v63 }
 0x172   : > { %v5655_v0 = vpop.f32.mrb[40].mxu1 }
 0x173   : > { %v2413_v3 = vpop.f32.mrb[41].mxu1 }
 0x174   : > { %v5658_v6 = vpop.f32.mrb[42].mxu1  ;;  %v5019_v3 = vld [vmem:[%s5253_s8 + $0x400] ss:$28 sps:$4 sm:$0xff]  }
 0x175   : > { %v2416_v9 = vpop.f32.mrb[43].mxu1 }
 0x177   : > { %2851 = vmatmul.mubr.bf16.gmra.mrb[116].mxu1 %v4989_v4  ;;  %3012 = vmatmul.mubr.bf16.gmra.mrb[52].mxu0 %v4990_v7  ;;  %v5023_v4 = vld [vmem:[%s5253_s8 + $0x168] ss:$28 sps:$4 sm:$0xff]  }
 0x178   : > { %2858 = vmatprep.mubr.bf16.mxu1 %v4992_v8  ;;  %3019 = vmatprep.mubr.bf16.mxu0 %v4994_v11  ;;  %v5021_v8 = vld [vmem:[%s5253_s8 + $0x43c] ss:$28 sps:$4 sm:$0xff]  }
 0x17a   : > { %v5663_v12 = vpop.f32.mrb[44].mxu1 }
 0x17b   : > { %v2421_v14 = vpop.f32.mrb[45].mxu1 }
 0x17c   : > { %v5666_v16 = vpop.f32.mrb[46].mxu1  ;;  %v5025_v14 = vld [vmem:[%s5253_s8 + $0x1a0] ss:$28 sps:$4 sm:$0xff]  }
 0x17d   : > { %v2424_v19 = vpop.f32.mrb[47].mxu1 }
 0x17f   : > { %2859 = vmatmul.mubr.bf16.gmra.mrb[120].mxu1 %v4996_v15  ;;  %3020 = vmatmul.mubr.bf16.gmra.mrb[56].mxu0 %v4997_v17  ;;  %v5024_v17 = vld [vmem:[%s5253_s8 + $0x438] ss:$28 sps:$4 sm:$0xff]  }
 0x180   : > { %2866 = vmatprep.mubr.bf16.mxu1 %v4999_v18  ;;  %3027 = vmatprep.mubr.bf16.mxu0 %v5001_v21  ;;  %v5028_v18 = vld [vmem:[%s5253_s8 + $0x1d8] ss:$28 sps:$4 sm:$0xff]  }
 0x181   : > { %v5026_v21 = vld [vmem:[%s5253_s8 + $0x474] ss:$28 sps:$4 sm:$0xff]  }
 0x182   : > { %v5671_v22 = vpop.f32.mrb[48].mxu1 }
 0x183   : > { %v2429_v24 = vpop.f32.mrb[49].mxu1 }
 0x184   : > { %v5674_v26 = vpop.f32.mrb[50].mxu1 }
 0x185   : > { %v2432_v28 = vpop.f32.mrb[51].mxu1 }
 0x186   : > { %v5029_v28 = vld [vmem:[%s5253_s8 + $0x470] ss:$28 sps:$4 sm:$0xff]  }
 0x187   : > { %2867 = vmatmul.mubr.bf16.gmra.mrb[124].mxu1 %v5003_v25  ;;  %3028 = vmatmul.mubr.bf16.gmra.mrb[60].mxu0 %v5004_v55  ;;  %v5030_v55 = vld [vmem:[%s5253_s8 + $0x210] ss:$28 sps:$4 sm:$0xff]  }
 0x188   : > { %4396 = vmatprep.mubr.bf16.mxu1 %v5008_v27  ;;  %3035 = vmatprep.mubr.bf16.mxu0 %v5006_v29  ;;  %v5033_v29 = vld [vmem:[%s5253_s8 + $0x248] ss:$28 sps:$4 sm:$0xff]  }
 0x18a   : > { %v5679_v30 = vpop.f32.mrb[52].mxu1 }
 0x18b   : > { %v2437_v33 = vpop.f32.mrb[53].mxu1 }
 0x18c   : > { %v5682_v36 = vpop.f32.mrb[54].mxu1 }
 0x18d   : > { %v2440_v41 = vpop.f32.mrb[55].mxu1 }
 0x18e   : > { %v5035_v41 = vld [vmem:[%s5253_s8 + $0x280] ss:$28 sps:$4 sm:$0xff]  }
 0x18f   : > { %4397 = vmatmul.mubr.bf16.vlgmr.msra.gmra.mrb[128].mxu1 %v5010_v34  ;;  %3036 = vmatmul.mubr.bf16.gmra.mrb[64].mxu0 %v5009_v37  ;;  %v5031_v34 = vld [vmem:[%s5253_s8 + $0x4ac] ss:$28 sps:$4 sm:$0xff]  }
 0x190   : > { %4400 = vmatprep.mubr.bf16.mxu1 %v5013_v38  ;;  %3043 = vmatprep.mubr.bf16.mxu0 %v5011_v42 }
 0x192   : > { %v5687_v44 = vpop.f32.mrb[56].mxu1 }
 0x193   : > { %v2445_v46 = vpop.f32.mrb[57].mxu1 }
 0x194   : > { %v5690_v49 = vpop.f32.mrb[58].mxu1  ;;  %v5034_v46 = vld [vmem:[%s5253_s8 + $0x4a8] ss:$28 sps:$4 sm:$0xff]  }
 0x195   : > { %v2448_v54 = vpop.f32.mrb[59].mxu1 }
 0x197   : > { %4401 = vmatmul.mubr.bf16.gmra.mrb[132].mxu1 %v5015_v47  ;;  %3044 = vmatmul.mubr.bf16.gmra.mrb[68].mxu0 %v5014_v50  ;;  %v5038_v47 = vld [vmem:[%s5253_s8 + $0x2b8] ss:$28 sps:$4 sm:$0xff]  }
 0x198   : > { %4404 = vmatprep.mubr.bf16.mxu1 %v5018_v52  ;;  %3051 = vmatprep.mubr.bf16.mxu0 %v5016_v56  ;;  %v5036_v52 = vld [vmem:[%s5253_s8 + $0x4e4] ss:$28 sps:$4 sm:$0xff]  }
 0x19a   : > { %v5695_v59 = vpop.f32.mrb[60].mxu1 }
 0x19b   : > { %v2453_v61 = vpop.f32.mrb[61].mxu1 }
 0x19c   : > { %v5698_v63 = vpop.f32.mrb[62].mxu1  ;;  %v5040_v61 = vld [vmem:[%s5253_s8 + $0x2f0] ss:$28 sps:$4 sm:$0xff]  }
 0x19d   : > { %v2456_v7 = vpop.f32.mrb[63].mxu1 }
 0x19f   : > { %4405 = vmatmul.mubr.bf16.gmra.mrb[136].mxu1 %v5020_v62  ;;  %3052 = vmatmul.mubr.bf16.gmra.mrb[72].mxu0 %v5019_v3  ;;  %v5039_v3 = vld [vmem:[%s5253_s8 + $0x4e0] ss:$28 sps:$4 sm:$0xff]  }
 0x1a0   : > { %4408 = vmatprep.mubr.bf16.mxu1 %v5023_v4  ;;  %3059 = vmatprep.mubr.bf16.mxu0 %v5021_v8  ;;  %v5043_v4 = vld [vmem:[%s5253_s8 + $0x328] ss:$28 sps:$4 sm:$0xff]   ;;  %v5041_v8 = vld [vmem:[%s5253_s8 + $0x51c] ss:$28 sps:$4 sm:$0xff]  }
 0x1a2   : > { %v5703_v9 = vpop.f32.mrb[64].mxu1 }
 0x1a3   : > { %v2461_v11 = vpop.f32.mrb[65].mxu1 }
 0x1a4   : > { %v5706_v15 = vpop.f32.mrb[66].mxu1 }
 0x1a5   : > { %v2464_v19 = vpop.f32.mrb[67].mxu1 }
 0x1a6   : > { %v5044_v19 = vld [vmem:[%s5253_s8 + $0x518] ss:$28 sps:$4 sm:$0xff]  }
 0x1a7   : > { %4409 = vmatmul.mubr.bf16.gmra.mrb[140].mxu1 %v5025_v14  ;;  %3060 = vmatmul.mubr.bf16.gmra.mrb[76].mxu0 %v5024_v17  ;;  %v5045_v17 = vld [vmem:[%s5253_s8 + $0x360] ss:$28 sps:$4 sm:$0xff]  }
 0x1a8   : > { %4412 = vmatprep.mubr.bf16.mxu1 %v5028_v18  ;;  %3067 = vmatprep.mubr.bf16.mxu0 %v5026_v21  ;;  %v5048_v21 = vld [vmem:[%s5253_s8 + $0x398] ss:$28 sps:$4 sm:$0xff]  }
 0x1aa   : > { %v5711_v24 = vpop.f32.mrb[68].mxu1 }
 0x1ab   : > { %v2469_v25 = vpop.f32.mrb[69].mxu1 }
 0x1ac   : > { %v5714_v27 = vpop.f32.mrb[70].mxu1 }
 0x1ad   : > { %v2472_v33 = vpop.f32.mrb[71].mxu1 }
 0x1ae   : > { %v5050_v33 = vld [vmem:[%s5253_s8 + $0x3d0] ss:$28 sps:$4 sm:$0xff]  }
 0x1af   : > { %4413 = vmatmul.mubr.bf16.gmra.mrb[144].mxu1 %v5030_v55  ;;  %3068 = vmatmul.mubr.bf16.gmra.mrb[80].mxu0 %v5029_v28  ;;  %v5046_v55 = vld [vmem:[%s5253_s8 + $0x554] ss:$28 sps:$4 sm:$0xff]  }
 0x1b0   : > { %4416 = vmatprep.mubr.bf16.mxu1 %v5033_v29  ;;  %3075 = vmatprep.mubr.bf16.mxu0 %v5031_v34 }
 0x1b2   : > { %v5719_v37 = vpop.f32.mrb[72].mxu1 }
 0x1b3   : > { %v2477_v38 = vpop.f32.mrb[73].mxu1 }
 0x1b4   : > { %v5722_v42 = vpop.f32.mrb[74].mxu1  ;;  %v5049_v38 = vld [vmem:[%s5253_s8 + $0x550] ss:$28 sps:$4 sm:$0xff]  }
 0x1b5   : > { %v2480_v50 = vpop.f32.mrb[75].mxu1 }
 0x1b7   : > { %4417 = vmatmul.mubr.bf16.gmra.mrb[148].mxu1 %v5035_v41  ;;  %3076 = vmatmul.mubr.bf16.gmra.mrb[84].mxu0 %v5034_v46  ;;  %v5053_v41 = vld [vmem:[%s5253_s8 + $0x408] ss:$28 sps:$4 sm:$0xff]  }
 0x1b8   : > { %4420 = vmatprep.mubr.bf16.mxu1 %v5038_v47  ;;  %3083 = vmatprep.mubr.bf16.mxu0 %v5036_v52  ;;  %v5051_v47 = vld [vmem:[%s5253_s8 + $0x58c] ss:$28 sps:$4 sm:$0xff]  }
 0x1ba   : > { %v5727_v54 = vpop.f32.mrb[76].mxu1 }
 0x1bb   : > { %v2485_v56 = vpop.f32.mrb[77].mxu1 }
 0x1bc   : > { %v5730_v62 = vpop.f32.mrb[78].mxu1  ;;  %v5055_v56 = vld [vmem:[%s5253_s8 + $0x440] ss:$28 sps:$4 sm:$0xff]  }
 0x1bd   : > { %v2488_v7 = vpop.f32.mrb[79].mxu1 }
 0x1bf   : > { %4421 = vmatmul.mubr.bf16.gmra.mrb[152].mxu1 %v5040_v61  ;;  %3084 = vmatmul.mubr.bf16.gmra.mrb[88].mxu0 %v5039_v3  ;;  %v5054_v3 = vld [vmem:[%s5253_s8 + $0x588] ss:$28 sps:$4 sm:$0xff]  }
 0x1c0   : > { %4424 = vmatprep.mubr.bf16.mxu1 %v5043_v4  ;;  %3091 = vmatprep.mubr.bf16.mxu0 %v5041_v8  ;;  %v5058_v4 = vld [vmem:[%s5253_s8 + $0x478] ss:$28 sps:$4 sm:$0xff]   ;;  %v5056_v8 = vld [vmem:[%s5253_s8 + $0x5c4] ss:$28 sps:$4 sm:$0xff]  }
 0x1c2   : > { %v5735_v11 = vpop.f32.mrb[80].mxu1 }
 0x1c3   : > { %v2493_v14 = vpop.f32.mrb[81].mxu1 }
 0x1c4   : > { %v5738_v18 = vpop.f32.mrb[82].mxu1 }
 0x1c5   : > { %v2496_v25 = vpop.f32.mrb[83].mxu1 }
 0x1c6   : > { %v5059_v25 = vld [vmem:[%s5253_s8 + $0x5c0] ss:$28 sps:$4 sm:$0xff]  }
 0x1c7   : > { %4425 = vmatmul.mubr.bf16.gmra.mrb[156].mxu1 %v5045_v17  ;;  %3092 = vmatmul.mubr.bf16.gmra.mrb[92].mxu0 %v5044_v19  ;;  %v5060_v19 = vld [vmem:[%s5253_s8 + $0x4b0] ss:$28 sps:$4 sm:$0xff]  }
 0x1c8   : > { %4428 = vmatprep.mubr.bf16.mxu1 %v5048_v21  ;;  %3099 = vmatprep.mubr.bf16.mxu0 %v5046_v55  ;;  %v5063_v55 = vld [vmem:[%s5253_s8 + $0x4e8] ss:$28 sps:$4 sm:$0xff]  }
 0x1ca   : > { %v5743_v28 = vpop.f32.mrb[84].mxu1 }
 0x1cb   : > { %v2501_v29 = vpop.f32.mrb[85].mxu1 }
 0x1cc   : > { %v5746_v34 = vpop.f32.mrb[86].mxu1 }
 0x1cd   : > { %v2504_v46 = vpop.f32.mrb[87].mxu1 }
 0x1cf   : > { %4429 = vmatmul.mubr.bf16.gmra.mrb[160].mxu1 %v5050_v33  ;;  %3100 = vmatmul.mubr.bf16.gmra.mrb[96].mxu0 %v5049_v38  ;;  %v5061_v33 = vld [vmem:[%s5253_s8 + $0x5fc] ss:$28 sps:$4 sm:$0xff]  }
 0x1d0   : > { %4432 = vmatprep.mubr.bf16.mxu1 %v5053_v41  ;;  %3107 = vmatprep.mubr.bf16.mxu0 %v5051_v47  ;;  %v5065_v41 = vld [vmem:[%s5253_s8 + $0x520] ss:$28 sps:$4 sm:$0xff]  }
 0x1d2   : > { %v5751_v50 = vpop.f32.mrb[88].mxu1 }
 0x1d3   : > { %v2509_v52 = vpop.f32.mrb[89].mxu1 }
 0x1d4   : > { %v5754_v61 = vpop.f32.mrb[90].mxu1  ;;  %v5064_v52 = vld [vmem:[%s5253_s8 + $0x5f8] ss:$28 sps:$4 sm:$0xff]  }
 0x1d5   : > { %v2512_v7 = vpop.f32.mrb[91].mxu1 }
 0x1d7   : > { %4433 = vmatmul.mubr.bf16.gmra.mrb[164].mxu1 %v5055_v56  ;;  %3108 = vmatmul.mubr.bf16.gmra.mrb[100].mxu0 %v5054_v3  ;;  %v5068_v56 = vld [vmem:[%s5253_s8 + $0x558] ss:$28 sps:$4 sm:$0xff]  }
 0x1d8   : > { %4436 = vmatprep.mubr.bf16.mxu1 %v5058_v4  ;;  %3115 = vmatprep.mubr.bf16.mxu0 %v5056_v8  ;;  %v5066_v4 = vld [vmem:[%s5253_s8 + $0x634] ss:$28 sps:$4 sm:$0xff]  }
 0x1da   : > { %v5759_v14 = vpop.f32.mrb[92].mxu1 }
 0x1db   : > { %v2517_v17 = vpop.f32.mrb[93].mxu1 }
 0x1dc   : > { %v5762_v21 = vpop.f32.mrb[94].mxu1 }
 0x1dd   : > { %v2520_v29 = vpop.f32.mrb[95].mxu1 }
 0x1de   : > { %v5073_v29 = vld [vmem:[%s5253_s8 + $0x5c8] ss:$28 sps:$4 sm:$0xff]  }
 0x1df   : > { %4437 = vmatmul.mubr.bf16.gmra.mrb[168].mxu1 %v5060_v19  ;;  %3116 = vmatmul.mubr.bf16.gmra.mrb[104].mxu0 %v5059_v25 }
 0x1e0   : > { %4440 = vmatprep.mubr.bf16.mxu1 %v5063_v55  ;;  %3123 = vmatprep.mubr.bf16.mxu0 %v5061_v33  ;;  %v5069_v55 = vld [vmem:[%s5253_s8 + $0x630] ss:$28 sps:$4 sm:$0xff]  }
 0x1e2   : > { %v2909_v38 = vpop.f32.mrb[0].mxu0 }
 0x1e3   : > { %v5769_v46 = vadd.f32 %v2909_v38, %v5553_v32  ;;  %v2911_v47 = vpop.f32.mrb[1].mxu0  ;;  %v5070_v32 = vld [vmem:[%s5253_s8 + $0x590] ss:$28 sps:$4 sm:$0xff]  }
 0x1e4   : > { %v2912_v3 = vpop.f32.mrb[2].mxu0 }
 0x1e5   : > { %v5775_v7 = vadd.f32 %v2912_v3, %v5556_v35  ;;  %v2914_v8 = vpop.f32.mrb[3].mxu0  ;;  %v5071_v35 = vld [vmem:[%s5253_s8 + $0x66c] ss:$28 sps:$4 sm:$0xff]  }
 0x1e6   : > { %v5074_v3 = vld [vmem:[%s5253_s8 + $0x668] ss:$28 sps:$4 sm:$0xff]  }
 0x1e7   : > { %4441 = vmatmul.mubr.bf16.gmra.mrb[172].mxu1 %v5065_v41  ;;  %3124 = vmatmul.mubr.bf16.gmra.mrb[108].mxu0 %v5064_v52 }
 0x1e8   : > { %4444 = vmatprep.mubr.bf16.mxu1 %v5068_v56  ;;  %3131 = vmatprep.mubr.bf16.mxu0 %v5066_v4  ;;  %v5078_v4 = vld [vmem:[%s5253_s8 + $0x638] ss:$28 sps:$4 sm:$0xff]  }
 0x1ea   : > { %v2917_v17 = vpop.f32.mrb[4].mxu0 }
 0x1eb   : > { %v5779_v19 = vadd.f32 %v2917_v17, %v5561_v40  ;;  %v2919_v25 = vpop.f32.mrb[5].mxu0  ;;  %v5075_v40 = vld [vmem:[%s5253_s8 + $0x600] ss:$28 sps:$4 sm:$0xff]  }
 0x1ec   : > { %v2920_v33 = vpop.f32.mrb[6].mxu0 }
 0x1ed   : > { %v5785_v38 = vadd.f32 %v2920_v33, %v5564_v43  ;;  %v2922_v41 = vpop.f32.mrb[7].mxu0  ;;  %v5076_v43 = vld [vmem:[%s5253_s8 + $0x6a4] ss:$28 sps:$4 sm:$0xff]  }
 0x1ee   : > { %v5079_v33 = vld [vmem:[%s5253_s8 + $0x6a0] ss:$28 sps:$4 sm:$0xff]  }
 0x1ef   : > { %4445 = vmatmul.mubr.bf16.gmra.mrb[176].mxu1 %v5070_v32  ;;  %3132 = vmatmul.mubr.bf16.gmra.mrb[112].mxu0 %v5069_v55 }
 0x1f0   : > { %4448 = vmatprep.mubr.bf16.mxu1 %v5073_v29  ;;  %3139 = vmatprep.mubr.bf16.mxu0 %v5071_v35  ;;  %v5083_v35 = vld [vmem:[%s5253_s8 + $0x6a8] ss:$28 sps:$4 sm:$0xff]  }
 0x1f2   : > { %v2925_v47 = vpop.f32.mrb[8].mxu0 }
 0x1f3   : > { %v5789_v52 = vadd.f32 %v2925_v47, %v5569_v48  ;;  %v2927_v56 = vpop.f32.mrb[9].mxu0  ;;  %v5080_v48 = vld [vmem:[%s5253_s8 + $0x670] ss:$28 sps:$4 sm:$0xff]   ;;  %v5081_v47 = vld [vmem:[%s5253_s8 + $0x6dc] ss:$28 sps:$4 sm:$0xff]  }
 0x1f4   : > { %v2928_v8 = vpop.f32.mrb[10].mxu0 }
 0x1f5   : > { %v5795_v17 = vadd.f32 %v2928_v8, %v5572_v51  ;;  %v2930_v32 = vpop.f32.mrb[11].mxu0  ;;  %v5084_v8 = vld [vmem:[%s5253_s8 + $0x6d8] ss:$28 sps:$4 sm:$0xff]  }
 0x1f7   : > { %4449 = vmatmul.mubr.bf16.gmra.mrb[180].mxu1 %v5075_v40  ;;  %3140 = vmatmul.mubr.bf16.gmra.mrb[116].mxu0 %v5074_v3  ;;  %v5085_v3 = vld [vmem:[%s5253_s8 + $0x6e0] ss:$28 sps:$4 sm:$0xff]  }
 0x1f8   : > { %4452 = vmatprep.mubr.bf16.mxu1 %v5078_v4  ;;  %3147 = vmatprep.mubr.bf16.mxu0 %v5076_v43 }
 0x1fa   : > { %v2933_v25 = vpop.f32.mrb[12].mxu0 }
 0x1fb   : > { %v5799_v55 = vadd.f32 %v2933_v25, %v5577_v57  ;;  %v2935_v29 = vpop.f32.mrb[13].mxu0 }
 0x1fc   : > { %v2936_v41 = vpop.f32.mrb[14].mxu0 }
 0x1fd   : > { %v5805_v51 = vadd.f32 %v2936_v41, %v5580_v60  ;;  %v2938_v56 = vpop.f32.mrb[15].mxu0 }
 0x1ff   : > { %4453 = vmatmul.mubr.bf16.gmra.mrb[184].mxu1 %v5080_v48  ;;  %3148 = vmatmul.mubr.bf16.gmra.mrb[120].mxu0 %v5079_v33 }
 0x200   : > { %4456 = vmatprep.mubr.bf16.mxu1 %v5083_v35  ;;  %3155 = vmatprep.mubr.bf16.mxu0 %v5081_v47 }
 0x202   : > { %v2941_v40 = vpop.f32.mrb[16].mxu0 }
 0x203   : > { %v5809_v4 = vadd.f32 %v2941_v40, %v5585_v2  ;;  %v2943_v57 = vpop.f32.mrb[17].mxu0 }
 0x204   : > { %v2944_v43 = vpop.f32.mrb[18].mxu0 }
 0x205   : > { %v5813_v32 = vadd.f32 %v2944_v43, %v5588_v5  ;;  %v2946_v25 = vpop.f32.mrb[19].mxu0 }
 0x207   : > { %4457 = vmatmul.mubr.bf16.gmra.mrb[188].mxu1 %v5085_v3  ;;  %3156 = vmatmul.mubr.bf16.gmra.mrb[124].mxu0 %v5084_v8 }
 0x20a   : > { %v2949_v60 = vpop.f32.mrb[20].mxu0 }
 0x20b   : > { %v5816_v48 = vadd.f32 %v2949_v60, %v5593_v10  ;;  %v2951_v29 = vpop.f32.mrb[21].mxu0 }
 0x20c   : > { %v2952_v33 = vpop.f32.mrb[22].mxu0 }
 0x20d   : > { %v5819_v35 = vadd.f32 %v2952_v33, %v5596_v13  ;;  %v2954_v2 = vpop.f32.mrb[23].mxu0 }
 0x212   : > { %v2957_v41 = vpop.f32.mrb[24].mxu0 }
 0x213   : > { %v5822_v47 = vadd.f32 %v2957_v41, %v5608_v20  ;;  %v2959_v56 = vpop.f32.mrb[25].mxu0 }
 0x214   : > { %v2960_v5 = vpop.f32.mrb[26].mxu0 }
 0x215   : > { %v5825_v40 = vadd.f32 %v2960_v5, %v5611_v23  ;;  %v2962_v3 = vpop.f32.mrb[27].mxu0 }
 0x21a   : > { %v2965_v57 = vpop.f32.mrb[28].mxu0 }
 0x21b   : > { %v5828_v10 = vadd.f32 %v2965_v57, %v5619_v1  ;;  %v2967_v8 = vpop.f32.mrb[29].mxu0 }
 0x21c   : > { %v2968_v43 = vpop.f32.mrb[30].mxu0 }
 0x21d   : > { %v5831_v13 = vadd.f32 %v2968_v43, %v5625_v31  ;;  %v2970_v25 = vpop.f32.mrb[31].mxu0 }
 0x222   : > { %v5833_v60 = vpop.f32.mrb[96].mxu1  ;;  %v2973_v20 = vpop.f32.mrb[32].mxu0 }
 0x223   : > { %v2814_v29 = vpop.f32.mrb[97].mxu1  ;;  %v5836_v33 = vadd.f32 %v2973_v20, %v5633_v39  ;;  %v2975_v23 = vpop.f32.mrb[33].mxu0 }
 0x224   : > { %v5838_v2 = vpop.f32.mrb[98].mxu1  ;;  %v2976_v41 = vpop.f32.mrb[34].mxu0 }
 0x225   : > { %v2817_v56 = vpop.f32.mrb[99].mxu1  ;;  %v5841_v1 = vadd.f32 %v2976_v41, %v5639_v45  ;;  %v2978_v5 = vpop.f32.mrb[35].mxu0 }
 0x22a   : > { %v5843_v3 = vpop.f32.mrb[100].mxu1  ;;  %v2981_v31 = vpop.f32.mrb[36].mxu0 }
 0x22b   : > { %6265 = vst [vmem:[#allocation3_spill] sm:$0xff] %v5843_v3  ;;  %v2822_v57 = vpop.f32.mrb[101].mxu1  ;;  %v5846_v8 = vadd.f32 %v2981_v31, %v5647_v53  ;;  %v2983_v43 = vpop.f32.mrb[37].mxu0 }
 0x22c   : > { %v5848_v25 = vpop.f32.mrb[102].mxu1  ;;  %v2984_v39 = vpop.f32.mrb[38].mxu0 }
 0x22d   : > { %6266 = vst [vmem:[#allocation4_spill] sm:$0xff] %v5848_v25  ;;  %v2825_v20 = vpop.f32.mrb[103].mxu1  ;;  %v5851_v29 = vadd.f32 %v2984_v39, %v5650_v58  ;;  %v2986_v23 = vpop.f32.mrb[39].mxu0 }
 0x232   : > { %v5853_v56 = vpop.f32.mrb[104].mxu1  ;;  %v2989_v45 = vpop.f32.mrb[40].mxu0 }
 0x233   : > { %6267 = vst [vmem:[#allocation5_spill] sm:$0xff] %v5853_v56  ;;  %v2830_v41 = vpop.f32.mrb[105].mxu1  ;;  %v5856_v5 = vadd.f32 %v2989_v45, %v5655_v0  ;;  %v2991_v57 = vpop.f32.mrb[41].mxu0 }
 0x234   : > { %v5858_v3 = vpop.f32.mrb[106].mxu1  ;;  %v2992_v53 = vpop.f32.mrb[42].mxu0 }
 0x235   : > { %6268 = vst [vmem:[#allocation6_spill] sm:$0xff] %v5858_v3  ;;  %v2833_v31 = vpop.f32.mrb[107].mxu1  ;;  %v5861_v43 = vadd.f32 %v2992_v53, %v5658_v6  ;;  %v2994_v20 = vpop.f32.mrb[43].mxu0 }
 0x23a   : > { %v5863_v25 = vpop.f32.mrb[108].mxu1  ;;  %v2997_v58 = vpop.f32.mrb[44].mxu0 }
 0x23b   : > { %6269 = vst [vmem:[#allocation7_spill] sm:$0xff] %v5863_v25  ;;  %v2838_v39 = vpop.f32.mrb[109].mxu1  ;;  %v5866_v23 = vadd.f32 %v2997_v58, %v5663_v12  ;;  %v2999_v41 = vpop.f32.mrb[45].mxu0 }
 0x23c   : > { %v5868_v56 = vpop.f32.mrb[110].mxu1  ;;  %v3000_v0 = vpop.f32.mrb[46].mxu0 }
 0x23d   : > { %6270 = vst [vmem:[#allocation8_spill] sm:$0xff] %v5868_v56  ;;  %v2841_v45 = vpop.f32.mrb[111].mxu1  ;;  %v5871_v57 = vadd.f32 %v3000_v0, %v5666_v16  ;;  %v3002_v31 = vpop.f32.mrb[47].mxu0 }
 0x242   : > { %v5873_v3 = vpop.f32.mrb[112].mxu1  ;;  %v3005_v6 = vpop.f32.mrb[48].mxu0 }
 0x243   : > { %6271 = vst [vmem:[#allocation9_spill] sm:$0xff] %v5873_v3  ;;  %v2846_v53 = vpop.f32.mrb[113].mxu1  ;;  %v5876_v20 = vadd.f32 %v3005_v6, %v5671_v22  ;;  %v3007_v39 = vpop.f32.mrb[49].mxu0 }
 0x244   : > { %v5878_v25 = vpop.f32.mrb[114].mxu1  ;;  %v3008_v12 = vpop.f32.mrb[50].mxu0 }
 0x245   : > { %6272 = vst [vmem:[#allocation10_spill] sm:$0xff] %v5878_v25  ;;  %v2849_v58 = vpop.f32.mrb[115].mxu1  ;;  %v5881_v41 = vadd.f32 %v3008_v12, %v5674_v26  ;;  %v3010_v45 = vpop.f32.mrb[51].mxu0 }
 0x24a   : > { %v5883_v56 = vpop.f32.mrb[116].mxu1  ;;  %v3013_v16 = vpop.f32.mrb[52].mxu0 }
 0x24b   : > { %6273 = vst [vmem:[#allocation11_spill] sm:$0xff] %v5883_v56  ;;  %v2854_v0 = vpop.f32.mrb[117].mxu1  ;;  %v5886_v31 = vadd.f32 %v3013_v16, %v5679_v30  ;;  %v3015_v53 = vpop.f32.mrb[53].mxu0 }
 0x24c   : > { %v5888_v3 = vpop.f32.mrb[118].mxu1  ;;  %v3016_v22 = vpop.f32.mrb[54].mxu0 }
 0x24d   : > { %6274 = vst [vmem:[#allocation12_spill] sm:$0xff] %v5888_v3  ;;  %v2857_v6 = vpop.f32.mrb[119].mxu1  ;;  %v5891_v39 = vadd.f32 %v3016_v22, %v5682_v36  ;;  %v3018_v58 = vpop.f32.mrb[55].mxu0 }
 0x252   : > { %v5893_v25 = vpop.f32.mrb[120].mxu1  ;;  %v3021_v26 = vpop.f32.mrb[56].mxu0 }
 0x253   : > { %6275 = vst [vmem:[#allocation13_spill] sm:$0xff] %v5893_v25  ;;  %v2862_v12 = vpop.f32.mrb[121].mxu1  ;;  %v5896_v45 = vadd.f32 %v3021_v26, %v5687_v44  ;;  %v3023_v0 = vpop.f32.mrb[57].mxu0 }
 0x254   : > { %v5898_v56 = vpop.f32.mrb[122].mxu1  ;;  %v3024_v30 = vpop.f32.mrb[58].mxu0 }
 0x255   : > { %6276 = vst [vmem:[#allocation14_spill] sm:$0xff] %v5898_v56  ;;  %v2865_v16 = vpop.f32.mrb[123].mxu1  ;;  %v5901_v53 = vadd.f32 %v3024_v30, %v5690_v49  ;;  %v3026_v6 = vpop.f32.mrb[59].mxu0  ;;  %v5916_v30 = vld [vmem:[%s6262_s2] ss:$0 sm:$0xff] }
 0x25a   : > { %v5903_v3 = vpop.f32.mrb[124].mxu1  ;;  %v3029_v36 = vpop.f32.mrb[60].mxu0 }
 0x25b   : > { %6277 = vst [vmem:[#allocation15_spill] sm:$0xff] %v5903_v3  ;;  %v2870_v22 = vpop.f32.mrb[125].mxu1  ;;  %v5906_v58 = vadd.f32 %v3029_v36, %v5695_v59  ;;  %v3031_v12 = vpop.f32.mrb[61].mxu0 }
 0x25c   : > { %v5908_v44 = vpop.f32.mrb[126].mxu1  ;;  %v3032_v26 = vpop.f32.mrb[62].mxu0  ;;  %v5925_v12 = vld [vmem:[%s6263_s3] ss:$0 sm:$0xff] }
 0x25d   : > { %6278 = vst [vmem:[#allocation16_spill] sm:$0xff] %v5908_v44  ;;  %v2873_v0 = vpop.f32.mrb[127].mxu1  ;;  %v5911_v56 = vadd.f32 %v3032_v26, %v5698_v63  ;;  %v3034_v16 = vpop.f32.mrb[63].mxu0 }
 0x262   : > { %v4398_v49 = vpop.f32.mrb[128].mxu1  ;;  %v3037_v6 = vpop.f32.mrb[64].mxu0 }
 0x263   : > { %v3207_v59 = vadd.f32 %v5779_v19, %v4398_v49  ;;  %v3198_v36 = vpop.f32.mrb[129].mxu1  ;;  %v5920_v22 = vadd.f32 %v3037_v6, %v5703_v9  ;;  %v3039_v63 = vpop.f32.mrb[65].mxu0 }
 0x264   : > { %v3199_v26 = vadd.f32 %v5769_v46, %v3198_v36  ;;  %v4399_v0 = vpop.f32.mrb[130].mxu1  ;;  %v3040_v44 = vpop.f32.mrb[66].mxu0 }
 0x265   : > { %v3657_v16 = vmul.f32 %v5916_v30, %v3207_v59  ;;  %v3210_v3 = vadd.f32 %v5785_v38, %v4399_v0  ;;  %v3201_v19 = vpop.f32.mrb[131].mxu1  ;;  %v5933_v9 = vadd.f32 %v3040_v44, %v5706_v15  ;;  %v3042_v6 = vpop.f32.mrb[67].mxu0 }
 0x266   : > { %v3655_v49 = vmul.f32 %v5916_v30, %v3199_v26  ;;  %v3202_v25 = vadd.f32 %v5775_v7, %v3201_v19 }
 0x267   : > { %v3728_v63 = vadd.f32 %v5925_v12, %v3657_v16  ;;  %v3658_v46 = vmul.f32 %v5916_v30, %v3210_v3 }
 0x268   : > { %v3726_v38 = vadd.f32 %v5925_v12, %v3655_v49  ;;  %v3656_v59 = vmul.f32 %v5916_v30, %v3202_v25 }
 0x269   : > { %v3792_v15 = vmax.f32 %v3728_v63, 0.0  ;;  %v3729_v44 = vadd.f32 %v5925_v12, %v3658_v46 }
 0x26a   : > { %v3790_v7 = vmax.f32 %v3726_v38, 0.0  ;;  %v3727_v36 = vadd.f32 %v5925_v12, %v3656_v59  ;;  %v4402_v26 = vpop.f32.mrb[132].mxu1  ;;  %v3045_v0 = vpop.f32.mrb[68].mxu0 }
 0x26b   : > { %3856 = vst [vmem:[%s5941_s7 + $0x10] sm:$0xff] %v3792_v15  ;;  %v3793_v3 = vmax.f32 %v3729_v44, 0.0  ;;  %v3223_v16 = vadd.f32 %v5799_v55, %v4402_v26  ;;  %v3214_v19 = vpop.f32.mrb[133].mxu1  ;;  %v5951_v49 = vadd.f32 %v3045_v0, %v5711_v24  ;;  %v3047_v25 = vpop.f32.mrb[69].mxu0 }
 0x26c   : > { %3854 = vst [vmem:[%s5941_s7] sm:$0xff] %v3790_v7  ;;  %v3791_v6 = vmax.f32 %v3727_v36, 0.0  ;;  %v3215_v63 = vadd.f32 %v5789_v52, %v3214_v19  ;;  %v4403_v46 = vpop.f32.mrb[134].mxu1  ;;  %v3048_v59 = vpop.f32.mrb[70].mxu0 }
 0x26d   : > { %3857 = vst [vmem:[%s5941_s7 + $0x18] sm:$0xff] %v3793_v3  ;;  %v3661_v38 = vmul.f32 %v5916_v30, %v3223_v16  ;;  %v3226_v15 = vadd.f32 %v5805_v51, %v4403_v46  ;;  %v3217_v44 = vpop.f32.mrb[135].mxu1  ;;  %v5960_v7 = vadd.f32 %v3048_v59, %v5714_v27  ;;  %v3050_v24 = vpop.f32.mrb[71].mxu0 }
 0x26e   : > { %3855 = vst [vmem:[%s5941_s7 + $0x8] sm:$0xff] %v3791_v6  ;;  %v3659_v55 = vmul.f32 %v5916_v30, %v3215_v63  ;;  %v3218_v36 = vadd.f32 %v5795_v17, %v3217_v44 }
 0x26f   : > { %v3732_v52 = vadd.f32 %v5925_v12, %v3661_v38  ;;  %v3662_v26 = vmul.f32 %v5916_v30, %v3226_v15 }
 0x270   : > { %v3730_v3 = vadd.f32 %v5925_v12, %v3659_v55  ;;  %v3660_v51 = vmul.f32 %v5916_v30, %v3218_v36 }
 0x271   : > { %v3796_v0 = vmax.f32 %v3732_v52, 0.0  ;;  %v3733_v16 = vadd.f32 %v5925_v12, %v3662_v26 }
 0x272   : > { %v3794_v19 = vmax.f32 %v3730_v3, 0.0  ;;  %v3731_v27 = vadd.f32 %v5925_v12, %v3660_v51  ;;  %v4406_v6 = vpop.f32.mrb[136].mxu1  ;;  %v3053_v17 = vpop.f32.mrb[72].mxu0 }
 0x273   : > { %3860 = vst [vmem:[%s5941_s7 + $0x30] sm:$0xff] %v3796_v0  ;;  %v3797_v25 = vmax.f32 %v3733_v16, 0.0  ;;  %v3239_v63 = vadd.f32 %v5816_v48, %v4406_v6  ;;  %v3230_v46 = vpop.f32.mrb[137].mxu1  ;;  %v5973_v59 = vadd.f32 %v3053_v17, %v5719_v37  ;;  %v3055_v15 = vpop.f32.mrb[73].mxu0 }
 0x274   : > { %3858 = vst [vmem:[%s5941_s7 + $0x20] sm:$0xff] %v3794_v19  ;;  %v3795_v38 = vmax.f32 %v3731_v27, 0.0  ;;  %v3231_v44 = vadd.f32 %v5809_v4, %v3230_v46  ;;  %v4407_v55 = vpop.f32.mrb[138].mxu1  ;;  %v3056_v36 = vpop.f32.mrb[74].mxu0 }
 0x275   : > { %3861 = vst [vmem:[%s5941_s7 + $0x38] sm:$0xff] %v3797_v25  ;;  %v3665_v24 = vmul.f32 %v5916_v30, %v3239_v63  ;;  %v3242_v52 = vadd.f32 %v5819_v35, %v4407_v55  ;;  %v3233_v26 = vpop.f32.mrb[139].mxu1  ;;  %v5982_v3 = vadd.f32 %v3056_v36, %v5722_v42  ;;  %v3058_v37 = vpop.f32.mrb[75].mxu0 }
 0x276   : > { %3859 = vst [vmem:[%s5941_s7 + $0x28] sm:$0xff] %v3795_v38  ;;  %v3663_v48 = vmul.f32 %v5916_v30, %v3231_v44  ;;  %v3234_v51 = vadd.f32 %v5813_v32, %v3233_v26 }
 0x277   : > { %v3736_v4 = vadd.f32 %v5925_v12, %v3665_v24  ;;  %v3666_v0 = vmul.f32 %v5916_v30, %v3242_v52 }
 0x278   : > { %v3734_v16 = vadd.f32 %v5925_v12, %v3663_v48  ;;  %v3664_v35 = vmul.f32 %v5916_v30, %v3234_v51 }
 0x279   : > { %v3800_v19 = vmax.f32 %v3736_v4, 0.0  ;;  %v3737_v27 = vadd.f32 %v5925_v12, %v3666_v0 }
 0x27a   : > { %v3798_v6 = vmax.f32 %v3734_v16, 0.0  ;;  %v3735_v42 = vadd.f32 %v5925_v12, %v3664_v35  ;;  %v4410_v25 = vpop.f32.mrb[140].mxu1  ;;  %v3061_v32 = vpop.f32.mrb[76].mxu0 }
 0x27b   : > { %3864 = vst [vmem:[%s5941_s7 + $0x50] sm:$0xff] %v3800_v19  ;;  %v3801_v17 = vmax.f32 %v3737_v27, 0.0  ;;  %v3255_v63 = vadd.f32 %v5828_v10, %v4410_v25  ;;  %v3246_v46 = vpop.f32.mrb[141].mxu1  ;;  %v5995_v15 = vadd.f32 %v3061_v32, %v5727_v54  ;;  %v3063_v44 = vpop.f32.mrb[77].mxu0 }
 0x27c   : > { %3862 = vst [vmem:[%s5941_s7 + $0x40] sm:$0xff] %v3798_v6  ;;  %v3799_v38 = vmax.f32 %v3735_v42, 0.0  ;;  %v3247_v55 = vadd.f32 %v5822_v47, %v3246_v46  ;;  %v4411_v24 = vpop.f32.mrb[142].mxu1  ;;  %v3064_v52 = vpop.f32.mrb[78].mxu0 }
 0x27d   : > { %3865 = vst [vmem:[%s5941_s7 + $0x58] sm:$0xff] %v3801_v17  ;;  %v3669_v36 = vmul.f32 %v5916_v30, %v3255_v63  ;;  %v3258_v26 = vadd.f32 %v5831_v13, %v4411_v24  ;;  %v3249_v48 = vpop.f32.mrb[143].mxu1  ;;  %v6004_v37 = vadd.f32 %v3064_v52, %v5730_v62  ;;  %v3066_v54 = vpop.f32.mrb[79].mxu0 }
 0x27e   : > { %3863 = vst [vmem:[%s5941_s7 + $0x48] sm:$0xff] %v3799_v38  ;;  %v3667_v10 = vmul.f32 %v5916_v30, %v3247_v55  ;;  %v3250_v51 = vadd.f32 %v5825_v40, %v3249_v48 }
 0x27f   : > { %v3740_v47 = vadd.f32 %v5925_v12, %v3669_v36  ;;  %v3670_v4 = vmul.f32 %v5916_v30, %v3258_v26 }
 0x280   : > { %v3738_v0 = vadd.f32 %v5925_v12, %v3667_v10  ;;  %v3668_v13 = vmul.f32 %v5916_v30, %v3250_v51 }
 0x281   : > { %v3804_v16 = vmax.f32 %v3740_v47, 0.0  ;;  %v3741_v35 = vadd.f32 %v5925_v12, %v3670_v4 }
 0x282   : > { %v3802_v19 = vmax.f32 %v3738_v0, 0.0  ;;  %v3739_v62 = vadd.f32 %v5925_v12, %v3668_v13  ;;  %v4414_v27 = vpop.f32.mrb[144].mxu1  ;;  %v3069_v40 = vpop.f32.mrb[80].mxu0 }
 0x283   : > { %3868 = vst [vmem:[%s5941_s7 + $0x70] sm:$0xff] %v3804_v16  ;;  %v3805_v6 = vmax.f32 %v3741_v35, 0.0  ;;  %v3271_v42 = vadd.f32 %v5846_v8, %v4414_v27  ;;  %v3262_v25 = vpop.f32.mrb[145].mxu1  ;;  %v6017_v32 = vadd.f32 %v3069_v40, %v5735_v11  ;;  %v3071_v63 = vpop.f32.mrb[81].mxu0 }
 0x284   : > { %3866 = vst [vmem:[%s5941_s7 + $0x60] sm:$0xff] %v3802_v19  ;;  %v3803_v17 = vmax.f32 %v3739_v62, 0.0  ;;  %v3263_v46 = vadd.f32 %v5836_v33, %v3262_v25  ;;  %v4415_v38 = vpop.f32.mrb[146].mxu1  ;;  %v3072_v55 = vpop.f32.mrb[82].mxu0 }
 0x285   : > { %3869 = vst [vmem:[%s5941_s7 + $0x78] sm:$0xff] %v3805_v6  ;;  %v3673_v44 = vmul.f32 %v5916_v30, %v3271_v42  ;;  %v3274_v24 = vadd.f32 %v5851_v29, %v4415_v38  ;;  %v3265_v36 = vpop.f32.mrb[147].mxu1  ;;  %v6026_v52 = vadd.f32 %v3072_v55, %v5738_v18  ;;  %v3074_v11 = vpop.f32.mrb[83].mxu0 }
 0x286   : > { %3867 = vst [vmem:[%s5941_s7 + $0x68] sm:$0xff] %v3803_v17  ;;  %v3671_v8 = vmul.f32 %v5916_v30, %v3263_v46  ;;  %v3266_v26 = vadd.f32 %v5841_v1, %v3265_v36 }
 0x287   : > { %v3744_v33 = vadd.f32 %v5925_v12, %v3673_v44  ;;  %v3674_v48 = vmul.f32 %v5916_v30, %v3274_v24 }
 0x288   : > { %v3742_v10 = vadd.f32 %v5925_v12, %v3671_v8  ;;  %v3672_v29 = vmul.f32 %v5916_v30, %v3266_v26 }
 0x289   : > { %v3808_v54 = vmax.f32 %v3744_v33, 0.0  ;;  %v3745_v51 = vadd.f32 %v5925_v12, %v3674_v48 }
 0x28a   : > { %v3806_v47 = vmax.f32 %v3742_v10, 0.0  ;;  %v3743_v18 = vadd.f32 %v5925_v12, %v3672_v29  ;;  %v4418_v4 = vpop.f32.mrb[148].mxu1  ;;  %v3077_v1 = vpop.f32.mrb[84].mxu0 }
 0x28b   : > { %3872 = vst [vmem:[%s5941_s7 + $0x90] sm:$0xff] %v3808_v54  ;;  %v3809_v0 = vmax.f32 %v3745_v51, 0.0  ;;  %v3287_v13 = vadd.f32 %v5866_v23, %v4418_v4  ;;  %v3278_v16 = vpop.f32.mrb[149].mxu1  ;;  %v6039_v19 = vadd.f32 %v3077_v1, %v5743_v28  ;;  %v3079_v62 = vpop.f32.mrb[85].mxu0 }
 0x28c   : > { %3870 = vst [vmem:[%s5941_s7 + $0x80] sm:$0xff] %v3806_v47  ;;  %v3807_v35 = vmax.f32 %v3743_v18, 0.0  ;;  %v3279_v27 = vadd.f32 %v5856_v5, %v3278_v16  ;;  %v4419_v6 = vpop.f32.mrb[150].mxu1  ;;  %v3080_v42 = vpop.f32.mrb[86].mxu0 }
 0x28d   : > { %3873 = vst [vmem:[%s5941_s7 + $0x98] sm:$0xff] %v3809_v0  ;;  %v3677_v40 = vmul.f32 %v5916_v30, %v3287_v13  ;;  %v3290_v25 = vadd.f32 %v5871_v57, %v4419_v6  ;;  %v3281_v17 = vpop.f32.mrb[151].mxu1  ;;  %v6048_v63 = vadd.f32 %v3080_v42, %v5746_v34  ;;  %v3082_v28 = vpop.f32.mrb[87].mxu0 }
 0x28e   : > { %3871 = vst [vmem:[%s5941_s7 + $0x88] sm:$0xff] %v3807_v35  ;;  %v3675_v23 = vmul.f32 %v5916_v30, %v3279_v27  ;;  %v3282_v46 = vadd.f32 %v5861_v43, %v3281_v17 }
 0x28f   : > { %v3748_v5 = vadd.f32 %v5925_v12, %v3677_v40  ;;  %v3678_v38 = vmul.f32 %v5916_v30, %v3290_v25 }
 0x290   : > { %v3746_v44 = vadd.f32 %v5925_v12, %v3675_v23  ;;  %v3676_v57 = vmul.f32 %v5916_v30, %v3282_v46 }
 0x291   : > { %v3812_v55 = vmax.f32 %v3748_v5, 0.0  ;;  %v3749_v24 = vadd.f32 %v5925_v12, %v3678_v38 }
 0x292   : > { %v3810_v36 = vmax.f32 %v3746_v44, 0.0  ;;  %v3747_v34 = vadd.f32 %v5925_v12, %v3676_v57  ;;  %v4422_v8 = vpop.f32.mrb[152].mxu1  ;;  %v3085_v43 = vpop.f32.mrb[88].mxu0 }
 0x293   : > { %3876 = vst [vmem:[%s5941_s7 + $0xb0] sm:$0xff] %v3812_v55  ;;  %v3813_v11 = vmax.f32 %v3749_v24, 0.0  ;;  %v3303_v26 = vadd.f32 %v5886_v31, %v4422_v8  ;;  %v3294_v33 = vpop.f32.mrb[153].mxu1  ;;  %v6061_v10 = vadd.f32 %v3085_v43, %v5751_v50  ;;  %v3087_v29 = vpop.f32.mrb[89].mxu0 }
 0x294   : > { %3874 = vst [vmem:[%s5941_s7 + $0xa0] sm:$0xff] %v3810_v36  ;;  %v3811_v48 = vmax.f32 %v3747_v34, 0.0  ;;  %v3295_v54 = vadd.f32 %v5876_v20, %v3294_v33  ;;  %v4423_v51 = vpop.f32.mrb[154].mxu1  ;;  %v3088_v18 = vpop.f32.mrb[90].mxu0 }
 0x295   : > { %3877 = vst [vmem:[%s5941_s7 + $0xb8] sm:$0xff] %v3813_v11  ;;  %v3681_v47 = vmul.f32 %v5916_v30, %v3303_v26  ;;  %v3306_v4 = vadd.f32 %v5891_v39, %v4423_v51  ;;  %v3297_v0 = vpop.f32.mrb[155].mxu1  ;;  %v6070_v1 = vadd.f32 %v3088_v18, %v5754_v61  ;;  %v3090_v50 = vpop.f32.mrb[91].mxu0 }
 0x296   : > { %3875 = vst [vmem:[%s5941_s7 + $0xa8] sm:$0xff] %v3811_v48  ;;  %v3679_v31 = vmul.f32 %v5916_v30, %v3295_v54  ;;  %v3298_v13 = vadd.f32 %v5881_v41, %v3297_v0 }
 0x297   : > { %v3752_v20 = vadd.f32 %v5925_v12, %v3681_v47  ;;  %v3682_v16 = vmul.f32 %v5916_v30, %v3306_v4 }
 0x298   : > { %v3750_v35 = vadd.f32 %v5925_v12, %v3679_v31  ;;  %v3680_v39 = vmul.f32 %v5916_v30, %v3298_v13 }
 0x299   : > { %v3816_v62 = vmax.f32 %v3752_v20, 0.0  ;;  %v3753_v27 = vadd.f32 %v5925_v12, %v3682_v16 }
 0x29a   : > { %v3814_v6 = vmax.f32 %v3750_v35, 0.0  ;;  %v3751_v61 = vadd.f32 %v5925_v12, %v3680_v39  ;;  %v4426_v40 = vpop.f32.mrb[156].mxu1  ;;  %v3093_v41 = vpop.f32.mrb[92].mxu0 }
 0x29b   : > { %3880 = vst [vmem:[%s5941_s7 + $0xd0] sm:$0xff] %v3816_v62  ;;  %v3817_v42 = vmax.f32 %v3753_v27, 0.0  ;;  %v3319_v25 = vadd.f32 %v5906_v58, %v4426_v40  ;;  %v3310_v17 = vpop.f32.mrb[157].mxu1  ;;  %v6083_v28 = vadd.f32 %v3093_v41, %v5759_v14  ;;  %v3095_v46 = vpop.f32.mrb[93].mxu0 }
 0x29c   : > { %3878 = vst [vmem:[%s5941_s7 + $0xc0] sm:$0xff] %v3814_v6  ;;  %v3815_v23 = vmax.f32 %v3751_v61, 0.0  ;;  %v3311_v5 = vadd.f32 %v5896_v45, %v3310_v17  ;;  %v4427_v38 = vpop.f32.mrb[158].mxu1  ;;  %v3096_v57 = vpop.f32.mrb[94].mxu0  ;;  %v6279_v46 = vld [vmem:[#allocation3_spill] sm:$0xff] }
 0x29d   : > { %3881 = vst [vmem:[%s5941_s7 + $0xd8] sm:$0xff] %v3817_v42  ;;  %v3685_v44 = vmul.f32 %v5916_v30, %v3319_v25  ;;  %v3322_v55 = vadd.f32 %v5911_v56, %v4427_v38  ;;  %v3313_v24 = vpop.f32.mrb[159].mxu1  ;;  %v6092_v36 = vadd.f32 %v3096_v57, %v5762_v21  ;;  %v3098_v14 = vpop.f32.mrb[95].mxu0 }
 0x29e   : > { %3879 = vst [vmem:[%s5941_s7 + $0xc8] sm:$0xff] %v3815_v23  ;;  %v3683_v58 = vmul.f32 %v5916_v30, %v3311_v5  ;;  %v3314_v34 = vadd.f32 %v5901_v53, %v3313_v24 }
 0x29f   : > { %v3756_v45 = vadd.f32 %v5925_v12, %v3685_v44  ;;  %v3686_v8 = vmul.f32 %v5916_v30, %v3322_v55 }
 0x2a0   : > { %v3754_v11 = vadd.f32 %v5925_v12, %v3683_v58  ;;  %v3684_v56 = vmul.f32 %v5916_v30, %v3314_v34  ;;  %v6280_v34 = vld [vmem:[#allocation4_spill] sm:$0xff] }
 0x2a1   : > { %v3820_v43 = vmax.f32 %v3756_v45, 0.0  ;;  %v3757_v26 = vadd.f32 %v5925_v12, %v3686_v8 }
 0x2a2   : > { %v3818_v33 = vmax.f32 %v3754_v11, 0.0  ;;  %v3755_v21 = vadd.f32 %v5925_v12, %v3684_v56  ;;  %v4430_v48 = vpop.f32.mrb[160].mxu1  ;;  %v3101_v53 = vpop.f32.mrb[96].mxu0 }
 0x2a3   : > { %3884 = vst [vmem:[%s5941_s7 + $0xf0] sm:$0xff] %v3820_v43  ;;  %v3821_v29 = vmax.f32 %v3757_v26, 0.0  ;;  %v3335_v54 = vadd.f32 %v5951_v49, %v4430_v48  ;;  %v3326_v51 = vpop.f32.mrb[161].mxu1  ;;  %v6105_v18 = vadd.f32 %v3101_v53, %v5833_v60  ;;  %v3103_v4 = vpop.f32.mrb[97].mxu0 }
 0x2a4   : > { %3882 = vst [vmem:[%s5941_s7 + $0xe0] sm:$0xff] %v3818_v33  ;;  %v3819_v47 = vmax.f32 %v3755_v21, 0.0  ;;  %v3327_v0 = vadd.f32 %v5920_v22, %v3326_v51  ;;  %v4431_v31 = vpop.f32.mrb[162].mxu1  ;;  %v3104_v13 = vpop.f32.mrb[98].mxu0  ;;  %v6281_v4 = vld [vmem:[#allocation5_spill] sm:$0xff] }
 0x2a5   : > { %3885 = vst [vmem:[%s5941_s7 + $0xf8] sm:$0xff] %v3821_v29  ;;  %v3689_v50 = vmul.f32 %v5916_v30, %v3335_v54  ;;  %v3338_v20 = vadd.f32 %v5960_v7, %v4431_v31  ;;  %v3329_v16 = vpop.f32.mrb[163].mxu1  ;;  %v6114_v35 = vadd.f32 %v3104_v13, %v5838_v2  ;;  %v3106_v60 = vpop.f32.mrb[99].mxu0 }
 0x2a6   : > { %3883 = vst [vmem:[%s5941_s7 + $0xe8] sm:$0xff] %v3819_v47  ;;  %v3687_v49 = vmul.f32 %v5916_v30, %v3327_v0  ;;  %v3330_v39 = vadd.f32 %v5933_v9, %v3329_v16 }
 0x2a7   : > { %v3760_v22 = vadd.f32 %v5925_v12, %v3689_v50  ;;  %v3690_v62 = vmul.f32 %v5916_v30, %v3338_v20 }
 0x2a8   : > { %v3758_v27 = vadd.f32 %v5925_v12, %v3687_v49  ;;  %v3688_v7 = vmul.f32 %v5916_v30, %v3330_v39  ;;  %v6282_v39 = vld [vmem:[#allocation6_spill] sm:$0xff] }
 0x2a9   : > { %v3824_v6 = vmax.f32 %v3760_v22, 0.0  ;;  %v3761_v61 = vadd.f32 %v5925_v12, %v3690_v62 }
 0x2aa   : > { %v3822_v40 = vmax.f32 %v3758_v27, 0.0  ;;  %v3759_v2 = vadd.f32 %v5925_v12, %v3688_v7  ;;  %v4434_v42 = vpop.f32.mrb[164].mxu1  ;;  %v3109_v9 = vpop.f32.mrb[100].mxu0 }
 0x2ab   : > { %3888 = vst [vmem:[%s5941_s7 + $0x110] sm:$0xff] %v3824_v6  ;;  %v3825_v41 = vmax.f32 %v3761_v61, 0.0  ;;  %v3351_v25 = vadd.f32 %v5995_v15, %v4434_v42  ;;  %v3342_v17 = vpop.f32.mrb[165].mxu1  ;;  %v6127_v5 = vadd.f32 %v3109_v9, %v6279_v46  ;;  %v3111_v38 = vpop.f32.mrb[101].mxu0  ;;  %v6283_v46 = vld [vmem:[#allocation7_spill] sm:$0xff] }
 0x2ac   : > { %3886 = vst [vmem:[%s5941_s7 + $0x100] sm:$0xff] %v3822_v40  ;;  %v3823_v23 = vmax.f32 %v3759_v2, 0.0  ;;  %v3343_v44 = vadd.f32 %v5973_v59, %v3342_v17  ;;  %v4435_v57 = vpop.f32.mrb[166].mxu1  ;;  %v3112_v24 = vpop.f32.mrb[102].mxu0 }
 0x2ad   : > { %3889 = vst [vmem:[%s5941_s7 + $0x118] sm:$0xff] %v3825_v41  ;;  %v3693_v55 = vmul.f32 %v5916_v30, %v3351_v25  ;;  %v3354_v58 = vadd.f32 %v6004_v37, %v4435_v57  ;;  %v3345_v14 = vpop.f32.mrb[167].mxu1  ;;  %v6136_v45 = vadd.f32 %v3112_v24, %v6280_v34  ;;  %v3114_v8 = vpop.f32.mrb[103].mxu0  ;;  %v6284_v34 = vld [vmem:[#allocation8_spill] sm:$0xff] }
 0x2ae   : > { %3887 = vst [vmem:[%s5941_s7 + $0x108] sm:$0xff] %v3823_v23  ;;  %v3691_v15 = vmul.f32 %v5916_v30, %v3343_v44  ;;  %v3346_v11 = vadd.f32 %v5982_v3, %v3345_v14 }
 0x2af   : > { %v3764_v59 = vadd.f32 %v5925_v12, %v3693_v55  ;;  %v3694_v56 = vmul.f32 %v5916_v30, %v3354_v58 }
 0x2b0   : > { %v3762_v43 = vadd.f32 %v5925_v12, %v3691_v15  ;;  %v3692_v37 = vmul.f32 %v5916_v30, %v3346_v11 }
 0x2b1   : > { %v3828_v26 = vmax.f32 %v3764_v59, 0.0  ;;  %v3765_v33 = vadd.f32 %v5925_v12, %v3694_v56 }
 0x2b2   : > { %v3826_v21 = vmax.f32 %v3762_v43, 0.0  ;;  %v3763_v48 = vadd.f32 %v5925_v12, %v3692_v37  ;;  %v4438_v29 = vpop.f32.mrb[168].mxu1  ;;  %v3117_v3 = vpop.f32.mrb[104].mxu0 }
 0x2b3   : > { %3892 = vst [vmem:[%s5941_s7 + $0x130] sm:$0xff] %v3828_v26  ;;  %v3829_v53 = vmax.f32 %v3765_v33, 0.0  ;;  %v3367_v54 = vadd.f32 %v6039_v19, %v4438_v29  ;;  %v3358_v51 = vpop.f32.mrb[169].mxu1  ;;  %v6149_v0 = vadd.f32 %v3117_v3, %v6281_v4  ;;  %v3119_v31 = vpop.f32.mrb[105].mxu0 }
 0x2b4   : > { %3890 = vst [vmem:[%s5941_s7 + $0x120] sm:$0xff] %v3826_v21  ;;  %v3827_v47 = vmax.f32 %v3763_v48, 0.0  ;;  %v3359_v50 = vadd.f32 %v6017_v32, %v3358_v51  ;;  %v4439_v13 = vpop.f32.mrb[170].mxu1  ;;  %v3120_v16 = vpop.f32.mrb[106].mxu0  ;;  %v6285_v51 = vld [vmem:[#allocation9_spill] sm:$0xff] }
 0x2b5   : > { %3893 = vst [vmem:[%s5941_s7 + $0x138] sm:$0xff] %v3829_v53  ;;  %v3697_v20 = vmul.f32 %v5916_v30, %v3367_v54  ;;  %v3370_v49 = vadd.f32 %v6048_v63, %v4439_v13  ;;  %v3361_v60 = vpop.f32.mrb[171].mxu1  ;;  %v6158_v22 = vadd.f32 %v3120_v16, %v6282_v39  ;;  %v3122_v62 = vpop.f32.mrb[107].mxu0 }
 0x2b6   : > { %3891 = vst [vmem:[%s5941_s7 + $0x128] sm:$0xff] %v3827_v47  ;;  %v3695_v19 = vmul.f32 %v5916_v30, %v3359_v50  ;;  %v3362_v27 = vadd.f32 %v6026_v52, %v3361_v60  ;;  %v6286_v60 = vld [vmem:[#allocation10_spill] sm:$0xff] }
 0x2b7   : > { %v3768_v32 = vadd.f32 %v5925_v12, %v3697_v20  ;;  %v3698_v7 = vmul.f32 %v5916_v30, %v3370_v49 }
 0x2b8   : > { %v3766_v6 = vadd.f32 %v5925_v12, %v3695_v19  ;;  %v3696_v63 = vmul.f32 %v5916_v30, %v3362_v27 }
 0x2b9   : > { %v3832_v61 = vmax.f32 %v3768_v32, 0.0  ;;  %v3769_v40 = vadd.f32 %v5925_v12, %v3698_v7 }
 0x2ba   : > { %v3830_v2 = vmax.f32 %v3766_v6, 0.0  ;;  %v3767_v42 = vadd.f32 %v5925_v12, %v3696_v63  ;;  %v4442_v41 = vpop.f32.mrb[172].mxu1  ;;  %v3125_v52 = vpop.f32.mrb[108].mxu0 }
 0x2bb   : > { %3896 = vst [vmem:[%s5941_s7 + $0x150] sm:$0xff] %v3832_v61  ;;  %v3833_v9 = vmax.f32 %v3769_v40, 0.0  ;;  %v3383_v25 = vadd.f32 %v6083_v28, %v4442_v41  ;;  %v3374_v17 = vpop.f32.mrb[173].mxu1  ;;  %v4546_v38 = vadd.f32 %v3125_v52, %v6283_v46  ;;  %v3127_v44 = vpop.f32.mrb[109].mxu0  ;;  %v6287_v52 = vld [vmem:[#allocation11_spill] sm:$0xff] }
 0x2bc   : > { %3894 = vst [vmem:[%s5941_s7 + $0x140] sm:$0xff] %v3830_v2  ;;  %v3831_v23 = vmax.f32 %v3767_v42, 0.0  ;;  %v3375_v57 = vadd.f32 %v6061_v10, %v3374_v17  ;;  %v4443_v55 = vpop.f32.mrb[174].mxu1  ;;  %v3128_v58 = vpop.f32.mrb[110].mxu0 }
 0x2bd   : > { %3897 = vst [vmem:[%s5941_s7 + $0x158] sm:$0xff] %v3833_v9  ;;  %v3701_v24 = vmul.f32 %v5916_v30, %v3383_v25  ;;  %v3386_v14 = vadd.f32 %v6092_v36, %v4443_v55  ;;  %v3377_v15 = vpop.f32.mrb[175].mxu1  ;;  %v4547_v8 = vadd.f32 %v3128_v58, %v6284_v34  ;;  %v3130_v11 = vpop.f32.mrb[111].mxu0 }
 0x2be   : > { %3895 = vst [vmem:[%s5941_s7 + $0x148] sm:$0xff] %v3831_v23  ;;  %v3699_v28 = vmul.f32 %v5916_v30, %v3375_v57  ;;  %v3378_v59 = vadd.f32 %v6070_v1, %v3377_v15 }
 0x2bf   : > { %v3772_v10 = vadd.f32 %v5925_v12, %v3701_v24  ;;  %v3702_v56 = vmul.f32 %v5916_v30, %v3386_v14 }
 0x2c0   : > { %v3770_v43 = vadd.f32 %v5925_v12, %v3699_v28  ;;  %v3700_v37 = vmul.f32 %v5916_v30, %v3378_v59 }
 0x2c1   : > { %v3836_v36 = vmax.f32 %v3772_v10, 0.0  ;;  %v3773_v26 = vadd.f32 %v5925_v12, %v3702_v56 }
 0x2c2   : > { %v3834_v33 = vmax.f32 %v3770_v43, 0.0  ;;  %v3771_v21 = vadd.f32 %v5925_v12, %v3700_v37  ;;  %v4446_v48 = vpop.f32.mrb[176].mxu1  ;;  %v3133_v1 = vpop.f32.mrb[112].mxu0 }
 0x2c3   : > { %3900 = vst [vmem:[%s5941_s7 + $0x170] sm:$0xff] %v3836_v36  ;;  %v3837_v29 = vmax.f32 %v3773_v26, 0.0  ;;  %v3399_v53 = vadd.f32 %v6127_v5, %v4446_v48  ;;  %v3390_v3 = vpop.f32.mrb[177].mxu1  ;;  %v4548_v47 = vadd.f32 %v3133_v1, %v6285_v51  ;;  %v3135_v4 = vpop.f32.mrb[113].mxu0  ;;  %v6289_v48 = vld [vmem:[#allocation13_spill] sm:$0xff] }
 0x2c4   : > { %3898 = vst [vmem:[%s5941_s7 + $0x160] sm:$0xff] %v3834_v33  ;;  %v3835_v54 = vmax.f32 %v3771_v21, 0.0  ;;  %v3391_v31 = vadd.f32 %v6105_v18, %v3390_v3  ;;  %v4447_v50 = vpop.f32.mrb[178].mxu1  ;;  %v3136_v20 = vpop.f32.mrb[114].mxu0 }
 0x2c5   : > { %3901 = vst [vmem:[%s5941_s7 + $0x178] sm:$0xff] %v3837_v29  ;;  %v3705_v13 = vmul.f32 %v5916_v30, %v3399_v53  ;;  %v3402_v16 = vadd.f32 %v6136_v45, %v4447_v50  ;;  %v3393_v49 = vpop.f32.mrb[179].mxu1  ;;  %v4549_v19 = vadd.f32 %v3136_v20, %v6286_v60  ;;  %v3138_v39 = vpop.f32.mrb[115].mxu0 }
 0x2c6   : > { %3899 = vst [vmem:[%s5941_s7 + $0x168] sm:$0xff] %v3835_v54  ;;  %v3703_v5 = vmul.f32 %v5916_v30, %v3391_v31  ;;  %v3394_v62 = vadd.f32 %v6114_v35, %v3393_v49 }
 0x2c7   : > { %v3776_v18 = vadd.f32 %v5925_v12, %v3705_v13  ;;  %v3706_v27 = vmul.f32 %v5916_v30, %v3402_v16  ;;  %v6290_v13 = vld [vmem:[#allocation14_spill] sm:$0xff] }
 0x2c8   : > { %v3774_v32 = vadd.f32 %v5925_v12, %v3703_v5  ;;  %v3704_v7 = vmul.f32 %v5916_v30, %v3394_v62 }
 0x2c9   : > { %v3840_v45 = vmax.f32 %v3776_v18, 0.0  ;;  %v3777_v6 = vadd.f32 %v5925_v12, %v3706_v27 }
 0x2ca   : > { %v3838_v63 = vmax.f32 %v3774_v32, 0.0  ;;  %v3775_v61 = vadd.f32 %v5925_v12, %v3704_v7  ;;  %v4450_v40 = vpop.f32.mrb[180].mxu1  ;;  %v3141_v35 = vpop.f32.mrb[116].mxu0 }
 0x2cb   : > { %3904 = vst [vmem:[%s5941_s7 + $0x190] sm:$0xff] %v3840_v45  ;;  %v3841_v2 = vmax.f32 %v3777_v6, 0.0  ;;  %v3415_v42 = vadd.f32 %v4546_v38, %v4450_v40  ;;  %v3406_v41 = vpop.f32.mrb[181].mxu1  ;;  %v4550_v25 = vadd.f32 %v3141_v35, %v6287_v52  ;;  %v3143_v17 = vpop.f32.mrb[117].mxu0  ;;  %v6288_v38 = vld [vmem:[#allocation12_spill] sm:$0xff] }
 0x2cc   : > { %3902 = vst [vmem:[%s5941_s7 + $0x180] sm:$0xff] %v3838_v63  ;;  %v3839_v9 = vmax.f32 %v3775_v61, 0.0  ;;  %v3407_v23 = vadd.f32 %v6149_v0, %v3406_v41  ;;  %v4451_v46 = vpop.f32.mrb[182].mxu1  ;;  %v3144_v57 = vpop.f32.mrb[118].mxu0  ;;  %v6291_v61 = vld [vmem:[#allocation15_spill] sm:$0xff]  ;;  %v6292_v17 = vld [vmem:[#allocation16_spill] sm:$0xff] }
 0x2cd   : > { %3905 = vst [vmem:[%s5941_s7 + $0x198] sm:$0xff] %v3841_v2  ;;  %v3709_v44 = vmul.f32 %v5916_v30, %v3415_v42  ;;  %v3418_v55 = vadd.f32 %v4547_v8, %v4451_v46  ;;  %v3409_v24 = vpop.f32.mrb[183].mxu1  ;;  %v4551_v14 = vadd.f32 %v3144_v57, %v6288_v38  ;;  %v3146_v15 = vpop.f32.mrb[119].mxu0 }
 0x2ce   : > { %3903 = vst [vmem:[%s5941_s7 + $0x188] sm:$0xff] %v3839_v9  ;;  %v3707_v58 = vmul.f32 %v5916_v30, %v3407_v23  ;;  %v3410_v28 = vadd.f32 %v6158_v22, %v3409_v24 }
 0x2cf   : > { %v3780_v34 = vadd.f32 %v5925_v12, %v3709_v44  ;;  %v3710_v0 = vmul.f32 %v5916_v30, %v3418_v55 }
 0x2d0   : > { %v3778_v11 = vadd.f32 %v5925_v12, %v3707_v58  ;;  %v3708_v59 = vmul.f32 %v5916_v30, %v3410_v28 }
 0x2d1   : > { %v3844_v8 = vmax.f32 %v3780_v34, 0.0  ;;  %v3781_v10 = vadd.f32 %v5925_v12, %v3710_v0 }
 0x2d2   : > { %v3842_v56 = vmax.f32 %v3778_v11, 0.0  ;;  %v3779_v43 = vadd.f32 %v5925_v12, %v3708_v59  ;;  %v4454_v37 = vpop.f32.mrb[184].mxu1  ;;  %v3149_v22 = vpop.f32.mrb[120].mxu0 }
 0x2d3   : > { %3908 = vst [vmem:[%s5941_s7 + $0x1b0] sm:$0xff] %v3844_v8  ;;  %v3845_v36 = vmax.f32 %v3781_v10, 0.0  ;;  %v3431_v26 = vadd.f32 %v4550_v25, %v4454_v37  ;;  %v3422_v33 = vpop.f32.mrb[185].mxu1  ;;  %v4552_v29 = vadd.f32 %v3149_v22, %v6289_v48  ;;  %v3151_v1 = vpop.f32.mrb[121].mxu0 }
 0x2d4   : > { %3906 = vst [vmem:[%s5941_s7 + $0x1a0] sm:$0xff] %v3842_v56  ;;  %v3843_v21 = vmax.f32 %v3779_v43, 0.0  ;;  %v3423_v53 = vadd.f32 %v4548_v47, %v3422_v33  ;;  %v4455_v3 = vpop.f32.mrb[186].mxu1  ;;  %v3152_v51 = vpop.f32.mrb[122].mxu0 }
 0x2d5   : > { %3909 = vst [vmem:[%s5941_s7 + $0x1b8] sm:$0xff] %v3845_v36  ;;  %v3713_v54 = vmul.f32 %v5916_v30, %v3431_v26  ;;  %v3434_v4 = vadd.f32 %v4551_v14, %v4455_v3  ;;  %v3425_v31 = vpop.f32.mrb[187].mxu1  ;;  %v4553_v20 = vadd.f32 %v3152_v51, %v6290_v13  ;;  %v3154_v16 = vpop.f32.mrb[123].mxu0 }
 0x2d6   : > { %3907 = vst [vmem:[%s5941_s7 + $0x1a8] sm:$0xff] %v3843_v21  ;;  %v3711_v50 = vmul.f32 %v5916_v30, %v3423_v53  ;;  %v3426_v49 = vadd.f32 %v4549_v19, %v3425_v31 }
 0x2d7   : > { %v3784_v5 = vadd.f32 %v5925_v12, %v3713_v54  ;;  %v3714_v47 = vmul.f32 %v5916_v30, %v3434_v4 }
 0x2d8   : > { %v3782_v60 = vadd.f32 %v5925_v12, %v3711_v50  ;;  %v3712_v39 = vmul.f32 %v5916_v30, %v3426_v49 }
 0x2d9   : > { %v3848_v62 = vmax.f32 %v3784_v5, 0.0  ;;  %v3785_v18 = vadd.f32 %v5925_v12, %v3714_v47 }
 0x2da   : > { %v3846_v27 = vmax.f32 %v3782_v60, 0.0  ;;  %v3783_v32 = vadd.f32 %v5925_v12, %v3712_v39  ;;  %v4458_v7 = vpop.f32.mrb[188].mxu1  ;;  %v3157_v19 = vpop.f32.mrb[124].mxu0 }
 0x2db   : > { %3912 = vst [vmem:[%s5941_s7 + $0x1d0] sm:$0xff] %v3848_v62  ;;  %v3849_v45 = vmax.f32 %v3785_v18, 0.0  ;;  %v3438_v6 = vpop.f32.mrb[189].mxu1  ;;  %v4554_v40 = vadd.f32 %v3157_v19, %v6291_v61  ;;  %v3159_v2 = vpop.f32.mrb[125].mxu0 }
 0x2dc   : > { %3910 = vst [vmem:[%s5941_s7 + $0x1c0] sm:$0xff] %v3846_v27  ;;  %v3847_v63 = vmax.f32 %v3783_v32, 0.0  ;;  %v3439_v35 = vadd.f32 %v4552_v29, %v3438_v6  ;;  %v4459_v42 = vpop.f32.mrb[190].mxu1  ;;  %v3160_v41 = vpop.f32.mrb[126].mxu0 }
 0x2dd   : > { %3913 = vst [vmem:[%s5941_s7 + $0x1d8] sm:$0xff] %v3849_v45  ;;  %v3441_v9 = vpop.f32.mrb[191].mxu1  ;;  %v3447_v52 = vadd.f32 %v4554_v40, %v4458_v7  ;;  %v4555_v23 = vadd.f32 %v3160_v41, %v6292_v17  ;;  %v3162_v46 = vpop.f32.mrb[127].mxu0 }
 0x2de   : > { %3911 = vst [vmem:[%s5941_s7 + $0x1c8] sm:$0xff] %v3847_v63  ;;  %v3715_v25 = vmul.f32 %v5916_v30, %v3439_v35  ;;  %v3442_v44 = vadd.f32 %v4553_v20, %v3441_v9 }
 0x2df   : > { %v3717_v57 = vmul.f32 %v5916_v30, %v3447_v52  ;;  %v3450_v24 = vadd.f32 %v4555_v23, %v4459_v42 }
 0x2e0   : > { %v3786_v55 = vadd.f32 %v5925_v12, %v3715_v25  ;;  %v3716_v58 = vmul.f32 %v5916_v30, %v3442_v44 }
 0x2e1   : > { %v3788_v38 = vadd.f32 %v5925_v12, %v3717_v57  ;;  %v3718_v15 = vmul.f32 %v5916_v30, %v3450_v24 }
 0x2e2   : > { %v3850_v14 = vmax.f32 %v3786_v55, 0.0  ;;  %v3787_v28 = vadd.f32 %v5925_v12, %v3716_v58 }
 0x2e3   : > { %v3852_v34 = vmax.f32 %v3788_v38, 0.0  ;;  %v3789_v0 = vadd.f32 %v5925_v12, %v3718_v15 }
 0x2e4   : > { %3914 = vst [vmem:[%s5941_s7 + $0x1e0] sm:$0xff] %v3850_v14  ;;  %v3851_v11 = vmax.f32 %v3787_v28, 0.0 }
 0x2e5   : > { %3916 = vst [vmem:[%s5941_s7 + $0x1f0] sm:$0xff] %v3852_v34  ;;  %v3853_v59 = vmax.f32 %v3789_v0, 0.0 }
 0x2e6   : > { %3915 = vst [vmem:[%s5941_s7 + $0x1e8] sm:$0xff] %v3851_v11 }
 0x2e7   : > { %3917 = vst [vmem:[%s5941_s7 + $0x1f8] sm:$0xff] %v3853_v59 }
 0x2e8 PF: > { %s14_s17 = sadd.s32 1, %s5108_s17   ;;  %s6293_s15 = smov %s5104_s16 }
 0x2e9   : > { %p11_p5 = scmp.ge.s32.totalorder %s14_s17, 4   ;;  %s6294_s16 = smov %s6296_s18 }
 0x2eb   :  { %13 = sbr.rel (!%p11_p5) target bundleno = 2 (0x2), region = 83 }

// kernel: fwd.7
= control target key start
LH: loop header
LB: loop body
LE: loop exit
PB: predicated region body
PF: predicated region fallthrough
CT: control target
= control target key end

     0   :  { %s5348_s18 = smov 0   ;;  %s5350_s19 = smov 0   ;;  %s6567_s0 = inlined_call_operand.vmem [shape: bf16[1024,896], index: 0, kind: input, shape index: {}]   ;;  %s6568_s1 = inlined_call_operand.vmem [shape: bf16[896,128], index: 1, kind: input, shape index: {}]   ;;  %s6569_s2 = inlined_call_operand.vmem [shape: f32[1,128], index: 2, kind: input, shape index: {}]   ;;  %s6570_s3 = inlined_call_operand.vmem [shape: f32[1,128], index: 3, kind: input, shape index: {}]   ;;  %s6571_s4 = inlined_call_operand.vmem [shape: f32[1024,128], index: 4, kind: input, shape index: {}]   ;;  %s6572_s5 = inlined_call_operand.vmem [shape: f32[1024,128], index: 5, kind: output, shape index: {}]  }
   0x1   :  { %s5352_s20 = smov 0  }
   0x2 LB: > { %s34_s21 = sadd.s32 1, %s5311_s19  ;;  %p4254_p0 = scmp.ge.s32.totalorder %s5315_s20, 1  ;;  %s5315_s20 = sphi %s5352_s20, %s15_s20   ;;  %s5311_s19 = sphi %s5350_s19, %s6608_s19   ;;  %s5307_s18 = sphi %s5348_s18, %s6607_s18  }
   0x3   : > { %p36_p1 = scmp.ge.s32.totalorder %s34_s21, 2  ;;  %p265_p2 = scmp.lt.s32.totalorder %s5315_s20, 3 }
   0x5   : > { %s6610_s21 = smov (%p36_p1, %s34_s21), 0  ;;  %p266_p3 = pnand %p4254_p0, %p265_p2 }
   0x7   : > { %269 = sbr.rel (%p266_p3) target bundleno = 746 (0x2ea), region = 40 }
   0xe   : > { %v4915_v0 = vld [vmem:[%s6568_s1] sm:$0xff]   ;;  %v5317_v1 = vmov 0   ;;  %v4917_v3 = vld [vmem:[%s6568_s1 + $0x8] sm:$0xff]   ;;  %v4919_v5 = vld [vmem:[%s6568_s1 + $0x10] sm:$0xff]   ;;  %s4255_s17 = sshll.u32 %s5307_s18, 6 }
   0xf   : > { %2357 = vmatprep.subr.bf16.mxu1 %v5317_v1  ;;  %2646 = vmatprep.subr.bf16.mxu0 %v5317_v1  ;;  %v5376_v2 = vld [vmem:[%s6568_s1 + $0x80] sm:$0xff]   ;;  %v5386_v4 = vld [vmem:[%s6568_s1 + $0x88] sm:$0xff]   ;;  %v5397_v6 = vld [vmem:[%s6568_s1 + $0x90] sm:$0xff]   ;;  %p325_p4 = scmp.lt.s32.totalorder %s4255_s17, 127 }
  0x10   : > { %2358 = vmatpush1.bf16.msra.mxu1 %v4915_v0  ;;  %2647 = vmatpush1.bf16.msra.mxu0 %v5376_v2  ;;  %v4921_v7 = vld [vmem:[%s6568_s1 + $0x18] sm:$0xff]   ;;  %v4923_v9 = vld [vmem:[%s6568_s1 + $0x20] sm:$0xff]   ;;  %v4925_v11 = vld [vmem:[%s6568_s1 + $0x28] sm:$0xff]  }
  0x11   : > { %2359 = vmatprep.subr.bf16.mxu1 %v5317_v1  ;;  %2648 = vmatprep.subr.bf16.mxu0 %v5317_v1  ;;  %v5408_v8 = vld [vmem:[%s6568_s1 + $0x98] sm:$0xff]   ;;  %v5419_v10 = vld [vmem:[%s6568_s1 + $0xa0] sm:$0xff]   ;;  %v5431_v12 = vld [vmem:[%s6568_s1 + $0xa8] sm:$0xff]   ;;  %s6612_s17 = smov (!%p325_p4, %s4255_s17), 127 }
  0x12   : > { %v4927_v13 = vld [vmem:[%s6568_s1 + $0x30] sm:$0xff]   ;;  %v4929_v15 = vld [vmem:[%s6568_s1 + $0x38] sm:$0xff]   ;;  %s4889_s6 = smul.u32 28, %s6612_s17  ;;  %v4931_v17 = vld [vmem:[%s6568_s1 + $0x40] sm:$0xff]  }
  0x13   : > { %v5444_v14 = vld [vmem:[%s6568_s1 + $0xb0] sm:$0xff]   ;;  %v5456_v16 = vld [vmem:[%s6568_s1 + $0xb8] sm:$0xff]   ;;  %v5472_v18 = vld [vmem:[%s6568_s1 + $0xc0] sm:$0xff]  }
  0x14   : > { %2360 = vmatpush1.bf16.msra.mxu1 %v4917_v3  ;;  %2649 = vmatpush1.bf16.msra.mxu0 %v5386_v4  ;;  %s5465_s13 = scalar_lea.vmem %s6567_s0, %s4889_s6  ;;  %v4933_v20 = vld [vmem:[%s6568_s1 + $0x48] sm:$0xff]   ;;  %v4935_v23 = vld [vmem:[%s6568_s1 + $0x50] sm:$0xff]   ;;  %v4937_v25 = vld [vmem:[%s6568_s1 + $0x58] sm:$0xff]  }
  0x15   : > { %2361 = vmatprep.subr.bf16.mxu1 %v5317_v1  ;;  %2650 = vmatprep.subr.bf16.mxu0 %v5317_v1  ;;  %v4949_v19 = vld [vmem:[%s5465_s13 + $0x4] ss:$28 sps:$4 sm:$0xff]   ;;  %v4952_v21 = vld [vmem:[%s5465_s13 + $0xc] ss:$28 sps:$4 sm:$0xff]   ;;  %v5496_v24 = vld [vmem:[%s6568_s1 + $0xd0] sm:$0xff]  }
  0x16   : > { %v5485_v22 = vld [vmem:[%s6568_s1 + $0xc8] sm:$0xff]   ;;  %2389 = vmatprep.mubr.bf16.mxu1 %v4949_v19  ;;  %2678 = vmatprep.mubr.bf16.mxu0 %v4952_v21  ;;  %v5507_v26 = vld [vmem:[%s6568_s1 + $0xd8] sm:$0xff]   ;;  %v4939_v27 = vld [vmem:[%s6568_s1 + $0x60] sm:$0xff]  }
  0x17   : > { %v5518_v28 = vld [vmem:[%s6568_s1 + $0xe0] sm:$0xff]   ;;  %v4941_v29 = vld [vmem:[%s6568_s1 + $0x68] sm:$0xff]   ;;  %v4943_v31 = vld [vmem:[%s6568_s1 + $0x70] sm:$0xff]  }
  0x18   : > { %2362 = vmatpush1.bf16.msra.mxu1 %v4919_v5  ;;  %2651 = vmatpush1.bf16.msra.mxu0 %v5397_v6  ;;  %v5529_v30 = vld [vmem:[%s6568_s1 + $0xe8] sm:$0xff]   ;;  %v5540_v32 = vld [vmem:[%s6568_s1 + $0xf0] sm:$0xff]   ;;  %v4945_v33 = vld [vmem:[%s6568_s1 + $0x78] sm:$0xff]  }
  0x19   : > { %2363 = vmatprep.subr.bf16.mxu1 %v5317_v1  ;;  %2652 = vmatprep.subr.bf16.mxu0 %v5317_v1  ;;  %v5551_v34 = vld [vmem:[%s6568_s1 + $0xf8] sm:$0xff]   ;;  %v4950_v36 = vld [vmem:[%s5465_s13 + $0x8] ss:$28 sps:$4 sm:$0xff]   ;;  %v4961_v43 = vld [vmem:[%s5465_s13 + $0x74] ss:$28 sps:$4 sm:$0xff]  }
  0x1a   : > { %v4947_v35 = vld [vmem:[%s5465_s13] ss:$28 sps:$4 sm:$0xff]   ;;  %v4960_v40 = vld [vmem:[%s6568_s1 + $0x108] sm:$0xff]   ;;  %v4958_v41 = vld [vmem:[%s5465_s13 + $0x38] ss:$28 sps:$4 sm:$0xff]  }
  0x1b   : > { %v4953_v37 = vld [vmem:[%s6568_s1 + $0x100] sm:$0xff]   ;;  %v4954_v38 = vld [vmem:[%s5465_s13 + $0x3c] ss:$28 sps:$4 sm:$0xff]   ;;  %v4973_v45 = vld [vmem:[%s6568_s1 + $0x110] sm:$0xff]  }
  0x1c   : > { %2364 = vmatpush1.bf16.msra.mxu1 %v4921_v7  ;;  %2653 = vmatpush1.bf16.msra.mxu0 %v5408_v8  ;;  %v4956_v39 = vld [vmem:[%s5465_s13 + $0x44] ss:$28 sps:$4 sm:$0xff]   ;;  %v4963_v44 = vld [vmem:[%s5465_s13 + $0x7c] ss:$28 sps:$4 sm:$0xff]   ;;  %v4965_v47 = vld [vmem:[%s5465_s13 + $0x70] ss:$28 sps:$4 sm:$0xff]  }
  0x1d   : > { %2365 = vmatprep.subr.bf16.mxu1 %v5317_v1  ;;  %2654 = vmatprep.subr.bf16.mxu0 %v5317_v1  ;;  %v4959_v42 = vld [vmem:[%s5465_s13 + $0x40] ss:$28 sps:$4 sm:$0xff]   ;;  %v4966_v48 = vld [vmem:[%s5465_s13 + $0x78] ss:$28 sps:$4 sm:$0xff]   ;;  %v4967_v49 = vld [vmem:[%s5465_s13 + $0xac] ss:$28 sps:$4 sm:$0xff]  }
  0x1e   : > { %v4980_v46 = vld [vmem:[%s6568_s1 + $0x118] sm:$0xff]   ;;  %v4969_v50 = vld [vmem:[%s5465_s13 + $0xb4] ss:$28 sps:$4 sm:$0xff]   ;;  %v4993_v51 = vld [vmem:[%s6568_s1 + $0x120] sm:$0xff]  }
  0x1f   : > { %v5000_v52 = vld [vmem:[%s6568_s1 + $0x128] sm:$0xff]   ;;  %v4974_v55 = vld [vmem:[%s5465_s13 + $0xe4] ss:$28 sps:$4 sm:$0xff]   ;;  %v5013_v57 = vld [vmem:[%s6568_s1 + $0x130] sm:$0xff]  }
  0x20   : > { %2366 = vmatpush1.bf16.msra.mxu1 %v4923_v9  ;;  %2655 = vmatpush1.bf16.msra.mxu0 %v5419_v10  ;;  %v4971_v53 = vld [vmem:[%s5465_s13 + $0xa8] ss:$28 sps:$4 sm:$0xff]   ;;  %v4972_v54 = vld [vmem:[%s5465_s13 + $0xb0] ss:$28 sps:$4 sm:$0xff]   ;;  %v5020_v58 = vld [vmem:[%s6568_s1 + $0x138] sm:$0xff]  }
  0x21   : > { %2367 = vmatprep.subr.bf16.mxu1 %v5317_v1  ;;  %2656 = vmatprep.subr.bf16.mxu0 %v5317_v1  ;;  %v4976_v56 = vld [vmem:[%s5465_s13 + $0xec] ss:$28 sps:$4 sm:$0xff]   ;;  %v4978_v59 = vld [vmem:[%s5465_s13 + $0xe0] ss:$28 sps:$4 sm:$0xff]   ;;  %v4992_v9 = vld [vmem:[%s5465_s13 + $0x158] ss:$28 sps:$4 sm:$0xff]  }
  0x22   : > { %v4979_v60 = vld [vmem:[%s5465_s13 + $0xe8] ss:$28 sps:$4 sm:$0xff]   ;;  %v4981_v61 = vld [vmem:[%s5465_s13 + $0x11c] ss:$28 sps:$4 sm:$0xff]   ;;  %v4991_v7 = vld [vmem:[%s5465_s13 + $0x150] ss:$28 sps:$4 sm:$0xff]  }
  0x23   : > { %v4983_v62 = vld [vmem:[%s5465_s13 + $0x124] ss:$28 sps:$4 sm:$0xff]   ;;  %v5040_v0 = vld [vmem:[%s6568_s1 + $0x148] sm:$0xff]   ;;  %v4989_v5 = vld [vmem:[%s5465_s13 + $0x15c] ss:$28 sps:$4 sm:$0xff]  }
  0x24   : > { %2368 = vmatpush1.bf16.msra.mxu1 %v4925_v11  ;;  %2657 = vmatpush1.bf16.msra.mxu0 %v5431_v12  ;;  %v5033_v63 = vld [vmem:[%s6568_s1 + $0x140] sm:$0xff]   ;;  %v4996_v11 = vld [vmem:[%s5465_s13 + $0x194] ss:$28 sps:$4 sm:$0xff]  }
  0x25   : > { %2369 = vmatprep.subr.bf16.mxu1 %v5317_v1  ;;  %2658 = vmatprep.subr.bf16.mxu0 %v5317_v1  ;;  %v4986_v3 = vld [vmem:[%s5465_s13 + $0x120] ss:$28 sps:$4 sm:$0xff]   ;;  %v5006_v21 = vld [vmem:[%s5465_s13 + $0x1c8] ss:$28 sps:$4 sm:$0xff]  }
  0x26   : > { %v5005_v19 = vld [vmem:[%s5465_s13 + $0x1c0] ss:$28 sps:$4 sm:$0xff]  }
  0x28   : > { %2370 = vmatpush1.bf16.msra.mxu1 %v4927_v13  ;;  %2659 = vmatpush1.bf16.msra.mxu0 %v5444_v14  ;;  %v4998_v13 = vld [vmem:[%s5465_s13 + $0x188] ss:$28 sps:$4 sm:$0xff]  }
  0x29   : > { %2371 = vmatprep.subr.bf16.mxu1 %v5317_v1  ;;  %2660 = vmatprep.subr.bf16.mxu0 %v5317_v1 }
  0x2c   : > { %2372 = vmatpush1.bf16.msra.mxu1 %v4929_v15  ;;  %2661 = vmatpush1.bf16.msra.mxu0 %v5456_v16  ;;  %v4999_v15 = vld [vmem:[%s5465_s13 + $0x190] ss:$28 sps:$4 sm:$0xff]  }
  0x2d   : > { %2373 = vmatprep.subr.bf16.mxu1 %v5317_v1  ;;  %2662 = vmatprep.subr.bf16.mxu0 %v5317_v1 }
  0x30   : > { %2374 = vmatpush1.bf16.msra.mxu1 %v4931_v17  ;;  %2663 = vmatpush1.bf16.msra.mxu0 %v5472_v18  ;;  %v5003_v17 = vld [vmem:[%s5465_s13 + $0x1cc] ss:$28 sps:$4 sm:$0xff]  }
  0x31   : > { %2375 = vmatprep.subr.bf16.mxu1 %v5317_v1  ;;  %2664 = vmatprep.subr.bf16.mxu0 %v5317_v1 }
  0x34   : > { %2376 = vmatpush1.bf16.msra.mxu1 %v4933_v20  ;;  %2665 = vmatpush1.bf16.msra.mxu0 %v5485_v22  ;;  %v5100_v20 = vld [vmem:[%s6568_s1 + $0x178] sm:$0xff]  }
  0x35   : > { %2377 = vmatprep.subr.bf16.mxu1 %v5317_v1  ;;  %2666 = vmatprep.subr.bf16.mxu0 %v5317_v1 }
  0x38   : > { %2378 = vmatpush1.bf16.msra.mxu1 %v4935_v23  ;;  %2667 = vmatpush1.bf16.msra.mxu0 %v5496_v24  ;;  %v5009_v23 = vld [vmem:[%s5465_s13 + $0x204] ss:$28 sps:$4 sm:$0xff]  }
  0x39   : > { %2379 = vmatprep.subr.bf16.mxu1 %v5317_v1  ;;  %2668 = vmatprep.subr.bf16.mxu0 %v5317_v1 }
  0x3c   : > { %2380 = vmatpush1.bf16.msra.mxu1 %v4937_v25  ;;  %2669 = vmatpush1.bf16.msra.mxu0 %v5507_v26  ;;  %v5012_v25 = vld [vmem:[%s5465_s13 + $0x200] ss:$28 sps:$4 sm:$0xff]  }
  0x3d   : > { %2381 = vmatprep.subr.bf16.mxu1 %v5317_v1  ;;  %2670 = vmatprep.subr.bf16.mxu0 %v5317_v1 }
  0x40   : > { %2382 = vmatpush1.bf16.msra.mxu1 %v4939_v27  ;;  %2671 = vmatpush1.bf16.msra.mxu0 %v5518_v28  ;;  %v5016_v27 = vld [vmem:[%s5465_s13 + $0x23c] ss:$28 sps:$4 sm:$0xff]  }
  0x41   : > { %2383 = vmatprep.subr.bf16.mxu1 %v5317_v1  ;;  %2672 = vmatprep.subr.bf16.mxu0 %v5317_v1 }
  0x44   : > { %2384 = vmatpush1.bf16.msra.mxu1 %v4941_v29  ;;  %2673 = vmatpush1.bf16.msra.mxu0 %v5529_v30  ;;  %v5021_v29 = vld [vmem:[%s5465_s13 + $0x26c] ss:$28 sps:$4 sm:$0xff]  }
  0x45   : > { %2385 = vmatprep.subr.bf16.mxu1 %v5317_v1  ;;  %2674 = vmatprep.subr.bf16.mxu0 %v5317_v1 }
  0x48   : > { %2386 = vmatpush1.bf16.msra.mxu1 %v4943_v31  ;;  %2675 = vmatpush1.bf16.msra.mxu0 %v5540_v32  ;;  %v5025_v31 = vld [vmem:[%s5465_s13 + $0x268] ss:$28 sps:$4 sm:$0xff]  }
  0x49   : > { %2387 = vmatprep.subr.bf16.mxu1 %v5317_v1  ;;  %2676 = vmatprep.subr.bf16.mxu0 %v5317_v1 }
  0x4c   : > { %2388 = vmatpush1.bf16.msra.mxu1 %v4945_v33  ;;  %2677 = vmatpush1.bf16.msra.mxu0 %v5551_v34  ;;  %v5027_v33 = vld [vmem:[%s5465_s13 + $0x2a4] ss:$28 sps:$4 sm:$0xff]  }
  0x4d   : > { %4665 = vmatprep.subr.bf16.mxu1 %v5317_v1  ;;  %2935 = vmatprep.subr.bf16.mxu0 %v5317_v1 }
  0x4f   : > { %2390 = vmatmul.mubr.bf16.vlgmr.msra.gmra.mrb[0].mxu1 %v4947_v35  ;;  %2679 = vmatmul.mubr.bf16.vlgmr.msra.gmra.mrb[0].mxu0 %v4950_v36  ;;  %v5031_v35 = vld [vmem:[%s5465_s13 + $0x2a0] ss:$28 sps:$4 sm:$0xff]   ;;  %v5032_v36 = vld [vmem:[%s5465_s13 + $0x2a8] ss:$28 sps:$4 sm:$0xff]  }
  0x50   : > { %4681 = vmatpush1.bf16.msra.mxu1 %v5376_v2  ;;  %2936 = vmatpush1.bf16.msra.mxu0 %v4953_v37  ;;  %v4985_v2 = vld [vmem:[%s5465_s13 + $0x118] ss:$28 sps:$4 sm:$0xff]  }
  0x51   : > { %2397 = vmatprep.mubr.bf16.mxu1 %v4954_v38  ;;  %2686 = vmatprep.mubr.bf16.mxu0 %v4956_v39  ;;  %v5034_v37 = vld [vmem:[%s5465_s13 + $0x2dc] ss:$28 sps:$4 sm:$0xff]   ;;  %v5036_v38 = vld [vmem:[%s5465_s13 + $0x2e4] ss:$28 sps:$4 sm:$0xff]  }
  0x52   : > { %2937 = vmatprep.subr.bf16.mxu0 %v5317_v1  ;;  %4666 = vmatprep.subr.bf16.mxu1 %v5317_v1  ;;  %v5038_v39 = vld [vmem:[%s5465_s13 + $0x2d8] ss:$28 sps:$4 sm:$0xff]  }
  0x54   : > { %4682 = vmatpush1.bf16.msra.mxu1 %v5386_v4  ;;  %2938 = vmatpush1.bf16.msra.mxu0 %v4960_v40  ;;  %v4987_v4 = vld [vmem:[%s5465_s13 + $0x154] ss:$28 sps:$4 sm:$0xff]   ;;  %v5039_v40 = vld [vmem:[%s5465_s13 + $0x2e0] ss:$28 sps:$4 sm:$0xff]  }
  0x55   : > { %4667 = vmatprep.subr.bf16.mxu1 %v5317_v1  ;;  %2939 = vmatprep.subr.bf16.mxu0 %v5317_v1 }
  0x57   : > { %2398 = vmatmul.mubr.bf16.gmra.mrb[4].mxu1 %v4958_v41  ;;  %2687 = vmatmul.mubr.bf16.gmra.mrb[4].mxu0 %v4959_v42  ;;  %v5041_v41 = vld [vmem:[%s5465_s13 + $0x314] ss:$28 sps:$4 sm:$0xff]   ;;  %v5043_v42 = vld [vmem:[%s5465_s13 + $0x31c] ss:$28 sps:$4 sm:$0xff]  }
  0x58   : > { %2405 = vmatprep.mubr.bf16.mxu1 %v4961_v43  ;;  %2694 = vmatprep.mubr.bf16.mxu0 %v4963_v44  ;;  %v5045_v43 = vld [vmem:[%s5465_s13 + $0x310] ss:$28 sps:$4 sm:$0xff]   ;;  %v5046_v44 = vld [vmem:[%s5465_s13 + $0x318] ss:$28 sps:$4 sm:$0xff]  }
  0x59   : > { %2940 = vmatpush1.bf16.msra.mxu0 %v4973_v45  ;;  %4683 = vmatpush1.bf16.msra.mxu1 %v5397_v6  ;;  %v5053_v6 = vld [vmem:[%s6568_s1 + $0x150] sm:$0xff]   ;;  %v5047_v45 = vld [vmem:[%s5465_s13 + $0x34c] ss:$28 sps:$4 sm:$0xff]  }
  0x5a   : > { %2941 = vmatprep.subr.bf16.mxu0 %v5317_v1  ;;  %4668 = vmatprep.subr.bf16.mxu1 %v5317_v1 }
  0x5d   : > { %2942 = vmatpush1.bf16.msra.mxu0 %v4980_v46  ;;  %4684 = vmatpush1.bf16.msra.mxu1 %v5408_v8  ;;  %v5060_v8 = vld [vmem:[%s6568_s1 + $0x158] sm:$0xff]   ;;  %v5049_v46 = vld [vmem:[%s5465_s13 + $0x354] ss:$28 sps:$4 sm:$0xff]  }
  0x5e   : > { %2943 = vmatprep.subr.bf16.mxu0 %v5317_v1  ;;  %4669 = vmatprep.subr.bf16.mxu1 %v5317_v1 }
  0x5f   : > { %2406 = vmatmul.mubr.bf16.gmra.mrb[8].mxu1 %v4965_v47  ;;  %2695 = vmatmul.mubr.bf16.gmra.mrb[8].mxu0 %v4966_v48  ;;  %v5051_v47 = vld [vmem:[%s5465_s13 + $0x348] ss:$28 sps:$4 sm:$0xff]   ;;  %v5052_v48 = vld [vmem:[%s5465_s13 + $0x350] ss:$28 sps:$4 sm:$0xff]  }
  0x60   : > { %2413 = vmatprep.mubr.bf16.mxu1 %v4967_v49  ;;  %2702 = vmatprep.mubr.bf16.mxu0 %v4969_v50  ;;  %v5054_v49 = vld [vmem:[%s5465_s13 + $0x384] ss:$28 sps:$4 sm:$0xff]   ;;  %v5056_v50 = vld [vmem:[%s5465_s13 + $0x38c] ss:$28 sps:$4 sm:$0xff]  }
  0x61   : > { %2944 = vmatpush1.bf16.msra.mxu0 %v4993_v51  ;;  %4685 = vmatpush1.bf16.msra.mxu1 %v5419_v10  ;;  %v4994_v10 = vld [vmem:[%s5465_s13 + $0x18c] ss:$28 sps:$4 sm:$0xff]   ;;  %v5058_v51 = vld [vmem:[%s5465_s13 + $0x380] ss:$28 sps:$4 sm:$0xff]  }
  0x62   : > { %2945 = vmatprep.subr.bf16.mxu0 %v5317_v1  ;;  %4670 = vmatprep.subr.bf16.mxu1 %v5317_v1 }
  0x65   : > { %2946 = vmatpush1.bf16.msra.mxu0 %v5000_v52  ;;  %4686 = vmatpush1.bf16.msra.mxu1 %v5431_v12  ;;  %v5073_v12 = vld [vmem:[%s6568_s1 + $0x160] sm:$0xff]  }
  0x66   : > { %2947 = vmatprep.subr.bf16.mxu0 %v5317_v1  ;;  %4671 = vmatprep.subr.bf16.mxu1 %v5317_v1  ;;  %v5059_v52 = vld [vmem:[%s5465_s13 + $0x388] ss:$28 sps:$4 sm:$0xff]  }
  0x67   : > { %2414 = vmatmul.mubr.bf16.gmra.mrb[12].mxu1 %v4971_v53  ;;  %2703 = vmatmul.mubr.bf16.gmra.mrb[12].mxu0 %v4972_v54  ;;  %v5061_v53 = vld [vmem:[%s5465_s13 + $0x3bc] ss:$28 sps:$4 sm:$0xff]   ;;  %v5063_v54 = vld [vmem:[%s5465_s13 + $0x3c4] ss:$28 sps:$4 sm:$0xff]  }
  0x68   : > { %2421 = vmatprep.mubr.bf16.mxu1 %v4974_v55  ;;  %2710 = vmatprep.mubr.bf16.mxu0 %v4976_v56  ;;  %v5722_v55 = vld [vmem:[%s6568_s1 + $0x180] sm:$0xff]   ;;  %v5065_v56 = vld [vmem:[%s5465_s13 + $0x3b8] ss:$28 sps:$4 sm:$0xff]  }
  0x69   : > { %2948 = vmatpush1.bf16.msra.mxu0 %v5013_v57  ;;  %4687 = vmatpush1.bf16.msra.mxu1 %v5444_v14  ;;  %v5080_v14 = vld [vmem:[%s6568_s1 + $0x168] sm:$0xff]   ;;  %v5066_v57 = vld [vmem:[%s5465_s13 + $0x3c0] ss:$28 sps:$4 sm:$0xff]  }
  0x6a   : > { %2949 = vmatprep.subr.bf16.mxu0 %v5317_v1  ;;  %4672 = vmatprep.subr.bf16.mxu1 %v5317_v1 }
  0x6d   : > { %2950 = vmatpush1.bf16.msra.mxu0 %v5020_v58  ;;  %4688 = vmatpush1.bf16.msra.mxu1 %v5456_v16  ;;  %v5001_v16 = vld [vmem:[%s5465_s13 + $0x1c4] ss:$28 sps:$4 sm:$0xff]   ;;  %v5067_v58 = vld [vmem:[%s5465_s13 + $0x3f4] ss:$28 sps:$4 sm:$0xff]  }
  0x6e   : > { %2951 = vmatprep.subr.bf16.mxu0 %v5317_v1  ;;  %4673 = vmatprep.subr.bf16.mxu1 %v5317_v1 }
  0x6f   : > { %2422 = vmatmul.mubr.bf16.gmra.mrb[16].mxu1 %v4978_v59  ;;  %2711 = vmatmul.mubr.bf16.gmra.mrb[16].mxu0 %v4979_v60  ;;  %v5069_v59 = vld [vmem:[%s5465_s13 + $0x3fc] ss:$28 sps:$4 sm:$0xff]   ;;  %v5071_v60 = vld [vmem:[%s5465_s13 + $0x3f0] ss:$28 sps:$4 sm:$0xff]  }
  0x70   : > { %2429 = vmatprep.mubr.bf16.mxu1 %v4981_v61  ;;  %2718 = vmatprep.mubr.bf16.mxu0 %v4983_v62  ;;  %v5072_v61 = vld [vmem:[%s5465_s13 + $0x3f8] ss:$28 sps:$4 sm:$0xff]   ;;  %v5074_v62 = vld [vmem:[%s5465_s13 + $0x42c] ss:$28 sps:$4 sm:$0xff]  }
  0x71   : > { %2952 = vmatpush1.bf16.msra.mxu0 %v5033_v63  ;;  %4689 = vmatpush1.bf16.msra.mxu1 %v5472_v18  ;;  %v5093_v18 = vld [vmem:[%s6568_s1 + $0x170] sm:$0xff]  }
  0x72   : > { %2953 = vmatprep.subr.bf16.mxu0 %v5317_v1  ;;  %4674 = vmatprep.subr.bf16.mxu1 %v5317_v1  ;;  %v5076_v63 = vld [vmem:[%s5465_s13 + $0x434] ss:$28 sps:$4 sm:$0xff]  }
  0x75   : > { %2954 = vmatpush1.bf16.msra.mxu0 %v5040_v0  ;;  %4690 = vmatpush1.bf16.msra.mxu1 %v5485_v22  ;;  %v5007_v22 = vld [vmem:[%s5465_s13 + $0x1fc] ss:$28 sps:$4 sm:$0xff]   ;;  %v5078_v0 = vld [vmem:[%s5465_s13 + $0x428] ss:$28 sps:$4 sm:$0xff]  }
  0x76   : > { %2955 = vmatprep.subr.bf16.mxu0 %v5317_v1  ;;  %4675 = vmatprep.subr.bf16.mxu1 %v5317_v1 }
  0x77   : > { %2430 = vmatmul.mubr.bf16.gmra.mrb[20].mxu1 %v4985_v2  ;;  %2719 = vmatmul.mubr.bf16.gmra.mrb[20].mxu0 %v4986_v3  ;;  %v5079_v2 = vld [vmem:[%s5465_s13 + $0x430] ss:$28 sps:$4 sm:$0xff]   ;;  %v5081_v3 = vld [vmem:[%s5465_s13 + $0x464] ss:$28 sps:$4 sm:$0xff]  }
  0x78   : > { %2437 = vmatprep.mubr.bf16.mxu1 %v4987_v4  ;;  %2726 = vmatprep.mubr.bf16.mxu0 %v4989_v5  ;;  %v5083_v4 = vld [vmem:[%s5465_s13 + $0x46c] ss:$28 sps:$4 sm:$0xff]   ;;  %v5085_v5 = vld [vmem:[%s5465_s13 + $0x460] ss:$28 sps:$4 sm:$0xff]  }
  0x79   : > { %2956 = vmatpush1.bf16.msra.mxu0 %v5053_v6  ;;  %4691 = vmatpush1.bf16.msra.mxu1 %v5496_v24  ;;  %v5011_v24 = vld [vmem:[%s5465_s13 + $0x1f8] ss:$28 sps:$4 sm:$0xff]   ;;  %v5086_v6 = vld [vmem:[%s5465_s13 + $0x468] ss:$28 sps:$4 sm:$0xff]  }
  0x7a   : > { %2957 = vmatprep.subr.bf16.mxu0 %v5317_v1  ;;  %4676 = vmatprep.subr.bf16.mxu1 %v5317_v1 }
  0x7d   : > { %2958 = vmatpush1.bf16.msra.mxu0 %v5060_v8  ;;  %4692 = vmatpush1.bf16.msra.mxu1 %v5507_v26  ;;  %v5014_v26 = vld [vmem:[%s5465_s13 + $0x234] ss:$28 sps:$4 sm:$0xff]   ;;  %v5089_v8 = vld [vmem:[%s5465_s13 + $0x4a4] ss:$28 sps:$4 sm:$0xff]  }
  0x7e   : > { %2959 = vmatprep.subr.bf16.mxu0 %v5317_v1  ;;  %4677 = vmatprep.subr.bf16.mxu1 %v5317_v1 }
  0x7f   : > { %2438 = vmatmul.mubr.bf16.gmra.mrb[24].mxu1 %v4991_v7  ;;  %2727 = vmatmul.mubr.bf16.gmra.mrb[24].mxu0 %v4992_v9  ;;  %v5087_v7 = vld [vmem:[%s5465_s13 + $0x49c] ss:$28 sps:$4 sm:$0xff]  }
  0x80   : > { %2445 = vmatprep.mubr.bf16.mxu1 %v4994_v10  ;;  %2734 = vmatprep.mubr.bf16.mxu0 %v4996_v11  ;;  %v5091_v9 = vld [vmem:[%s5465_s13 + $0x498] ss:$28 sps:$4 sm:$0xff]   ;;  %v5092_v10 = vld [vmem:[%s5465_s13 + $0x4a0] ss:$28 sps:$4 sm:$0xff]  }
  0x81   : > { %2960 = vmatpush1.bf16.msra.mxu0 %v5073_v12  ;;  %4693 = vmatpush1.bf16.msra.mxu1 %v5518_v28  ;;  %v5019_v28 = vld [vmem:[%s5465_s13 + $0x238] ss:$28 sps:$4 sm:$0xff]  }
  0x82   : > { %2961 = vmatprep.subr.bf16.mxu0 %v5317_v1  ;;  %4678 = vmatprep.subr.bf16.mxu1 %v5317_v1  ;;  %v5094_v11 = vld [vmem:[%s5465_s13 + $0x4d4] ss:$28 sps:$4 sm:$0xff]   ;;  %v5096_v12 = vld [vmem:[%s5465_s13 + $0x4dc] ss:$28 sps:$4 sm:$0xff]  }
  0x85   : > { %2962 = vmatpush1.bf16.msra.mxu0 %v5080_v14  ;;  %4694 = vmatpush1.bf16.msra.mxu1 %v5529_v30  ;;  %v5023_v30 = vld [vmem:[%s5465_s13 + $0x274] ss:$28 sps:$4 sm:$0xff]  }
  0x86   : > { %2963 = vmatprep.subr.bf16.mxu0 %v5317_v1  ;;  %4679 = vmatprep.subr.bf16.mxu1 %v5317_v1  ;;  %v5099_v14 = vld [vmem:[%s5465_s13 + $0x4d8] ss:$28 sps:$4 sm:$0xff]  }
  0x87   : > { %2446 = vmatmul.mubr.bf16.gmra.mrb[28].mxu1 %v4998_v13  ;;  %2735 = vmatmul.mubr.bf16.gmra.mrb[28].mxu0 %v4999_v15  ;;  %v5098_v13 = vld [vmem:[%s5465_s13 + $0x4d0] ss:$28 sps:$4 sm:$0xff]  }
  0x88   : > { %2453 = vmatprep.mubr.bf16.mxu1 %v5001_v16  ;;  %2742 = vmatprep.mubr.bf16.mxu0 %v5003_v17  ;;  %v5101_v15 = vld [vmem:[%s5465_s13 + $0x50c] ss:$28 sps:$4 sm:$0xff]   ;;  %v5103_v16 = vld [vmem:[%s5465_s13 + $0x514] ss:$28 sps:$4 sm:$0xff]  }
  0x89   : > { %2964 = vmatpush1.bf16.msra.mxu0 %v5093_v18  ;;  %4695 = vmatpush1.bf16.msra.mxu1 %v5540_v32  ;;  %v5026_v32 = vld [vmem:[%s5465_s13 + $0x270] ss:$28 sps:$4 sm:$0xff]   ;;  %v5105_v17 = vld [vmem:[%s5465_s13 + $0x508] ss:$28 sps:$4 sm:$0xff]  }
  0x8a   : > { %2965 = vmatprep.subr.bf16.mxu0 %v5317_v1  ;;  %4680 = vmatprep.subr.bf16.mxu1 %v5317_v1  ;;  %v5018_v1 = vld [vmem:[%s5465_s13 + $0x230] ss:$28 sps:$4 sm:$0xff]  }
  0x8b   : > { %v5106_v18 = vld [vmem:[%s5465_s13 + $0x510] ss:$28 sps:$4 sm:$0xff]  }
  0x8d   : > { %2966 = vmatpush1.bf16.msra.mxu0 %v5100_v20  ;;  %4696 = vmatpush1.bf16.msra.mxu1 %v5551_v34  ;;  %v5029_v34 = vld [vmem:[%s5465_s13 + $0x2ac] ss:$28 sps:$4 sm:$0xff]   ;;  %v5111_v20 = vld [vmem:[%s5465_s13 + $0x14] ss:$28 sps:$4 sm:$0xff]  }
  0x8e   : > { %4585 = vmatprep.subr.bf16.mxu1 %v5722_v55 }
  0x8f   : > { %2454 = vmatmul.mubr.bf16.gmra.mrb[32].mxu1 %v5005_v19  ;;  %2743 = vmatmul.mubr.bf16.gmra.mrb[32].mxu0 %v5006_v21  ;;  %v5107_v19 = vld [vmem:[%s5465_s13 + $0x544] ss:$28 sps:$4 sm:$0xff]  }
  0x90   : > { %2461 = vmatprep.mubr.bf16.mxu1 %v5007_v22  ;;  %2750 = vmatprep.mubr.bf16.mxu0 %v5009_v23  ;;  %v5112_v21 = vld [vmem:[%s5465_s13 + $0x540] ss:$28 sps:$4 sm:$0xff]   ;;  %v5109_v22 = vld [vmem:[%s5465_s13 + $0x10] ss:$28 sps:$4 sm:$0xff]  }
  0x91   : > { %v5113_v23 = vld [vmem:[%s5465_s13 + $0x57c] ss:$28 sps:$4 sm:$0xff]  }
  0x97   : > { %2462 = vmatmul.mubr.bf16.gmra.mrb[36].mxu1 %v5011_v24  ;;  %2751 = vmatmul.mubr.bf16.gmra.mrb[36].mxu0 %v5012_v25  ;;  %v5115_v24 = vld [vmem:[%s5465_s13 + $0x4c] ss:$28 sps:$4 sm:$0xff]   ;;  %v5117_v25 = vld [vmem:[%s5465_s13 + $0x578] ss:$28 sps:$4 sm:$0xff]  }
  0x98   : > { %2469 = vmatprep.mubr.bf16.mxu1 %v5014_v26  ;;  %2758 = vmatprep.mubr.bf16.mxu0 %v5016_v27  ;;  %v5118_v26 = vld [vmem:[%s5465_s13 + $0x48] ss:$28 sps:$4 sm:$0xff]   ;;  %v5119_v27 = vld [vmem:[%s5465_s13 + $0x5b4] ss:$28 sps:$4 sm:$0xff]  }
  0x9f   : > { %2470 = vmatmul.mubr.bf16.gmra.mrb[40].mxu1 %v5018_v1  ;;  %2759 = vmatmul.mubr.bf16.gmra.mrb[40].mxu0 %v5019_v28  ;;  %v5121_v1 = vld [vmem:[%s5465_s13 + $0x84] ss:$28 sps:$4 sm:$0xff]   ;;  %v5123_v28 = vld [vmem:[%s5465_s13 + $0x5b0] ss:$28 sps:$4 sm:$0xff]  }
  0xa0   : > { %2477 = vmatprep.mubr.bf16.mxu1 %v5021_v29  ;;  %2766 = vmatprep.mubr.bf16.mxu0 %v5023_v30  ;;  %v5124_v29 = vld [vmem:[%s5465_s13 + $0x80] ss:$28 sps:$4 sm:$0xff]   ;;  %v5125_v30 = vld [vmem:[%s5465_s13 + $0x5ec] ss:$28 sps:$4 sm:$0xff]  }
  0xa7   : > { %2478 = vmatmul.mubr.bf16.gmra.mrb[44].mxu1 %v5025_v31  ;;  %2767 = vmatmul.mubr.bf16.gmra.mrb[44].mxu0 %v5026_v32  ;;  %v5127_v31 = vld [vmem:[%s5465_s13 + $0xbc] ss:$28 sps:$4 sm:$0xff]  }
  0xa8   : > { %2485 = vmatprep.mubr.bf16.mxu1 %v5027_v33  ;;  %2774 = vmatprep.mubr.bf16.mxu0 %v5029_v34  ;;  %v5129_v34 = vld [vmem:[%s5465_s13 + $0x5e8] ss:$28 sps:$4 sm:$0xff]  }
  0xaf   : > { %2486 = vmatmul.mubr.bf16.gmra.mrb[48].mxu1 %v5031_v35  ;;  %2775 = vmatmul.mubr.bf16.gmra.mrb[48].mxu0 %v5032_v36  ;;  %v5130_v36 = vld [vmem:[%s5465_s13 + $0xb8] ss:$28 sps:$4 sm:$0xff]  }
  0xb0   : > { %2493 = vmatprep.mubr.bf16.mxu1 %v5034_v37  ;;  %2782 = vmatprep.mubr.bf16.mxu0 %v5036_v38  ;;  %v5131_v37 = vld [vmem:[%s5465_s13 + $0x624] ss:$28 sps:$4 sm:$0xff]  }
  0xb7   : > { %2494 = vmatmul.mubr.bf16.gmra.mrb[52].mxu1 %v5038_v39  ;;  %2783 = vmatmul.mubr.bf16.gmra.mrb[52].mxu0 %v5039_v40  ;;  %v5133_v39 = vld [vmem:[%s5465_s13 + $0xf4] ss:$28 sps:$4 sm:$0xff]  }
  0xb8   : > { %2501 = vmatprep.mubr.bf16.mxu1 %v5041_v41  ;;  %2790 = vmatprep.mubr.bf16.mxu0 %v5043_v42  ;;  %v5135_v42 = vld [vmem:[%s5465_s13 + $0x620] ss:$28 sps:$4 sm:$0xff]  }
  0xbf   : > { %2502 = vmatmul.mubr.bf16.gmra.mrb[56].mxu1 %v5045_v43  ;;  %2791 = vmatmul.mubr.bf16.gmra.mrb[56].mxu0 %v5046_v44  ;;  %v5136_v44 = vld [vmem:[%s5465_s13 + $0xf0] ss:$28 sps:$4 sm:$0xff]  }
  0xc0   : > { %2509 = vmatprep.mubr.bf16.mxu1 %v5047_v45  ;;  %2798 = vmatprep.mubr.bf16.mxu0 %v5049_v46  ;;  %v5137_v45 = vld [vmem:[%s5465_s13 + $0x65c] ss:$28 sps:$4 sm:$0xff]  }
  0xc7   : > { %2510 = vmatmul.mubr.bf16.gmra.mrb[60].mxu1 %v5051_v47  ;;  %2799 = vmatmul.mubr.bf16.gmra.mrb[60].mxu0 %v5052_v48  ;;  %v5139_v47 = vld [vmem:[%s5465_s13 + $0x12c] ss:$28 sps:$4 sm:$0xff]  }
  0xc8   : > { %2517 = vmatprep.mubr.bf16.mxu1 %v5054_v49  ;;  %2806 = vmatprep.mubr.bf16.mxu0 %v5056_v50  ;;  %v5141_v50 = vld [vmem:[%s5465_s13 + $0x658] ss:$28 sps:$4 sm:$0xff]  }
  0xcf   : > { %2518 = vmatmul.mubr.bf16.gmra.mrb[64].mxu1 %v5058_v51  ;;  %2807 = vmatmul.mubr.bf16.gmra.mrb[64].mxu0 %v5059_v52  ;;  %v5142_v52 = vld [vmem:[%s5465_s13 + $0x128] ss:$28 sps:$4 sm:$0xff]  }
  0xd0   : > { %2525 = vmatprep.mubr.bf16.mxu1 %v5061_v53  ;;  %2814 = vmatprep.mubr.bf16.mxu0 %v5063_v54  ;;  %v5143_v53 = vld [vmem:[%s5465_s13 + $0x694] ss:$28 sps:$4 sm:$0xff]  }
  0xd7   : > { %2526 = vmatmul.mubr.bf16.gmra.mrb[68].mxu1 %v5065_v56  ;;  %2815 = vmatmul.mubr.bf16.gmra.mrb[68].mxu0 %v5066_v57  ;;  %v5145_v56 = vld [vmem:[%s5465_s13 + $0x164] ss:$28 sps:$4 sm:$0xff]  }
  0xd8   : > { %2533 = vmatprep.mubr.bf16.mxu1 %v5067_v58  ;;  %2822 = vmatprep.mubr.bf16.mxu0 %v5069_v59  ;;  %v5147_v59 = vld [vmem:[%s5465_s13 + $0x690] ss:$28 sps:$4 sm:$0xff]  }
  0xdf   : > { %2534 = vmatmul.mubr.bf16.gmra.mrb[72].mxu1 %v5071_v60  ;;  %2823 = vmatmul.mubr.bf16.gmra.mrb[72].mxu0 %v5072_v61  ;;  %v5148_v61 = vld [vmem:[%s5465_s13 + $0x160] ss:$28 sps:$4 sm:$0xff]  }
  0xe0   : > { %2541 = vmatprep.mubr.bf16.mxu1 %v5074_v62  ;;  %2830 = vmatprep.mubr.bf16.mxu0 %v5076_v63  ;;  %v5149_v62 = vld [vmem:[%s5465_s13 + $0x6cc] ss:$28 sps:$4 sm:$0xff]  }
  0xe7   : > { %2542 = vmatmul.mubr.bf16.gmra.mrb[76].mxu1 %v5078_v0  ;;  %2831 = vmatmul.mubr.bf16.gmra.mrb[76].mxu0 %v5079_v2  ;;  %v5151_v0 = vld [vmem:[%s5465_s13 + $0x19c] ss:$28 sps:$4 sm:$0xff]  }
  0xe8   : > { %2549 = vmatprep.mubr.bf16.mxu1 %v5081_v3  ;;  %2838 = vmatprep.mubr.bf16.mxu0 %v5083_v4  ;;  %v5153_v4 = vld [vmem:[%s5465_s13 + $0x6c8] ss:$28 sps:$4 sm:$0xff]  }
  0xef   : > { %2550 = vmatmul.mubr.bf16.gmra.mrb[80].mxu1 %v5085_v5  ;;  %2839 = vmatmul.mubr.bf16.gmra.mrb[80].mxu0 %v5086_v6  ;;  %v5154_v6 = vld [vmem:[%s5465_s13 + $0x198] ss:$28 sps:$4 sm:$0xff]  }
  0xf0   : > { %2557 = vmatprep.mubr.bf16.mxu1 %v5087_v7  ;;  %2846 = vmatprep.mubr.bf16.mxu0 %v5089_v8  ;;  %v5157_v7 = vld [vmem:[%s5465_s13 + $0x54c] ss:$28 sps:$4 sm:$0xff]  }
  0xf7   : > { %2558 = vmatmul.mubr.bf16.gmra.mrb[84].mxu1 %v5091_v9  ;;  %2847 = vmatmul.mubr.bf16.gmra.mrb[84].mxu0 %v5092_v10  ;;  %v5158_v9 = vld [vmem:[%s5465_s13 + $0x1d4] ss:$28 sps:$4 sm:$0xff]  }
  0xf8   : > { %2565 = vmatprep.mubr.bf16.mxu1 %v5094_v11  ;;  %2854 = vmatprep.mubr.bf16.mxu0 %v5096_v12  ;;  %v5155_v12 = vld [vmem:[%s5465_s13 + $0x548] ss:$28 sps:$4 sm:$0xff]  }
  0xff   : > { %2566 = vmatmul.mubr.bf16.gmra.mrb[88].mxu1 %v5098_v13  ;;  %2855 = vmatmul.mubr.bf16.gmra.mrb[88].mxu0 %v5099_v14  ;;  %v5160_v14 = vld [vmem:[%s5465_s13 + $0x1d0] ss:$28 sps:$4 sm:$0xff]  }
 0x100   : > { %2573 = vmatprep.mubr.bf16.mxu1 %v5101_v15  ;;  %2862 = vmatprep.mubr.bf16.mxu0 %v5103_v16  ;;  %v5162_v16 = vld [vmem:[%s5465_s13 + $0x584] ss:$28 sps:$4 sm:$0xff]  }
 0x107   : > { %2574 = vmatmul.mubr.bf16.gmra.mrb[92].mxu1 %v5105_v17  ;;  %2863 = vmatmul.mubr.bf16.gmra.mrb[92].mxu0 %v5106_v18  ;;  %v5164_v17 = vld [vmem:[%s5465_s13 + $0x20c] ss:$28 sps:$4 sm:$0xff]  }
 0x108   : > { %2581 = vmatprep.mubr.bf16.mxu1 %v5107_v19  ;;  %2967 = vmatprep.mubr.bf16.mxu0 %v5111_v20  ;;  %v5168_v18 = vld [vmem:[%s6568_s1 + $0x188] sm:$0xff]   ;;  %v5175_v19 = vld [vmem:[%s6568_s1 + $0x190] sm:$0xff]  }
 0x10f   : > { %2582 = vmatmul.mubr.bf16.gmra.mrb[96].mxu1 %v5112_v21  ;;  %2968 = vmatmul.mubr.bf16.vlgmr.msra.gmra.mrb[0].mxu0 %v5109_v22  ;;  %v5166_v22 = vld [vmem:[%s5465_s13 + $0x580] ss:$28 sps:$4 sm:$0xff]  }
 0x110   : > { %2589 = vmatprep.mubr.bf16.mxu1 %v5113_v23  ;;  %2975 = vmatprep.mubr.bf16.mxu0 %v5115_v24  ;;  %v5167_v24 = vld [vmem:[%s5465_s13 + $0x208] ss:$28 sps:$4 sm:$0xff]  }
 0x117   : > { %2590 = vmatmul.mubr.bf16.gmra.mrb[100].mxu1 %v5117_v25  ;;  %2976 = vmatmul.mubr.bf16.gmra.mrb[4].mxu0 %v5118_v26  ;;  %v5169_v25 = vld [vmem:[%s5465_s13 + $0x5bc] ss:$28 sps:$4 sm:$0xff]  }
 0x118   : > { %2597 = vmatprep.mubr.bf16.mxu1 %v5119_v27  ;;  %2983 = vmatprep.mubr.bf16.mxu0 %v5121_v1  ;;  %v5182_v27 = vld [vmem:[%s6568_s1 + $0x198] sm:$0xff]  }
 0x11f   : > { %2598 = vmatmul.mubr.bf16.gmra.mrb[104].mxu1 %v5123_v28  ;;  %2984 = vmatmul.mubr.bf16.gmra.mrb[8].mxu0 %v5124_v29  ;;  %v5189_v28 = vld [vmem:[%s6568_s1 + $0x1a0] sm:$0xff]  }
 0x120   : > { %2605 = vmatprep.mubr.bf16.mxu1 %v5125_v30  ;;  %2991 = vmatprep.mubr.bf16.mxu0 %v5127_v31  ;;  %v5173_v30 = vld [vmem:[%s5465_s13 + $0x5b8] ss:$28 sps:$4 sm:$0xff]  }
 0x122   : > { %v5765_v32 = vpop.f32.mrb[0].mxu1 }
 0x123   : > { %v2393_v33 = vpop.f32.mrb[1].mxu1 }
 0x124   : > { %v5768_v35 = vpop.f32.mrb[2].mxu1  ;;  %v5174_v33 = vld [vmem:[%s5465_s13 + $0x240] ss:$28 sps:$4 sm:$0xff]  }
 0x125   : > { %v2396_v38 = vpop.f32.mrb[3].mxu1 }
 0x126   : > { %v5196_v38 = vld [vmem:[%s6568_s1 + $0x1a8] sm:$0xff]  }
 0x127   : > { %2606 = vmatmul.mubr.bf16.gmra.mrb[108].mxu1 %v5129_v34  ;;  %2992 = vmatmul.mubr.bf16.gmra.mrb[12].mxu0 %v5130_v36  ;;  %v5176_v34 = vld [vmem:[%s5465_s13 + $0x5f4] ss:$28 sps:$4 sm:$0xff]  }
 0x128   : > { %2613 = vmatprep.mubr.bf16.mxu1 %v5131_v37  ;;  %2999 = vmatprep.mubr.bf16.mxu0 %v5133_v39  ;;  %v5178_v37 = vld [vmem:[%s5465_s13 + $0x27c] ss:$28 sps:$4 sm:$0xff]  }
 0x12a   : > { %v5773_v40 = vpop.f32.mrb[4].mxu1 }
 0x12b   : > { %v2401_v41 = vpop.f32.mrb[5].mxu1 }
 0x12c   : > { %v5776_v43 = vpop.f32.mrb[6].mxu1  ;;  %v5203_v41 = vld [vmem:[%s6568_s1 + $0x1b0] sm:$0xff]  }
 0x12d   : > { %v2404_v46 = vpop.f32.mrb[7].mxu1 }
 0x12e   : > { %v5181_v46 = vld [vmem:[%s5465_s13 + $0x278] ss:$28 sps:$4 sm:$0xff]  }
 0x12f   : > { %2614 = vmatmul.mubr.bf16.gmra.mrb[112].mxu1 %v5135_v42  ;;  %3000 = vmatmul.mubr.bf16.gmra.mrb[16].mxu0 %v5136_v44  ;;  %v5180_v44 = vld [vmem:[%s5465_s13 + $0x5f0] ss:$28 sps:$4 sm:$0xff]  }
 0x130   : > { %2621 = vmatprep.mubr.bf16.mxu1 %v5137_v45  ;;  %3007 = vmatprep.mubr.bf16.mxu0 %v5139_v47  ;;  %v5183_v47 = vld [vmem:[%s5465_s13 + $0x62c] ss:$28 sps:$4 sm:$0xff]  }
 0x132   : > { %v5781_v48 = vpop.f32.mrb[8].mxu1 }
 0x133   : > { %v2409_v49 = vpop.f32.mrb[9].mxu1 }
 0x134   : > { %v5784_v51 = vpop.f32.mrb[10].mxu1 }
 0x135   : > { %v2412_v54 = vpop.f32.mrb[11].mxu1 }
 0x137   : > { %2622 = vmatmul.mubr.bf16.gmra.mrb[116].mxu1 %v5141_v50  ;;  %3008 = vmatmul.mubr.bf16.gmra.mrb[20].mxu0 %v5142_v52  ;;  %v5185_v50 = vld [vmem:[%s5465_s13 + $0x2b4] ss:$28 sps:$4 sm:$0xff]   ;;  %v5210_v52 = vld [vmem:[%s6568_s1 + $0x1b8] sm:$0xff]  }
 0x138   : > { %2629 = vmatprep.mubr.bf16.mxu1 %v5143_v53  ;;  %3015 = vmatprep.mubr.bf16.mxu0 %v5145_v56  ;;  %v5187_v56 = vld [vmem:[%s5465_s13 + $0x628] ss:$28 sps:$4 sm:$0xff]  }
 0x13a   : > { %v5789_v57 = vpop.f32.mrb[12].mxu1 }
 0x13b   : > { %v2417_v58 = vpop.f32.mrb[13].mxu1 }
 0x13c   : > { %v5792_v60 = vpop.f32.mrb[14].mxu1 }
 0x13d   : > { %v2420_v63 = vpop.f32.mrb[15].mxu1 }
 0x13e   : > { %v5192_v63 = vld [vmem:[%s5465_s13 + $0x2ec] ss:$28 sps:$4 sm:$0xff]  }
 0x13f   : > { %2630 = vmatmul.mubr.bf16.gmra.mrb[120].mxu1 %v5147_v59  ;;  %3016 = vmatmul.mubr.bf16.gmra.mrb[24].mxu0 %v5148_v61  ;;  %v5188_v59 = vld [vmem:[%s5465_s13 + $0x2b0] ss:$28 sps:$4 sm:$0xff]   ;;  %v5190_v61 = vld [vmem:[%s5465_s13 + $0x664] ss:$28 sps:$4 sm:$0xff]  }
 0x140   : > { %2637 = vmatprep.mubr.bf16.mxu1 %v5149_v62  ;;  %3023 = vmatprep.mubr.bf16.mxu0 %v5151_v0 }
 0x142   : > { %v5797_v2 = vpop.f32.mrb[16].mxu1 }
 0x143   : > { %v2425_v3 = vpop.f32.mrb[17].mxu1 }
 0x144   : > { %v5800_v5 = vpop.f32.mrb[18].mxu1 }
 0x145   : > { %v2428_v8 = vpop.f32.mrb[19].mxu1 }
 0x146   : > { %v5197_v8 = vld [vmem:[%s5465_s13 + $0x69c] ss:$28 sps:$4 sm:$0xff]  }
 0x147   : > { %2638 = vmatmul.mubr.bf16.gmra.mrb[124].mxu1 %v5153_v4  ;;  %3024 = vmatmul.mubr.bf16.gmra.mrb[28].mxu0 %v5154_v6  ;;  %v5194_v4 = vld [vmem:[%s5465_s13 + $0x660] ss:$28 sps:$4 sm:$0xff]  }
 0x148   : > { %2870 = vmatprep.mubr.bf16.mxu1 %v5157_v7  ;;  %3031 = vmatprep.mubr.bf16.mxu0 %v5158_v9  ;;  %v5195_v7 = vld [vmem:[%s5465_s13 + $0x2e8] ss:$28 sps:$4 sm:$0xff]  }
 0x14a   : > { %v5805_v10 = vpop.f32.mrb[20].mxu1 }
 0x14b   : > { %v2433_v11 = vpop.f32.mrb[21].mxu1 }
 0x14c   : > { %v5808_v13 = vpop.f32.mrb[22].mxu1  ;;  %v5199_v11 = vld [vmem:[%s5465_s13 + $0x324] ss:$28 sps:$4 sm:$0xff]  }
 0x14d   : > { %v2436_v15 = vpop.f32.mrb[23].mxu1 }
 0x14e   : > { %v5201_v15 = vld [vmem:[%s5465_s13 + $0x698] ss:$28 sps:$4 sm:$0xff]  }
 0x14f   : > { %2871 = vmatmul.mubr.bf16.vlgmr.msra.gmra.mrb[96].mxu1 %v5155_v12  ;;  %3032 = vmatmul.mubr.bf16.gmra.mrb[32].mxu0 %v5160_v14 }
 0x150   : > { %4586 = vmatpush3.bf16.msra.mxu1 %v5722_v55  ;;  %2878 = vmatprep.mubr.bf16.mxu1 %v5162_v16  ;;  %v5171_v55 = vld [vmem:[%s5465_s13 + $0x244] ss:$28 sps:$4 sm:$0xff]  }
 0x151   : > { %3039 = vmatprep.mubr.bf16.mxu0 %v5164_v17  ;;  %4587 = vmatprep.subr.bf16.mxu1 %v5168_v18  ;;  %v5202_v17 = vld [vmem:[%s5465_s13 + $0x320] ss:$28 sps:$4 sm:$0xff]  }
 0x152   : > { %v5820_v20 = vpop.f32.mrb[24].mxu1 }
 0x153   : > { %v2441_v21 = vpop.f32.mrb[25].mxu1 }
 0x154   : > { %v5823_v23 = vpop.f32.mrb[26].mxu1  ;;  %4588 = vmatpush3.bf16.msra.mxu1 %v5168_v18  ;;  %v5204_v18 = vld [vmem:[%s5465_s13 + $0x6d4] ss:$28 sps:$4 sm:$0xff]   ;;  %v5206_v21 = vld [vmem:[%s5465_s13 + $0x35c] ss:$28 sps:$4 sm:$0xff]  }
 0x155   : > { %v2444_v26 = vpop.f32.mrb[27].mxu1  ;;  %4589 = vmatprep.subr.bf16.mxu1 %v5175_v19 }
 0x157   : > { %2879 = vmatmul.mubr.bf16.gmra.mrb[100].mxu1 %v5166_v22  ;;  %3040 = vmatmul.mubr.bf16.gmra.mrb[36].mxu0 %v5167_v24 }
 0x158   : > { %2886 = vmatprep.mubr.bf16.mxu1 %v5169_v25  ;;  %3047 = vmatprep.mubr.bf16.mxu0 %v5171_v55  ;;  %v5208_v25 = vld [vmem:[%s5465_s13 + $0x6d0] ss:$28 sps:$4 sm:$0xff]   ;;  %v5209_v55 = vld [vmem:[%s5465_s13 + $0x358] ss:$28 sps:$4 sm:$0xff]  }
 0x159   : > { %4590 = vmatpush3.bf16.msra.mxu1 %v5175_v19 }
 0x15a   : > { %v5831_v1 = vpop.f32.mrb[28].mxu1  ;;  %4591 = vmatprep.subr.bf16.mxu1 %v5182_v27 }
 0x15b   : > { %v2449_v29 = vpop.f32.mrb[29].mxu1 }
 0x15c   : > { %v5837_v31 = vpop.f32.mrb[30].mxu1  ;;  %v5211_v29 = vld [vmem:[%s5465_s13 + $0x394] ss:$28 sps:$4 sm:$0xff]  }
 0x15d   : > { %v2452_v36 = vpop.f32.mrb[31].mxu1  ;;  %4592 = vmatpush3.bf16.msra.mxu1 %v5182_v27  ;;  %v5213_v27 = vld [vmem:[%s5465_s13 + $0x18] ss:$28 sps:$4 sm:$0xff]  }
 0x15e   : > { %4593 = vmatprep.subr.bf16.mxu1 %v5189_v28 }
 0x15f   : > { %2887 = vmatmul.mubr.bf16.gmra.mrb[104].mxu1 %v5173_v30  ;;  %3048 = vmatmul.mubr.bf16.gmra.mrb[40].mxu0 %v5174_v33 }
 0x160   : > { %2894 = vmatprep.mubr.bf16.mxu1 %v5176_v34  ;;  %3055 = vmatprep.mubr.bf16.mxu0 %v5178_v37  ;;  %v5215_v34 = vld [vmem:[%s5465_s13 + $0x50] ss:$28 sps:$4 sm:$0xff]  }
 0x161   : > { %4594 = vmatpush3.bf16.msra.mxu1 %v5189_v28  ;;  %v5214_v37 = vld [vmem:[%s5465_s13 + $0x390] ss:$28 sps:$4 sm:$0xff]  }
 0x162   : > { %v5845_v39 = vpop.f32.mrb[32].mxu1  ;;  %4595 = vmatprep.subr.bf16.mxu1 %v5196_v38 }
 0x163   : > { %v2457_v42 = vpop.f32.mrb[33].mxu1 }
 0x164   : > { %v5851_v45 = vpop.f32.mrb[34].mxu1  ;;  %v5216_v42 = vld [vmem:[%s5465_s13 + $0x3cc] ss:$28 sps:$4 sm:$0xff]  }
 0x165   : > { %v2460_v49 = vpop.f32.mrb[35].mxu1  ;;  %4596 = vmatpush3.bf16.msra.mxu1 %v5196_v38  ;;  %v5218_v38 = vld [vmem:[%s5465_s13 + $0x88] ss:$28 sps:$4 sm:$0xff]  }
 0x166   : > { %4597 = vmatprep.subr.bf16.mxu1 %v5203_v41 }
 0x167   : > { %2895 = vmatmul.mubr.bf16.gmra.mrb[108].mxu1 %v5180_v44  ;;  %3056 = vmatmul.mubr.bf16.gmra.mrb[44].mxu0 %v5181_v46 }
 0x168   : > { %2902 = vmatprep.mubr.bf16.mxu1 %v5183_v47  ;;  %3063 = vmatprep.mubr.bf16.mxu0 %v5185_v50  ;;  %v5220_v47 = vld [vmem:[%s5465_s13 + $0xc0] ss:$28 sps:$4 sm:$0xff]   ;;  %v5219_v50 = vld [vmem:[%s5465_s13 + $0x3c8] ss:$28 sps:$4 sm:$0xff]  }
 0x169   : > { %4598 = vmatpush3.bf16.msra.mxu1 %v5203_v41 }
 0x16a   : > { %v5859_v53 = vpop.f32.mrb[36].mxu1  ;;  %4599 = vmatprep.subr.bf16.mxu1 %v5210_v52 }
 0x16b   : > { %v2465_v54 = vpop.f32.mrb[37].mxu1 }
 0x16c   : > { %v5862_v58 = vpop.f32.mrb[38].mxu1 }
 0x16d   : > { %v2468_v62 = vpop.f32.mrb[39].mxu1  ;;  %4600 = vmatpush3.bf16.msra.mxu1 %v5210_v52  ;;  %v5223_v52 = vld [vmem:[%s5465_s13 + $0xf8] ss:$28 sps:$4 sm:$0xff]  }
 0x16e   : > { %v5225_v62 = vld [vmem:[%s5465_s13 + $0x130] ss:$28 sps:$4 sm:$0xff]  }
 0x16f   : > { %2903 = vmatmul.mubr.bf16.gmra.mrb[112].mxu1 %v5187_v56  ;;  %3064 = vmatmul.mubr.bf16.gmra.mrb[48].mxu0 %v5188_v59  ;;  %v5221_v56 = vld [vmem:[%s5465_s13 + $0x404] ss:$28 sps:$4 sm:$0xff]  }
 0x170   : > { %2910 = vmatprep.mubr.bf16.mxu1 %v5190_v61  ;;  %3071 = vmatprep.mubr.bf16.mxu0 %v5192_v63 }
 0x172   : > { %v5867_v0 = vpop.f32.mrb[40].mxu1 }
 0x173   : > { %v2473_v3 = vpop.f32.mrb[41].mxu1 }
 0x174   : > { %v5870_v6 = vpop.f32.mrb[42].mxu1  ;;  %v5224_v3 = vld [vmem:[%s5465_s13 + $0x400] ss:$28 sps:$4 sm:$0xff]  }
 0x175   : > { %v2476_v9 = vpop.f32.mrb[43].mxu1 }
 0x177   : > { %2911 = vmatmul.mubr.bf16.gmra.mrb[116].mxu1 %v5194_v4  ;;  %3072 = vmatmul.mubr.bf16.gmra.mrb[52].mxu0 %v5195_v7  ;;  %v5228_v4 = vld [vmem:[%s5465_s13 + $0x168] ss:$28 sps:$4 sm:$0xff]  }
 0x178   : > { %2918 = vmatprep.mubr.bf16.mxu1 %v5197_v8  ;;  %3079 = vmatprep.mubr.bf16.mxu0 %v5199_v11  ;;  %v5226_v8 = vld [vmem:[%s5465_s13 + $0x43c] ss:$28 sps:$4 sm:$0xff]  }
 0x17a   : > { %v5875_v12 = vpop.f32.mrb[44].mxu1 }
 0x17b   : > { %v2481_v14 = vpop.f32.mrb[45].mxu1 }
 0x17c   : > { %v5878_v16 = vpop.f32.mrb[46].mxu1  ;;  %v5230_v14 = vld [vmem:[%s5465_s13 + $0x1a0] ss:$28 sps:$4 sm:$0xff]  }
 0x17d   : > { %v2484_v19 = vpop.f32.mrb[47].mxu1 }
 0x17f   : > { %2919 = vmatmul.mubr.bf16.gmra.mrb[120].mxu1 %v5201_v15  ;;  %3080 = vmatmul.mubr.bf16.gmra.mrb[56].mxu0 %v5202_v17  ;;  %v5229_v17 = vld [vmem:[%s5465_s13 + $0x438] ss:$28 sps:$4 sm:$0xff]  }
 0x180   : > { %2926 = vmatprep.mubr.bf16.mxu1 %v5204_v18  ;;  %3087 = vmatprep.mubr.bf16.mxu0 %v5206_v21  ;;  %v5233_v18 = vld [vmem:[%s5465_s13 + $0x1d8] ss:$28 sps:$4 sm:$0xff]  }
 0x181   : > { %v5231_v21 = vld [vmem:[%s5465_s13 + $0x474] ss:$28 sps:$4 sm:$0xff]  }
 0x182   : > { %v5883_v22 = vpop.f32.mrb[48].mxu1 }
 0x183   : > { %v2489_v24 = vpop.f32.mrb[49].mxu1 }
 0x184   : > { %v5886_v26 = vpop.f32.mrb[50].mxu1 }
 0x185   : > { %v2492_v28 = vpop.f32.mrb[51].mxu1 }
 0x186   : > { %v5234_v28 = vld [vmem:[%s5465_s13 + $0x470] ss:$28 sps:$4 sm:$0xff]  }
 0x187   : > { %2927 = vmatmul.mubr.bf16.gmra.mrb[124].mxu1 %v5208_v25  ;;  %3088 = vmatmul.mubr.bf16.gmra.mrb[60].mxu0 %v5209_v55  ;;  %v5235_v55 = vld [vmem:[%s5465_s13 + $0x210] ss:$28 sps:$4 sm:$0xff]  }
 0x188   : > { %4601 = vmatprep.mubr.bf16.mxu1 %v5213_v27  ;;  %3095 = vmatprep.mubr.bf16.mxu0 %v5211_v29  ;;  %v5238_v29 = vld [vmem:[%s5465_s13 + $0x248] ss:$28 sps:$4 sm:$0xff]  }
 0x18a   : > { %v5891_v30 = vpop.f32.mrb[52].mxu1 }
 0x18b   : > { %v2497_v33 = vpop.f32.mrb[53].mxu1 }
 0x18c   : > { %v5894_v36 = vpop.f32.mrb[54].mxu1 }
 0x18d   : > { %v2500_v41 = vpop.f32.mrb[55].mxu1 }
 0x18e   : > { %v5240_v41 = vld [vmem:[%s5465_s13 + $0x280] ss:$28 sps:$4 sm:$0xff]  }
 0x18f   : > { %4602 = vmatmul.mubr.bf16.vlgmr.msra.gmra.mrb[128].mxu1 %v5215_v34  ;;  %3096 = vmatmul.mubr.bf16.gmra.mrb[64].mxu0 %v5214_v37  ;;  %v5236_v34 = vld [vmem:[%s5465_s13 + $0x4ac] ss:$28 sps:$4 sm:$0xff]  }
 0x190   : > { %4605 = vmatprep.mubr.bf16.mxu1 %v5218_v38  ;;  %3103 = vmatprep.mubr.bf16.mxu0 %v5216_v42 }
 0x192   : > { %v5899_v44 = vpop.f32.mrb[56].mxu1 }
 0x193   : > { %v2505_v46 = vpop.f32.mrb[57].mxu1 }
 0x194   : > { %v5902_v49 = vpop.f32.mrb[58].mxu1  ;;  %v5239_v46 = vld [vmem:[%s5465_s13 + $0x4a8] ss:$28 sps:$4 sm:$0xff]  }
 0x195   : > { %v2508_v54 = vpop.f32.mrb[59].mxu1 }
 0x197   : > { %4606 = vmatmul.mubr.bf16.gmra.mrb[132].mxu1 %v5220_v47  ;;  %3104 = vmatmul.mubr.bf16.gmra.mrb[68].mxu0 %v5219_v50  ;;  %v5243_v47 = vld [vmem:[%s5465_s13 + $0x2b8] ss:$28 sps:$4 sm:$0xff]  }
 0x198   : > { %4609 = vmatprep.mubr.bf16.mxu1 %v5223_v52  ;;  %3111 = vmatprep.mubr.bf16.mxu0 %v5221_v56  ;;  %v5241_v52 = vld [vmem:[%s5465_s13 + $0x4e4] ss:$28 sps:$4 sm:$0xff]  }
 0x19a   : > { %v5907_v59 = vpop.f32.mrb[60].mxu1 }
 0x19b   : > { %v2513_v61 = vpop.f32.mrb[61].mxu1 }
 0x19c   : > { %v5910_v63 = vpop.f32.mrb[62].mxu1  ;;  %v5245_v61 = vld [vmem:[%s5465_s13 + $0x2f0] ss:$28 sps:$4 sm:$0xff]  }
 0x19d   : > { %v2516_v7 = vpop.f32.mrb[63].mxu1 }
 0x19f   : > { %4610 = vmatmul.mubr.bf16.gmra.mrb[136].mxu1 %v5225_v62  ;;  %3112 = vmatmul.mubr.bf16.gmra.mrb[72].mxu0 %v5224_v3  ;;  %v5244_v3 = vld [vmem:[%s5465_s13 + $0x4e0] ss:$28 sps:$4 sm:$0xff]  }
 0x1a0   : > { %4613 = vmatprep.mubr.bf16.mxu1 %v5228_v4  ;;  %3119 = vmatprep.mubr.bf16.mxu0 %v5226_v8  ;;  %v5248_v4 = vld [vmem:[%s5465_s13 + $0x328] ss:$28 sps:$4 sm:$0xff]   ;;  %v5246_v8 = vld [vmem:[%s5465_s13 + $0x51c] ss:$28 sps:$4 sm:$0xff]  }
 0x1a2   : > { %v5915_v9 = vpop.f32.mrb[64].mxu1 }
 0x1a3   : > { %v2521_v11 = vpop.f32.mrb[65].mxu1 }
 0x1a4   : > { %v5918_v15 = vpop.f32.mrb[66].mxu1 }
 0x1a5   : > { %v2524_v19 = vpop.f32.mrb[67].mxu1 }
 0x1a6   : > { %v5249_v19 = vld [vmem:[%s5465_s13 + $0x518] ss:$28 sps:$4 sm:$0xff]  }
 0x1a7   : > { %4614 = vmatmul.mubr.bf16.gmra.mrb[140].mxu1 %v5230_v14  ;;  %3120 = vmatmul.mubr.bf16.gmra.mrb[76].mxu0 %v5229_v17  ;;  %v5250_v17 = vld [vmem:[%s5465_s13 + $0x360] ss:$28 sps:$4 sm:$0xff]  }
 0x1a8   : > { %4617 = vmatprep.mubr.bf16.mxu1 %v5233_v18  ;;  %3127 = vmatprep.mubr.bf16.mxu0 %v5231_v21  ;;  %v5253_v21 = vld [vmem:[%s5465_s13 + $0x398] ss:$28 sps:$4 sm:$0xff]  }
 0x1aa   : > { %v5923_v24 = vpop.f32.mrb[68].mxu1 }
 0x1ab   : > { %v2529_v25 = vpop.f32.mrb[69].mxu1 }
 0x1ac   : > { %v5926_v27 = vpop.f32.mrb[70].mxu1 }
 0x1ad   : > { %v2532_v33 = vpop.f32.mrb[71].mxu1 }
 0x1ae   : > { %v5255_v33 = vld [vmem:[%s5465_s13 + $0x3d0] ss:$28 sps:$4 sm:$0xff]  }
 0x1af   : > { %4618 = vmatmul.mubr.bf16.gmra.mrb[144].mxu1 %v5235_v55  ;;  %3128 = vmatmul.mubr.bf16.gmra.mrb[80].mxu0 %v5234_v28  ;;  %v5251_v55 = vld [vmem:[%s5465_s13 + $0x554] ss:$28 sps:$4 sm:$0xff]  }
 0x1b0   : > { %4621 = vmatprep.mubr.bf16.mxu1 %v5238_v29  ;;  %3135 = vmatprep.mubr.bf16.mxu0 %v5236_v34 }
 0x1b2   : > { %v5931_v37 = vpop.f32.mrb[72].mxu1 }
 0x1b3   : > { %v2537_v38 = vpop.f32.mrb[73].mxu1 }
 0x1b4   : > { %v5934_v42 = vpop.f32.mrb[74].mxu1  ;;  %v5254_v38 = vld [vmem:[%s5465_s13 + $0x550] ss:$28 sps:$4 sm:$0xff]  }
 0x1b5   : > { %v2540_v50 = vpop.f32.mrb[75].mxu1 }
 0x1b7   : > { %4622 = vmatmul.mubr.bf16.gmra.mrb[148].mxu1 %v5240_v41  ;;  %3136 = vmatmul.mubr.bf16.gmra.mrb[84].mxu0 %v5239_v46  ;;  %v5258_v41 = vld [vmem:[%s5465_s13 + $0x408] ss:$28 sps:$4 sm:$0xff]  }
 0x1b8   : > { %4625 = vmatprep.mubr.bf16.mxu1 %v5243_v47  ;;  %3143 = vmatprep.mubr.bf16.mxu0 %v5241_v52  ;;  %v5256_v47 = vld [vmem:[%s5465_s13 + $0x58c] ss:$28 sps:$4 sm:$0xff]  }
 0x1ba   : > { %v5939_v54 = vpop.f32.mrb[76].mxu1 }
 0x1bb   : > { %v2545_v56 = vpop.f32.mrb[77].mxu1 }
 0x1bc   : > { %v5942_v62 = vpop.f32.mrb[78].mxu1  ;;  %v5260_v56 = vld [vmem:[%s5465_s13 + $0x440] ss:$28 sps:$4 sm:$0xff]  }
 0x1bd   : > { %v2548_v7 = vpop.f32.mrb[79].mxu1 }
 0x1bf   : > { %4626 = vmatmul.mubr.bf16.gmra.mrb[152].mxu1 %v5245_v61  ;;  %3144 = vmatmul.mubr.bf16.gmra.mrb[88].mxu0 %v5244_v3  ;;  %v5259_v3 = vld [vmem:[%s5465_s13 + $0x588] ss:$28 sps:$4 sm:$0xff]  }
 0x1c0   : > { %4629 = vmatprep.mubr.bf16.mxu1 %v5248_v4  ;;  %3151 = vmatprep.mubr.bf16.mxu0 %v5246_v8  ;;  %v5263_v4 = vld [vmem:[%s5465_s13 + $0x478] ss:$28 sps:$4 sm:$0xff]   ;;  %v5261_v8 = vld [vmem:[%s5465_s13 + $0x5c4] ss:$28 sps:$4 sm:$0xff]  }
 0x1c2   : > { %v5947_v11 = vpop.f32.mrb[80].mxu1 }
 0x1c3   : > { %v2553_v14 = vpop.f32.mrb[81].mxu1 }
 0x1c4   : > { %v5950_v18 = vpop.f32.mrb[82].mxu1 }
 0x1c5   : > { %v2556_v25 = vpop.f32.mrb[83].mxu1 }
 0x1c6   : > { %v5264_v25 = vld [vmem:[%s5465_s13 + $0x5c0] ss:$28 sps:$4 sm:$0xff]  }
 0x1c7   : > { %4630 = vmatmul.mubr.bf16.gmra.mrb[156].mxu1 %v5250_v17  ;;  %3152 = vmatmul.mubr.bf16.gmra.mrb[92].mxu0 %v5249_v19  ;;  %v5265_v19 = vld [vmem:[%s5465_s13 + $0x4b0] ss:$28 sps:$4 sm:$0xff]  }
 0x1c8   : > { %4633 = vmatprep.mubr.bf16.mxu1 %v5253_v21  ;;  %3159 = vmatprep.mubr.bf16.mxu0 %v5251_v55  ;;  %v5268_v55 = vld [vmem:[%s5465_s13 + $0x4e8] ss:$28 sps:$4 sm:$0xff]  }
 0x1ca   : > { %v5955_v28 = vpop.f32.mrb[84].mxu1 }
 0x1cb   : > { %v2561_v29 = vpop.f32.mrb[85].mxu1 }
 0x1cc   : > { %v5958_v34 = vpop.f32.mrb[86].mxu1 }
 0x1cd   : > { %v2564_v46 = vpop.f32.mrb[87].mxu1 }
 0x1cf   : > { %4634 = vmatmul.mubr.bf16.gmra.mrb[160].mxu1 %v5255_v33  ;;  %3160 = vmatmul.mubr.bf16.gmra.mrb[96].mxu0 %v5254_v38  ;;  %v5266_v33 = vld [vmem:[%s5465_s13 + $0x5fc] ss:$28 sps:$4 sm:$0xff]  }
 0x1d0   : > { %4637 = vmatprep.mubr.bf16.mxu1 %v5258_v41  ;;  %3167 = vmatprep.mubr.bf16.mxu0 %v5256_v47  ;;  %v5270_v41 = vld [vmem:[%s5465_s13 + $0x520] ss:$28 sps:$4 sm:$0xff]  }
 0x1d2   : > { %v5963_v50 = vpop.f32.mrb[88].mxu1 }
 0x1d3   : > { %v2569_v52 = vpop.f32.mrb[89].mxu1 }
 0x1d4   : > { %v5966_v61 = vpop.f32.mrb[90].mxu1  ;;  %v5269_v52 = vld [vmem:[%s5465_s13 + $0x5f8] ss:$28 sps:$4 sm:$0xff]  }
 0x1d5   : > { %v2572_v7 = vpop.f32.mrb[91].mxu1 }
 0x1d7   : > { %4638 = vmatmul.mubr.bf16.gmra.mrb[164].mxu1 %v5260_v56  ;;  %3168 = vmatmul.mubr.bf16.gmra.mrb[100].mxu0 %v5259_v3  ;;  %v5273_v56 = vld [vmem:[%s5465_s13 + $0x558] ss:$28 sps:$4 sm:$0xff]  }
 0x1d8   : > { %4641 = vmatprep.mubr.bf16.mxu1 %v5263_v4  ;;  %3175 = vmatprep.mubr.bf16.mxu0 %v5261_v8  ;;  %v5271_v4 = vld [vmem:[%s5465_s13 + $0x634] ss:$28 sps:$4 sm:$0xff]  }
 0x1da   : > { %v5971_v14 = vpop.f32.mrb[92].mxu1 }
 0x1db   : > { %v2577_v17 = vpop.f32.mrb[93].mxu1 }
 0x1dc   : > { %v5974_v21 = vpop.f32.mrb[94].mxu1 }
 0x1dd   : > { %v2580_v29 = vpop.f32.mrb[95].mxu1 }
 0x1de   : > { %v5278_v29 = vld [vmem:[%s5465_s13 + $0x5c8] ss:$28 sps:$4 sm:$0xff]  }
 0x1df   : > { %4642 = vmatmul.mubr.bf16.gmra.mrb[168].mxu1 %v5265_v19  ;;  %3176 = vmatmul.mubr.bf16.gmra.mrb[104].mxu0 %v5264_v25 }
 0x1e0   : > { %4645 = vmatprep.mubr.bf16.mxu1 %v5268_v55  ;;  %3183 = vmatprep.mubr.bf16.mxu0 %v5266_v33  ;;  %v5274_v55 = vld [vmem:[%s5465_s13 + $0x630] ss:$28 sps:$4 sm:$0xff]  }
 0x1e2   : > { %v2969_v38 = vpop.f32.mrb[0].mxu0 }
 0x1e3   : > { %v5981_v46 = vadd.f32 %v2969_v38, %v5765_v32  ;;  %v2971_v47 = vpop.f32.mrb[1].mxu0  ;;  %v5275_v32 = vld [vmem:[%s5465_s13 + $0x590] ss:$28 sps:$4 sm:$0xff]  }
 0x1e4   : > { %v2972_v3 = vpop.f32.mrb[2].mxu0 }
 0x1e5   : > { %v5987_v7 = vadd.f32 %v2972_v3, %v5768_v35  ;;  %v2974_v8 = vpop.f32.mrb[3].mxu0  ;;  %v5276_v35 = vld [vmem:[%s5465_s13 + $0x66c] ss:$28 sps:$4 sm:$0xff]  }
 0x1e6   : > { %v5279_v3 = vld [vmem:[%s5465_s13 + $0x668] ss:$28 sps:$4 sm:$0xff]  }
 0x1e7   : > { %4646 = vmatmul.mubr.bf16.gmra.mrb[172].mxu1 %v5270_v41  ;;  %3184 = vmatmul.mubr.bf16.gmra.mrb[108].mxu0 %v5269_v52 }
 0x1e8   : > { %4649 = vmatprep.mubr.bf16.mxu1 %v5273_v56  ;;  %3191 = vmatprep.mubr.bf16.mxu0 %v5271_v4  ;;  %v5283_v4 = vld [vmem:[%s5465_s13 + $0x638] ss:$28 sps:$4 sm:$0xff]  }
 0x1ea   : > { %v2977_v17 = vpop.f32.mrb[4].mxu0 }
 0x1eb   : > { %v5991_v19 = vadd.f32 %v2977_v17, %v5773_v40  ;;  %v2979_v25 = vpop.f32.mrb[5].mxu0  ;;  %v5280_v40 = vld [vmem:[%s5465_s13 + $0x600] ss:$28 sps:$4 sm:$0xff]  }
 0x1ec   : > { %v2980_v33 = vpop.f32.mrb[6].mxu0 }
 0x1ed   : > { %v5997_v38 = vadd.f32 %v2980_v33, %v5776_v43  ;;  %v2982_v41 = vpop.f32.mrb[7].mxu0  ;;  %v5281_v43 = vld [vmem:[%s5465_s13 + $0x6a4] ss:$28 sps:$4 sm:$0xff]  }
 0x1ee   : > { %v5284_v33 = vld [vmem:[%s5465_s13 + $0x6a0] ss:$28 sps:$4 sm:$0xff]  }
 0x1ef   : > { %4650 = vmatmul.mubr.bf16.gmra.mrb[176].mxu1 %v5275_v32  ;;  %3192 = vmatmul.mubr.bf16.gmra.mrb[112].mxu0 %v5274_v55 }
 0x1f0   : > { %4653 = vmatprep.mubr.bf16.mxu1 %v5278_v29  ;;  %3199 = vmatprep.mubr.bf16.mxu0 %v5276_v35  ;;  %v5288_v35 = vld [vmem:[%s5465_s13 + $0x6a8] ss:$28 sps:$4 sm:$0xff]  }
 0x1f2   : > { %v2985_v47 = vpop.f32.mrb[8].mxu0 }
 0x1f3   : > { %v6001_v52 = vadd.f32 %v2985_v47, %v5781_v48  ;;  %v2987_v56 = vpop.f32.mrb[9].mxu0  ;;  %v5285_v48 = vld [vmem:[%s5465_s13 + $0x670] ss:$28 sps:$4 sm:$0xff]   ;;  %v5286_v47 = vld [vmem:[%s5465_s13 + $0x6dc] ss:$28 sps:$4 sm:$0xff]  }
 0x1f4   : > { %v2988_v8 = vpop.f32.mrb[10].mxu0 }
 0x1f5   : > { %v6007_v17 = vadd.f32 %v2988_v8, %v5784_v51  ;;  %v2990_v32 = vpop.f32.mrb[11].mxu0  ;;  %v5289_v8 = vld [vmem:[%s5465_s13 + $0x6d8] ss:$28 sps:$4 sm:$0xff]  }
 0x1f7   : > { %4654 = vmatmul.mubr.bf16.gmra.mrb[180].mxu1 %v5280_v40  ;;  %3200 = vmatmul.mubr.bf16.gmra.mrb[116].mxu0 %v5279_v3  ;;  %v5290_v3 = vld [vmem:[%s5465_s13 + $0x6e0] ss:$28 sps:$4 sm:$0xff]   ;;  %s4258_s13 = sshll.u32 %s6612_s17, 3 }
 0x1f8   : > { %4657 = vmatprep.mubr.bf16.mxu1 %v5283_v4  ;;  %3207 = vmatprep.mubr.bf16.mxu0 %v5281_v43  ;;  %s6136_s16 = scalar_lea.vmem %s6571_s4, %s4258_s13  ;;  %s6169_s18 = scalar_lea.vmem %s6572_s5, %s4258_s13 }
 0x1fa   : > { %v2993_v25 = vpop.f32.mrb[12].mxu0 }
 0x1fb   : > { %v6011_v55 = vadd.f32 %v2993_v25, %v5789_v57  ;;  %v2995_v29 = vpop.f32.mrb[13].mxu0 }
 0x1fc   : > { %v2996_v41 = vpop.f32.mrb[14].mxu0 }
 0x1fd   : > { %v6017_v51 = vadd.f32 %v2996_v41, %v5792_v60  ;;  %v2998_v56 = vpop.f32.mrb[15].mxu0 }
 0x1ff   : > { %4658 = vmatmul.mubr.bf16.gmra.mrb[184].mxu1 %v5285_v48  ;;  %3208 = vmatmul.mubr.bf16.gmra.mrb[120].mxu0 %v5284_v33 }
 0x200   : > { %4661 = vmatprep.mubr.bf16.mxu1 %v5288_v35  ;;  %3215 = vmatprep.mubr.bf16.mxu0 %v5286_v47 }
 0x202   : > { %v3001_v40 = vpop.f32.mrb[16].mxu0 }
 0x203   : > { %v6021_v4 = vadd.f32 %v3001_v40, %v5797_v2  ;;  %v3003_v57 = vpop.f32.mrb[17].mxu0 }
 0x204   : > { %v3004_v43 = vpop.f32.mrb[18].mxu0 }
 0x205   : > { %v6025_v32 = vadd.f32 %v3004_v43, %v5800_v5  ;;  %v3006_v25 = vpop.f32.mrb[19].mxu0 }
 0x207   : > { %4662 = vmatmul.mubr.bf16.gmra.mrb[188].mxu1 %v5290_v3  ;;  %3216 = vmatmul.mubr.bf16.gmra.mrb[124].mxu0 %v5289_v8 }
 0x20a   : > { %v3009_v60 = vpop.f32.mrb[20].mxu0 }
 0x20b   : > { %v6028_v48 = vadd.f32 %v3009_v60, %v5805_v10  ;;  %v3011_v29 = vpop.f32.mrb[21].mxu0 }
 0x20c   : > { %v3012_v33 = vpop.f32.mrb[22].mxu0 }
 0x20d   : > { %v6031_v35 = vadd.f32 %v3012_v33, %v5808_v13  ;;  %v3014_v2 = vpop.f32.mrb[23].mxu0 }
 0x212   : > { %v3017_v41 = vpop.f32.mrb[24].mxu0 }
 0x213   : > { %v6034_v47 = vadd.f32 %v3017_v41, %v5820_v20  ;;  %v3019_v56 = vpop.f32.mrb[25].mxu0 }
 0x214   : > { %v3020_v5 = vpop.f32.mrb[26].mxu0 }
 0x215   : > { %v6037_v40 = vadd.f32 %v3020_v5, %v5823_v23  ;;  %v3022_v3 = vpop.f32.mrb[27].mxu0 }
 0x21a   : > { %v3025_v57 = vpop.f32.mrb[28].mxu0 }
 0x21b   : > { %v6040_v10 = vadd.f32 %v3025_v57, %v5831_v1  ;;  %v3027_v8 = vpop.f32.mrb[29].mxu0 }
 0x21c   : > { %v3028_v43 = vpop.f32.mrb[30].mxu0 }
 0x21d   : > { %v6043_v13 = vadd.f32 %v3028_v43, %v5837_v31  ;;  %v3030_v25 = vpop.f32.mrb[31].mxu0 }
 0x222   : > { %v6045_v60 = vpop.f32.mrb[96].mxu1  ;;  %v3033_v20 = vpop.f32.mrb[32].mxu0 }
 0x223   : > { %6573 = vst [vmem:[#allocation3_spill] sm:$0xff] %v6045_v60  ;;  %v2874_v29 = vpop.f32.mrb[97].mxu1  ;;  %v6048_v33 = vadd.f32 %v3033_v20, %v5845_v39  ;;  %v3035_v23 = vpop.f32.mrb[33].mxu0 }
 0x224   : > { %v6050_v2 = vpop.f32.mrb[98].mxu1  ;;  %v3036_v41 = vpop.f32.mrb[34].mxu0 }
 0x225   : > { %6574 = vst [vmem:[#allocation4_spill] sm:$0xff] %v6050_v2  ;;  %v2877_v56 = vpop.f32.mrb[99].mxu1  ;;  %v6053_v1 = vadd.f32 %v3036_v41, %v5851_v45  ;;  %v3038_v5 = vpop.f32.mrb[35].mxu0 }
 0x22a   : > { %v6055_v3 = vpop.f32.mrb[100].mxu1  ;;  %v3041_v31 = vpop.f32.mrb[36].mxu0 }
 0x22b   : > { %6575 = vst [vmem:[#allocation5_spill] sm:$0xff] %v6055_v3  ;;  %v2882_v57 = vpop.f32.mrb[101].mxu1  ;;  %v6058_v8 = vadd.f32 %v3041_v31, %v5859_v53  ;;  %v3043_v43 = vpop.f32.mrb[37].mxu0 }
 0x22c   : > { %v6060_v25 = vpop.f32.mrb[102].mxu1  ;;  %v3044_v39 = vpop.f32.mrb[38].mxu0 }
 0x22d   : > { %6576 = vst [vmem:[#allocation6_spill] sm:$0xff] %v6060_v25  ;;  %v2885_v20 = vpop.f32.mrb[103].mxu1  ;;  %v6063_v29 = vadd.f32 %v3044_v39, %v5862_v58  ;;  %v3046_v23 = vpop.f32.mrb[39].mxu0 }
 0x232   : > { %v6065_v56 = vpop.f32.mrb[104].mxu1  ;;  %v3049_v45 = vpop.f32.mrb[40].mxu0 }
 0x233   : > { %6577 = vst [vmem:[#allocation7_spill] sm:$0xff] %v6065_v56  ;;  %v2890_v41 = vpop.f32.mrb[105].mxu1  ;;  %v6068_v5 = vadd.f32 %v3049_v45, %v5867_v0  ;;  %v3051_v57 = vpop.f32.mrb[41].mxu0 }
 0x234   : > { %v6070_v3 = vpop.f32.mrb[106].mxu1  ;;  %v3052_v53 = vpop.f32.mrb[42].mxu0 }
 0x235   : > { %6578 = vst [vmem:[#allocation8_spill] sm:$0xff] %v6070_v3  ;;  %v2893_v31 = vpop.f32.mrb[107].mxu1  ;;  %v6073_v43 = vadd.f32 %v3052_v53, %v5870_v6  ;;  %v3054_v20 = vpop.f32.mrb[43].mxu0 }
 0x23a   : > { %v6075_v25 = vpop.f32.mrb[108].mxu1  ;;  %v3057_v58 = vpop.f32.mrb[44].mxu0 }
 0x23b   : > { %6579 = vst [vmem:[#allocation9_spill] sm:$0xff] %v6075_v25  ;;  %v2898_v39 = vpop.f32.mrb[109].mxu1  ;;  %v6078_v23 = vadd.f32 %v3057_v58, %v5875_v12  ;;  %v3059_v41 = vpop.f32.mrb[45].mxu0 }
 0x23c   : > { %v6080_v56 = vpop.f32.mrb[110].mxu1  ;;  %v3060_v0 = vpop.f32.mrb[46].mxu0 }
 0x23d   : > { %6580 = vst [vmem:[#allocation10_spill] sm:$0xff] %v6080_v56  ;;  %v2901_v45 = vpop.f32.mrb[111].mxu1  ;;  %v6083_v57 = vadd.f32 %v3060_v0, %v5878_v16  ;;  %v3062_v31 = vpop.f32.mrb[47].mxu0 }
 0x242   : > { %v6085_v3 = vpop.f32.mrb[112].mxu1  ;;  %v3065_v6 = vpop.f32.mrb[48].mxu0 }
 0x243   : > { %6581 = vst [vmem:[#allocation11_spill] sm:$0xff] %v6085_v3  ;;  %v2906_v53 = vpop.f32.mrb[113].mxu1  ;;  %v6088_v20 = vadd.f32 %v3065_v6, %v5883_v22  ;;  %v3067_v39 = vpop.f32.mrb[49].mxu0 }
 0x244   : > { %v6090_v25 = vpop.f32.mrb[114].mxu1  ;;  %v3068_v12 = vpop.f32.mrb[50].mxu0 }
 0x245   : > { %6582 = vst [vmem:[#allocation12_spill] sm:$0xff] %v6090_v25  ;;  %v2909_v58 = vpop.f32.mrb[115].mxu1  ;;  %v6093_v41 = vadd.f32 %v3068_v12, %v5886_v26  ;;  %v3070_v45 = vpop.f32.mrb[51].mxu0 }
 0x24a   : > { %v6095_v56 = vpop.f32.mrb[116].mxu1  ;;  %v3073_v16 = vpop.f32.mrb[52].mxu0 }
 0x24b   : > { %6583 = vst [vmem:[#allocation13_spill] sm:$0xff] %v6095_v56  ;;  %v2914_v0 = vpop.f32.mrb[117].mxu1  ;;  %v6098_v31 = vadd.f32 %v3073_v16, %v5891_v30  ;;  %v3075_v53 = vpop.f32.mrb[53].mxu0 }
 0x24c   : > { %v6100_v3 = vpop.f32.mrb[118].mxu1  ;;  %v3076_v22 = vpop.f32.mrb[54].mxu0 }
 0x24d   : > { %6584 = vst [vmem:[#allocation14_spill] sm:$0xff] %v6100_v3  ;;  %v2917_v6 = vpop.f32.mrb[119].mxu1  ;;  %v6103_v39 = vadd.f32 %v3076_v22, %v5894_v36  ;;  %v3078_v58 = vpop.f32.mrb[55].mxu0 }
 0x252   : > { %v6105_v25 = vpop.f32.mrb[120].mxu1  ;;  %v3081_v26 = vpop.f32.mrb[56].mxu0 }
 0x253   : > { %6585 = vst [vmem:[#allocation15_spill] sm:$0xff] %v6105_v25  ;;  %v2922_v12 = vpop.f32.mrb[121].mxu1  ;;  %v6108_v45 = vadd.f32 %v3081_v26, %v5899_v44  ;;  %v3083_v0 = vpop.f32.mrb[57].mxu0 }
 0x254   : > { %v6110_v30 = vpop.f32.mrb[122].mxu1  ;;  %v3084_v16 = vpop.f32.mrb[58].mxu0 }
 0x255   : > { %6586 = vst [vmem:[#allocation16_spill] sm:$0xff] %v6110_v30  ;;  %v2925_v53 = vpop.f32.mrb[123].mxu1  ;;  %v6113_v3 = vadd.f32 %v3084_v16, %v5902_v49  ;;  %v3086_v36 = vpop.f32.mrb[59].mxu0  ;;  %v6129_v16 = vld [vmem:[%s6569_s2] ss:$0 sm:$0xff] }
 0x25a   : > { %v6115_v22 = vpop.f32.mrb[124].mxu1  ;;  %v3089_v6 = vpop.f32.mrb[60].mxu0 }
 0x25b   : > { %6587 = vst [vmem:[#allocation17_spill] sm:$0xff] %v6115_v22  ;;  %v2930_v58 = vpop.f32.mrb[125].mxu1  ;;  %v6118_v12 = vadd.f32 %v3089_v6, %v5907_v59  ;;  %v3091_v44 = vpop.f32.mrb[61].mxu0  ;;  %v6145_v6 = vld [vmem:[%s6570_s3] ss:$0 sm:$0xff] }
 0x25c   : > { %v6120_v26 = vpop.f32.mrb[126].mxu1  ;;  %v3092_v0 = vpop.f32.mrb[62].mxu0 }
 0x25d   : > { %6588 = vst [vmem:[#allocation18_spill] sm:$0xff] %v6120_v26  ;;  %v2933_v25 = vpop.f32.mrb[127].mxu1  ;;  %v6123_v30 = vadd.f32 %v3092_v0, %v5910_v63  ;;  %v3094_v53 = vpop.f32.mrb[63].mxu0 }
 0x262   : > { %v4603_v49 = vpop.f32.mrb[128].mxu1  ;;  %v3097_v36 = vpop.f32.mrb[64].mxu0 }
 0x263   : > { %v3267_v59 = vadd.f32 %v5991_v19, %v4603_v49  ;;  %v3258_v63 = vpop.f32.mrb[129].mxu1  ;;  %v6140_v25 = vadd.f32 %v3097_v36, %v5915_v9  ;;  %v3099_v58 = vpop.f32.mrb[65].mxu0  ;;  %v3852_v9 = vld [vmem:[%s6136_s16 + $0x10] sm:$0xff] }
 0x264   : > { %v3259_v44 = vadd.f32 %v5981_v46, %v3258_v63  ;;  %v4604_v0 = vpop.f32.mrb[130].mxu1  ;;  %v3100_v26 = vpop.f32.mrb[66].mxu0  ;;  %v3850_v63 = vld [vmem:[%s6136_s16] sm:$0xff] }
 0x265   : > { %6589 = vst [vmem:[#allocation19_spill] sm:$0xff] %v6140_v25  ;;  %v3717_v53 = vmul.f32 %v6129_v16, %v3267_v59  ;;  %v3270_v19 = vadd.f32 %v5997_v38, %v4604_v0  ;;  %v3261_v49 = vpop.f32.mrb[131].mxu1  ;;  %v6153_v22 = vadd.f32 %v3100_v26, %v5918_v15  ;;  %v3102_v56 = vpop.f32.mrb[67].mxu0  ;;  %v3853_v25 = vld [vmem:[%s6136_s16 + $0x18] sm:$0xff] }
 0x266   : > { %v3715_v36 = vmul.f32 %v6129_v16, %v3259_v44  ;;  %v3262_v58 = vadd.f32 %v5987_v7, %v3261_v49  ;;  %v3851_v44 = vld [vmem:[%s6136_s16 + $0x8] sm:$0xff] }
 0x267   : > { %v3788_v46 = vadd.f32 %v6145_v6, %v3717_v53  ;;  %v3718_v59 = vmul.f32 %v6129_v16, %v3270_v19 }
 0x268   : > { %v3786_v2 = vadd.f32 %v6145_v6, %v3715_v36  ;;  %v3716_v38 = vmul.f32 %v6129_v16, %v3262_v58 }
 0x269   : > { %v3916_v0 = vadd.f32 %v3852_v9, %v3788_v46  ;;  %v3789_v60 = vadd.f32 %v6145_v6, %v3718_v59 }
 0x26a   : > { %v3914_v15 = vadd.f32 %v3850_v63, %v3786_v2  ;;  %v3787_v7 = vadd.f32 %v6145_v6, %v3716_v38  ;;  %v4607_v56 = vpop.f32.mrb[132].mxu1  ;;  %v3105_v19 = vpop.f32.mrb[68].mxu0 }
 0x26b   : > { %v3980_v26 = vmax.f32 %v3916_v0, 0.0  ;;  %v3917_v53 = vadd.f32 %v3853_v25, %v3789_v60  ;;  %v3283_v49 = vadd.f32 %v6011_v55, %v4607_v56  ;;  %v3274_v9 = vpop.f32.mrb[133].mxu1  ;;  %v6174_v46 = vadd.f32 %v3105_v19, %v5923_v24  ;;  %v3107_v59 = vpop.f32.mrb[69].mxu0  ;;  %v3856_v24 = vld [vmem:[%s6136_s16 + $0x30] sm:$0xff] }
 0x26c   : > { %v3978_v36 = vmax.f32 %v3914_v15, 0.0  ;;  %v3915_v58 = vadd.f32 %v3851_v44, %v3787_v7  ;;  %v3275_v2 = vadd.f32 %v6001_v52, %v3274_v9  ;;  %v4608_v63 = vpop.f32.mrb[134].mxu1  ;;  %v3108_v25 = vpop.f32.mrb[70].mxu0 }
 0x26d   : > { %4044 = vst [vmem:[%s6169_s18 + $0x10] sm:$0xff] %v3980_v26  ;;  %v3981_v38 = vmax.f32 %v3917_v53, 0.0  ;;  %v3721_v60 = vmul.f32 %v6129_v16, %v3283_v49  ;;  %v3286_v55 = vadd.f32 %v6017_v51, %v4608_v63  ;;  %v3277_v0 = vpop.f32.mrb[135].mxu1  ;;  %v6184_v52 = vadd.f32 %v3108_v25, %v5926_v27  ;;  %v3110_v7 = vpop.f32.mrb[71].mxu0  ;;  %v3854_v53 = vld [vmem:[%s6136_s16 + $0x20] sm:$0xff]  ;;  %v3857_v49 = vld [vmem:[%s6136_s16 + $0x38] sm:$0xff] }
 0x26e   : > { %4042 = vst [vmem:[%s6169_s18] sm:$0xff] %v3978_v36  ;;  %v3979_v44 = vmax.f32 %v3915_v58, 0.0  ;;  %v3719_v15 = vmul.f32 %v6129_v16, %v3275_v2  ;;  %v3278_v56 = vadd.f32 %v6007_v17, %v3277_v0  ;;  %v3855_v27 = vld [vmem:[%s6136_s16 + $0x28] sm:$0xff] }
 0x26f   : > { %4045 = vst [vmem:[%s6169_s18 + $0x18] sm:$0xff] %v3981_v38  ;;  %v3792_v26 = vadd.f32 %v6145_v6, %v3721_v60  ;;  %v3722_v19 = vmul.f32 %v6129_v16, %v3286_v55 }
 0x270   : > { %4043 = vst [vmem:[%s6169_s18 + $0x8] sm:$0xff] %v3979_v44  ;;  %v3790_v51 = vadd.f32 %v6145_v6, %v3719_v15  ;;  %v3720_v9 = vmul.f32 %v6129_v16, %v3278_v56 }
 0x271   : > { %v3920_v36 = vadd.f32 %v3856_v24, %v3792_v26  ;;  %v3793_v58 = vadd.f32 %v6145_v6, %v3722_v19 }
 0x272   : > { %v3918_v59 = vadd.f32 %v3854_v53, %v3790_v51  ;;  %v3791_v17 = vadd.f32 %v6145_v6, %v3720_v9  ;;  %v4611_v2 = vpop.f32.mrb[136].mxu1  ;;  %v3113_v60 = vpop.f32.mrb[72].mxu0 }
 0x273   : > { %v3984_v63 = vmax.f32 %v3920_v36, 0.0  ;;  %v3921_v38 = vadd.f32 %v3857_v49, %v3793_v58  ;;  %v3299_v25 = vadd.f32 %v6028_v48, %v4611_v2  ;;  %v3290_v55 = vpop.f32.mrb[137].mxu1  ;;  %v6200_v24 = vadd.f32 %v3113_v60, %v5931_v37  ;;  %v3115_v15 = vpop.f32.mrb[73].mxu0  ;;  %v3860_v37 = vld [vmem:[%s6136_s16 + $0x50] sm:$0xff]  ;;  %v3861_v2 = vld [vmem:[%s6136_s16 + $0x58] sm:$0xff] }
 0x274   : > { %v3982_v0 = vmax.f32 %v3918_v59, 0.0  ;;  %v3919_v44 = vadd.f32 %v3855_v27, %v3791_v17  ;;  %v3291_v7 = vadd.f32 %v6021_v4, %v3290_v55  ;;  %v4612_v56 = vpop.f32.mrb[138].mxu1  ;;  %v3116_v19 = vpop.f32.mrb[74].mxu0  ;;  %v3858_v59 = vld [vmem:[%s6136_s16 + $0x40] sm:$0xff] }
 0x275   : > { %4048 = vst [vmem:[%s6169_s18 + $0x30] sm:$0xff] %v3984_v63  ;;  %v3985_v26 = vmax.f32 %v3921_v38, 0.0  ;;  %v3725_v53 = vmul.f32 %v6129_v16, %v3299_v25  ;;  %v3302_v48 = vadd.f32 %v6031_v35, %v4612_v56  ;;  %v3293_v51 = vpop.f32.mrb[139].mxu1  ;;  %v6210_v4 = vadd.f32 %v3116_v19, %v5934_v42  ;;  %v3118_v36 = vpop.f32.mrb[75].mxu0  ;;  %v3859_v42 = vld [vmem:[%s6136_s16 + $0x48] sm:$0xff] }
 0x276   : > { %4046 = vst [vmem:[%s6169_s18 + $0x20] sm:$0xff] %v3982_v0  ;;  %v3983_v49 = vmax.f32 %v3919_v44, 0.0  ;;  %v3723_v9 = vmul.f32 %v6129_v16, %v3291_v7  ;;  %v3294_v58 = vadd.f32 %v6025_v32, %v3293_v51 }
 0x277   : > { %4049 = vst [vmem:[%s6169_s18 + $0x38] sm:$0xff] %v3985_v26  ;;  %v3796_v27 = vadd.f32 %v6145_v6, %v3725_v53  ;;  %v3726_v17 = vmul.f32 %v6129_v16, %v3302_v48 }
 0x278   : > { %4047 = vst [vmem:[%s6169_s18 + $0x28] sm:$0xff] %v3983_v49  ;;  %v3794_v35 = vadd.f32 %v6145_v6, %v3723_v9  ;;  %v3724_v63 = vmul.f32 %v6129_v16, %v3294_v58 }
 0x279   : > { %v3924_v38 = vadd.f32 %v3860_v37, %v3796_v27  ;;  %v3797_v60 = vadd.f32 %v6145_v6, %v3726_v17 }
 0x27a   : > { %v3922_v25 = vadd.f32 %v3858_v59, %v3794_v35  ;;  %v3795_v32 = vadd.f32 %v6145_v6, %v3724_v63  ;;  %v4615_v55 = vpop.f32.mrb[140].mxu1  ;;  %v3121_v15 = vpop.f32.mrb[76].mxu0  ;;  %v3862_v63 = vld [vmem:[%s6136_s16 + $0x60] sm:$0xff] }
 0x27b   : > { %v3988_v0 = vmax.f32 %v3924_v38, 0.0  ;;  %v3925_v44 = vadd.f32 %v3861_v2, %v3797_v60  ;;  %v3315_v7 = vadd.f32 %v6040_v10, %v4615_v55  ;;  %v3306_v56 = vpop.f32.mrb[141].mxu1  ;;  %v6226_v19 = vadd.f32 %v3121_v15, %v5939_v54  ;;  %v3123_v48 = vpop.f32.mrb[77].mxu0  ;;  %v3864_v54 = vld [vmem:[%s6136_s16 + $0x70] sm:$0xff]  ;;  %v3865_v60 = vld [vmem:[%s6136_s16 + $0x78] sm:$0xff] }
 0x27c   : > { %v3986_v26 = vmax.f32 %v3922_v25, 0.0  ;;  %v3923_v53 = vadd.f32 %v3859_v42, %v3795_v32  ;;  %v3307_v51 = vadd.f32 %v6034_v47, %v3306_v56  ;;  %v4616_v49 = vpop.f32.mrb[142].mxu1  ;;  %v3124_v36 = vpop.f32.mrb[78].mxu0 }
 0x27d   : > { %4052 = vst [vmem:[%s6169_s18 + $0x50] sm:$0xff] %v3988_v0  ;;  %v3989_v37 = vmax.f32 %v3925_v44, 0.0  ;;  %v3729_v9 = vmul.f32 %v6129_v16, %v3315_v7  ;;  %v3318_v10 = vadd.f32 %v6043_v13, %v4616_v49  ;;  %v3309_v58 = vpop.f32.mrb[143].mxu1  ;;  %v6236_v47 = vadd.f32 %v3124_v36, %v5942_v62  ;;  %v3126_v17 = vpop.f32.mrb[79].mxu0  ;;  %v3863_v62 = vld [vmem:[%s6136_s16 + $0x68] sm:$0xff] }
 0x27e   : > { %4050 = vst [vmem:[%s6169_s18 + $0x40] sm:$0xff] %v3986_v26  ;;  %v3987_v27 = vmax.f32 %v3923_v53, 0.0  ;;  %v3727_v59 = vmul.f32 %v6129_v16, %v3307_v51  ;;  %v3310_v35 = vadd.f32 %v6037_v40, %v3309_v58 }
 0x27f   : > { %4053 = vst [vmem:[%s6169_s18 + $0x58] sm:$0xff] %v3989_v37  ;;  %v3800_v2 = vadd.f32 %v6145_v6, %v3729_v9  ;;  %v3730_v38 = vmul.f32 %v6129_v16, %v3318_v10 }
 0x280   : > { %4051 = vst [vmem:[%s6169_s18 + $0x48] sm:$0xff] %v3987_v27  ;;  %v3798_v13 = vadd.f32 %v6145_v6, %v3727_v59  ;;  %v3728_v42 = vmul.f32 %v6129_v16, %v3310_v35 }
 0x281   : > { %v3928_v25 = vadd.f32 %v3864_v54, %v3800_v2  ;;  %v3801_v32 = vadd.f32 %v6145_v6, %v3730_v38 }
 0x282   : > { %v3926_v55 = vadd.f32 %v3862_v63, %v3798_v13  ;;  %v3799_v40 = vadd.f32 %v6145_v6, %v3728_v42  ;;  %v4619_v0 = vpop.f32.mrb[144].mxu1  ;;  %v3129_v7 = vpop.f32.mrb[80].mxu0  ;;  %v3866_v63 = vld [vmem:[%s6136_s16 + $0x80] sm:$0xff]  ;;  %v3869_v13 = vld [vmem:[%s6136_s16 + $0x98] sm:$0xff] }
 0x283   : > { %v3992_v44 = vmax.f32 %v3928_v25, 0.0  ;;  %v3929_v15 = vadd.f32 %v3865_v60, %v3801_v32  ;;  %v3331_v56 = vadd.f32 %v6058_v8, %v4619_v0  ;;  %v3322_v26 = vpop.f32.mrb[145].mxu1  ;;  %v6252_v51 = vadd.f32 %v3129_v7, %v5947_v11  ;;  %v3131_v49 = vpop.f32.mrb[81].mxu0  ;;  %v3868_v11 = vld [vmem:[%s6136_s16 + $0x90] sm:$0xff] }
 0x284   : > { %v3990_v53 = vmax.f32 %v3926_v55, 0.0  ;;  %v3927_v48 = vadd.f32 %v3863_v62, %v3799_v40  ;;  %v3323_v37 = vadd.f32 %v6048_v33, %v3322_v26  ;;  %v4620_v9 = vpop.f32.mrb[146].mxu1  ;;  %v3132_v58 = vpop.f32.mrb[82].mxu0 }
 0x285   : > { %4056 = vst [vmem:[%s6169_s18 + $0x70] sm:$0xff] %v3992_v44  ;;  %v3993_v36 = vmax.f32 %v3929_v15, 0.0  ;;  %v3733_v10 = vmul.f32 %v6129_v16, %v3331_v56  ;;  %v3334_v8 = vadd.f32 %v6063_v29, %v4620_v9  ;;  %v3325_v27 = vpop.f32.mrb[147].mxu1  ;;  %v6262_v33 = vadd.f32 %v3132_v58, %v5950_v18  ;;  %v3134_v17 = vpop.f32.mrb[83].mxu0  ;;  %v3867_v18 = vld [vmem:[%s6136_s16 + $0x88] sm:$0xff] }
 0x286   : > { %4054 = vst [vmem:[%s6169_s18 + $0x60] sm:$0xff] %v3990_v53  ;;  %v3991_v54 = vmax.f32 %v3927_v48, 0.0  ;;  %v3731_v59 = vmul.f32 %v6129_v16, %v3323_v37  ;;  %v3326_v35 = vadd.f32 %v6053_v1, %v3325_v27 }
 0x287   : > { %4057 = vst [vmem:[%s6169_s18 + $0x78] sm:$0xff] %v3993_v36  ;;  %v3804_v2 = vadd.f32 %v6145_v6, %v3733_v10  ;;  %v3734_v38 = vmul.f32 %v6129_v16, %v3334_v8 }
 0x288   : > { %4055 = vst [vmem:[%s6169_s18 + $0x68] sm:$0xff] %v3991_v54  ;;  %v3802_v29 = vadd.f32 %v6145_v6, %v3731_v59  ;;  %v3732_v60 = vmul.f32 %v6129_v16, %v3326_v35  ;;  %v3870_v59 = vld [vmem:[%s6136_s16 + $0xa0] sm:$0xff]  ;;  %v3873_v35 = vld [vmem:[%s6136_s16 + $0xb8] sm:$0xff] }
 0x289   : > { %v3932_v42 = vadd.f32 %v3868_v11, %v3804_v2  ;;  %v3805_v25 = vadd.f32 %v6145_v6, %v3734_v38 }
 0x28a   : > { %v3930_v32 = vadd.f32 %v3866_v63, %v3802_v29  ;;  %v3803_v1 = vadd.f32 %v6145_v6, %v3732_v60  ;;  %v4623_v62 = vpop.f32.mrb[148].mxu1  ;;  %v3137_v0 = vpop.f32.mrb[84].mxu0 }
 0x28b   : > { %v3996_v55 = vmax.f32 %v3932_v42, 0.0  ;;  %v3933_v40 = vadd.f32 %v3869_v13, %v3805_v25  ;;  %v3347_v44 = vadd.f32 %v6078_v23, %v4623_v62  ;;  %v3338_v15 = vpop.f32.mrb[149].mxu1  ;;  %v6278_v26 = vadd.f32 %v3137_v0, %v5955_v28  ;;  %v3139_v53 = vpop.f32.mrb[85].mxu0  ;;  %v3872_v28 = vld [vmem:[%s6136_s16 + $0xb0] sm:$0xff] }
 0x28c   : > { %v3994_v7 = vmax.f32 %v3930_v32, 0.0  ;;  %v3931_v56 = vadd.f32 %v3867_v18, %v3803_v1  ;;  %v3339_v48 = vadd.f32 %v6068_v5, %v3338_v15  ;;  %v4624_v49 = vpop.f32.mrb[150].mxu1  ;;  %v3140_v36 = vpop.f32.mrb[86].mxu0 }
 0x28d   : > { %4060 = vst [vmem:[%s6169_s18 + $0x90] sm:$0xff] %v3996_v55  ;;  %v3997_v37 = vmax.f32 %v3933_v40, 0.0  ;;  %v3737_v9 = vmul.f32 %v6129_v16, %v3347_v44  ;;  %v3350_v23 = vadd.f32 %v6083_v57, %v4624_v49  ;;  %v3341_v10 = vpop.f32.mrb[151].mxu1  ;;  %v6288_v5 = vadd.f32 %v3140_v36, %v5958_v34  ;;  %v3142_v27 = vpop.f32.mrb[87].mxu0  ;;  %v3871_v34 = vld [vmem:[%s6136_s16 + $0xa8] sm:$0xff] }
 0x28e   : > { %4058 = vst [vmem:[%s6169_s18 + $0x80] sm:$0xff] %v3994_v7  ;;  %v3995_v58 = vmax.f32 %v3931_v56, 0.0  ;;  %v3735_v8 = vmul.f32 %v6129_v16, %v3339_v48  ;;  %v3342_v54 = vadd.f32 %v6073_v43, %v3341_v10 }
 0x28f   : > { %4061 = vst [vmem:[%s6169_s18 + $0x98] sm:$0xff] %v3997_v37  ;;  %v3808_v11 = vadd.f32 %v6145_v6, %v3737_v9  ;;  %v3738_v17 = vmul.f32 %v6129_v16, %v3350_v23  ;;  %v3874_v23 = vld [vmem:[%s6136_s16 + $0xc0] sm:$0xff] }
 0x290   : > { %4059 = vst [vmem:[%s6169_s18 + $0x88] sm:$0xff] %v3995_v58  ;;  %v3806_v57 = vadd.f32 %v6145_v6, %v3735_v8  ;;  %v3736_v2 = vmul.f32 %v6129_v16, %v3342_v54  ;;  %v3877_v58 = vld [vmem:[%s6136_s16 + $0xd8] sm:$0xff] }
 0x291   : > { %v3936_v63 = vadd.f32 %v3872_v28, %v3808_v11  ;;  %v3809_v38 = vadd.f32 %v6145_v6, %v3738_v17 }
 0x292   : > { %v3934_v29 = vadd.f32 %v3870_v59, %v3806_v57  ;;  %v3807_v43 = vadd.f32 %v6145_v6, %v3736_v2  ;;  %v4627_v13 = vpop.f32.mrb[152].mxu1  ;;  %v3145_v25 = vpop.f32.mrb[88].mxu0 }
 0x293   : > { %v4000_v60 = vmax.f32 %v3936_v63, 0.0  ;;  %v3937_v42 = vadd.f32 %v3873_v35, %v3809_v38  ;;  %v3363_v18 = vadd.f32 %v6098_v31, %v4627_v13  ;;  %v3354_v32 = vpop.f32.mrb[153].mxu1  ;;  %v6304_v55 = vadd.f32 %v3145_v25, %v5963_v50  ;;  %v3147_v40 = vpop.f32.mrb[89].mxu0  ;;  %v3876_v50 = vld [vmem:[%s6136_s16 + $0xd0] sm:$0xff] }
 0x294   : > { %v3998_v1 = vmax.f32 %v3934_v29, 0.0  ;;  %v3935_v62 = vadd.f32 %v3871_v34, %v3807_v43  ;;  %v3355_v0 = vadd.f32 %v6088_v20, %v3354_v32  ;;  %v4628_v44 = vpop.f32.mrb[154].mxu1  ;;  %v3148_v56 = vpop.f32.mrb[90].mxu0 }
 0x295   : > { %4064 = vst [vmem:[%s6169_s18 + $0xb0] sm:$0xff] %v4000_v60  ;;  %v4001_v15 = vmax.f32 %v3937_v42, 0.0  ;;  %v3741_v7 = vmul.f32 %v6129_v16, %v3363_v18  ;;  %v3366_v31 = vadd.f32 %v6103_v39, %v4628_v44  ;;  %v3357_v53 = vpop.f32.mrb[155].mxu1  ;;  %v6314_v20 = vadd.f32 %v3148_v56, %v5966_v61  ;;  %v3150_v37 = vpop.f32.mrb[91].mxu0  ;;  %v3875_v61 = vld [vmem:[%s6136_s16 + $0xc8] sm:$0xff]  ;;  %v3878_v44 = vld [vmem:[%s6136_s16 + $0xe0] sm:$0xff] }
 0x296   : > { %4062 = vst [vmem:[%s6169_s18 + $0xa0] sm:$0xff] %v3998_v1  ;;  %v3999_v48 = vmax.f32 %v3935_v62, 0.0  ;;  %v3739_v49 = vmul.f32 %v6129_v16, %v3355_v0  ;;  %v3358_v9 = vadd.f32 %v6093_v41, %v3357_v53 }
 0x297   : > { %4065 = vst [vmem:[%s6169_s18 + $0xb8] sm:$0xff] %v4001_v15  ;;  %v3812_v36 = vadd.f32 %v6145_v6, %v3741_v7  ;;  %v3742_v10 = vmul.f32 %v6129_v16, %v3366_v31  ;;  %v3881_v7 = vld [vmem:[%s6136_s16 + $0xf8] sm:$0xff] }
 0x298   : > { %4063 = vst [vmem:[%s6169_s18 + $0xa8] sm:$0xff] %v3999_v48  ;;  %v3810_v39 = vadd.f32 %v6145_v6, %v3739_v49  ;;  %v3740_v28 = vmul.f32 %v6129_v16, %v3358_v9 }
 0x299   : > { %v3940_v8 = vadd.f32 %v3876_v50, %v3812_v36  ;;  %v3813_v27 = vadd.f32 %v6145_v6, %v3742_v10 }
 0x29a   : > { %v3938_v54 = vadd.f32 %v3874_v23, %v3810_v39  ;;  %v3811_v41 = vadd.f32 %v6145_v6, %v3740_v28  ;;  %v4631_v11 = vpop.f32.mrb[156].mxu1  ;;  %v3153_v57 = vpop.f32.mrb[92].mxu0 }
 0x29b   : > { %v4004_v59 = vmax.f32 %v3940_v8, 0.0  ;;  %v3941_v17 = vadd.f32 %v3877_v58, %v3813_v27  ;;  %v3379_v35 = vadd.f32 %v6118_v12, %v4631_v11  ;;  %v3370_v2 = vpop.f32.mrb[157].mxu1  ;;  %v6330_v34 = vadd.f32 %v3153_v57, %v5971_v14  ;;  %v3155_v29 = vpop.f32.mrb[93].mxu0  ;;  %v3880_v14 = vld [vmem:[%s6136_s16 + $0xf0] sm:$0xff]  ;;  %v6590_v58 = vld [vmem:[#allocation3_spill] sm:$0xff] }
 0x29c   : > { %v4002_v63 = vmax.f32 %v3938_v54, 0.0  ;;  %v3939_v38 = vadd.f32 %v3875_v61, %v3811_v41  ;;  %v3371_v43 = vadd.f32 %v6108_v45, %v3370_v2  ;;  %v4632_v13 = vpop.f32.mrb[158].mxu1  ;;  %v3156_v25 = vpop.f32.mrb[94].mxu0  ;;  %v6591_v27 = vld [vmem:[#allocation19_spill] sm:$0xff] }
 0x29d   : > { %4068 = vst [vmem:[%s6169_s18 + $0xd0] sm:$0xff] %v4004_v59  ;;  %v4005_v60 = vmax.f32 %v3941_v17, 0.0  ;;  %v3745_v42 = vmul.f32 %v6129_v16, %v3379_v35  ;;  %v3382_v12 = vadd.f32 %v6123_v30, %v4632_v13  ;;  %v3373_v18 = vpop.f32.mrb[159].mxu1  ;;  %v6340_v45 = vadd.f32 %v3156_v25, %v5974_v21  ;;  %v3158_v62 = vpop.f32.mrb[95].mxu0  ;;  %v3879_v21 = vld [vmem:[%s6136_s16 + $0xe8] sm:$0xff]  ;;  %v3884_v35 = vld [vmem:[%s6136_s16 + $0x110] sm:$0xff] }
 0x29e   : > { %4066 = vst [vmem:[%s6169_s18 + $0xc0] sm:$0xff] %v4002_v63  ;;  %v4003_v32 = vmax.f32 %v3939_v38, 0.0  ;;  %v3743_v1 = vmul.f32 %v6129_v16, %v3371_v43  ;;  %v3374_v40 = vadd.f32 %v6113_v3, %v3373_v18  ;;  %v6592_v63 = vld [vmem:[#allocation4_spill] sm:$0xff]  ;;  %v3885_v25 = vld [vmem:[%s6136_s16 + $0x118] sm:$0xff] }
 0x29f   : > { %4069 = vst [vmem:[%s6169_s18 + $0xd8] sm:$0xff] %v4005_v60  ;;  %v3816_v0 = vadd.f32 %v6145_v6, %v3745_v42  ;;  %v3746_v15 = vmul.f32 %v6129_v16, %v3382_v12  ;;  %v3882_v60 = vld [vmem:[%s6136_s16 + $0x100] sm:$0xff] }
 0x2a0   : > { %4067 = vst [vmem:[%s6169_s18 + $0xc8] sm:$0xff] %v4003_v32  ;;  %v3814_v30 = vadd.f32 %v6145_v6, %v3743_v1  ;;  %v3744_v56 = vmul.f32 %v6129_v16, %v3374_v40 }
 0x2a1   : > { %v3944_v31 = vadd.f32 %v3880_v14, %v3816_v0  ;;  %v3817_v53 = vadd.f32 %v6145_v6, %v3746_v15  ;;  %v3883_v14 = vld [vmem:[%s6136_s16 + $0x108] sm:$0xff] }
 0x2a2   : > { %v3942_v48 = vadd.f32 %v3878_v44, %v3814_v30  ;;  %v3815_v3 = vadd.f32 %v6145_v6, %v3744_v56  ;;  %v4635_v50 = vpop.f32.mrb[160].mxu1  ;;  %v3161_v9 = vpop.f32.mrb[96].mxu0 }
 0x2a3   : > { %v4008_v49 = vmax.f32 %v3944_v31, 0.0  ;;  %v3945_v37 = vadd.f32 %v3881_v7, %v3817_v53  ;;  %v3395_v36 = vadd.f32 %v6174_v46, %v4635_v50  ;;  %v3386_v23 = vpop.f32.mrb[161].mxu1  ;;  %v6356_v28 = vadd.f32 %v3161_v9, %v6590_v58  ;;  %v3163_v8 = vpop.f32.mrb[97].mxu0  ;;  %v6593_v31 = vld [vmem:[#allocation5_spill] sm:$0xff] }
 0x2a4   : > { %v4006_v10 = vmax.f32 %v3942_v48, 0.0  ;;  %v3943_v39 = vadd.f32 %v3879_v21, %v3815_v3  ;;  %v3387_v61 = vadd.f32 %v6591_v27, %v3386_v23  ;;  %v4636_v54 = vpop.f32.mrb[162].mxu1  ;;  %v3164_v59 = vpop.f32.mrb[98].mxu0  ;;  %v3888_v23 = vld [vmem:[%s6136_s16 + $0x130] sm:$0xff] }
 0x2a5   : > { %4072 = vst [vmem:[%s6169_s18 + $0xf0] sm:$0xff] %v4008_v49  ;;  %v4009_v41 = vmax.f32 %v3945_v37, 0.0  ;;  %v3749_v11 = vmul.f32 %v6129_v16, %v3395_v36  ;;  %v3398_v46 = vadd.f32 %v6184_v52, %v4636_v54  ;;  %v3389_v17 = vpop.f32.mrb[163].mxu1  ;;  %v6366_v38 = vadd.f32 %v3164_v59, %v6592_v63  ;;  %v3166_v29 = vpop.f32.mrb[99].mxu0 }
 0x2a6   : > { %4070 = vst [vmem:[%s6169_s18 + $0xe0] sm:$0xff] %v4006_v10  ;;  %v4007_v57 = vmax.f32 %v3943_v39, 0.0  ;;  %v3747_v2 = vmul.f32 %v6129_v16, %v3387_v61  ;;  %v3390_v43 = vadd.f32 %v6153_v22, %v3389_v17  ;;  %v6594_v39 = vld [vmem:[#allocation6_spill] sm:$0xff]  ;;  %v3886_v61 = vld [vmem:[%s6136_s16 + $0x120] sm:$0xff]  ;;  %v3887_v17 = vld [vmem:[%s6136_s16 + $0x128] sm:$0xff] }
 0x2a7   : > { %4073 = vst [vmem:[%s6169_s18 + $0xf8] sm:$0xff] %v4009_v41  ;;  %v3820_v13 = vadd.f32 %v6145_v6, %v3749_v11  ;;  %v3750_v42 = vmul.f32 %v6129_v16, %v3398_v46  ;;  %v3889_v41 = vld [vmem:[%s6136_s16 + $0x138] sm:$0xff] }
 0x2a8   : > { %4071 = vst [vmem:[%s6169_s18 + $0xe8] sm:$0xff] %v4007_v57  ;;  %v3818_v52 = vadd.f32 %v6145_v6, %v3747_v2  ;;  %v3748_v12 = vmul.f32 %v6129_v16, %v3390_v43 }
 0x2a9   : > { %v3948_v18 = vadd.f32 %v3884_v35, %v3820_v13  ;;  %v3821_v32 = vadd.f32 %v6145_v6, %v3750_v42 }
 0x2aa   : > { %v3946_v1 = vadd.f32 %v3882_v60, %v3818_v52  ;;  %v3819_v22 = vadd.f32 %v6145_v6, %v3748_v12  ;;  %v4639_v62 = vpop.f32.mrb[164].mxu1  ;;  %v3169_v44 = vpop.f32.mrb[100].mxu0  ;;  %v6595_v52 = vld [vmem:[#allocation7_spill] sm:$0xff] }
 0x2ab   : > { %v4012_v40 = vmax.f32 %v3948_v18, 0.0  ;;  %v3949_v0 = vadd.f32 %v3885_v25, %v3821_v32  ;;  %v3411_v15 = vadd.f32 %v6226_v19, %v4639_v62  ;;  %v3402_v30 = vpop.f32.mrb[165].mxu1  ;;  %v6382_v53 = vadd.f32 %v3169_v44, %v6593_v31  ;;  %v3171_v21 = vpop.f32.mrb[101].mxu0  ;;  %v3890_v31 = vld [vmem:[%s6136_s16 + $0x140] sm:$0xff] }
 0x2ac   : > { %v4010_v7 = vmax.f32 %v3946_v1, 0.0  ;;  %v3947_v56 = vadd.f32 %v3883_v14, %v3819_v22  ;;  %v3403_v48 = vadd.f32 %v6200_v24, %v3402_v30  ;;  %v4640_v3 = vpop.f32.mrb[166].mxu1  ;;  %v3172_v37 = vpop.f32.mrb[102].mxu0 }
 0x2ad   : > { %4076 = vst [vmem:[%s6169_s18 + $0x110] sm:$0xff] %v4012_v40  ;;  %v4013_v50 = vmax.f32 %v3949_v0, 0.0  ;;  %v3753_v49 = vmul.f32 %v6129_v16, %v3411_v15  ;;  %v3414_v19 = vadd.f32 %v6236_v47, %v4640_v3  ;;  %v3405_v9 = vpop.f32.mrb[167].mxu1  ;;  %v6392_v24 = vadd.f32 %v3172_v37, %v6594_v39  ;;  %v3174_v58 = vpop.f32.mrb[103].mxu0  ;;  %v3892_v0 = vld [vmem:[%s6136_s16 + $0x150] sm:$0xff]  ;;  %v6596_v15 = vld [vmem:[#allocation8_spill] sm:$0xff] }
 0x2ae   : > { %4074 = vst [vmem:[%s6169_s18 + $0x100] sm:$0xff] %v4010_v7  ;;  %v4011_v36 = vmax.f32 %v3947_v56, 0.0  ;;  %v3751_v10 = vmul.f32 %v6129_v16, %v3403_v48  ;;  %v3406_v8 = vadd.f32 %v6210_v4, %v3405_v9  ;;  %v3893_v48 = vld [vmem:[%s6136_s16 + $0x158] sm:$0xff]  ;;  %v3891_v37 = vld [vmem:[%s6136_s16 + $0x148] sm:$0xff] }
 0x2af   : > { %4077 = vst [vmem:[%s6169_s18 + $0x118] sm:$0xff] %v4013_v50  ;;  %v3824_v27 = vadd.f32 %v6145_v6, %v3753_v49  ;;  %v3754_v54 = vmul.f32 %v6129_v16, %v3414_v19 }
 0x2b0   : > { %4075 = vst [vmem:[%s6169_s18 + $0x108] sm:$0xff] %v4011_v36  ;;  %v3822_v47 = vadd.f32 %v6145_v6, %v3751_v10  ;;  %v3752_v11 = vmul.f32 %v6129_v16, %v3406_v8 }
 0x2b1   : > { %v3952_v59 = vadd.f32 %v3888_v23, %v3824_v27  ;;  %v3825_v46 = vadd.f32 %v6145_v6, %v3754_v54 }
 0x2b2   : > { %v3950_v57 = vadd.f32 %v3886_v61, %v3822_v47  ;;  %v3823_v4 = vadd.f32 %v6145_v6, %v3752_v11  ;;  %v4643_v35 = vpop.f32.mrb[168].mxu1  ;;  %v3177_v29 = vpop.f32.mrb[104].mxu0  ;;  %v6597_v61 = vld [vmem:[#allocation9_spill] sm:$0xff] }
 0x2b3   : > { %v4016_v2 = vmax.f32 %v3952_v59, 0.0  ;;  %v3953_v63 = vadd.f32 %v3889_v41, %v3825_v46  ;;  %v3427_v43 = vadd.f32 %v6278_v26, %v4643_v35  ;;  %v3418_v13 = vpop.f32.mrb[169].mxu1  ;;  %v6408_v25 = vadd.f32 %v3177_v29, %v6595_v52  ;;  %v3179_v12 = vpop.f32.mrb[105].mxu0  ;;  %v3896_v35 = vld [vmem:[%s6136_s16 + $0x170] sm:$0xff]  ;;  %v3897_v52 = vld [vmem:[%s6136_s16 + $0x178] sm:$0xff] }
 0x2b4   : > { %v4014_v60 = vmax.f32 %v3950_v57, 0.0  ;;  %v3951_v42 = vadd.f32 %v3887_v17, %v3823_v4  ;;  %v3419_v18 = vadd.f32 %v6252_v51, %v3418_v13  ;;  %v4644_v32 = vpop.f32.mrb[170].mxu1  ;;  %v3180_v22 = vpop.f32.mrb[106].mxu0 }
 0x2b5   : > { %4080 = vst [vmem:[%s6169_s18 + $0x130] sm:$0xff] %v4016_v2  ;;  %v4017_v14 = vmax.f32 %v3953_v63, 0.0  ;;  %v3757_v1 = vmul.f32 %v6129_v16, %v3427_v43  ;;  %v3430_v26 = vadd.f32 %v6288_v5, %v4644_v32  ;;  %v3421_v62 = vpop.f32.mrb[171].mxu1  ;;  %v6418_v51 = vadd.f32 %v3180_v22, %v6596_v15  ;;  %v3182_v30 = vpop.f32.mrb[107].mxu0  ;;  %v6598_v63 = vld [vmem:[#allocation10_spill] sm:$0xff] }
 0x2b6   : > { %4078 = vst [vmem:[%s6169_s18 + $0x120] sm:$0xff] %v4014_v60  ;;  %v4015_v40 = vmax.f32 %v3951_v42, 0.0  ;;  %v3755_v44 = vmul.f32 %v6129_v16, %v3419_v18  ;;  %v3422_v7 = vadd.f32 %v6262_v33, %v3421_v62  ;;  %v3894_v60 = vld [vmem:[%s6136_s16 + $0x160] sm:$0xff] }
 0x2b7   : > { %4081 = vst [vmem:[%s6169_s18 + $0x138] sm:$0xff] %v4017_v14  ;;  %v3828_v56 = vadd.f32 %v6145_v6, %v3757_v1  ;;  %v3758_v21 = vmul.f32 %v6129_v16, %v3430_v26  ;;  %v3895_v14 = vld [vmem:[%s6136_s16 + $0x168] sm:$0xff] }
 0x2b8   : > { %4079 = vst [vmem:[%s6169_s18 + $0x128] sm:$0xff] %v4015_v40  ;;  %v3826_v5 = vadd.f32 %v6145_v6, %v3755_v44  ;;  %v3756_v3 = vmul.f32 %v6129_v16, %v3422_v7  ;;  %v6599_v7 = vld [vmem:[#allocation11_spill] sm:$0xff] }
 0x2b9   : > { %v3956_v50 = vadd.f32 %v3892_v0, %v3828_v56  ;;  %v3829_v49 = vadd.f32 %v6145_v6, %v3758_v21 }
 0x2ba   : > { %v3954_v19 = vadd.f32 %v3890_v31, %v3826_v5  ;;  %v3827_v33 = vadd.f32 %v6145_v6, %v3756_v3  ;;  %v4647_v9 = vpop.f32.mrb[172].mxu1  ;;  %v3185_v10 = vpop.f32.mrb[108].mxu0 }
 0x2bb   : > { %v4020_v36 = vmax.f32 %v3956_v50, 0.0  ;;  %v3957_v23 = vadd.f32 %v3893_v48, %v3829_v49  ;;  %v3443_v39 = vadd.f32 %v6330_v34, %v4647_v9  ;;  %v3434_v58 = vpop.f32.mrb[173].mxu1  ;;  %v6434_v54 = vadd.f32 %v3185_v10, %v6597_v61  ;;  %v3187_v47 = vpop.f32.mrb[109].mxu0  ;;  %v6600_v9 = vld [vmem:[#allocation12_spill] sm:$0xff] }
 0x2bc   : > { %v4018_v8 = vmax.f32 %v3954_v19, 0.0  ;;  %v3955_v27 = vadd.f32 %v3891_v37, %v3827_v33  ;;  %v3435_v41 = vadd.f32 %v6304_v55, %v3434_v58  ;;  %v4648_v11 = vpop.f32.mrb[174].mxu1  ;;  %v3188_v17 = vpop.f32.mrb[110].mxu0  ;;  %v3900_v19 = vld [vmem:[%s6136_s16 + $0x190] sm:$0xff] }
 0x2bd   : > { %4084 = vst [vmem:[%s6169_s18 + $0x150] sm:$0xff] %v4020_v36  ;;  %v4021_v59 = vmax.f32 %v3957_v23, 0.0  ;;  %v3761_v46 = vmul.f32 %v6129_v16, %v3443_v39  ;;  %v3446_v34 = vadd.f32 %v6340_v45, %v4648_v11  ;;  %v3437_v57 = vpop.f32.mrb[175].mxu1  ;;  %v6444_v55 = vadd.f32 %v3188_v17, %v6598_v63  ;;  %v3190_v29 = vpop.f32.mrb[111].mxu0  ;;  %v3898_v39 = vld [vmem:[%s6136_s16 + $0x180] sm:$0xff]  ;;  %v6601_v63 = vld [vmem:[#allocation13_spill] sm:$0xff] }
 0x2be   : > { %4082 = vst [vmem:[%s6169_s18 + $0x140] sm:$0xff] %v4018_v8  ;;  %v4019_v4 = vmax.f32 %v3955_v27, 0.0  ;;  %v3759_v2 = vmul.f32 %v6129_v16, %v3435_v41  ;;  %v3438_v43 = vadd.f32 %v6314_v20, %v3437_v57  ;;  %v3901_v8 = vld [vmem:[%s6136_s16 + $0x198] sm:$0xff]  ;;  %v3899_v41 = vld [vmem:[%s6136_s16 + $0x188] sm:$0xff] }
 0x2bf   : > { %4085 = vst [vmem:[%s6169_s18 + $0x158] sm:$0xff] %v4021_v59  ;;  %v3832_v13 = vadd.f32 %v6145_v6, %v3761_v46  ;;  %v3762_v42 = vmul.f32 %v6129_v16, %v3446_v34 }
 0x2c0   : > { %4083 = vst [vmem:[%s6169_s18 + $0x148] sm:$0xff] %v4019_v4  ;;  %v3830_v45 = vadd.f32 %v6145_v6, %v3759_v2  ;;  %v3760_v12 = vmul.f32 %v6129_v16, %v3438_v43 }
 0x2c1   : > { %v3960_v18 = vadd.f32 %v3896_v35, %v3832_v13  ;;  %v3833_v32 = vadd.f32 %v6145_v6, %v3762_v42 }
 0x2c2   : > { %v3958_v1 = vadd.f32 %v3894_v60, %v3830_v45  ;;  %v3831_v20 = vadd.f32 %v6145_v6, %v3760_v12  ;;  %v4651_v22 = vpop.f32.mrb[176].mxu1  ;;  %v3193_v40 = vpop.f32.mrb[112].mxu0 }
 0x2c3   : > { %v4024_v26 = vmax.f32 %v3960_v18, 0.0  ;;  %v3961_v62 = vadd.f32 %v3897_v52, %v3833_v32  ;;  %v3459_v0 = vadd.f32 %v6382_v53, %v4651_v22  ;;  %v3450_v44 = vpop.f32.mrb[177].mxu1  ;;  %v6460_v56 = vadd.f32 %v3193_v40, %v6599_v7  ;;  %v3195_v31 = vpop.f32.mrb[113].mxu0  ;;  %v3904_v32 = vld [vmem:[%s6136_s16 + $0x1b0] sm:$0xff]  ;;  %v3903_v7 = vld [vmem:[%s6136_s16 + $0x1a8] sm:$0xff] }
 0x2c4   : > { %v4022_v15 = vmax.f32 %v3958_v1, 0.0  ;;  %v3959_v30 = vadd.f32 %v3895_v14, %v3831_v20  ;;  %v3451_v21 = vadd.f32 %v6356_v28, %v3450_v44  ;;  %v4652_v5 = vpop.f32.mrb[178].mxu1  ;;  %v3196_v50 = vpop.f32.mrb[114].mxu0  ;;  %v6602_v1 = vld [vmem:[#allocation14_spill] sm:$0xff] }
 0x2c5   : > { %4088 = vst [vmem:[%s6169_s18 + $0x170] sm:$0xff] %v4024_v26  ;;  %v4025_v48 = vmax.f32 %v3961_v62, 0.0  ;;  %v3765_v3 = vmul.f32 %v6129_v16, %v3459_v0  ;;  %v3462_v53 = vadd.f32 %v6392_v24, %v4652_v5  ;;  %v3453_v49 = vpop.f32.mrb[179].mxu1  ;;  %v6470_v28 = vadd.f32 %v3196_v50, %v6600_v9  ;;  %v3198_v36 = vpop.f32.mrb[115].mxu0  ;;  %v3902_v62 = vld [vmem:[%s6136_s16 + $0x1a0] sm:$0xff]  ;;  %v3905_v0 = vld [vmem:[%s6136_s16 + $0x1b8] sm:$0xff] }
 0x2c6   : > { %4086 = vst [vmem:[%s6169_s18 + $0x160] sm:$0xff] %v4022_v15  ;;  %v4023_v37 = vmax.f32 %v3959_v30, 0.0  ;;  %v3763_v33 = vmul.f32 %v6129_v16, %v3451_v21  ;;  %v3454_v23 = vadd.f32 %v6366_v38, %v3453_v49 }
 0x2c7   : > { %4089 = vst [vmem:[%s6169_s18 + $0x178] sm:$0xff] %v4025_v48  ;;  %v3836_v10 = vadd.f32 %v6145_v6, %v3765_v3  ;;  %v3766_v58 = vmul.f32 %v6129_v16, %v3462_v53 }
 0x2c8   : > { %4087 = vst [vmem:[%s6169_s18 + $0x168] sm:$0xff] %v4023_v37  ;;  %v3834_v24 = vadd.f32 %v6145_v6, %v3763_v33  ;;  %v3764_v27 = vmul.f32 %v6129_v16, %v3454_v23 }
 0x2c9   : > { %v3964_v61 = vadd.f32 %v3900_v19, %v3836_v10  ;;  %v3837_v47 = vadd.f32 %v6145_v6, %v3766_v58  ;;  %v6603_v19 = vld [vmem:[#allocation15_spill] sm:$0xff] }
 0x2ca   : > { %v3962_v11 = vadd.f32 %v3898_v39, %v3834_v24  ;;  %v3835_v38 = vadd.f32 %v6145_v6, %v3764_v27  ;;  %v4655_v59 = vpop.f32.mrb[180].mxu1  ;;  %v3201_v34 = vpop.f32.mrb[116].mxu0 }
 0x2cb   : > { %v4028_v46 = vmax.f32 %v3964_v61, 0.0  ;;  %v3965_v17 = vadd.f32 %v3901_v8, %v3837_v47  ;;  %v3475_v57 = vadd.f32 %v6434_v54, %v4655_v59  ;;  %v3466_v4 = vpop.f32.mrb[181].mxu1  ;;  %v4755_v29 = vadd.f32 %v3201_v34, %v6601_v63  ;;  %v3203_v43 = vpop.f32.mrb[117].mxu0  ;;  %v3908_v61 = vld [vmem:[%s6136_s16 + $0x1d0] sm:$0xff]  ;;  %v3907_v63 = vld [vmem:[%s6136_s16 + $0x1c8] sm:$0xff] }
 0x2cc   : > { %v4026_v35 = vmax.f32 %v3962_v11, 0.0  ;;  %v3963_v2 = vadd.f32 %v3899_v41, %v3835_v38  ;;  %v3467_v13 = vadd.f32 %v6408_v25, %v3466_v4  ;;  %v4656_v60 = vpop.f32.mrb[182].mxu1  ;;  %v3204_v52 = vpop.f32.mrb[118].mxu0  ;;  %v6604_v41 = vld [vmem:[#allocation16_spill] sm:$0xff] }
 0x2cd   : > { %4092 = vst [vmem:[%s6169_s18 + $0x190] sm:$0xff] %v4028_v46  ;;  %v4029_v42 = vmax.f32 %v3965_v17, 0.0  ;;  %v3769_v45 = vmul.f32 %v6129_v16, %v3475_v57  ;;  %v3478_v54 = vadd.f32 %v6444_v55, %v4656_v60  ;;  %v3469_v12 = vpop.f32.mrb[183].mxu1  ;;  %v4756_v25 = vadd.f32 %v3204_v52, %v6602_v1  ;;  %v3206_v20 = vpop.f32.mrb[119].mxu0  ;;  %v6501_v55 = vld [vmem:[%s6569_s2] ss:$0 sm:$0xff] }
 0x2ce   : > { %4090 = vst [vmem:[%s6169_s18 + $0x180] sm:$0xff] %v4026_v35  ;;  %v4027_v18 = vmax.f32 %v3963_v2, 0.0  ;;  %v3767_v14 = vmul.f32 %v6129_v16, %v3467_v13  ;;  %v3470_v22 = vadd.f32 %v6418_v51, %v3469_v12  ;;  %v6511_v51 = vld [vmem:[%s6570_s3] ss:$0 sm:$0xff]  ;;  %v3909_v57 = vld [vmem:[%s6136_s16 + $0x1d8] sm:$0xff]  ;;  %v6605_v12 = vld [vmem:[#allocation17_spill] sm:$0xff] }
 0x2cf   : > { %4093 = vst [vmem:[%s6169_s18 + $0x198] sm:$0xff] %v4029_v42  ;;  %v3840_v26 = vadd.f32 %v6145_v6, %v3769_v45  ;;  %v3770_v40 = vmul.f32 %v6501_v55, %v3478_v54  ;;  %v3906_v46 = vld [vmem:[%s6136_s16 + $0x1c0] sm:$0xff] }
 0x2d0   : > { %4091 = vst [vmem:[%s6169_s18 + $0x188] sm:$0xff] %v4027_v18  ;;  %v3838_v16 = vadd.f32 %v6145_v6, %v3767_v14  ;;  %v3768_v44 = vmul.f32 %v6501_v55, %v3470_v22 }
 0x2d1   : > { %v3968_v15 = vadd.f32 %v3904_v32, %v3840_v26  ;;  %v3841_v30 = vadd.f32 %v6511_v51, %v3770_v40 }
 0x2d2   : > { %v3966_v31 = vadd.f32 %v3902_v62, %v3838_v16  ;;  %v3839_v21 = vadd.f32 %v6511_v51, %v3768_v44  ;;  %v4659_v5 = vpop.f32.mrb[184].mxu1  ;;  %v3209_v6 = vpop.f32.mrb[120].mxu0  ;;  %v6606_v16 = vld [vmem:[#allocation18_spill] sm:$0xff] }
 0x2d3   : > { %v4032_v48 = vmax.f32 %v3968_v15, 0.0  ;;  %v3969_v3 = vadd.f32 %v3905_v0, %v3841_v30  ;;  %v3491_v50 = vadd.f32 %v4755_v29, %v4659_v5  ;;  %v3482_v53 = vpop.f32.mrb[185].mxu1  ;;  %v4757_v33 = vadd.f32 %v3209_v6, %v6603_v19  ;;  %v3211_v9 = vpop.f32.mrb[121].mxu0  ;;  %v3910_v15 = vld [vmem:[%s6136_s16 + $0x1e0] sm:$0xff]  ;;  %v3912_v5 = vld [vmem:[%s6136_s16 + $0x1f0] sm:$0xff] }
 0x2d4   : > { %v4030_v49 = vmax.f32 %v3966_v31, 0.0  ;;  %v3967_v37 = vadd.f32 %v3903_v7, %v3839_v21  ;;  %v3483_v36 = vadd.f32 %v6460_v56, %v3482_v53  ;;  %v4660_v23 = vpop.f32.mrb[186].mxu1  ;;  %v3212_v58 = vpop.f32.mrb[122].mxu0  ;;  %v3911_v53 = vld [vmem:[%s6136_s16 + $0x1e8] sm:$0xff] }
 0x2d5   : > { %4096 = vst [vmem:[%s6169_s18 + $0x1b0] sm:$0xff] %v4032_v48  ;;  %v4033_v10 = vmax.f32 %v3969_v3, 0.0  ;;  %v3773_v39 = vmul.f32 %v6501_v55, %v3491_v50  ;;  %v3494_v24 = vadd.f32 %v4756_v25, %v4660_v23  ;;  %v3485_v8 = vpop.f32.mrb[187].mxu1  ;;  %v4758_v11 = vadd.f32 %v3212_v58, %v6604_v41  ;;  %v3214_v56 = vpop.f32.mrb[123].mxu0 }
 0x2d6   : > { %4094 = vst [vmem:[%s6169_s18 + $0x1a0] sm:$0xff] %v4030_v49  ;;  %v4031_v27 = vmax.f32 %v3967_v37, 0.0  ;;  %v3771_v47 = vmul.f32 %v6501_v55, %v3483_v36  ;;  %v3486_v38 = vadd.f32 %v6470_v28, %v3485_v8  ;;  %v3913_v49 = vld [vmem:[%s6136_s16 + $0x1f8] sm:$0xff] }
 0x2d7   : > { %4097 = vst [vmem:[%s6169_s18 + $0x1b8] sm:$0xff] %v4033_v10  ;;  %v3844_v59 = vadd.f32 %v6511_v51, %v3773_v39  ;;  %v3774_v17 = vmul.f32 %v6501_v55, %v3494_v24 }
 0x2d8   : > { %4095 = vst [vmem:[%s6169_s18 + $0x1a8] sm:$0xff] %v4031_v27  ;;  %v3842_v34 = vadd.f32 %v6511_v51, %v3771_v47  ;;  %v3772_v4 = vmul.f32 %v6501_v55, %v3486_v38 }
 0x2d9   : > { %v3972_v35 = vadd.f32 %v3908_v61, %v3844_v59  ;;  %v3845_v2 = vadd.f32 %v6511_v51, %v3774_v17 }
 0x2da   : > { %v3970_v29 = vadd.f32 %v3906_v46, %v3842_v34  ;;  %v3843_v28 = vadd.f32 %v6511_v51, %v3772_v4  ;;  %v4663_v43 = vpop.f32.mrb[188].mxu1  ;;  %v3217_v42 = vpop.f32.mrb[124].mxu0 }
 0x2db   : > { %v4036_v13 = vmax.f32 %v3972_v35, 0.0  ;;  %v3973_v60 = vadd.f32 %v3909_v57, %v3845_v2  ;;  %v3498_v45 = vpop.f32.mrb[189].mxu1  ;;  %v4759_v18 = vadd.f32 %v3217_v42, %v6605_v12  ;;  %v3219_v32 = vpop.f32.mrb[125].mxu0 }
 0x2dc   : > { %v4034_v52 = vmax.f32 %v3970_v29, 0.0  ;;  %v3971_v54 = vadd.f32 %v3907_v63, %v3843_v28  ;;  %v3499_v14 = vadd.f32 %v4757_v33, %v3498_v45  ;;  %v4664_v1 = vpop.f32.mrb[190].mxu1  ;;  %v3220_v20 = vpop.f32.mrb[126].mxu0 }
 0x2dd   : > { %4100 = vst [vmem:[%s6169_s18 + $0x1d0] sm:$0xff] %v4036_v13  ;;  %v4037_v25 = vmax.f32 %v3973_v60, 0.0  ;;  %v3501_v22 = vpop.f32.mrb[191].mxu1  ;;  %v3507_v62 = vadd.f32 %v4759_v18, %v4663_v43  ;;  %v4760_v0 = vadd.f32 %v3220_v20, %v6606_v16  ;;  %v3222_v44 = vpop.f32.mrb[127].mxu0 }
 0x2de   : > { %4098 = vst [vmem:[%s6169_s18 + $0x1c0] sm:$0xff] %v4034_v52  ;;  %v4035_v26 = vmax.f32 %v3971_v54, 0.0  ;;  %v3775_v40 = vmul.f32 %v6501_v55, %v3499_v14  ;;  %v3502_v30 = vadd.f32 %v4758_v11, %v3501_v22 }
 0x2df   : > { %4101 = vst [vmem:[%s6169_s18 + $0x1d8] sm:$0xff] %v4037_v25  ;;  %v3777_v7 = vmul.f32 %v6501_v55, %v3507_v62  ;;  %v3510_v21 = vadd.f32 %v4760_v0, %v4664_v1 }
 0x2e0   : > { %4099 = vst [vmem:[%s6169_s18 + $0x1c8] sm:$0xff] %v4035_v26  ;;  %v3846_v31 = vadd.f32 %v6511_v51, %v3775_v40  ;;  %v3776_v48 = vmul.f32 %v6501_v55, %v3502_v30 }
 0x2e1   : > { %v3848_v3 = vadd.f32 %v6511_v51, %v3777_v7  ;;  %v3778_v50 = vmul.f32 %v6501_v55, %v3510_v21 }
 0x2e2   : > { %v3974_v6 = vadd.f32 %v3910_v15, %v3846_v31  ;;  %v3847_v37 = vadd.f32 %v6511_v51, %v3776_v48 }
 0x2e3   : > { %v3976_v19 = vadd.f32 %v3912_v5, %v3848_v3  ;;  %v3849_v9 = vadd.f32 %v6511_v51, %v3778_v50 }
 0x2e4   : > { %v4038_v33 = vmax.f32 %v3974_v6, 0.0  ;;  %v3975_v36 = vadd.f32 %v3911_v53, %v3847_v37 }
 0x2e5   : > { %v4040_v23 = vmax.f32 %v3976_v19, 0.0  ;;  %v3977_v10 = vadd.f32 %v3913_v49, %v3849_v9 }
 0x2e6   : > { %4102 = vst [vmem:[%s6169_s18 + $0x1e0] sm:$0xff] %v4038_v33  ;;  %v4039_v39 = vmax.f32 %v3975_v36, 0.0 }
 0x2e7   : > { %4104 = vst [vmem:[%s6169_s18 + $0x1f0] sm:$0xff] %v4040_v23  ;;  %v4041_v58 = vmax.f32 %v3977_v10, 0.0 }
 0x2e8   : > { %4103 = vst [vmem:[%s6169_s18 + $0x1e8] sm:$0xff] %v4039_v39 }
 0x2e9   : > { %4105 = vst [vmem:[%s6169_s18 + $0x1f8] sm:$0xff] %v4041_v58 }
 0x2ea PF: > { %s15_s20 = sadd.s32 1, %s5315_s20   ;;  %s6607_s18 = smov %s5311_s19 }
 0x2eb   : > { %p12_p5 = scmp.ge.s32.totalorder %s15_s20, 4   ;;  %s6608_s19 = smov %s6610_s21 }
 0x2ed   :  { %14 = sbr.rel (!%p12_p5) target bundleno = 2 (0x2), region = 90 }

// kernel: fwd.9
= control target key start
LH: loop header
LB: loop body
LE: loop exit
PB: predicated region body
PF: predicated region fallthrough
CT: control target
= control target key end

     0   :  { %10 = vsyncpa [#allocation4], 0  ;;  %s6745_s0 = inlined_call_operand.vmem [shape: bf16[1024,896], index: 0, kind: input, shape index: {}]   ;;  %s6746_s1 = inlined_call_operand.vmem [shape: bf16[896,128], index: 1, kind: input, shape index: {}]   ;;  %s6747_s2 = inlined_call_operand.vmem [shape: f32[1,128], index: 2, kind: input, shape index: {}]   ;;  %s6748_s3 = inlined_call_operand.vmem [shape: f32[1,128], index: 3, kind: input, shape index: {}]   ;;  %s6749_s4 = inlined_call_operand.vmem [shape: f32[1024,128], index: 4, kind: input, shape index: {}]   ;;  %s6750_s5 = inlined_call_operand.hbm [shape: f32[1024,128], index: 5, kind: output, shape index: {}]  }
   0x1   :  { %12 = vsyncpa [#allocation4 + $0x1], 0  ;;  %s5447_s18 = smov 0   ;;  %s5449_s19 = smov 0  }
   0x2   :  { %s5451_s20 = smov 0   ;;  %s5453_s21 = smov 0  }
   0x3   :  { %s5455_s22 = smov 0   ;;  %s5457_s23 = smov 0  }
   0x4 LB: > { %s4251_s24 = sadd.s32 4294967295, %s5411_s23   ;;  %s4252_s25 = sadd.s32 4294967294, %s5411_s23   ;;  %s5411_s23 = sphi %s5457_s23, %s18_s23   ;;  %s5407_s22 = sphi %s5455_s22, %s6797_s22   ;;  %s5403_s21 = sphi %s5453_s21, %s6796_s21   ;;  %s5399_s20 = sphi %s5451_s20, %s6795_s20   ;;  %s5395_s19 = sphi %s5449_s19, %s6794_s19   ;;  %s5391_s18 = sphi %s5447_s18, %s6793_s18  }
   0x5   : > { %s37_s26 = sadd.s32 1, %s5407_s22  ;;  %s182_s27 = sadd.s32 1, %s5399_s20 }
   0x6   : > { %p39_p0 = scmp.ge.s32.totalorder %s37_s26, 2  ;;  %p192_p1 = scmp.ne.s32.totalorder %s5399_s20, %s5395_s19 }
   0x7   : > { %p193_p2 = scmp.eq.s32.totalorder %s4251_s24, 1  ;;  %p198_p3 = scmp.ne.s32.totalorder %s5395_s19, %s5391_s18 }
   0x8   : > { %s6799_s26 = smov (%p39_p0, %s37_s26), 0  ;;  %p199_p5 = scmp.eq.s32.totalorder %s4252_s25, 1 }
   0x9   : > { %p5487_p4 = por %p193_p2, %p192_p1  ;;  %s177_s29 = ssub.s32 %s5407_s22, %s6799_s26 }
   0xa   : > { %p4258_p6 = scmp.ge.s32.totalorder %s5411_s23, 1  ;;  %p180_p7 = scmp.eq.s32.totalorder %s177_s29, 0 }
   0xb   : > { %p5494_p8 = por %p199_p5, %p198_p3  ;;  %p268_p9 = scmp.lt.s32.totalorder %s5411_s23, 3 }
   0xc   : > { %s5500_s6 = scalar_select %p180_p7, %s5399_s20, %s182_s27  }
   0xd   : > { %p269_p10 = pnand %p4258_p6, %p268_p9 }
   0xf   : > { %272 = sbr.rel (%p269_p10) target bundleno = 768 (0x300), region = 40 }
  0x16   : > { %v4955_v0 = vld [vmem:[%s6746_s1] sm:$0xff]   ;;  %v5413_v1 = vmov 0   ;;  %v4957_v3 = vld [vmem:[%s6746_s1 + $0x8] sm:$0xff]   ;;  %v4959_v5 = vld [vmem:[%s6746_s1 + $0x10] sm:$0xff]   ;;  %s4260_s12 = sshll.u32 %s5403_s21, 6  ;;  %s5414_s7 = smov [#allocation3]  }
  0x17   : > { %2349 = vmatprep.subr.bf16.mxu1 %v5413_v1  ;;  %2638 = vmatprep.subr.bf16.mxu0 %v5413_v1  ;;  %v5510_v2 = vld [vmem:[%s6746_s1 + $0x80] sm:$0xff]   ;;  %v5520_v4 = vld [vmem:[%s6746_s1 + $0x88] sm:$0xff]   ;;  %v5531_v6 = vld [vmem:[%s6746_s1 + $0x90] sm:$0xff]   ;;  %p325_p11 = scmp.lt.s32.totalorder %s4260_s12, 127 }
  0x18   : > { %2350 = vmatpush1.bf16.msra.mxu1 %v4955_v0  ;;  %2639 = vmatpush1.bf16.msra.mxu0 %v5510_v2  ;;  %v4961_v7 = vld [vmem:[%s6746_s1 + $0x18] sm:$0xff]   ;;  %v4963_v9 = vld [vmem:[%s6746_s1 + $0x20] sm:$0xff]   ;;  %v4965_v11 = vld [vmem:[%s6746_s1 + $0x28] sm:$0xff]  }
  0x19   : > { %2351 = vmatprep.subr.bf16.mxu1 %v5413_v1  ;;  %2640 = vmatprep.subr.bf16.mxu0 %v5413_v1  ;;  %v5542_v8 = vld [vmem:[%s6746_s1 + $0x98] sm:$0xff]   ;;  %v5553_v10 = vld [vmem:[%s6746_s1 + $0xa0] sm:$0xff]   ;;  %v5565_v12 = vld [vmem:[%s6746_s1 + $0xa8] sm:$0xff]   ;;  %s6801_s12 = smov (!%p325_p11, %s4260_s12), 127 }
  0x1a   : > { %v4967_v13 = vld [vmem:[%s6746_s1 + $0x30] sm:$0xff]   ;;  %v4969_v15 = vld [vmem:[%s6746_s1 + $0x38] sm:$0xff]   ;;  %s4896_s8 = smul.u32 28, %s6801_s12  ;;  %v4971_v17 = vld [vmem:[%s6746_s1 + $0x40] sm:$0xff]  }
  0x1b   : > { %v5578_v14 = vld [vmem:[%s6746_s1 + $0xb0] sm:$0xff]   ;;  %v5590_v16 = vld [vmem:[%s6746_s1 + $0xb8] sm:$0xff]   ;;  %v5606_v18 = vld [vmem:[%s6746_s1 + $0xc0] sm:$0xff]  }
  0x1c   : > { %2352 = vmatpush1.bf16.msra.mxu1 %v4957_v3  ;;  %2641 = vmatpush1.bf16.msra.mxu0 %v5520_v4  ;;  %s5599_s16 = scalar_lea.vmem %s6745_s0, %s4896_s8  ;;  %v4973_v20 = vld [vmem:[%s6746_s1 + $0x48] sm:$0xff]   ;;  %v4975_v23 = vld [vmem:[%s6746_s1 + $0x50] sm:$0xff]   ;;  %v4977_v25 = vld [vmem:[%s6746_s1 + $0x58] sm:$0xff]   ;;  %s5337_s8 = sshll.u32 %s5414_s7, 4  ;;  %s5338_s8 = int_to_ptr.vmem [resolvable:$false] %s5337_s8 }
  0x1d   : > { %2353 = vmatprep.subr.bf16.mxu1 %v5413_v1  ;;  %2642 = vmatprep.subr.bf16.mxu0 %v5413_v1  ;;  %v4989_v19 = vld [vmem:[%s5599_s16 + $0x4] ss:$28 sps:$4 sm:$0xff]   ;;  %v4992_v21 = vld [vmem:[%s5599_s16 + $0xc] ss:$28 sps:$4 sm:$0xff]   ;;  %v5630_v24 = vld [vmem:[%s6746_s1 + $0xd0] sm:$0xff]  }
  0x1e   : > { %v5619_v22 = vld [vmem:[%s6746_s1 + $0xc8] sm:$0xff]   ;;  %2381 = vmatprep.mubr.bf16.mxu1 %v4989_v19  ;;  %2670 = vmatprep.mubr.bf16.mxu0 %v4992_v21  ;;  %v5641_v26 = vld [vmem:[%s6746_s1 + $0xd8] sm:$0xff]   ;;  %v4979_v27 = vld [vmem:[%s6746_s1 + $0x60] sm:$0xff]  }
  0x1f   : > { %v5652_v28 = vld [vmem:[%s6746_s1 + $0xe0] sm:$0xff]   ;;  %v4981_v29 = vld [vmem:[%s6746_s1 + $0x68] sm:$0xff]   ;;  %v4983_v31 = vld [vmem:[%s6746_s1 + $0x70] sm:$0xff]  }
  0x20   : > { %2354 = vmatpush1.bf16.msra.mxu1 %v4959_v5  ;;  %2643 = vmatpush1.bf16.msra.mxu0 %v5531_v6  ;;  %v5663_v30 = vld [vmem:[%s6746_s1 + $0xe8] sm:$0xff]   ;;  %v5674_v32 = vld [vmem:[%s6746_s1 + $0xf0] sm:$0xff]   ;;  %v4985_v33 = vld [vmem:[%s6746_s1 + $0x78] sm:$0xff]  }
  0x21   : > { %2355 = vmatprep.subr.bf16.mxu1 %v5413_v1  ;;  %2644 = vmatprep.subr.bf16.mxu0 %v5413_v1  ;;  %v5685_v34 = vld [vmem:[%s6746_s1 + $0xf8] sm:$0xff]   ;;  %v4990_v36 = vld [vmem:[%s5599_s16 + $0x8] ss:$28 sps:$4 sm:$0xff]   ;;  %v5001_v43 = vld [vmem:[%s5599_s16 + $0x74] ss:$28 sps:$4 sm:$0xff]  }
  0x22   : > { %v4987_v35 = vld [vmem:[%s5599_s16] ss:$28 sps:$4 sm:$0xff]   ;;  %v5000_v40 = vld [vmem:[%s6746_s1 + $0x108] sm:$0xff]   ;;  %v4998_v41 = vld [vmem:[%s5599_s16 + $0x38] ss:$28 sps:$4 sm:$0xff]  }
  0x23   : > { %v4993_v37 = vld [vmem:[%s6746_s1 + $0x100] sm:$0xff]   ;;  %v4994_v38 = vld [vmem:[%s5599_s16 + $0x3c] ss:$28 sps:$4 sm:$0xff]   ;;  %v5013_v45 = vld [vmem:[%s6746_s1 + $0x110] sm:$0xff]  }
  0x24   : > { %2356 = vmatpush1.bf16.msra.mxu1 %v4961_v7  ;;  %2645 = vmatpush1.bf16.msra.mxu0 %v5542_v8  ;;  %v4996_v39 = vld [vmem:[%s5599_s16 + $0x44] ss:$28 sps:$4 sm:$0xff]   ;;  %v5003_v44 = vld [vmem:[%s5599_s16 + $0x7c] ss:$28 sps:$4 sm:$0xff]   ;;  %v5005_v47 = vld [vmem:[%s5599_s16 + $0x70] ss:$28 sps:$4 sm:$0xff]  }
  0x25   : > { %2357 = vmatprep.subr.bf16.mxu1 %v5413_v1  ;;  %2646 = vmatprep.subr.bf16.mxu0 %v5413_v1  ;;  %v4999_v42 = vld [vmem:[%s5599_s16 + $0x40] ss:$28 sps:$4 sm:$0xff]   ;;  %v5006_v48 = vld [vmem:[%s5599_s16 + $0x78] ss:$28 sps:$4 sm:$0xff]   ;;  %v5007_v49 = vld [vmem:[%s5599_s16 + $0xac] ss:$28 sps:$4 sm:$0xff]  }
  0x26   : > { %v5020_v46 = vld [vmem:[%s6746_s1 + $0x118] sm:$0xff]   ;;  %v5009_v50 = vld [vmem:[%s5599_s16 + $0xb4] ss:$28 sps:$4 sm:$0xff]   ;;  %v5033_v51 = vld [vmem:[%s6746_s1 + $0x120] sm:$0xff]  }
  0x27   : > { %v5040_v52 = vld [vmem:[%s6746_s1 + $0x128] sm:$0xff]   ;;  %v5014_v55 = vld [vmem:[%s5599_s16 + $0xe4] ss:$28 sps:$4 sm:$0xff]   ;;  %v5053_v57 = vld [vmem:[%s6746_s1 + $0x130] sm:$0xff]  }
  0x28   : > { %2358 = vmatpush1.bf16.msra.mxu1 %v4963_v9  ;;  %2647 = vmatpush1.bf16.msra.mxu0 %v5553_v10  ;;  %v5011_v53 = vld [vmem:[%s5599_s16 + $0xa8] ss:$28 sps:$4 sm:$0xff]   ;;  %v5012_v54 = vld [vmem:[%s5599_s16 + $0xb0] ss:$28 sps:$4 sm:$0xff]   ;;  %v5060_v58 = vld [vmem:[%s6746_s1 + $0x138] sm:$0xff]  }
  0x29   : > { %2359 = vmatprep.subr.bf16.mxu1 %v5413_v1  ;;  %2648 = vmatprep.subr.bf16.mxu0 %v5413_v1  ;;  %v5016_v56 = vld [vmem:[%s5599_s16 + $0xec] ss:$28 sps:$4 sm:$0xff]   ;;  %v5018_v59 = vld [vmem:[%s5599_s16 + $0xe0] ss:$28 sps:$4 sm:$0xff]   ;;  %v5032_v9 = vld [vmem:[%s5599_s16 + $0x158] ss:$28 sps:$4 sm:$0xff]  }
  0x2a   : > { %v5019_v60 = vld [vmem:[%s5599_s16 + $0xe8] ss:$28 sps:$4 sm:$0xff]   ;;  %v5021_v61 = vld [vmem:[%s5599_s16 + $0x11c] ss:$28 sps:$4 sm:$0xff]   ;;  %v5031_v7 = vld [vmem:[%s5599_s16 + $0x150] ss:$28 sps:$4 sm:$0xff]  }
  0x2b   : > { %v5023_v62 = vld [vmem:[%s5599_s16 + $0x124] ss:$28 sps:$4 sm:$0xff]   ;;  %v5080_v0 = vld [vmem:[%s6746_s1 + $0x148] sm:$0xff]   ;;  %v5029_v5 = vld [vmem:[%s5599_s16 + $0x15c] ss:$28 sps:$4 sm:$0xff]  }
  0x2c   : > { %2360 = vmatpush1.bf16.msra.mxu1 %v4965_v11  ;;  %2649 = vmatpush1.bf16.msra.mxu0 %v5565_v12  ;;  %v5073_v63 = vld [vmem:[%s6746_s1 + $0x140] sm:$0xff]   ;;  %v5036_v11 = vld [vmem:[%s5599_s16 + $0x194] ss:$28 sps:$4 sm:$0xff]  }
  0x2d   : > { %2361 = vmatprep.subr.bf16.mxu1 %v5413_v1  ;;  %2650 = vmatprep.subr.bf16.mxu0 %v5413_v1  ;;  %v5026_v3 = vld [vmem:[%s5599_s16 + $0x120] ss:$28 sps:$4 sm:$0xff]   ;;  %v5046_v21 = vld [vmem:[%s5599_s16 + $0x1c8] ss:$28 sps:$4 sm:$0xff]  }
  0x2e   : > { %v5045_v19 = vld [vmem:[%s5599_s16 + $0x1c0] ss:$28 sps:$4 sm:$0xff]  }
  0x30   : > { %2362 = vmatpush1.bf16.msra.mxu1 %v4967_v13  ;;  %2651 = vmatpush1.bf16.msra.mxu0 %v5578_v14  ;;  %v5038_v13 = vld [vmem:[%s5599_s16 + $0x188] ss:$28 sps:$4 sm:$0xff]  }
  0x31   : > { %2363 = vmatprep.subr.bf16.mxu1 %v5413_v1  ;;  %2652 = vmatprep.subr.bf16.mxu0 %v5413_v1 }
  0x34   : > { %2364 = vmatpush1.bf16.msra.mxu1 %v4969_v15  ;;  %2653 = vmatpush1.bf16.msra.mxu0 %v5590_v16  ;;  %v5039_v15 = vld [vmem:[%s5599_s16 + $0x190] ss:$28 sps:$4 sm:$0xff]  }
  0x35   : > { %2365 = vmatprep.subr.bf16.mxu1 %v5413_v1  ;;  %2654 = vmatprep.subr.bf16.mxu0 %v5413_v1 }
  0x38   : > { %2366 = vmatpush1.bf16.msra.mxu1 %v4971_v17  ;;  %2655 = vmatpush1.bf16.msra.mxu0 %v5606_v18  ;;  %v5043_v17 = vld [vmem:[%s5599_s16 + $0x1cc] ss:$28 sps:$4 sm:$0xff]  }
  0x39   : > { %2367 = vmatprep.subr.bf16.mxu1 %v5413_v1  ;;  %2656 = vmatprep.subr.bf16.mxu0 %v5413_v1 }
  0x3c   : > { %2368 = vmatpush1.bf16.msra.mxu1 %v4973_v20  ;;  %2657 = vmatpush1.bf16.msra.mxu0 %v5619_v22  ;;  %v5140_v20 = vld [vmem:[%s6746_s1 + $0x178] sm:$0xff]  }
  0x3d   : > { %2369 = vmatprep.subr.bf16.mxu1 %v5413_v1  ;;  %2658 = vmatprep.subr.bf16.mxu0 %v5413_v1 }
  0x40   : > { %2370 = vmatpush1.bf16.msra.mxu1 %v4975_v23  ;;  %2659 = vmatpush1.bf16.msra.mxu0 %v5630_v24  ;;  %v5049_v23 = vld [vmem:[%s5599_s16 + $0x204] ss:$28 sps:$4 sm:$0xff]  }
  0x41   : > { %2371 = vmatprep.subr.bf16.mxu1 %v5413_v1  ;;  %2660 = vmatprep.subr.bf16.mxu0 %v5413_v1 }
  0x44   : > { %2372 = vmatpush1.bf16.msra.mxu1 %v4977_v25  ;;  %2661 = vmatpush1.bf16.msra.mxu0 %v5641_v26  ;;  %v5052_v25 = vld [vmem:[%s5599_s16 + $0x200] ss:$28 sps:$4 sm:$0xff]  }
  0x45   : > { %2373 = vmatprep.subr.bf16.mxu1 %v5413_v1  ;;  %2662 = vmatprep.subr.bf16.mxu0 %v5413_v1 }
  0x48   : > { %2374 = vmatpush1.bf16.msra.mxu1 %v4979_v27  ;;  %2663 = vmatpush1.bf16.msra.mxu0 %v5652_v28  ;;  %v5056_v27 = vld [vmem:[%s5599_s16 + $0x23c] ss:$28 sps:$4 sm:$0xff]  }
  0x49   : > { %2375 = vmatprep.subr.bf16.mxu1 %v5413_v1  ;;  %2664 = vmatprep.subr.bf16.mxu0 %v5413_v1 }
  0x4c   : > { %2376 = vmatpush1.bf16.msra.mxu1 %v4981_v29  ;;  %2665 = vmatpush1.bf16.msra.mxu0 %v5663_v30  ;;  %v5061_v29 = vld [vmem:[%s5599_s16 + $0x26c] ss:$28 sps:$4 sm:$0xff]  }
  0x4d   : > { %2377 = vmatprep.subr.bf16.mxu1 %v5413_v1  ;;  %2666 = vmatprep.subr.bf16.mxu0 %v5413_v1 }
  0x50   : > { %2378 = vmatpush1.bf16.msra.mxu1 %v4983_v31  ;;  %2667 = vmatpush1.bf16.msra.mxu0 %v5674_v32  ;;  %v5065_v31 = vld [vmem:[%s5599_s16 + $0x268] ss:$28 sps:$4 sm:$0xff]  }
  0x51   : > { %2379 = vmatprep.subr.bf16.mxu1 %v5413_v1  ;;  %2668 = vmatprep.subr.bf16.mxu0 %v5413_v1 }
  0x54   : > { %2380 = vmatpush1.bf16.msra.mxu1 %v4985_v33  ;;  %2669 = vmatpush1.bf16.msra.mxu0 %v5685_v34  ;;  %v5067_v33 = vld [vmem:[%s5599_s16 + $0x2a4] ss:$28 sps:$4 sm:$0xff]  }
  0x55   : > { %4672 = vmatprep.subr.bf16.mxu1 %v5413_v1  ;;  %2927 = vmatprep.subr.bf16.mxu0 %v5413_v1 }
  0x57   : > { %2382 = vmatmul.mubr.bf16.vlgmr.msra.gmra.mrb[0].mxu1 %v4987_v35  ;;  %2671 = vmatmul.mubr.bf16.vlgmr.msra.gmra.mrb[0].mxu0 %v4990_v36  ;;  %v5071_v35 = vld [vmem:[%s5599_s16 + $0x2a0] ss:$28 sps:$4 sm:$0xff]   ;;  %v5072_v36 = vld [vmem:[%s5599_s16 + $0x2a8] ss:$28 sps:$4 sm:$0xff]  }
  0x58   : > { %4688 = vmatpush1.bf16.msra.mxu1 %v5510_v2  ;;  %2928 = vmatpush1.bf16.msra.mxu0 %v4993_v37  ;;  %v5025_v2 = vld [vmem:[%s5599_s16 + $0x118] ss:$28 sps:$4 sm:$0xff]  }
  0x59   : > { %2389 = vmatprep.mubr.bf16.mxu1 %v4994_v38  ;;  %2678 = vmatprep.mubr.bf16.mxu0 %v4996_v39  ;;  %v5074_v37 = vld [vmem:[%s5599_s16 + $0x2dc] ss:$28 sps:$4 sm:$0xff]   ;;  %v5076_v38 = vld [vmem:[%s5599_s16 + $0x2e4] ss:$28 sps:$4 sm:$0xff]  }
  0x5a   : > { %2929 = vmatprep.subr.bf16.mxu0 %v5413_v1  ;;  %4673 = vmatprep.subr.bf16.mxu1 %v5413_v1  ;;  %v5078_v39 = vld [vmem:[%s5599_s16 + $0x2d8] ss:$28 sps:$4 sm:$0xff]  }
  0x5c   : > { %4689 = vmatpush1.bf16.msra.mxu1 %v5520_v4  ;;  %2930 = vmatpush1.bf16.msra.mxu0 %v5000_v40  ;;  %v5027_v4 = vld [vmem:[%s5599_s16 + $0x154] ss:$28 sps:$4 sm:$0xff]   ;;  %v5079_v40 = vld [vmem:[%s5599_s16 + $0x2e0] ss:$28 sps:$4 sm:$0xff]  }
  0x5d   : > { %4674 = vmatprep.subr.bf16.mxu1 %v5413_v1  ;;  %2931 = vmatprep.subr.bf16.mxu0 %v5413_v1 }
  0x5f   : > { %2390 = vmatmul.mubr.bf16.gmra.mrb[4].mxu1 %v4998_v41  ;;  %2679 = vmatmul.mubr.bf16.gmra.mrb[4].mxu0 %v4999_v42  ;;  %v5081_v41 = vld [vmem:[%s5599_s16 + $0x314] ss:$28 sps:$4 sm:$0xff]   ;;  %v5083_v42 = vld [vmem:[%s5599_s16 + $0x31c] ss:$28 sps:$4 sm:$0xff]  }
  0x60   : > { %2397 = vmatprep.mubr.bf16.mxu1 %v5001_v43  ;;  %2686 = vmatprep.mubr.bf16.mxu0 %v5003_v44  ;;  %v5085_v43 = vld [vmem:[%s5599_s16 + $0x310] ss:$28 sps:$4 sm:$0xff]   ;;  %v5086_v44 = vld [vmem:[%s5599_s16 + $0x318] ss:$28 sps:$4 sm:$0xff]  }
  0x61   : > { %2932 = vmatpush1.bf16.msra.mxu0 %v5013_v45  ;;  %4690 = vmatpush1.bf16.msra.mxu1 %v5531_v6  ;;  %v5093_v6 = vld [vmem:[%s6746_s1 + $0x150] sm:$0xff]   ;;  %v5087_v45 = vld [vmem:[%s5599_s16 + $0x34c] ss:$28 sps:$4 sm:$0xff]  }
  0x62   : > { %2933 = vmatprep.subr.bf16.mxu0 %v5413_v1  ;;  %4675 = vmatprep.subr.bf16.mxu1 %v5413_v1 }
  0x65   : > { %2934 = vmatpush1.bf16.msra.mxu0 %v5020_v46  ;;  %4691 = vmatpush1.bf16.msra.mxu1 %v5542_v8  ;;  %v5100_v8 = vld [vmem:[%s6746_s1 + $0x158] sm:$0xff]   ;;  %v5089_v46 = vld [vmem:[%s5599_s16 + $0x354] ss:$28 sps:$4 sm:$0xff]  }
  0x66   : > { %2935 = vmatprep.subr.bf16.mxu0 %v5413_v1  ;;  %4676 = vmatprep.subr.bf16.mxu1 %v5413_v1 }
  0x67   : > { %2398 = vmatmul.mubr.bf16.gmra.mrb[8].mxu1 %v5005_v47  ;;  %2687 = vmatmul.mubr.bf16.gmra.mrb[8].mxu0 %v5006_v48  ;;  %v5091_v47 = vld [vmem:[%s5599_s16 + $0x348] ss:$28 sps:$4 sm:$0xff]   ;;  %v5092_v48 = vld [vmem:[%s5599_s16 + $0x350] ss:$28 sps:$4 sm:$0xff]  }
  0x68   : > { %2405 = vmatprep.mubr.bf16.mxu1 %v5007_v49  ;;  %2694 = vmatprep.mubr.bf16.mxu0 %v5009_v50  ;;  %v5094_v49 = vld [vmem:[%s5599_s16 + $0x384] ss:$28 sps:$4 sm:$0xff]   ;;  %v5096_v50 = vld [vmem:[%s5599_s16 + $0x38c] ss:$28 sps:$4 sm:$0xff]  }
  0x69   : > { %2936 = vmatpush1.bf16.msra.mxu0 %v5033_v51  ;;  %4692 = vmatpush1.bf16.msra.mxu1 %v5553_v10  ;;  %v5034_v10 = vld [vmem:[%s5599_s16 + $0x18c] ss:$28 sps:$4 sm:$0xff]   ;;  %v5098_v51 = vld [vmem:[%s5599_s16 + $0x380] ss:$28 sps:$4 sm:$0xff]  }
  0x6a   : > { %2937 = vmatprep.subr.bf16.mxu0 %v5413_v1  ;;  %4677 = vmatprep.subr.bf16.mxu1 %v5413_v1 }
  0x6d   : > { %2938 = vmatpush1.bf16.msra.mxu0 %v5040_v52  ;;  %4693 = vmatpush1.bf16.msra.mxu1 %v5565_v12  ;;  %v5113_v12 = vld [vmem:[%s6746_s1 + $0x160] sm:$0xff]  }
  0x6e   : > { %2939 = vmatprep.subr.bf16.mxu0 %v5413_v1  ;;  %4678 = vmatprep.subr.bf16.mxu1 %v5413_v1  ;;  %v5099_v52 = vld [vmem:[%s5599_s16 + $0x388] ss:$28 sps:$4 sm:$0xff]  }
  0x6f   : > { %2406 = vmatmul.mubr.bf16.gmra.mrb[12].mxu1 %v5011_v53  ;;  %2695 = vmatmul.mubr.bf16.gmra.mrb[12].mxu0 %v5012_v54  ;;  %v5101_v53 = vld [vmem:[%s5599_s16 + $0x3bc] ss:$28 sps:$4 sm:$0xff]   ;;  %v5103_v54 = vld [vmem:[%s5599_s16 + $0x3c4] ss:$28 sps:$4 sm:$0xff]  }
  0x70   : > { %2413 = vmatprep.mubr.bf16.mxu1 %v5014_v55  ;;  %2702 = vmatprep.mubr.bf16.mxu0 %v5016_v56  ;;  %v5856_v55 = vld [vmem:[%s6746_s1 + $0x180] sm:$0xff]   ;;  %v5105_v56 = vld [vmem:[%s5599_s16 + $0x3b8] ss:$28 sps:$4 sm:$0xff]  }
  0x71   : > { %2940 = vmatpush1.bf16.msra.mxu0 %v5053_v57  ;;  %4694 = vmatpush1.bf16.msra.mxu1 %v5578_v14  ;;  %v5120_v14 = vld [vmem:[%s6746_s1 + $0x168] sm:$0xff]   ;;  %v5106_v57 = vld [vmem:[%s5599_s16 + $0x3c0] ss:$28 sps:$4 sm:$0xff]  }
  0x72   : > { %2941 = vmatprep.subr.bf16.mxu0 %v5413_v1  ;;  %4679 = vmatprep.subr.bf16.mxu1 %v5413_v1 }
  0x75   : > { %2942 = vmatpush1.bf16.msra.mxu0 %v5060_v58  ;;  %4695 = vmatpush1.bf16.msra.mxu1 %v5590_v16  ;;  %v5041_v16 = vld [vmem:[%s5599_s16 + $0x1c4] ss:$28 sps:$4 sm:$0xff]   ;;  %v5107_v58 = vld [vmem:[%s5599_s16 + $0x3f4] ss:$28 sps:$4 sm:$0xff]  }
  0x76   : > { %2943 = vmatprep.subr.bf16.mxu0 %v5413_v1  ;;  %4680 = vmatprep.subr.bf16.mxu1 %v5413_v1 }
  0x77   : > { %2414 = vmatmul.mubr.bf16.gmra.mrb[16].mxu1 %v5018_v59  ;;  %2703 = vmatmul.mubr.bf16.gmra.mrb[16].mxu0 %v5019_v60  ;;  %v5109_v59 = vld [vmem:[%s5599_s16 + $0x3fc] ss:$28 sps:$4 sm:$0xff]   ;;  %v5111_v60 = vld [vmem:[%s5599_s16 + $0x3f0] ss:$28 sps:$4 sm:$0xff]  }
  0x78   : > { %2421 = vmatprep.mubr.bf16.mxu1 %v5021_v61  ;;  %2710 = vmatprep.mubr.bf16.mxu0 %v5023_v62  ;;  %v5112_v61 = vld [vmem:[%s5599_s16 + $0x3f8] ss:$28 sps:$4 sm:$0xff]   ;;  %v5114_v62 = vld [vmem:[%s5599_s16 + $0x42c] ss:$28 sps:$4 sm:$0xff]  }
  0x79   : > { %2944 = vmatpush1.bf16.msra.mxu0 %v5073_v63  ;;  %4696 = vmatpush1.bf16.msra.mxu1 %v5606_v18  ;;  %v5133_v18 = vld [vmem:[%s6746_s1 + $0x170] sm:$0xff]  }
  0x7a   : > { %2945 = vmatprep.subr.bf16.mxu0 %v5413_v1  ;;  %4681 = vmatprep.subr.bf16.mxu1 %v5413_v1  ;;  %v5116_v63 = vld [vmem:[%s5599_s16 + $0x434] ss:$28 sps:$4 sm:$0xff]  }
  0x7d   : > { %2946 = vmatpush1.bf16.msra.mxu0 %v5080_v0  ;;  %4697 = vmatpush1.bf16.msra.mxu1 %v5619_v22  ;;  %v5047_v22 = vld [vmem:[%s5599_s16 + $0x1fc] ss:$28 sps:$4 sm:$0xff]   ;;  %v5118_v0 = vld [vmem:[%s5599_s16 + $0x428] ss:$28 sps:$4 sm:$0xff]  }
  0x7e   : > { %2947 = vmatprep.subr.bf16.mxu0 %v5413_v1  ;;  %4682 = vmatprep.subr.bf16.mxu1 %v5413_v1 }
  0x7f   : > { %2422 = vmatmul.mubr.bf16.gmra.mrb[20].mxu1 %v5025_v2  ;;  %2711 = vmatmul.mubr.bf16.gmra.mrb[20].mxu0 %v5026_v3  ;;  %v5119_v2 = vld [vmem:[%s5599_s16 + $0x430] ss:$28 sps:$4 sm:$0xff]   ;;  %v5121_v3 = vld [vmem:[%s5599_s16 + $0x464] ss:$28 sps:$4 sm:$0xff]  }
  0x80   : > { %2429 = vmatprep.mubr.bf16.mxu1 %v5027_v4  ;;  %2718 = vmatprep.mubr.bf16.mxu0 %v5029_v5  ;;  %v5123_v4 = vld [vmem:[%s5599_s16 + $0x46c] ss:$28 sps:$4 sm:$0xff]   ;;  %v5125_v5 = vld [vmem:[%s5599_s16 + $0x460] ss:$28 sps:$4 sm:$0xff]  }
  0x81   : > { %2948 = vmatpush1.bf16.msra.mxu0 %v5093_v6  ;;  %4698 = vmatpush1.bf16.msra.mxu1 %v5630_v24  ;;  %v5051_v24 = vld [vmem:[%s5599_s16 + $0x1f8] ss:$28 sps:$4 sm:$0xff]   ;;  %v5126_v6 = vld [vmem:[%s5599_s16 + $0x468] ss:$28 sps:$4 sm:$0xff]  }
  0x82   : > { %2949 = vmatprep.subr.bf16.mxu0 %v5413_v1  ;;  %4683 = vmatprep.subr.bf16.mxu1 %v5413_v1 }
  0x85   : > { %2950 = vmatpush1.bf16.msra.mxu0 %v5100_v8  ;;  %4699 = vmatpush1.bf16.msra.mxu1 %v5641_v26  ;;  %v5054_v26 = vld [vmem:[%s5599_s16 + $0x234] ss:$28 sps:$4 sm:$0xff]   ;;  %v5129_v8 = vld [vmem:[%s5599_s16 + $0x4a4] ss:$28 sps:$4 sm:$0xff]  }
  0x86   : > { %2951 = vmatprep.subr.bf16.mxu0 %v5413_v1  ;;  %4684 = vmatprep.subr.bf16.mxu1 %v5413_v1 }
  0x87   : > { %2430 = vmatmul.mubr.bf16.gmra.mrb[24].mxu1 %v5031_v7  ;;  %2719 = vmatmul.mubr.bf16.gmra.mrb[24].mxu0 %v5032_v9  ;;  %v5127_v7 = vld [vmem:[%s5599_s16 + $0x49c] ss:$28 sps:$4 sm:$0xff]  }
  0x88   : > { %2437 = vmatprep.mubr.bf16.mxu1 %v5034_v10  ;;  %2726 = vmatprep.mubr.bf16.mxu0 %v5036_v11  ;;  %v5131_v9 = vld [vmem:[%s5599_s16 + $0x498] ss:$28 sps:$4 sm:$0xff]   ;;  %v5132_v10 = vld [vmem:[%s5599_s16 + $0x4a0] ss:$28 sps:$4 sm:$0xff]  }
  0x89   : > { %2952 = vmatpush1.bf16.msra.mxu0 %v5113_v12  ;;  %4700 = vmatpush1.bf16.msra.mxu1 %v5652_v28  ;;  %v5059_v28 = vld [vmem:[%s5599_s16 + $0x238] ss:$28 sps:$4 sm:$0xff]  }
  0x8a   : > { %2953 = vmatprep.subr.bf16.mxu0 %v5413_v1  ;;  %4685 = vmatprep.subr.bf16.mxu1 %v5413_v1  ;;  %v5134_v11 = vld [vmem:[%s5599_s16 + $0x4d4] ss:$28 sps:$4 sm:$0xff]   ;;  %v5136_v12 = vld [vmem:[%s5599_s16 + $0x4dc] ss:$28 sps:$4 sm:$0xff]  }
  0x8d   : > { %2954 = vmatpush1.bf16.msra.mxu0 %v5120_v14  ;;  %4701 = vmatpush1.bf16.msra.mxu1 %v5663_v30  ;;  %v5063_v30 = vld [vmem:[%s5599_s16 + $0x274] ss:$28 sps:$4 sm:$0xff]  }
  0x8e   : > { %2955 = vmatprep.subr.bf16.mxu0 %v5413_v1  ;;  %4686 = vmatprep.subr.bf16.mxu1 %v5413_v1  ;;  %v5139_v14 = vld [vmem:[%s5599_s16 + $0x4d8] ss:$28 sps:$4 sm:$0xff]  }
  0x8f   : > { %2438 = vmatmul.mubr.bf16.gmra.mrb[28].mxu1 %v5038_v13  ;;  %2727 = vmatmul.mubr.bf16.gmra.mrb[28].mxu0 %v5039_v15  ;;  %v5138_v13 = vld [vmem:[%s5599_s16 + $0x4d0] ss:$28 sps:$4 sm:$0xff]  }
  0x90   : > { %2445 = vmatprep.mubr.bf16.mxu1 %v5041_v16  ;;  %2734 = vmatprep.mubr.bf16.mxu0 %v5043_v17  ;;  %v5141_v15 = vld [vmem:[%s5599_s16 + $0x50c] ss:$28 sps:$4 sm:$0xff]   ;;  %v5143_v16 = vld [vmem:[%s5599_s16 + $0x514] ss:$28 sps:$4 sm:$0xff]  }
  0x91   : > { %2956 = vmatpush1.bf16.msra.mxu0 %v5133_v18  ;;  %4702 = vmatpush1.bf16.msra.mxu1 %v5674_v32  ;;  %v5066_v32 = vld [vmem:[%s5599_s16 + $0x270] ss:$28 sps:$4 sm:$0xff]   ;;  %v5145_v17 = vld [vmem:[%s5599_s16 + $0x508] ss:$28 sps:$4 sm:$0xff]  }
  0x92   : > { %2957 = vmatprep.subr.bf16.mxu0 %v5413_v1  ;;  %4687 = vmatprep.subr.bf16.mxu1 %v5413_v1  ;;  %v5058_v1 = vld [vmem:[%s5599_s16 + $0x230] ss:$28 sps:$4 sm:$0xff]  }
  0x93   : > { %v5146_v18 = vld [vmem:[%s5599_s16 + $0x510] ss:$28 sps:$4 sm:$0xff]  }
  0x95   : > { %2958 = vmatpush1.bf16.msra.mxu0 %v5140_v20  ;;  %4703 = vmatpush1.bf16.msra.mxu1 %v5685_v34  ;;  %v5069_v34 = vld [vmem:[%s5599_s16 + $0x2ac] ss:$28 sps:$4 sm:$0xff]   ;;  %v5151_v20 = vld [vmem:[%s5599_s16 + $0x14] ss:$28 sps:$4 sm:$0xff]  }
  0x96   : > { %4592 = vmatprep.subr.bf16.mxu1 %v5856_v55 }
  0x97   : > { %2446 = vmatmul.mubr.bf16.gmra.mrb[32].mxu1 %v5045_v19  ;;  %2735 = vmatmul.mubr.bf16.gmra.mrb[32].mxu0 %v5046_v21  ;;  %v5147_v19 = vld [vmem:[%s5599_s16 + $0x544] ss:$28 sps:$4 sm:$0xff]  }
  0x98   : > { %2453 = vmatprep.mubr.bf16.mxu1 %v5047_v22  ;;  %2742 = vmatprep.mubr.bf16.mxu0 %v5049_v23  ;;  %v5152_v21 = vld [vmem:[%s5599_s16 + $0x540] ss:$28 sps:$4 sm:$0xff]   ;;  %v5149_v22 = vld [vmem:[%s5599_s16 + $0x10] ss:$28 sps:$4 sm:$0xff]  }
  0x99   : > { %v5153_v23 = vld [vmem:[%s5599_s16 + $0x57c] ss:$28 sps:$4 sm:$0xff]  }
  0x9f   : > { %2454 = vmatmul.mubr.bf16.gmra.mrb[36].mxu1 %v5051_v24  ;;  %2743 = vmatmul.mubr.bf16.gmra.mrb[36].mxu0 %v5052_v25  ;;  %v5155_v24 = vld [vmem:[%s5599_s16 + $0x4c] ss:$28 sps:$4 sm:$0xff]   ;;  %v5157_v25 = vld [vmem:[%s5599_s16 + $0x578] ss:$28 sps:$4 sm:$0xff]  }
  0xa0   : > { %2461 = vmatprep.mubr.bf16.mxu1 %v5054_v26  ;;  %2750 = vmatprep.mubr.bf16.mxu0 %v5056_v27  ;;  %v5158_v26 = vld [vmem:[%s5599_s16 + $0x48] ss:$28 sps:$4 sm:$0xff]   ;;  %v5159_v27 = vld [vmem:[%s5599_s16 + $0x5b4] ss:$28 sps:$4 sm:$0xff]  }
  0xa7   : > { %2462 = vmatmul.mubr.bf16.gmra.mrb[40].mxu1 %v5058_v1  ;;  %2751 = vmatmul.mubr.bf16.gmra.mrb[40].mxu0 %v5059_v28  ;;  %v5161_v1 = vld [vmem:[%s5599_s16 + $0x84] ss:$28 sps:$4 sm:$0xff]   ;;  %v5163_v28 = vld [vmem:[%s5599_s16 + $0x5b0] ss:$28 sps:$4 sm:$0xff]  }
  0xa8   : > { %2469 = vmatprep.mubr.bf16.mxu1 %v5061_v29  ;;  %2758 = vmatprep.mubr.bf16.mxu0 %v5063_v30  ;;  %v5164_v29 = vld [vmem:[%s5599_s16 + $0x80] ss:$28 sps:$4 sm:$0xff]   ;;  %v5165_v30 = vld [vmem:[%s5599_s16 + $0x5ec] ss:$28 sps:$4 sm:$0xff]  }
  0xaf   : > { %2470 = vmatmul.mubr.bf16.gmra.mrb[44].mxu1 %v5065_v31  ;;  %2759 = vmatmul.mubr.bf16.gmra.mrb[44].mxu0 %v5066_v32  ;;  %v5167_v31 = vld [vmem:[%s5599_s16 + $0xbc] ss:$28 sps:$4 sm:$0xff]  }
  0xb0   : > { %2477 = vmatprep.mubr.bf16.mxu1 %v5067_v33  ;;  %2766 = vmatprep.mubr.bf16.mxu0 %v5069_v34  ;;  %v5169_v34 = vld [vmem:[%s5599_s16 + $0x5e8] ss:$28 sps:$4 sm:$0xff]  }
  0xb7   : > { %2478 = vmatmul.mubr.bf16.gmra.mrb[48].mxu1 %v5071_v35  ;;  %2767 = vmatmul.mubr.bf16.gmra.mrb[48].mxu0 %v5072_v36  ;;  %v5170_v36 = vld [vmem:[%s5599_s16 + $0xb8] ss:$28 sps:$4 sm:$0xff]  }
  0xb8   : > { %2485 = vmatprep.mubr.bf16.mxu1 %v5074_v37  ;;  %2774 = vmatprep.mubr.bf16.mxu0 %v5076_v38  ;;  %v5171_v37 = vld [vmem:[%s5599_s16 + $0x624] ss:$28 sps:$4 sm:$0xff]  }
  0xbf   : > { %2486 = vmatmul.mubr.bf16.gmra.mrb[52].mxu1 %v5078_v39  ;;  %2775 = vmatmul.mubr.bf16.gmra.mrb[52].mxu0 %v5079_v40  ;;  %v5173_v39 = vld [vmem:[%s5599_s16 + $0xf4] ss:$28 sps:$4 sm:$0xff]  }
  0xc0   : > { %2493 = vmatprep.mubr.bf16.mxu1 %v5081_v41  ;;  %2782 = vmatprep.mubr.bf16.mxu0 %v5083_v42  ;;  %v5175_v42 = vld [vmem:[%s5599_s16 + $0x620] ss:$28 sps:$4 sm:$0xff]  }
  0xc7   : > { %2494 = vmatmul.mubr.bf16.gmra.mrb[56].mxu1 %v5085_v43  ;;  %2783 = vmatmul.mubr.bf16.gmra.mrb[56].mxu0 %v5086_v44  ;;  %v5176_v44 = vld [vmem:[%s5599_s16 + $0xf0] ss:$28 sps:$4 sm:$0xff]  }
  0xc8   : > { %2501 = vmatprep.mubr.bf16.mxu1 %v5087_v45  ;;  %2790 = vmatprep.mubr.bf16.mxu0 %v5089_v46  ;;  %v5177_v45 = vld [vmem:[%s5599_s16 + $0x65c] ss:$28 sps:$4 sm:$0xff]  }
  0xcf   : > { %2502 = vmatmul.mubr.bf16.gmra.mrb[60].mxu1 %v5091_v47  ;;  %2791 = vmatmul.mubr.bf16.gmra.mrb[60].mxu0 %v5092_v48  ;;  %v5179_v47 = vld [vmem:[%s5599_s16 + $0x12c] ss:$28 sps:$4 sm:$0xff]  }
  0xd0   : > { %2509 = vmatprep.mubr.bf16.mxu1 %v5094_v49  ;;  %2798 = vmatprep.mubr.bf16.mxu0 %v5096_v50  ;;  %v5181_v50 = vld [vmem:[%s5599_s16 + $0x658] ss:$28 sps:$4 sm:$0xff]  }
  0xd7   : > { %2510 = vmatmul.mubr.bf16.gmra.mrb[64].mxu1 %v5098_v51  ;;  %2799 = vmatmul.mubr.bf16.gmra.mrb[64].mxu0 %v5099_v52  ;;  %v5182_v52 = vld [vmem:[%s5599_s16 + $0x128] ss:$28 sps:$4 sm:$0xff]  }
  0xd8   : > { %2517 = vmatprep.mubr.bf16.mxu1 %v5101_v53  ;;  %2806 = vmatprep.mubr.bf16.mxu0 %v5103_v54  ;;  %v5183_v53 = vld [vmem:[%s5599_s16 + $0x694] ss:$28 sps:$4 sm:$0xff]  }
  0xdf   : > { %2518 = vmatmul.mubr.bf16.gmra.mrb[68].mxu1 %v5105_v56  ;;  %2807 = vmatmul.mubr.bf16.gmra.mrb[68].mxu0 %v5106_v57  ;;  %v5185_v56 = vld [vmem:[%s5599_s16 + $0x164] ss:$28 sps:$4 sm:$0xff]  }
  0xe0   : > { %2525 = vmatprep.mubr.bf16.mxu1 %v5107_v58  ;;  %2814 = vmatprep.mubr.bf16.mxu0 %v5109_v59  ;;  %v5187_v59 = vld [vmem:[%s5599_s16 + $0x690] ss:$28 sps:$4 sm:$0xff]  }
  0xe7   : > { %2526 = vmatmul.mubr.bf16.gmra.mrb[72].mxu1 %v5111_v60  ;;  %2815 = vmatmul.mubr.bf16.gmra.mrb[72].mxu0 %v5112_v61  ;;  %v5188_v61 = vld [vmem:[%s5599_s16 + $0x160] ss:$28 sps:$4 sm:$0xff]  }
  0xe8   : > { %2533 = vmatprep.mubr.bf16.mxu1 %v5114_v62  ;;  %2822 = vmatprep.mubr.bf16.mxu0 %v5116_v63  ;;  %v5189_v62 = vld [vmem:[%s5599_s16 + $0x6cc] ss:$28 sps:$4 sm:$0xff]  }
  0xef   : > { %2534 = vmatmul.mubr.bf16.gmra.mrb[76].mxu1 %v5118_v0  ;;  %2823 = vmatmul.mubr.bf16.gmra.mrb[76].mxu0 %v5119_v2  ;;  %v5191_v0 = vld [vmem:[%s5599_s16 + $0x19c] ss:$28 sps:$4 sm:$0xff]  }
  0xf0   : > { %2541 = vmatprep.mubr.bf16.mxu1 %v5121_v3  ;;  %2830 = vmatprep.mubr.bf16.mxu0 %v5123_v4  ;;  %v5193_v4 = vld [vmem:[%s5599_s16 + $0x6c8] ss:$28 sps:$4 sm:$0xff]  }
  0xf7   : > { %2542 = vmatmul.mubr.bf16.gmra.mrb[80].mxu1 %v5125_v5  ;;  %2831 = vmatmul.mubr.bf16.gmra.mrb[80].mxu0 %v5126_v6  ;;  %v5194_v6 = vld [vmem:[%s5599_s16 + $0x198] ss:$28 sps:$4 sm:$0xff]  }
  0xf8   : > { %2549 = vmatprep.mubr.bf16.mxu1 %v5127_v7  ;;  %2838 = vmatprep.mubr.bf16.mxu0 %v5129_v8  ;;  %v5197_v7 = vld [vmem:[%s5599_s16 + $0x54c] ss:$28 sps:$4 sm:$0xff]  }
  0xff   : > { %2550 = vmatmul.mubr.bf16.gmra.mrb[84].mxu1 %v5131_v9  ;;  %2839 = vmatmul.mubr.bf16.gmra.mrb[84].mxu0 %v5132_v10  ;;  %v5198_v9 = vld [vmem:[%s5599_s16 + $0x1d4] ss:$28 sps:$4 sm:$0xff]  }
 0x100   : > { %2557 = vmatprep.mubr.bf16.mxu1 %v5134_v11  ;;  %2846 = vmatprep.mubr.bf16.mxu0 %v5136_v12  ;;  %v5195_v12 = vld [vmem:[%s5599_s16 + $0x548] ss:$28 sps:$4 sm:$0xff]  }
 0x107   : > { %2558 = vmatmul.mubr.bf16.gmra.mrb[88].mxu1 %v5138_v13  ;;  %2847 = vmatmul.mubr.bf16.gmra.mrb[88].mxu0 %v5139_v14  ;;  %v5200_v14 = vld [vmem:[%s5599_s16 + $0x1d0] ss:$28 sps:$4 sm:$0xff]  }
 0x108   : > { %2565 = vmatprep.mubr.bf16.mxu1 %v5141_v15  ;;  %2854 = vmatprep.mubr.bf16.mxu0 %v5143_v16  ;;  %v5202_v16 = vld [vmem:[%s5599_s16 + $0x584] ss:$28 sps:$4 sm:$0xff]  }
 0x10f   : > { %2566 = vmatmul.mubr.bf16.gmra.mrb[92].mxu1 %v5145_v17  ;;  %2855 = vmatmul.mubr.bf16.gmra.mrb[92].mxu0 %v5146_v18  ;;  %v5204_v17 = vld [vmem:[%s5599_s16 + $0x20c] ss:$28 sps:$4 sm:$0xff]  }
 0x110   : > { %2573 = vmatprep.mubr.bf16.mxu1 %v5147_v19  ;;  %2959 = vmatprep.mubr.bf16.mxu0 %v5151_v20  ;;  %v5208_v18 = vld [vmem:[%s6746_s1 + $0x188] sm:$0xff]   ;;  %v5215_v19 = vld [vmem:[%s6746_s1 + $0x190] sm:$0xff]  }
 0x117   : > { %2574 = vmatmul.mubr.bf16.gmra.mrb[96].mxu1 %v5152_v21  ;;  %2960 = vmatmul.mubr.bf16.vlgmr.msra.gmra.mrb[0].mxu0 %v5149_v22  ;;  %v5206_v22 = vld [vmem:[%s5599_s16 + $0x580] ss:$28 sps:$4 sm:$0xff]  }
 0x118   : > { %2581 = vmatprep.mubr.bf16.mxu1 %v5153_v23  ;;  %2967 = vmatprep.mubr.bf16.mxu0 %v5155_v24  ;;  %v5207_v24 = vld [vmem:[%s5599_s16 + $0x208] ss:$28 sps:$4 sm:$0xff]  }
 0x11f   : > { %2582 = vmatmul.mubr.bf16.gmra.mrb[100].mxu1 %v5157_v25  ;;  %2968 = vmatmul.mubr.bf16.gmra.mrb[4].mxu0 %v5158_v26  ;;  %v5209_v25 = vld [vmem:[%s5599_s16 + $0x5bc] ss:$28 sps:$4 sm:$0xff]  }
 0x120   : > { %2589 = vmatprep.mubr.bf16.mxu1 %v5159_v27  ;;  %2975 = vmatprep.mubr.bf16.mxu0 %v5161_v1  ;;  %v5222_v27 = vld [vmem:[%s6746_s1 + $0x198] sm:$0xff]  }
 0x127   : > { %2590 = vmatmul.mubr.bf16.gmra.mrb[104].mxu1 %v5163_v28  ;;  %2976 = vmatmul.mubr.bf16.gmra.mrb[8].mxu0 %v5164_v29  ;;  %v5229_v28 = vld [vmem:[%s6746_s1 + $0x1a0] sm:$0xff]  }
 0x128   : > { %2597 = vmatprep.mubr.bf16.mxu1 %v5165_v30  ;;  %2983 = vmatprep.mubr.bf16.mxu0 %v5167_v31  ;;  %v5213_v30 = vld [vmem:[%s5599_s16 + $0x5b8] ss:$28 sps:$4 sm:$0xff]  }
 0x12a   : > { %v5899_v32 = vpop.f32.mrb[0].mxu1 }
 0x12b   : > { %v2385_v33 = vpop.f32.mrb[1].mxu1 }
 0x12c   : > { %v5902_v35 = vpop.f32.mrb[2].mxu1  ;;  %v5214_v33 = vld [vmem:[%s5599_s16 + $0x240] ss:$28 sps:$4 sm:$0xff]  }
 0x12d   : > { %v2388_v38 = vpop.f32.mrb[3].mxu1 }
 0x12e   : > { %v5236_v38 = vld [vmem:[%s6746_s1 + $0x1a8] sm:$0xff]  }
 0x12f   : > { %2598 = vmatmul.mubr.bf16.gmra.mrb[108].mxu1 %v5169_v34  ;;  %2984 = vmatmul.mubr.bf16.gmra.mrb[12].mxu0 %v5170_v36  ;;  %v5216_v34 = vld [vmem:[%s5599_s16 + $0x5f4] ss:$28 sps:$4 sm:$0xff]  }
 0x130   : > { %2605 = vmatprep.mubr.bf16.mxu1 %v5171_v37  ;;  %2991 = vmatprep.mubr.bf16.mxu0 %v5173_v39  ;;  %v5218_v37 = vld [vmem:[%s5599_s16 + $0x27c] ss:$28 sps:$4 sm:$0xff]  }
 0x132   : > { %v5907_v40 = vpop.f32.mrb[4].mxu1 }
 0x133   : > { %v2393_v41 = vpop.f32.mrb[5].mxu1 }
 0x134   : > { %v5910_v43 = vpop.f32.mrb[6].mxu1  ;;  %v5243_v41 = vld [vmem:[%s6746_s1 + $0x1b0] sm:$0xff]  }
 0x135   : > { %v2396_v46 = vpop.f32.mrb[7].mxu1 }
 0x136   : > { %v5221_v46 = vld [vmem:[%s5599_s16 + $0x278] ss:$28 sps:$4 sm:$0xff]  }
 0x137   : > { %2606 = vmatmul.mubr.bf16.gmra.mrb[112].mxu1 %v5175_v42  ;;  %2992 = vmatmul.mubr.bf16.gmra.mrb[16].mxu0 %v5176_v44  ;;  %v5220_v44 = vld [vmem:[%s5599_s16 + $0x5f0] ss:$28 sps:$4 sm:$0xff]  }
 0x138   : > { %2613 = vmatprep.mubr.bf16.mxu1 %v5177_v45  ;;  %2999 = vmatprep.mubr.bf16.mxu0 %v5179_v47  ;;  %v5223_v47 = vld [vmem:[%s5599_s16 + $0x62c] ss:$28 sps:$4 sm:$0xff]  }
 0x13a   : > { %v5915_v48 = vpop.f32.mrb[8].mxu1 }
 0x13b   : > { %v2401_v49 = vpop.f32.mrb[9].mxu1 }
 0x13c   : > { %v5918_v51 = vpop.f32.mrb[10].mxu1 }
 0x13d   : > { %v2404_v54 = vpop.f32.mrb[11].mxu1 }
 0x13f   : > { %2614 = vmatmul.mubr.bf16.gmra.mrb[116].mxu1 %v5181_v50  ;;  %3000 = vmatmul.mubr.bf16.gmra.mrb[20].mxu0 %v5182_v52  ;;  %v5225_v50 = vld [vmem:[%s5599_s16 + $0x2b4] ss:$28 sps:$4 sm:$0xff]   ;;  %v5250_v52 = vld [vmem:[%s6746_s1 + $0x1b8] sm:$0xff]  }
 0x140   : > { %2621 = vmatprep.mubr.bf16.mxu1 %v5183_v53  ;;  %3007 = vmatprep.mubr.bf16.mxu0 %v5185_v56  ;;  %v5227_v56 = vld [vmem:[%s5599_s16 + $0x628] ss:$28 sps:$4 sm:$0xff]  }
 0x142   : > { %v5923_v57 = vpop.f32.mrb[12].mxu1 }
 0x143   : > { %v2409_v58 = vpop.f32.mrb[13].mxu1 }
 0x144   : > { %v5926_v60 = vpop.f32.mrb[14].mxu1 }
 0x145   : > { %v2412_v63 = vpop.f32.mrb[15].mxu1 }
 0x146   : > { %v5232_v63 = vld [vmem:[%s5599_s16 + $0x2ec] ss:$28 sps:$4 sm:$0xff]  }
 0x147   : > { %2622 = vmatmul.mubr.bf16.gmra.mrb[120].mxu1 %v5187_v59  ;;  %3008 = vmatmul.mubr.bf16.gmra.mrb[24].mxu0 %v5188_v61  ;;  %v5228_v59 = vld [vmem:[%s5599_s16 + $0x2b0] ss:$28 sps:$4 sm:$0xff]   ;;  %v5230_v61 = vld [vmem:[%s5599_s16 + $0x664] ss:$28 sps:$4 sm:$0xff]  }
 0x148   : > { %2629 = vmatprep.mubr.bf16.mxu1 %v5189_v62  ;;  %3015 = vmatprep.mubr.bf16.mxu0 %v5191_v0 }
 0x14a   : > { %v5931_v2 = vpop.f32.mrb[16].mxu1 }
 0x14b   : > { %v2417_v3 = vpop.f32.mrb[17].mxu1 }
 0x14c   : > { %v5934_v5 = vpop.f32.mrb[18].mxu1 }
 0x14d   : > { %v2420_v8 = vpop.f32.mrb[19].mxu1 }
 0x14e   : > { %v5237_v8 = vld [vmem:[%s5599_s16 + $0x69c] ss:$28 sps:$4 sm:$0xff]  }
 0x14f   : > { %2630 = vmatmul.mubr.bf16.gmra.mrb[124].mxu1 %v5193_v4  ;;  %3016 = vmatmul.mubr.bf16.gmra.mrb[28].mxu0 %v5194_v6  ;;  %v5234_v4 = vld [vmem:[%s5599_s16 + $0x660] ss:$28 sps:$4 sm:$0xff]  }
 0x150   : > { %2862 = vmatprep.mubr.bf16.mxu1 %v5197_v7  ;;  %3023 = vmatprep.mubr.bf16.mxu0 %v5198_v9  ;;  %v5235_v7 = vld [vmem:[%s5599_s16 + $0x2e8] ss:$28 sps:$4 sm:$0xff]  }
 0x152   : > { %v5939_v10 = vpop.f32.mrb[20].mxu1 }
 0x153   : > { %v2425_v11 = vpop.f32.mrb[21].mxu1 }
 0x154   : > { %v5942_v13 = vpop.f32.mrb[22].mxu1  ;;  %v5239_v11 = vld [vmem:[%s5599_s16 + $0x324] ss:$28 sps:$4 sm:$0xff]  }
 0x155   : > { %v2428_v15 = vpop.f32.mrb[23].mxu1 }
 0x156   : > { %v5241_v15 = vld [vmem:[%s5599_s16 + $0x698] ss:$28 sps:$4 sm:$0xff]  }
 0x157   : > { %2863 = vmatmul.mubr.bf16.vlgmr.msra.gmra.mrb[96].mxu1 %v5195_v12  ;;  %3024 = vmatmul.mubr.bf16.gmra.mrb[32].mxu0 %v5200_v14 }
 0x158   : > { %4593 = vmatpush3.bf16.msra.mxu1 %v5856_v55  ;;  %2870 = vmatprep.mubr.bf16.mxu1 %v5202_v16  ;;  %v5211_v55 = vld [vmem:[%s5599_s16 + $0x244] ss:$28 sps:$4 sm:$0xff]  }
 0x159   : > { %3031 = vmatprep.mubr.bf16.mxu0 %v5204_v17  ;;  %4594 = vmatprep.subr.bf16.mxu1 %v5208_v18  ;;  %v5242_v17 = vld [vmem:[%s5599_s16 + $0x320] ss:$28 sps:$4 sm:$0xff]  }
 0x15a   : > { %v5954_v20 = vpop.f32.mrb[24].mxu1 }
 0x15b   : > { %v2433_v21 = vpop.f32.mrb[25].mxu1 }
 0x15c   : > { %v5957_v23 = vpop.f32.mrb[26].mxu1  ;;  %4595 = vmatpush3.bf16.msra.mxu1 %v5208_v18  ;;  %v5244_v18 = vld [vmem:[%s5599_s16 + $0x6d4] ss:$28 sps:$4 sm:$0xff]   ;;  %v5246_v21 = vld [vmem:[%s5599_s16 + $0x35c] ss:$28 sps:$4 sm:$0xff]  }
 0x15d   : > { %v2436_v26 = vpop.f32.mrb[27].mxu1  ;;  %4596 = vmatprep.subr.bf16.mxu1 %v5215_v19 }
 0x15f   : > { %2871 = vmatmul.mubr.bf16.gmra.mrb[100].mxu1 %v5206_v22  ;;  %3032 = vmatmul.mubr.bf16.gmra.mrb[36].mxu0 %v5207_v24 }
 0x160   : > { %2878 = vmatprep.mubr.bf16.mxu1 %v5209_v25  ;;  %3039 = vmatprep.mubr.bf16.mxu0 %v5211_v55  ;;  %v5248_v25 = vld [vmem:[%s5599_s16 + $0x6d0] ss:$28 sps:$4 sm:$0xff]   ;;  %v5249_v55 = vld [vmem:[%s5599_s16 + $0x358] ss:$28 sps:$4 sm:$0xff]  }
 0x161   : > { %4597 = vmatpush3.bf16.msra.mxu1 %v5215_v19 }
 0x162   : > { %v5965_v1 = vpop.f32.mrb[28].mxu1  ;;  %4598 = vmatprep.subr.bf16.mxu1 %v5222_v27 }
 0x163   : > { %v2441_v29 = vpop.f32.mrb[29].mxu1 }
 0x164   : > { %v5971_v31 = vpop.f32.mrb[30].mxu1  ;;  %v5251_v29 = vld [vmem:[%s5599_s16 + $0x394] ss:$28 sps:$4 sm:$0xff]  }
 0x165   : > { %v2444_v36 = vpop.f32.mrb[31].mxu1  ;;  %4599 = vmatpush3.bf16.msra.mxu1 %v5222_v27  ;;  %v5253_v27 = vld [vmem:[%s5599_s16 + $0x18] ss:$28 sps:$4 sm:$0xff]  }
 0x166   : > { %4600 = vmatprep.subr.bf16.mxu1 %v5229_v28 }
 0x167   : > { %2879 = vmatmul.mubr.bf16.gmra.mrb[104].mxu1 %v5213_v30  ;;  %3040 = vmatmul.mubr.bf16.gmra.mrb[40].mxu0 %v5214_v33 }
 0x168   : > { %2886 = vmatprep.mubr.bf16.mxu1 %v5216_v34  ;;  %3047 = vmatprep.mubr.bf16.mxu0 %v5218_v37  ;;  %v5255_v34 = vld [vmem:[%s5599_s16 + $0x50] ss:$28 sps:$4 sm:$0xff]  }
 0x169   : > { %4601 = vmatpush3.bf16.msra.mxu1 %v5229_v28  ;;  %v5254_v37 = vld [vmem:[%s5599_s16 + $0x390] ss:$28 sps:$4 sm:$0xff]  }
 0x16a   : > { %v5979_v39 = vpop.f32.mrb[32].mxu1  ;;  %4602 = vmatprep.subr.bf16.mxu1 %v5236_v38 }
 0x16b   : > { %v2449_v42 = vpop.f32.mrb[33].mxu1 }
 0x16c   : > { %v5985_v45 = vpop.f32.mrb[34].mxu1  ;;  %v5256_v42 = vld [vmem:[%s5599_s16 + $0x3cc] ss:$28 sps:$4 sm:$0xff]  }
 0x16d   : > { %v2452_v49 = vpop.f32.mrb[35].mxu1  ;;  %4603 = vmatpush3.bf16.msra.mxu1 %v5236_v38  ;;  %v5258_v38 = vld [vmem:[%s5599_s16 + $0x88] ss:$28 sps:$4 sm:$0xff]  }
 0x16e   : > { %4604 = vmatprep.subr.bf16.mxu1 %v5243_v41 }
 0x16f   : > { %2887 = vmatmul.mubr.bf16.gmra.mrb[108].mxu1 %v5220_v44  ;;  %3048 = vmatmul.mubr.bf16.gmra.mrb[44].mxu0 %v5221_v46 }
 0x170   : > { %2894 = vmatprep.mubr.bf16.mxu1 %v5223_v47  ;;  %3055 = vmatprep.mubr.bf16.mxu0 %v5225_v50  ;;  %v5260_v47 = vld [vmem:[%s5599_s16 + $0xc0] ss:$28 sps:$4 sm:$0xff]   ;;  %v5259_v50 = vld [vmem:[%s5599_s16 + $0x3c8] ss:$28 sps:$4 sm:$0xff]  }
 0x171   : > { %4605 = vmatpush3.bf16.msra.mxu1 %v5243_v41 }
 0x172   : > { %v5993_v53 = vpop.f32.mrb[36].mxu1  ;;  %4606 = vmatprep.subr.bf16.mxu1 %v5250_v52 }
 0x173   : > { %v2457_v54 = vpop.f32.mrb[37].mxu1 }
 0x174   : > { %v5996_v58 = vpop.f32.mrb[38].mxu1 }
 0x175   : > { %v2460_v62 = vpop.f32.mrb[39].mxu1  ;;  %4607 = vmatpush3.bf16.msra.mxu1 %v5250_v52  ;;  %v5263_v52 = vld [vmem:[%s5599_s16 + $0xf8] ss:$28 sps:$4 sm:$0xff]  }
 0x176   : > { %v5265_v62 = vld [vmem:[%s5599_s16 + $0x130] ss:$28 sps:$4 sm:$0xff]  }
 0x177   : > { %2895 = vmatmul.mubr.bf16.gmra.mrb[112].mxu1 %v5227_v56  ;;  %3056 = vmatmul.mubr.bf16.gmra.mrb[48].mxu0 %v5228_v59  ;;  %v5261_v56 = vld [vmem:[%s5599_s16 + $0x404] ss:$28 sps:$4 sm:$0xff]  }
 0x178   : > { %2902 = vmatprep.mubr.bf16.mxu1 %v5230_v61  ;;  %3063 = vmatprep.mubr.bf16.mxu0 %v5232_v63 }
 0x17a   : > { %v6001_v0 = vpop.f32.mrb[40].mxu1 }
 0x17b   : > { %v2465_v3 = vpop.f32.mrb[41].mxu1 }
 0x17c   : > { %v6004_v6 = vpop.f32.mrb[42].mxu1  ;;  %v5264_v3 = vld [vmem:[%s5599_s16 + $0x400] ss:$28 sps:$4 sm:$0xff]  }
 0x17d   : > { %v2468_v9 = vpop.f32.mrb[43].mxu1 }
 0x17f   : > { %2903 = vmatmul.mubr.bf16.gmra.mrb[116].mxu1 %v5234_v4  ;;  %3064 = vmatmul.mubr.bf16.gmra.mrb[52].mxu0 %v5235_v7  ;;  %v5268_v4 = vld [vmem:[%s5599_s16 + $0x168] ss:$28 sps:$4 sm:$0xff]  }
 0x180   : > { %2910 = vmatprep.mubr.bf16.mxu1 %v5237_v8  ;;  %3071 = vmatprep.mubr.bf16.mxu0 %v5239_v11  ;;  %v5266_v8 = vld [vmem:[%s5599_s16 + $0x43c] ss:$28 sps:$4 sm:$0xff]  }
 0x182   : > { %v6009_v12 = vpop.f32.mrb[44].mxu1 }
 0x183   : > { %v2473_v14 = vpop.f32.mrb[45].mxu1 }
 0x184   : > { %v6012_v16 = vpop.f32.mrb[46].mxu1  ;;  %v5270_v14 = vld [vmem:[%s5599_s16 + $0x1a0] ss:$28 sps:$4 sm:$0xff]  }
 0x185   : > { %v2476_v19 = vpop.f32.mrb[47].mxu1 }
 0x187   : > { %2911 = vmatmul.mubr.bf16.gmra.mrb[120].mxu1 %v5241_v15  ;;  %3072 = vmatmul.mubr.bf16.gmra.mrb[56].mxu0 %v5242_v17  ;;  %v5269_v17 = vld [vmem:[%s5599_s16 + $0x438] ss:$28 sps:$4 sm:$0xff]  }
 0x188   : > { %2918 = vmatprep.mubr.bf16.mxu1 %v5244_v18  ;;  %3079 = vmatprep.mubr.bf16.mxu0 %v5246_v21  ;;  %v5273_v18 = vld [vmem:[%s5599_s16 + $0x1d8] ss:$28 sps:$4 sm:$0xff]  }
 0x189   : > { %v5271_v21 = vld [vmem:[%s5599_s16 + $0x474] ss:$28 sps:$4 sm:$0xff]  }
 0x18a   : > { %v6017_v22 = vpop.f32.mrb[48].mxu1 }
 0x18b   : > { %v2481_v24 = vpop.f32.mrb[49].mxu1 }
 0x18c   : > { %v6020_v26 = vpop.f32.mrb[50].mxu1 }
 0x18d   : > { %v2484_v28 = vpop.f32.mrb[51].mxu1 }
 0x18e   : > { %v5274_v28 = vld [vmem:[%s5599_s16 + $0x470] ss:$28 sps:$4 sm:$0xff]  }
 0x18f   : > { %2919 = vmatmul.mubr.bf16.gmra.mrb[124].mxu1 %v5248_v25  ;;  %3080 = vmatmul.mubr.bf16.gmra.mrb[60].mxu0 %v5249_v55  ;;  %v5275_v55 = vld [vmem:[%s5599_s16 + $0x210] ss:$28 sps:$4 sm:$0xff]  }
 0x190   : > { %4608 = vmatprep.mubr.bf16.mxu1 %v5253_v27  ;;  %3087 = vmatprep.mubr.bf16.mxu0 %v5251_v29  ;;  %v5278_v29 = vld [vmem:[%s5599_s16 + $0x248] ss:$28 sps:$4 sm:$0xff]  }
 0x192   : > { %v6025_v30 = vpop.f32.mrb[52].mxu1 }
 0x193   : > { %v2489_v33 = vpop.f32.mrb[53].mxu1 }
 0x194   : > { %v6028_v36 = vpop.f32.mrb[54].mxu1 }
 0x195   : > { %v2492_v41 = vpop.f32.mrb[55].mxu1 }
 0x196   : > { %v5280_v41 = vld [vmem:[%s5599_s16 + $0x280] ss:$28 sps:$4 sm:$0xff]  }
 0x197   : > { %4609 = vmatmul.mubr.bf16.vlgmr.msra.gmra.mrb[128].mxu1 %v5255_v34  ;;  %3088 = vmatmul.mubr.bf16.gmra.mrb[64].mxu0 %v5254_v37  ;;  %v5276_v34 = vld [vmem:[%s5599_s16 + $0x4ac] ss:$28 sps:$4 sm:$0xff]  }
 0x198   : > { %4612 = vmatprep.mubr.bf16.mxu1 %v5258_v38  ;;  %3095 = vmatprep.mubr.bf16.mxu0 %v5256_v42 }
 0x19a   : > { %v6033_v44 = vpop.f32.mrb[56].mxu1 }
 0x19b   : > { %v2497_v46 = vpop.f32.mrb[57].mxu1 }
 0x19c   : > { %v6036_v49 = vpop.f32.mrb[58].mxu1  ;;  %v5279_v46 = vld [vmem:[%s5599_s16 + $0x4a8] ss:$28 sps:$4 sm:$0xff]  }
 0x19d   : > { %v2500_v54 = vpop.f32.mrb[59].mxu1 }
 0x19f   : > { %4613 = vmatmul.mubr.bf16.gmra.mrb[132].mxu1 %v5260_v47  ;;  %3096 = vmatmul.mubr.bf16.gmra.mrb[68].mxu0 %v5259_v50  ;;  %v5283_v47 = vld [vmem:[%s5599_s16 + $0x2b8] ss:$28 sps:$4 sm:$0xff]  }
 0x1a0   : > { %4616 = vmatprep.mubr.bf16.mxu1 %v5263_v52  ;;  %3103 = vmatprep.mubr.bf16.mxu0 %v5261_v56  ;;  %v5281_v52 = vld [vmem:[%s5599_s16 + $0x4e4] ss:$28 sps:$4 sm:$0xff]  }
 0x1a2   : > { %v6041_v59 = vpop.f32.mrb[60].mxu1 }
 0x1a3   : > { %v2505_v61 = vpop.f32.mrb[61].mxu1 }
 0x1a4   : > { %v6044_v63 = vpop.f32.mrb[62].mxu1  ;;  %v5285_v61 = vld [vmem:[%s5599_s16 + $0x2f0] ss:$28 sps:$4 sm:$0xff]  }
 0x1a5   : > { %v2508_v7 = vpop.f32.mrb[63].mxu1 }
 0x1a7   : > { %4617 = vmatmul.mubr.bf16.gmra.mrb[136].mxu1 %v5265_v62  ;;  %3104 = vmatmul.mubr.bf16.gmra.mrb[72].mxu0 %v5264_v3  ;;  %v5284_v3 = vld [vmem:[%s5599_s16 + $0x4e0] ss:$28 sps:$4 sm:$0xff]  }
 0x1a8   : > { %4620 = vmatprep.mubr.bf16.mxu1 %v5268_v4  ;;  %3111 = vmatprep.mubr.bf16.mxu0 %v5266_v8  ;;  %v5288_v4 = vld [vmem:[%s5599_s16 + $0x328] ss:$28 sps:$4 sm:$0xff]   ;;  %v5286_v8 = vld [vmem:[%s5599_s16 + $0x51c] ss:$28 sps:$4 sm:$0xff]  }
 0x1aa   : > { %v6049_v9 = vpop.f32.mrb[64].mxu1 }
 0x1ab   : > { %v2513_v11 = vpop.f32.mrb[65].mxu1 }
 0x1ac   : > { %v6052_v15 = vpop.f32.mrb[66].mxu1 }
 0x1ad   : > { %v2516_v19 = vpop.f32.mrb[67].mxu1 }
 0x1ae   : > { %v5289_v19 = vld [vmem:[%s5599_s16 + $0x518] ss:$28 sps:$4 sm:$0xff]  }
 0x1af   : > { %4621 = vmatmul.mubr.bf16.gmra.mrb[140].mxu1 %v5270_v14  ;;  %3112 = vmatmul.mubr.bf16.gmra.mrb[76].mxu0 %v5269_v17  ;;  %v5290_v17 = vld [vmem:[%s5599_s16 + $0x360] ss:$28 sps:$4 sm:$0xff]  }
 0x1b0   : > { %4624 = vmatprep.mubr.bf16.mxu1 %v5273_v18  ;;  %3119 = vmatprep.mubr.bf16.mxu0 %v5271_v21  ;;  %v5293_v21 = vld [vmem:[%s5599_s16 + $0x398] ss:$28 sps:$4 sm:$0xff]  }
 0x1b2   : > { %v6057_v24 = vpop.f32.mrb[68].mxu1 }
 0x1b3   : > { %v2521_v25 = vpop.f32.mrb[69].mxu1 }
 0x1b4   : > { %v6060_v27 = vpop.f32.mrb[70].mxu1 }
 0x1b5   : > { %v2524_v33 = vpop.f32.mrb[71].mxu1 }
 0x1b6   : > { %v5295_v33 = vld [vmem:[%s5599_s16 + $0x3d0] ss:$28 sps:$4 sm:$0xff]  }
 0x1b7   : > { %4625 = vmatmul.mubr.bf16.gmra.mrb[144].mxu1 %v5275_v55  ;;  %3120 = vmatmul.mubr.bf16.gmra.mrb[80].mxu0 %v5274_v28  ;;  %v5291_v55 = vld [vmem:[%s5599_s16 + $0x554] ss:$28 sps:$4 sm:$0xff]  }
 0x1b8   : > { %4628 = vmatprep.mubr.bf16.mxu1 %v5278_v29  ;;  %3127 = vmatprep.mubr.bf16.mxu0 %v5276_v34 }
 0x1ba   : > { %v6065_v37 = vpop.f32.mrb[72].mxu1 }
 0x1bb   : > { %v2529_v38 = vpop.f32.mrb[73].mxu1 }
 0x1bc   : > { %v6068_v42 = vpop.f32.mrb[74].mxu1  ;;  %v5294_v38 = vld [vmem:[%s5599_s16 + $0x550] ss:$28 sps:$4 sm:$0xff]  }
 0x1bd   : > { %v2532_v50 = vpop.f32.mrb[75].mxu1 }
 0x1bf   : > { %4629 = vmatmul.mubr.bf16.gmra.mrb[148].mxu1 %v5280_v41  ;;  %3128 = vmatmul.mubr.bf16.gmra.mrb[84].mxu0 %v5279_v46  ;;  %v5298_v41 = vld [vmem:[%s5599_s16 + $0x408] ss:$28 sps:$4 sm:$0xff]  }
 0x1c0   : > { %4632 = vmatprep.mubr.bf16.mxu1 %v5283_v47  ;;  %3135 = vmatprep.mubr.bf16.mxu0 %v5281_v52  ;;  %v5296_v47 = vld [vmem:[%s5599_s16 + $0x58c] ss:$28 sps:$4 sm:$0xff]  }
 0x1c2   : > { %v6073_v54 = vpop.f32.mrb[76].mxu1 }
 0x1c3   : > { %v2537_v56 = vpop.f32.mrb[77].mxu1 }
 0x1c4   : > { %v6076_v62 = vpop.f32.mrb[78].mxu1  ;;  %v5300_v56 = vld [vmem:[%s5599_s16 + $0x440] ss:$28 sps:$4 sm:$0xff]  }
 0x1c5   : > { %v2540_v7 = vpop.f32.mrb[79].mxu1 }
 0x1c7   : > { %4633 = vmatmul.mubr.bf16.gmra.mrb[152].mxu1 %v5285_v61  ;;  %3136 = vmatmul.mubr.bf16.gmra.mrb[88].mxu0 %v5284_v3  ;;  %v5299_v3 = vld [vmem:[%s5599_s16 + $0x588] ss:$28 sps:$4 sm:$0xff]  }
 0x1c8   : > { %4636 = vmatprep.mubr.bf16.mxu1 %v5288_v4  ;;  %3143 = vmatprep.mubr.bf16.mxu0 %v5286_v8  ;;  %v5303_v4 = vld [vmem:[%s5599_s16 + $0x478] ss:$28 sps:$4 sm:$0xff]   ;;  %v5301_v8 = vld [vmem:[%s5599_s16 + $0x5c4] ss:$28 sps:$4 sm:$0xff]  }
 0x1ca   : > { %v6081_v11 = vpop.f32.mrb[80].mxu1 }
 0x1cb   : > { %v2545_v14 = vpop.f32.mrb[81].mxu1 }
 0x1cc   : > { %v6084_v18 = vpop.f32.mrb[82].mxu1 }
 0x1cd   : > { %v2548_v25 = vpop.f32.mrb[83].mxu1 }
 0x1ce   : > { %v5304_v25 = vld [vmem:[%s5599_s16 + $0x5c0] ss:$28 sps:$4 sm:$0xff]  }
 0x1cf   : > { %4637 = vmatmul.mubr.bf16.gmra.mrb[156].mxu1 %v5290_v17  ;;  %3144 = vmatmul.mubr.bf16.gmra.mrb[92].mxu0 %v5289_v19  ;;  %v5305_v19 = vld [vmem:[%s5599_s16 + $0x4b0] ss:$28 sps:$4 sm:$0xff]  }
 0x1d0   : > { %4640 = vmatprep.mubr.bf16.mxu1 %v5293_v21  ;;  %3151 = vmatprep.mubr.bf16.mxu0 %v5291_v55  ;;  %v5308_v55 = vld [vmem:[%s5599_s16 + $0x4e8] ss:$28 sps:$4 sm:$0xff]  }
 0x1d2   : > { %v6089_v28 = vpop.f32.mrb[84].mxu1 }
 0x1d3   : > { %v2553_v29 = vpop.f32.mrb[85].mxu1 }
 0x1d4   : > { %v6092_v34 = vpop.f32.mrb[86].mxu1 }
 0x1d5   : > { %v2556_v46 = vpop.f32.mrb[87].mxu1 }
 0x1d7   : > { %4641 = vmatmul.mubr.bf16.gmra.mrb[160].mxu1 %v5295_v33  ;;  %3152 = vmatmul.mubr.bf16.gmra.mrb[96].mxu0 %v5294_v38  ;;  %v5306_v33 = vld [vmem:[%s5599_s16 + $0x5fc] ss:$28 sps:$4 sm:$0xff]  }
 0x1d8   : > { %4644 = vmatprep.mubr.bf16.mxu1 %v5298_v41  ;;  %3159 = vmatprep.mubr.bf16.mxu0 %v5296_v47  ;;  %v5310_v41 = vld [vmem:[%s5599_s16 + $0x520] ss:$28 sps:$4 sm:$0xff]  }
 0x1da   : > { %v6097_v50 = vpop.f32.mrb[88].mxu1 }
 0x1db   : > { %v2561_v52 = vpop.f32.mrb[89].mxu1 }
 0x1dc   : > { %v6100_v61 = vpop.f32.mrb[90].mxu1  ;;  %v5309_v52 = vld [vmem:[%s5599_s16 + $0x5f8] ss:$28 sps:$4 sm:$0xff]  }
 0x1dd   : > { %v2564_v7 = vpop.f32.mrb[91].mxu1 }
 0x1df   : > { %4645 = vmatmul.mubr.bf16.gmra.mrb[164].mxu1 %v5300_v56  ;;  %3160 = vmatmul.mubr.bf16.gmra.mrb[100].mxu0 %v5299_v3  ;;  %v5313_v56 = vld [vmem:[%s5599_s16 + $0x558] ss:$28 sps:$4 sm:$0xff]  }
 0x1e0   : > { %4648 = vmatprep.mubr.bf16.mxu1 %v5303_v4  ;;  %3167 = vmatprep.mubr.bf16.mxu0 %v5301_v8  ;;  %v5311_v4 = vld [vmem:[%s5599_s16 + $0x634] ss:$28 sps:$4 sm:$0xff]  }
 0x1e2   : > { %v6105_v14 = vpop.f32.mrb[92].mxu1 }
 0x1e3   : > { %v2569_v17 = vpop.f32.mrb[93].mxu1 }
 0x1e4   : > { %v6108_v21 = vpop.f32.mrb[94].mxu1 }
 0x1e5   : > { %6753 = vst [vmem:[#allocation6_spill] sm:$0xff] %v6108_v21  ;;  %v2572_v29 = vpop.f32.mrb[95].mxu1 }
 0x1e6   : > { %v5318_v29 = vld [vmem:[%s5599_s16 + $0x5c8] ss:$28 sps:$4 sm:$0xff]  }
 0x1e7   : > { %4649 = vmatmul.mubr.bf16.gmra.mrb[168].mxu1 %v5305_v19  ;;  %3168 = vmatmul.mubr.bf16.gmra.mrb[104].mxu0 %v5304_v25 }
 0x1e8   : > { %4652 = vmatprep.mubr.bf16.mxu1 %v5308_v55  ;;  %3175 = vmatprep.mubr.bf16.mxu0 %v5306_v33  ;;  %v5314_v55 = vld [vmem:[%s5599_s16 + $0x630] ss:$28 sps:$4 sm:$0xff]  }
 0x1ea   : > { %v2961_v38 = vpop.f32.mrb[0].mxu0 }
 0x1eb   : > { %v6115_v46 = vadd.f32 %v2961_v38, %v5899_v32  ;;  %v2963_v47 = vpop.f32.mrb[1].mxu0  ;;  %v5315_v32 = vld [vmem:[%s5599_s16 + $0x590] ss:$28 sps:$4 sm:$0xff]  }
 0x1ec   : > { %v2964_v3 = vpop.f32.mrb[2].mxu0 }
 0x1ed   : > { %v6121_v7 = vadd.f32 %v2964_v3, %v5902_v35  ;;  %v2966_v8 = vpop.f32.mrb[3].mxu0  ;;  %v5316_v35 = vld [vmem:[%s5599_s16 + $0x66c] ss:$28 sps:$4 sm:$0xff]  }
 0x1ee   : > { %v5319_v3 = vld [vmem:[%s5599_s16 + $0x668] ss:$28 sps:$4 sm:$0xff]  }
 0x1ef   : > { %4653 = vmatmul.mubr.bf16.gmra.mrb[172].mxu1 %v5310_v41  ;;  %3176 = vmatmul.mubr.bf16.gmra.mrb[108].mxu0 %v5309_v52 }
 0x1f0   : > { %4656 = vmatprep.mubr.bf16.mxu1 %v5313_v56  ;;  %3183 = vmatprep.mubr.bf16.mxu0 %v5311_v4  ;;  %v5323_v4 = vld [vmem:[%s5599_s16 + $0x638] ss:$28 sps:$4 sm:$0xff]  }
 0x1f2   : > { %v2969_v17 = vpop.f32.mrb[4].mxu0 }
 0x1f3   : > { %v6125_v19 = vadd.f32 %v2969_v17, %v5907_v40  ;;  %v2971_v25 = vpop.f32.mrb[5].mxu0  ;;  %v5320_v40 = vld [vmem:[%s5599_s16 + $0x600] ss:$28 sps:$4 sm:$0xff]  }
 0x1f4   : > { %v2972_v33 = vpop.f32.mrb[6].mxu0 }
 0x1f5   : > { %v6131_v38 = vadd.f32 %v2972_v33, %v5910_v43  ;;  %v2974_v41 = vpop.f32.mrb[7].mxu0  ;;  %v5321_v43 = vld [vmem:[%s5599_s16 + $0x6a4] ss:$28 sps:$4 sm:$0xff]  }
 0x1f6   : > { %v5324_v33 = vld [vmem:[%s5599_s16 + $0x6a0] ss:$28 sps:$4 sm:$0xff]  }
 0x1f7   : > { %4657 = vmatmul.mubr.bf16.gmra.mrb[176].mxu1 %v5315_v32  ;;  %3184 = vmatmul.mubr.bf16.gmra.mrb[112].mxu0 %v5314_v55 }
 0x1f8   : > { %4660 = vmatprep.mubr.bf16.mxu1 %v5318_v29  ;;  %3191 = vmatprep.mubr.bf16.mxu0 %v5316_v35  ;;  %v5328_v35 = vld [vmem:[%s5599_s16 + $0x6a8] ss:$28 sps:$4 sm:$0xff]  }
 0x1fa   : > { %v2977_v47 = vpop.f32.mrb[8].mxu0 }
 0x1fb   : > { %v6135_v52 = vadd.f32 %v2977_v47, %v5915_v48  ;;  %v2979_v56 = vpop.f32.mrb[9].mxu0  ;;  %v5325_v48 = vld [vmem:[%s5599_s16 + $0x670] ss:$28 sps:$4 sm:$0xff]   ;;  %v5326_v47 = vld [vmem:[%s5599_s16 + $0x6dc] ss:$28 sps:$4 sm:$0xff]  }
 0x1fc   : > { %v2980_v8 = vpop.f32.mrb[10].mxu0 }
 0x1fd   : > { %v6141_v17 = vadd.f32 %v2980_v8, %v5918_v51  ;;  %v2982_v32 = vpop.f32.mrb[11].mxu0  ;;  %v5329_v8 = vld [vmem:[%s5599_s16 + $0x6d8] ss:$28 sps:$4 sm:$0xff]  }
 0x1ff   : > { %4661 = vmatmul.mubr.bf16.gmra.mrb[180].mxu1 %v5320_v40  ;;  %3192 = vmatmul.mubr.bf16.gmra.mrb[116].mxu0 %v5319_v3  ;;  %v5330_v3 = vld [vmem:[%s5599_s16 + $0x6e0] ss:$28 sps:$4 sm:$0xff]   ;;  %s4263_s16 = sshll.u32 %s6801_s12, 3  ;;  %s320_s12 = sand.u32 1, %s5395_s19  }
 0x200   : > { %4664 = vmatprep.mubr.bf16.mxu1 %v5323_v4  ;;  %3199 = vmatprep.mubr.bf16.mxu0 %v5321_v43  ;;  %s6268_s29 = scalar_lea.vmem %s6749_s4, %s4263_s16  ;;  %s4259_s9 = sshll.u32 %s320_s12, 9 }
 0x201   : > { %s6305_s10 = scalar_lea.vmem [#allocation3], %s4259_s9  ;;  %s4551_s16 = sshll.u32 %s5403_s21, 13 }
 0x202   : > { %v2985_v25 = vpop.f32.mrb[12].mxu0  ;;  %s4113_s17 = sshll.u32 %s6305_s10, 4  ;;  %s6690_s27 = scalar_lea.hbm %s6750_s5, %s4551_s16  ;;  %s6692_s17 = int_to_ptr.vmem [resolvable:$true] %s4113_s17 }
 0x203   : > { %v6145_v55 = vadd.f32 %v2985_v25, %v5923_v57  ;;  %v2987_v29 = vpop.f32.mrb[13].mxu0  ;;  %s6699_s21 = scalar_lea.sflag [#allocation4], %s320_s12  ;;  %s5339_s9 = scalar_lea.vmem %s5338_s8, 16384 }
 0x204   : > { %v2988_v41 = vpop.f32.mrb[14].mxu0  ;;  %p5340_p1 = scmp.lt.s32.totalorder %s6692_s17, %s5338_s8 }
 0x205   : > { %v6151_v51 = vadd.f32 %v2988_v41, %v5926_v60  ;;  %v2990_v56 = vpop.f32.mrb[15].mxu0 }
 0x207   : > { %4665 = vmatmul.mubr.bf16.gmra.mrb[184].mxu1 %v5325_v48  ;;  %3200 = vmatmul.mubr.bf16.gmra.mrb[120].mxu0 %v5324_v33 }
 0x208   : > { %4668 = vmatprep.mubr.bf16.mxu1 %v5328_v35  ;;  %3207 = vmatprep.mubr.bf16.mxu0 %v5326_v47 }
 0x20a   : > { %v2993_v40 = vpop.f32.mrb[16].mxu0 }
 0x20b   : > { %v6155_v4 = vadd.f32 %v2993_v40, %v5931_v2  ;;  %v2995_v57 = vpop.f32.mrb[17].mxu0 }
 0x20c   : > { %v2996_v43 = vpop.f32.mrb[18].mxu0 }
 0x20d   : > { %v6159_v32 = vadd.f32 %v2996_v43, %v5934_v5  ;;  %v2998_v25 = vpop.f32.mrb[19].mxu0 }
 0x20f   : > { %4669 = vmatmul.mubr.bf16.gmra.mrb[188].mxu1 %v5330_v3  ;;  %3208 = vmatmul.mubr.bf16.gmra.mrb[124].mxu0 %v5329_v8 }
 0x212   : > { %v3001_v60 = vpop.f32.mrb[20].mxu0 }
 0x213   : > { %v6162_v48 = vadd.f32 %v3001_v60, %v5939_v10  ;;  %v3003_v29 = vpop.f32.mrb[21].mxu0 }
 0x214   : > { %v3004_v33 = vpop.f32.mrb[22].mxu0 }
 0x215   : > { %v6165_v35 = vadd.f32 %v3004_v33, %v5942_v13  ;;  %v3006_v2 = vpop.f32.mrb[23].mxu0 }
 0x21a   : > { %v3009_v41 = vpop.f32.mrb[24].mxu0 }
 0x21b   : > { %v6168_v47 = vadd.f32 %v3009_v41, %v5954_v20  ;;  %v3011_v56 = vpop.f32.mrb[25].mxu0 }
 0x21c   : > { %v3012_v5 = vpop.f32.mrb[26].mxu0 }
 0x21d   : > { %v6171_v40 = vadd.f32 %v3012_v5, %v5957_v23  ;;  %v3014_v3 = vpop.f32.mrb[27].mxu0 }
 0x222   : > { %v3017_v57 = vpop.f32.mrb[28].mxu0 }
 0x223   : > { %v6174_v10 = vadd.f32 %v3017_v57, %v5965_v1  ;;  %v3019_v8 = vpop.f32.mrb[29].mxu0 }
 0x224   : > { %v3020_v43 = vpop.f32.mrb[30].mxu0 }
 0x225   : > { %v6177_v13 = vadd.f32 %v3020_v43, %v5971_v31  ;;  %v3022_v25 = vpop.f32.mrb[31].mxu0 }
 0x22a   : > { %v6179_v60 = vpop.f32.mrb[96].mxu1  ;;  %v3025_v20 = vpop.f32.mrb[32].mxu0 }
 0x22b   : > { %6754 = vst [vmem:[#allocation7_spill] sm:$0xff] %v6179_v60  ;;  %v2866_v29 = vpop.f32.mrb[97].mxu1  ;;  %v6182_v33 = vadd.f32 %v3025_v20, %v5979_v39  ;;  %v3027_v23 = vpop.f32.mrb[33].mxu0 }
 0x22c   : > { %v6184_v2 = vpop.f32.mrb[98].mxu1  ;;  %v3028_v41 = vpop.f32.mrb[34].mxu0 }
 0x22d   : > { %6755 = vst [vmem:[#allocation8_spill] sm:$0xff] %v6184_v2  ;;  %v2869_v56 = vpop.f32.mrb[99].mxu1  ;;  %v6187_v1 = vadd.f32 %v3028_v41, %v5985_v45  ;;  %v3030_v5 = vpop.f32.mrb[35].mxu0 }
 0x232   : > { %v6189_v3 = vpop.f32.mrb[100].mxu1  ;;  %v3033_v31 = vpop.f32.mrb[36].mxu0 }
 0x233   : > { %6756 = vst [vmem:[#allocation9_spill] sm:$0xff] %v6189_v3  ;;  %v2874_v57 = vpop.f32.mrb[101].mxu1  ;;  %v6192_v8 = vadd.f32 %v3033_v31, %v5993_v53  ;;  %v3035_v43 = vpop.f32.mrb[37].mxu0 }
 0x234   : > { %v6194_v25 = vpop.f32.mrb[102].mxu1  ;;  %v3036_v39 = vpop.f32.mrb[38].mxu0 }
 0x235   : > { %6757 = vst [vmem:[#allocation10_spill] sm:$0xff] %v6194_v25  ;;  %v2877_v20 = vpop.f32.mrb[103].mxu1  ;;  %v6197_v29 = vadd.f32 %v3036_v39, %v5996_v58  ;;  %v3038_v23 = vpop.f32.mrb[39].mxu0 }
 0x23a   : > { %v6199_v56 = vpop.f32.mrb[104].mxu1  ;;  %v3041_v45 = vpop.f32.mrb[40].mxu0 }
 0x23b   : > { %6758 = vst [vmem:[#allocation11_spill] sm:$0xff] %v6199_v56  ;;  %v2882_v41 = vpop.f32.mrb[105].mxu1  ;;  %v6202_v5 = vadd.f32 %v3041_v45, %v6001_v0  ;;  %v3043_v57 = vpop.f32.mrb[41].mxu0 }
 0x23c   : > { %v6204_v3 = vpop.f32.mrb[106].mxu1  ;;  %v3044_v53 = vpop.f32.mrb[42].mxu0 }
 0x23d   : > { %6759 = vst [vmem:[#allocation12_spill] sm:$0xff] %v6204_v3  ;;  %v2885_v31 = vpop.f32.mrb[107].mxu1  ;;  %v6207_v43 = vadd.f32 %v3044_v53, %v6004_v6  ;;  %v3046_v20 = vpop.f32.mrb[43].mxu0 }
 0x242   : > { %v6209_v25 = vpop.f32.mrb[108].mxu1  ;;  %v3049_v58 = vpop.f32.mrb[44].mxu0 }
 0x243   : > { %6760 = vst [vmem:[#allocation13_spill] sm:$0xff] %v6209_v25  ;;  %v2890_v39 = vpop.f32.mrb[109].mxu1  ;;  %v6212_v23 = vadd.f32 %v3049_v58, %v6009_v12  ;;  %v3051_v41 = vpop.f32.mrb[45].mxu0 }
 0x244   : > { %v6214_v56 = vpop.f32.mrb[110].mxu1  ;;  %v3052_v0 = vpop.f32.mrb[46].mxu0 }
 0x245   : > { %6761 = vst [vmem:[#allocation14_spill] sm:$0xff] %v6214_v56  ;;  %v2893_v45 = vpop.f32.mrb[111].mxu1  ;;  %v6217_v57 = vadd.f32 %v3052_v0, %v6012_v16  ;;  %v3054_v31 = vpop.f32.mrb[47].mxu0 }
 0x24a   : > { %v6219_v3 = vpop.f32.mrb[112].mxu1  ;;  %v3057_v6 = vpop.f32.mrb[48].mxu0 }
 0x24b   : > { %6762 = vst [vmem:[#allocation15_spill] sm:$0xff] %v6219_v3  ;;  %v2898_v53 = vpop.f32.mrb[113].mxu1  ;;  %v6222_v20 = vadd.f32 %v3057_v6, %v6017_v22  ;;  %v3059_v39 = vpop.f32.mrb[49].mxu0 }
 0x24c   : > { %v6224_v25 = vpop.f32.mrb[114].mxu1  ;;  %v3060_v12 = vpop.f32.mrb[50].mxu0 }
 0x24d   : > { %6763 = vst [vmem:[#allocation16_spill] sm:$0xff] %v6224_v25  ;;  %v2901_v58 = vpop.f32.mrb[115].mxu1  ;;  %v6227_v41 = vadd.f32 %v3060_v12, %v6020_v26  ;;  %v3062_v45 = vpop.f32.mrb[51].mxu0 }
 0x252   : > { %v6229_v56 = vpop.f32.mrb[116].mxu1  ;;  %v3065_v16 = vpop.f32.mrb[52].mxu0 }
 0x253   : > { %6764 = vst [vmem:[#allocation17_spill] sm:$0xff] %v6229_v56  ;;  %v2906_v0 = vpop.f32.mrb[117].mxu1  ;;  %v6232_v31 = vadd.f32 %v3065_v16, %v6025_v30  ;;  %v3067_v53 = vpop.f32.mrb[53].mxu0 }
 0x254   : > { %v6234_v3 = vpop.f32.mrb[118].mxu1  ;;  %v3068_v22 = vpop.f32.mrb[54].mxu0 }
 0x255   : > { %6765 = vst [vmem:[#allocation18_spill] sm:$0xff] %v6234_v3  ;;  %v2909_v6 = vpop.f32.mrb[119].mxu1  ;;  %v6237_v39 = vadd.f32 %v3068_v22, %v6028_v36  ;;  %v3070_v58 = vpop.f32.mrb[55].mxu0 }
 0x25a   : > { %v6239_v25 = vpop.f32.mrb[120].mxu1  ;;  %v3073_v26 = vpop.f32.mrb[56].mxu0 }
 0x25b   : > { %6766 = vst [vmem:[#allocation19_spill] sm:$0xff] %v6239_v25  ;;  %v2914_v12 = vpop.f32.mrb[121].mxu1  ;;  %v6242_v45 = vadd.f32 %v3073_v26, %v6033_v44  ;;  %v3075_v0 = vpop.f32.mrb[57].mxu0 }
 0x25c   : > { %v6244_v30 = vpop.f32.mrb[122].mxu1  ;;  %v3076_v16 = vpop.f32.mrb[58].mxu0 }
 0x25d   : > { %6767 = vst [vmem:[#allocation20_spill] sm:$0xff] %v6244_v30  ;;  %v2917_v53 = vpop.f32.mrb[123].mxu1  ;;  %v6247_v3 = vadd.f32 %v3076_v16, %v6036_v49  ;;  %v3078_v6 = vpop.f32.mrb[59].mxu0  ;;  %v6263_v16 = vld [vmem:[%s6747_s2] ss:$0 sm:$0xff] }
 0x25f   : > { %6768 = vst [vmem:[#allocation21_spill] sm:$0xff] %v6247_v3 }
 0x262   : > { %v6249_v36 = vpop.f32.mrb[124].mxu1  ;;  %v3081_v22 = vpop.f32.mrb[60].mxu0 }
 0x263   : > { %6769 = vst [vmem:[#allocation22_spill] sm:$0xff] %v6249_v36  ;;  %v2922_v58 = vpop.f32.mrb[125].mxu1  ;;  %v6252_v12 = vadd.f32 %v3081_v22, %v6041_v59  ;;  %v3083_v44 = vpop.f32.mrb[61].mxu0  ;;  %v6278_v22 = vld [vmem:[%s6748_s3] ss:$0 sm:$0xff] }
 0x264   : > { %v6254_v26 = vpop.f32.mrb[126].mxu1  ;;  %v3084_v0 = vpop.f32.mrb[62].mxu0 }
 0x265   : > { %6770 = vst [vmem:[#allocation23_spill] sm:$0xff] %v6254_v26  ;;  %v2925_v25 = vpop.f32.mrb[127].mxu1  ;;  %v6257_v30 = vadd.f32 %v3084_v0, %v6044_v63  ;;  %v3086_v53 = vpop.f32.mrb[63].mxu0 }
 0x26a   : > { %v4610_v49 = vpop.f32.mrb[128].mxu1  ;;  %v3089_v6 = vpop.f32.mrb[64].mxu0 }
 0x26b   : > { %v3259_v59 = vadd.f32 %v6125_v19, %v4610_v49  ;;  %v3250_v25 = vpop.f32.mrb[129].mxu1  ;;  %v6272_v63 = vadd.f32 %v3089_v6, %v6049_v9  ;;  %v3091_v58 = vpop.f32.mrb[65].mxu0  ;;  %v3844_v6 = vld [vmem:[%s6268_s29 + $0x10] sm:$0xff] }
 0x26c   : > { %v3251_v44 = vadd.f32 %v6115_v46, %v3250_v25  ;;  %v4611_v0 = vpop.f32.mrb[130].mxu1  ;;  %v3092_v19 = vpop.f32.mrb[66].mxu0  ;;  %v3842_v25 = vld [vmem:[%s6268_s29] sm:$0xff] }
 0x26d   : > { %6771 = vst [vmem:[#allocation24_spill] sm:$0xff] %v6272_v63  ;;  %v3709_v53 = vmul.f32 %v6263_v16, %v3259_v59  ;;  %v3262_v49 = vadd.f32 %v6131_v38, %v4611_v0  ;;  %v3253_v9 = vpop.f32.mrb[131].mxu1  ;;  %v6286_v36 = vadd.f32 %v3092_v19, %v6052_v15  ;;  %v3094_v56 = vpop.f32.mrb[67].mxu0  ;;  %v3845_v0 = vld [vmem:[%s6268_s29 + $0x18] sm:$0xff]  ;;  %v3843_v15 = vld [vmem:[%s6268_s29 + $0x8] sm:$0xff] }
 0x26e   : > { %v3707_v26 = vmul.f32 %v6263_v16, %v3251_v44  ;;  %v3254_v58 = vadd.f32 %v6121_v7, %v3253_v9 }
 0x26f   : > { %6772 = vst [vmem:[#allocation25_spill] sm:$0xff] %v6286_v36  ;;  %v3780_v46 = vadd.f32 %v6278_v22, %v3709_v53  ;;  %v3710_v59 = vmul.f32 %v6263_v16, %v3262_v49 }
 0x270   : > { %v3778_v38 = vadd.f32 %v6278_v22, %v3707_v26  ;;  %v3708_v2 = vmul.f32 %v6263_v16, %v3254_v58 }
 0x271   : > { %v3908_v63 = vadd.f32 %v3844_v6, %v3780_v46  ;;  %v3781_v44 = vadd.f32 %v6278_v22, %v3710_v59 }
 0x272   : > { %v3906_v19 = vadd.f32 %v3842_v25, %v3778_v38  ;;  %v3779_v56 = vadd.f32 %v6278_v22, %v3708_v2  ;;  %v4614_v7 = vpop.f32.mrb[132].mxu1  ;;  %v3097_v60 = vpop.f32.mrb[68].mxu0 }
 0x273   : > { %v3972_v9 = vmax.f32 %v3908_v63, 0.0  ;;  %v3909_v36 = vadd.f32 %v3845_v0, %v3781_v44  ;;  %v3275_v53 = vadd.f32 %v6145_v55, %v4614_v7  ;;  %v3266_v3 = vpop.f32.mrb[133].mxu1  ;;  %v6302_v21 = vadd.f32 %v3097_v60, %v6057_v24  ;;  %v3099_v6 = vpop.f32.mrb[69].mxu0  ;;  %v3846_v44 = vld [vmem:[%s6268_s29 + $0x20] sm:$0xff] }
 0x274   : > { %v3970_v49 = vmax.f32 %v3906_v19, 0.0  ;;  %v3907_v26 = vadd.f32 %v3843_v15, %v3779_v56  ;;  %v3267_v58 = vadd.f32 %v6135_v52, %v3266_v3  ;;  %v4615_v46 = vpop.f32.mrb[134].mxu1  ;;  %v3100_v63 = vpop.f32.mrb[70].mxu0  ;;  %v3848_v52 = vld [vmem:[%s6268_s29 + $0x30] sm:$0xff]  ;;  %v3849_v19 = vld [vmem:[%s6268_s29 + $0x38] sm:$0xff] }
 0x275   : > { %4036 = vst [vmem:[%s6305_s10 + $0x10] sm:$0xff] %v3972_v9  ;;  %v3973_v2 = vmax.f32 %v3909_v36, 0.0  ;;  %v3713_v55 = vmul.f32 %v6263_v16, %v3275_v53  ;;  %v3278_v24 = vadd.f32 %v6151_v51, %v4615_v46  ;;  %v3269_v60 = vpop.f32.mrb[135].mxu1  ;;  %v6314_v59 = vadd.f32 %v3100_v63, %v6060_v27  ;;  %v3102_v38 = vpop.f32.mrb[71].mxu0  ;;  %v3847_v27 = vld [vmem:[%s6268_s29 + $0x28] sm:$0xff] }
 0x276   : > { %4034 = vst [vmem:[%s6305_s10] sm:$0xff] %v3970_v49  ;;  %v3971_v25 = vmax.f32 %v3907_v26, 0.0  ;;  %v3711_v3 = vmul.f32 %v6263_v16, %v3267_v58  ;;  %v3270_v36 = vadd.f32 %v6141_v17, %v3269_v60 }
 0x277   : > { %4037 = vst [vmem:[%s6305_s10 + $0x18] sm:$0xff] %v3973_v2  ;;  %v3784_v0 = vadd.f32 %v6278_v22, %v3713_v55  ;;  %v3714_v15 = vmul.f32 %v6263_v16, %v3278_v24 }
 0x278   : > { %4035 = vst [vmem:[%s6305_s10 + $0x8] sm:$0xff] %v3971_v25  ;;  %v3782_v51 = vadd.f32 %v6278_v22, %v3711_v3  ;;  %v3712_v56 = vmul.f32 %v6263_v16, %v3270_v36 }
 0x279   : > { %v3912_v7 = vadd.f32 %v3848_v52, %v3784_v0  ;;  %v3785_v9 = vadd.f32 %v6278_v22, %v3714_v15 }
 0x27a   : > { %v3910_v53 = vadd.f32 %v3846_v44, %v3782_v51  ;;  %v3783_v17 = vadd.f32 %v6278_v22, %v3712_v56  ;;  %v4618_v49 = vpop.f32.mrb[136].mxu1  ;;  %v3105_v58 = vpop.f32.mrb[72].mxu0 }
 0x27b   : > { %v3976_v26 = vmax.f32 %v3912_v7, 0.0  ;;  %v3913_v6 = vadd.f32 %v3849_v19, %v3785_v9  ;;  %v3291_v46 = vadd.f32 %v6162_v48, %v4618_v49  ;;  %v3282_v2 = vpop.f32.mrb[137].mxu1  ;;  %v6330_v24 = vadd.f32 %v3105_v58, %v6065_v37  ;;  %v3107_v60 = vpop.f32.mrb[73].mxu0  ;;  %v3852_v37 = vld [vmem:[%s6268_s29 + $0x50] sm:$0xff]  ;;  %v3850_v7 = vld [vmem:[%s6268_s29 + $0x40] sm:$0xff] }
 0x27c   : > { %v3974_v55 = vmax.f32 %v3910_v53, 0.0  ;;  %v3911_v63 = vadd.f32 %v3847_v27, %v3783_v17  ;;  %v3283_v25 = vadd.f32 %v6155_v4, %v3282_v2  ;;  %v4619_v52 = vpop.f32.mrb[138].mxu1  ;;  %v3108_v36 = vpop.f32.mrb[74].mxu0  ;;  %v3853_v27 = vld [vmem:[%s6268_s29 + $0x58] sm:$0xff] }
 0x27d   : > { %4040 = vst [vmem:[%s6305_s10 + $0x30] sm:$0xff] %v3976_v26  ;;  %v3977_v3 = vmax.f32 %v3913_v6, 0.0  ;;  %v3717_v38 = vmul.f32 %v6263_v16, %v3291_v46  ;;  %v3294_v48 = vadd.f32 %v6165_v35, %v4619_v52  ;;  %v3285_v0 = vpop.f32.mrb[139].mxu1  ;;  %v6340_v4 = vadd.f32 %v3108_v36, %v6068_v42  ;;  %v3110_v51 = vpop.f32.mrb[75].mxu0  ;;  %v3851_v42 = vld [vmem:[%s6268_s29 + $0x48] sm:$0xff] }
 0x27e   : > { %4038 = vst [vmem:[%s6305_s10 + $0x20] sm:$0xff] %v3974_v55  ;;  %v3975_v44 = vmax.f32 %v3911_v63, 0.0  ;;  %v3715_v15 = vmul.f32 %v6263_v16, %v3283_v25  ;;  %v3286_v19 = vadd.f32 %v6159_v32, %v3285_v0 }
 0x27f   : > { %4041 = vst [vmem:[%s6305_s10 + $0x38] sm:$0xff] %v3977_v3  ;;  %v3788_v56 = vadd.f32 %v6278_v22, %v3717_v38  ;;  %v3718_v9 = vmul.f32 %v6263_v16, %v3294_v48 }
 0x280   : > { %4039 = vst [vmem:[%s6305_s10 + $0x28] sm:$0xff] %v3975_v44  ;;  %v3786_v35 = vadd.f32 %v6278_v22, %v3715_v15  ;;  %v3716_v53 = vmul.f32 %v6263_v16, %v3286_v19 }
 0x281   : > { %v3916_v17 = vadd.f32 %v3852_v37, %v3788_v56  ;;  %v3789_v49 = vadd.f32 %v6278_v22, %v3718_v9  ;;  %v3854_v9 = vld [vmem:[%s6268_s29 + $0x60] sm:$0xff] }
 0x282   : > { %v3914_v26 = vadd.f32 %v3850_v7, %v3786_v35  ;;  %v3787_v32 = vadd.f32 %v6278_v22, %v3716_v53  ;;  %v4622_v6 = vpop.f32.mrb[140].mxu1  ;;  %v3113_v2 = vpop.f32.mrb[76].mxu0 }
 0x283   : > { %v3980_v58 = vmax.f32 %v3916_v17, 0.0  ;;  %v3917_v46 = vadd.f32 %v3853_v27, %v3789_v49  ;;  %v3307_v55 = vadd.f32 %v6174_v10, %v4622_v6  ;;  %v3298_v63 = vpop.f32.mrb[141].mxu1  ;;  %v6356_v52 = vadd.f32 %v3113_v2, %v6073_v54  ;;  %v3115_v3 = vpop.f32.mrb[77].mxu0  ;;  %v3856_v54 = vld [vmem:[%s6268_s29 + $0x70] sm:$0xff]  ;;  %v3857_v27 = vld [vmem:[%s6268_s29 + $0x78] sm:$0xff] }
 0x284   : > { %v3978_v60 = vmax.f32 %v3914_v26, 0.0  ;;  %v3915_v25 = vadd.f32 %v3851_v42, %v3787_v32  ;;  %v3299_v38 = vadd.f32 %v6168_v47, %v3298_v63  ;;  %v4623_v36 = vpop.f32.mrb[142].mxu1  ;;  %v3116_v44 = vpop.f32.mrb[78].mxu0 }
 0x285   : > { %4044 = vst [vmem:[%s6305_s10 + $0x50] sm:$0xff] %v3980_v58  ;;  %v3981_v48 = vmax.f32 %v3917_v46, 0.0  ;;  %v3721_v0 = vmul.f32 %v6263_v16, %v3307_v55  ;;  %v3310_v10 = vadd.f32 %v6177_v13, %v4623_v36  ;;  %v3301_v37 = vpop.f32.mrb[143].mxu1  ;;  %v6366_v47 = vadd.f32 %v3116_v44, %v6076_v62  ;;  %v3118_v19 = vpop.f32.mrb[79].mxu0  ;;  %v3855_v62 = vld [vmem:[%s6268_s29 + $0x68] sm:$0xff] }
 0x286   : > { %4042 = vst [vmem:[%s6305_s10 + $0x40] sm:$0xff] %v3978_v60  ;;  %v3979_v15 = vmax.f32 %v3915_v25, 0.0  ;;  %v3719_v51 = vmul.f32 %v6263_v16, %v3299_v38  ;;  %v3302_v56 = vadd.f32 %v6171_v40, %v3301_v37  ;;  %v3858_v19 = vld [vmem:[%s6268_s29 + $0x80] sm:$0xff] }
 0x287   : > { %4045 = vst [vmem:[%s6305_s10 + $0x58] sm:$0xff] %v3981_v48  ;;  %v3792_v7 = vadd.f32 %v6278_v22, %v3721_v0  ;;  %v3722_v35 = vmul.f32 %v6263_v16, %v3310_v10 }
 0x288   : > { %4043 = vst [vmem:[%s6305_s10 + $0x48] sm:$0xff] %v3979_v15  ;;  %v3790_v13 = vadd.f32 %v6278_v22, %v3719_v51  ;;  %v3720_v53 = vmul.f32 %v6263_v16, %v3302_v56 }
 0x289   : > { %v3920_v17 = vadd.f32 %v3856_v54, %v3792_v7  ;;  %v3793_v49 = vadd.f32 %v6278_v22, %v3722_v35  ;;  %v3861_v7 = vld [vmem:[%s6268_s29 + $0x98] sm:$0xff] }
 0x28a   : > { %v3918_v42 = vadd.f32 %v3854_v9, %v3790_v13  ;;  %v3791_v40 = vadd.f32 %v6278_v22, %v3720_v53  ;;  %v4626_v26 = vpop.f32.mrb[144].mxu1  ;;  %v3121_v58 = vpop.f32.mrb[80].mxu0 }
 0x28b   : > { %v3984_v32 = vmax.f32 %v3920_v17, 0.0  ;;  %v3921_v6 = vadd.f32 %v3857_v27, %v3793_v49  ;;  %v3323_v46 = vadd.f32 %v6192_v8, %v4626_v26  ;;  %v3314_v2 = vpop.f32.mrb[145].mxu1  ;;  %v6382_v60 = vadd.f32 %v3121_v58, %v6081_v11  ;;  %v3123_v25 = vpop.f32.mrb[81].mxu0  ;;  %v3860_v11 = vld [vmem:[%s6268_s29 + $0x90] sm:$0xff] }
 0x28c   : > { %v3982_v55 = vmax.f32 %v3918_v42, 0.0  ;;  %v3919_v63 = vadd.f32 %v3855_v62, %v3791_v40  ;;  %v3315_v3 = vadd.f32 %v6182_v33, %v3314_v2  ;;  %v4627_v38 = vpop.f32.mrb[146].mxu1  ;;  %v3124_v0 = vpop.f32.mrb[82].mxu0 }
 0x28d   : > { %4048 = vst [vmem:[%s6305_s10 + $0x70] sm:$0xff] %v3984_v32  ;;  %v3985_v36 = vmax.f32 %v3921_v6, 0.0  ;;  %v3725_v48 = vmul.f32 %v6263_v16, %v3323_v46  ;;  %v3326_v8 = vadd.f32 %v6197_v29, %v4627_v38  ;;  %v3317_v44 = vpop.f32.mrb[147].mxu1  ;;  %v6392_v33 = vadd.f32 %v3124_v0, %v6084_v18  ;;  %v3126_v15 = vpop.f32.mrb[83].mxu0  ;;  %v3859_v18 = vld [vmem:[%s6268_s29 + $0x88] sm:$0xff] }
 0x28e   : > { %4046 = vst [vmem:[%s6305_s10 + $0x60] sm:$0xff] %v3982_v55  ;;  %v3983_v10 = vmax.f32 %v3919_v63, 0.0  ;;  %v3723_v37 = vmul.f32 %v6263_v16, %v3315_v3  ;;  %v3318_v54 = vadd.f32 %v6187_v1, %v3317_v44  ;;  %v3862_v44 = vld [vmem:[%s6268_s29 + $0xa0] sm:$0xff] }
 0x28f   : > { %4049 = vst [vmem:[%s6305_s10 + $0x78] sm:$0xff] %v3985_v36  ;;  %v3796_v51 = vadd.f32 %v6278_v22, %v3725_v48  ;;  %v3726_v56 = vmul.f32 %v6263_v16, %v3326_v8 }
 0x290   : > { %4047 = vst [vmem:[%s6305_s10 + $0x68] sm:$0xff] %v3983_v10  ;;  %v3794_v29 = vadd.f32 %v6278_v22, %v3723_v37  ;;  %v3724_v9 = vmul.f32 %v6263_v16, %v3318_v54 }
 0x291   : > { %v3924_v35 = vadd.f32 %v3860_v11, %v3796_v51  ;;  %v3797_v13 = vadd.f32 %v6278_v22, %v3726_v56  ;;  %v3865_v11 = vld [vmem:[%s6268_s29 + $0xb8] sm:$0xff] }
 0x292   : > { %v3922_v27 = vadd.f32 %v3858_v19, %v3794_v29  ;;  %v3795_v1 = vadd.f32 %v6278_v22, %v3724_v9  ;;  %v4630_v53 = vpop.f32.mrb[148].mxu1  ;;  %v3129_v62 = vpop.f32.mrb[84].mxu0 }
 0x293   : > { %v3988_v17 = vmax.f32 %v3924_v35, 0.0  ;;  %v3925_v49 = vadd.f32 %v3861_v7, %v3797_v13  ;;  %v3339_v42 = vadd.f32 %v6212_v23, %v4630_v53  ;;  %v3330_v40 = vpop.f32.mrb[149].mxu1  ;;  %v6408_v6 = vadd.f32 %v3129_v62, %v6089_v28  ;;  %v3131_v58 = vpop.f32.mrb[85].mxu0  ;;  %v3864_v28 = vld [vmem:[%s6268_s29 + $0xb0] sm:$0xff] }
 0x294   : > { %v3986_v26 = vmax.f32 %v3922_v27, 0.0  ;;  %v3923_v32 = vadd.f32 %v3859_v18, %v3795_v1  ;;  %v3331_v46 = vadd.f32 %v6202_v5, %v3330_v40  ;;  %v4631_v2 = vpop.f32.mrb[150].mxu1  ;;  %v3132_v25 = vpop.f32.mrb[86].mxu0 }
 0x295   : > { %4052 = vst [vmem:[%s6305_s10 + $0x90] sm:$0xff] %v3988_v17  ;;  %v3989_v55 = vmax.f32 %v3925_v49, 0.0  ;;  %v3729_v63 = vmul.f32 %v6263_v16, %v3339_v42  ;;  %v3342_v23 = vadd.f32 %v6217_v57, %v4631_v2  ;;  %v3333_v3 = vpop.f32.mrb[151].mxu1  ;;  %v6418_v5 = vadd.f32 %v3132_v25, %v6092_v34  ;;  %v3134_v48 = vpop.f32.mrb[87].mxu0  ;;  %v3863_v34 = vld [vmem:[%s6268_s29 + $0xa8] sm:$0xff]  ;;  %v3869_v25 = vld [vmem:[%s6268_s29 + $0xd8] sm:$0xff] }
 0x296   : > { %4050 = vst [vmem:[%s6305_s10 + $0x80] sm:$0xff] %v3986_v26  ;;  %v3987_v38 = vmax.f32 %v3923_v32, 0.0  ;;  %v3727_v36 = vmul.f32 %v6263_v16, %v3331_v46  ;;  %v3334_v0 = vadd.f32 %v6207_v43, %v3333_v3 }
 0x297   : > { %4053 = vst [vmem:[%s6305_s10 + $0x98] sm:$0xff] %v3989_v55  ;;  %v3800_v8 = vadd.f32 %v6278_v22, %v3729_v63  ;;  %v3730_v10 = vmul.f32 %v6263_v16, %v3342_v23  ;;  %v3866_v55 = vld [vmem:[%s6268_s29 + $0xc0] sm:$0xff] }
 0x298   : > { %4051 = vst [vmem:[%s6305_s10 + $0x88] sm:$0xff] %v3987_v38  ;;  %v3798_v57 = vadd.f32 %v6278_v22, %v3727_v36  ;;  %v3728_v37 = vmul.f32 %v6263_v16, %v3334_v0 }
 0x299   : > { %v3928_v15 = vadd.f32 %v3864_v28, %v3800_v8  ;;  %v3801_v54 = vadd.f32 %v6278_v22, %v3730_v10 }
 0x29a   : > { %v3926_v51 = vadd.f32 %v3862_v44, %v3798_v57  ;;  %v3799_v43 = vadd.f32 %v6278_v22, %v3728_v37  ;;  %v4634_v19 = vpop.f32.mrb[152].mxu1  ;;  %v3137_v7 = vpop.f32.mrb[88].mxu0 }
 0x29b   : > { %v3992_v56 = vmax.f32 %v3928_v15, 0.0  ;;  %v3929_v29 = vadd.f32 %v3865_v11, %v3801_v54  ;;  %v3355_v9 = vadd.f32 %v6232_v31, %v4634_v19  ;;  %v3346_v35 = vpop.f32.mrb[153].mxu1  ;;  %v6434_v27 = vadd.f32 %v3137_v7, %v6097_v50  ;;  %v3139_v1 = vpop.f32.mrb[89].mxu0  ;;  %v3868_v50 = vld [vmem:[%s6268_s29 + $0xd0] sm:$0xff] }
 0x29c   : > { %v3990_v13 = vmax.f32 %v3926_v51, 0.0  ;;  %v3927_v18 = vadd.f32 %v3863_v34, %v3799_v43  ;;  %v3347_v53 = vadd.f32 %v6222_v20, %v3346_v35  ;;  %v4635_v17 = vpop.f32.mrb[154].mxu1  ;;  %v3140_v42 = vpop.f32.mrb[90].mxu0 }
 0x29d   : > { %4056 = vst [vmem:[%s6305_s10 + $0xb0] sm:$0xff] %v3992_v56  ;;  %v3993_v49 = vmax.f32 %v3929_v29, 0.0  ;;  %v3733_v62 = vmul.f32 %v6263_v16, %v3355_v9  ;;  %v3358_v31 = vadd.f32 %v6237_v39, %v4635_v17  ;;  %v3349_v40 = vpop.f32.mrb[155].mxu1  ;;  %v6444_v20 = vadd.f32 %v3140_v42, %v6100_v61  ;;  %v3142_v58 = vpop.f32.mrb[91].mxu0  ;;  %v3867_v61 = vld [vmem:[%s6268_s29 + $0xc8] sm:$0xff]  ;;  %v6773_v9 = vld [vmem:[#allocation6_spill] sm:$0xff] }
 0x29e   : > { %4054 = vst [vmem:[%s6305_s10 + $0xa0] sm:$0xff] %v3990_v13  ;;  %v3991_v26 = vmax.f32 %v3927_v18, 0.0  ;;  %v3731_v32 = vmul.f32 %v6263_v16, %v3347_v53  ;;  %v3350_v46 = vadd.f32 %v6227_v41, %v3349_v40  ;;  %v6774_v13 = vld [vmem:[#allocation21_spill] sm:$0xff]  ;;  %v3870_v53 = vld [vmem:[%s6268_s29 + $0xe0] sm:$0xff]  ;;  %v3871_v40 = vld [vmem:[%s6268_s29 + $0xe8] sm:$0xff] }
 0x29f   : > { %4057 = vst [vmem:[%s6305_s10 + $0xb8] sm:$0xff] %v3993_v49  ;;  %v3804_v2 = vadd.f32 %v6278_v22, %v3733_v62  ;;  %v3734_v63 = vmul.f32 %v6263_v16, %v3358_v31  ;;  %v3873_v49 = vld [vmem:[%s6268_s29 + $0xf8] sm:$0xff] }
 0x2a0   : > { %4055 = vst [vmem:[%s6305_s10 + $0xa8] sm:$0xff] %v3991_v26  ;;  %v3802_v39 = vadd.f32 %v6278_v22, %v3731_v32  ;;  %v3732_v23 = vmul.f32 %v6263_v16, %v3350_v46 }
 0x2a1   : > { %v3932_v3 = vadd.f32 %v3868_v50, %v3804_v2  ;;  %v3805_v38 = vadd.f32 %v6278_v22, %v3734_v63 }
 0x2a2   : > { %v3930_v28 = vadd.f32 %v3866_v55, %v3802_v39  ;;  %v3803_v41 = vadd.f32 %v6278_v22, %v3732_v23  ;;  %v4638_v36 = vpop.f32.mrb[156].mxu1  ;;  %v3145_v8 = vpop.f32.mrb[92].mxu0  ;;  %v6775_v23 = vld [vmem:[#allocation7_spill] sm:$0xff] }
 0x2a3   : > { %v3996_v48 = vmax.f32 %v3932_v3, 0.0  ;;  %v3933_v0 = vadd.f32 %v3869_v25, %v3805_v38  ;;  %v3371_v44 = vadd.f32 %v6252_v12, %v4638_v36  ;;  %v3362_v10 = vpop.f32.mrb[157].mxu1  ;;  %v6460_v37 = vadd.f32 %v3145_v8, %v6105_v14  ;;  %v3147_v15 = vpop.f32.mrb[93].mxu0  ;;  %v3872_v14 = vld [vmem:[%s6268_s29 + $0xf0] sm:$0xff] }
 0x2a4   : > { %v3994_v57 = vmax.f32 %v3930_v28, 0.0  ;;  %v3931_v11 = vadd.f32 %v3867_v61, %v3803_v41  ;;  %v3363_v54 = vadd.f32 %v6242_v45, %v3362_v10  ;;  %v4639_v34 = vpop.f32.mrb[158].mxu1  ;;  %v3148_v19 = vpop.f32.mrb[94].mxu0  ;;  %v6776_v61 = vld [vmem:[#allocation24_spill] sm:$0xff] }
 0x2a5   : > { %4060 = vst [vmem:[%s6305_s10 + $0xd0] sm:$0xff] %v3996_v48  ;;  %v3997_v51 = vmax.f32 %v3933_v0, 0.0  ;;  %v3737_v43 = vmul.f32 %v6263_v16, %v3371_v44  ;;  %v3374_v12 = vadd.f32 %v6257_v30, %v4639_v34  ;;  %v3365_v56 = vpop.f32.mrb[159].mxu1  ;;  %v6470_v45 = vadd.f32 %v3148_v19, %v6773_v9  ;;  %v3150_v35 = vpop.f32.mrb[95].mxu0  ;;  %v3876_v10 = vld [vmem:[%s6268_s29 + $0x110] sm:$0xff]  ;;  %v6778_v34 = vld [vmem:[#allocation25_spill] sm:$0xff] }
 0x2a6   : > { %4058 = vst [vmem:[%s6305_s10 + $0xc0] sm:$0xff] %v3994_v57  ;;  %v3995_v29 = vmax.f32 %v3931_v11, 0.0  ;;  %v3735_v7 = vmul.f32 %v6263_v16, %v3363_v54  ;;  %v3366_v18 = vadd.f32 %v6774_v13, %v3365_v56  ;;  %v6777_v11 = vld [vmem:[#allocation8_spill] sm:$0xff]  ;;  %v3874_v19 = vld [vmem:[%s6268_s29 + $0x100] sm:$0xff]  ;;  %v3877_v56 = vld [vmem:[%s6268_s29 + $0x118] sm:$0xff] }
 0x2a7   : > { %4061 = vst [vmem:[%s6305_s10 + $0xd8] sm:$0xff] %v3997_v51  ;;  %v3808_v1 = vadd.f32 %v6278_v22, %v3737_v43  ;;  %v3738_v17 = vmul.f32 %v6263_v16, %v3374_v12  ;;  %v3875_v9 = vld [vmem:[%s6268_s29 + $0x108] sm:$0xff] }
 0x2a8   : > { %4059 = vst [vmem:[%s6305_s10 + $0xc8] sm:$0xff] %v3995_v29  ;;  %v3806_v30 = vadd.f32 %v6278_v22, %v3735_v7  ;;  %v3736_v62 = vmul.f32 %v6263_v16, %v3366_v18 }
 0x2a9   : > { %v3936_v42 = vadd.f32 %v3872_v14, %v3808_v1  ;;  %v3809_v31 = vadd.f32 %v6278_v22, %v3738_v17 }
 0x2aa   : > { %v3934_v26 = vadd.f32 %v3870_v53, %v3806_v30  ;;  %v3807_v50 = vadd.f32 %v6278_v22, %v3736_v62  ;;  %v4642_v32 = vpop.f32.mrb[160].mxu1  ;;  %v3153_v2 = vpop.f32.mrb[96].mxu0 }
 0x2ab   : > { %v4000_v58 = vmax.f32 %v3936_v42, 0.0  ;;  %v3937_v46 = vadd.f32 %v3873_v49, %v3809_v31  ;;  %v3387_v55 = vadd.f32 %v6302_v21, %v4642_v32  ;;  %v3378_v63 = vpop.f32.mrb[161].mxu1  ;;  %v6486_v3 = vadd.f32 %v3153_v2, %v6775_v23  ;;  %v3155_v38 = vpop.f32.mrb[97].mxu0  ;;  %v6779_v31 = vld [vmem:[#allocation9_spill] sm:$0xff]  ;;  %v6780_v23 = vld [vmem:[#allocation10_spill] sm:$0xff] }
 0x2ac   : > { %v3998_v39 = vmax.f32 %v3934_v26, 0.0  ;;  %v3935_v25 = vadd.f32 %v3871_v40, %v3807_v50  ;;  %v3379_v28 = vadd.f32 %v6776_v61, %v3378_v63  ;;  %v4643_v41 = vpop.f32.mrb[162].mxu1  ;;  %v3156_v0 = vpop.f32.mrb[98].mxu0 }
 0x2ad   : > { %4064 = vst [vmem:[%s6305_s10 + $0xf0] sm:$0xff] %v4000_v58  ;;  %v4001_v36 = vmax.f32 %v3937_v46, 0.0  ;;  %v3741_v48 = vmul.f32 %v6263_v16, %v3387_v55  ;;  %v3390_v21 = vadd.f32 %v6314_v59, %v4643_v41  ;;  %v3381_v8 = vpop.f32.mrb[163].mxu1  ;;  %v6496_v15 = vadd.f32 %v3156_v0, %v6777_v11  ;;  %v3158_v54 = vpop.f32.mrb[99].mxu0  ;;  %v3878_v41 = vld [vmem:[%s6268_s29 + $0x120] sm:$0xff] }
 0x2ae   : > { %4062 = vst [vmem:[%s6305_s10 + $0xe0] sm:$0xff] %v3998_v39  ;;  %v3999_v44 = vmax.f32 %v3935_v25, 0.0  ;;  %v3739_v57 = vmul.f32 %v6263_v16, %v3379_v28  ;;  %v3382_v51 = vadd.f32 %v6778_v34, %v3381_v8  ;;  %v3880_v39 = vld [vmem:[%s6268_s29 + $0x130] sm:$0xff] }
 0x2af   : > { %4065 = vst [vmem:[%s6305_s10 + $0xf8] sm:$0xff] %v4001_v36  ;;  %v3812_v43 = vadd.f32 %v6278_v22, %v3741_v48  ;;  %v3742_v12 = vmul.f32 %v6263_v16, %v3390_v21  ;;  %v3881_v48 = vld [vmem:[%s6268_s29 + $0x138] sm:$0xff] }
 0x2b0   : > { %4063 = vst [vmem:[%s6305_s10 + $0xe8] sm:$0xff] %v3999_v44  ;;  %v3810_v59 = vadd.f32 %v6278_v22, %v3739_v57  ;;  %v3740_v29 = vmul.f32 %v6263_v16, %v3382_v51  ;;  %v3879_v44 = vld [vmem:[%s6268_s29 + $0x128] sm:$0xff] }
 0x2b1   : > { %v3940_v14 = vadd.f32 %v3876_v10, %v3812_v43  ;;  %v3813_v7 = vadd.f32 %v6278_v22, %v3742_v12 }
 0x2b2   : > { %v3938_v35 = vadd.f32 %v3874_v19, %v3810_v59  ;;  %v3811_v13 = vadd.f32 %v6278_v22, %v3740_v29  ;;  %v4646_v18 = vpop.f32.mrb[164].mxu1  ;;  %v3161_v17 = vpop.f32.mrb[100].mxu0  ;;  %v6781_v59 = vld [vmem:[#allocation11_spill] sm:$0xff] }
 0x2b3   : > { %v4004_v1 = vmax.f32 %v3940_v14, 0.0  ;;  %v3941_v53 = vadd.f32 %v3877_v56, %v3813_v7  ;;  %v3403_v30 = vadd.f32 %v6356_v52, %v4646_v18  ;;  %v3394_v49 = vpop.f32.mrb[165].mxu1  ;;  %v6512_v40 = vadd.f32 %v3161_v17, %v6779_v31  ;;  %v3163_v26 = vpop.f32.mrb[101].mxu0  ;;  %v3882_v31 = vld [vmem:[%s6268_s29 + $0x140] sm:$0xff] }
 0x2b4   : > { %v4002_v62 = vmax.f32 %v3938_v35, 0.0  ;;  %v3939_v42 = vadd.f32 %v3875_v9, %v3811_v13  ;;  %v3395_v50 = vadd.f32 %v6330_v24, %v3394_v49  ;;  %v4647_v32 = vpop.f32.mrb[166].mxu1  ;;  %v3164_v2 = vpop.f32.mrb[102].mxu0 }
 0x2b5   : > { %4068 = vst [vmem:[%s6305_s10 + $0x110] sm:$0xff] %v4004_v1  ;;  %v4005_v58 = vmax.f32 %v3941_v53, 0.0  ;;  %v3745_v46 = vmul.f32 %v6263_v16, %v3403_v30  ;;  %v3406_v52 = vadd.f32 %v6366_v47, %v4647_v32  ;;  %v3397_v55 = vpop.f32.mrb[167].mxu1  ;;  %v6522_v24 = vadd.f32 %v3164_v2, %v6780_v23  ;;  %v3166_v38 = vpop.f32.mrb[103].mxu0  ;;  %v3884_v53 = vld [vmem:[%s6268_s29 + $0x150] sm:$0xff]  ;;  %v3883_v2 = vld [vmem:[%s6268_s29 + $0x148] sm:$0xff] }
 0x2b6   : > { %4066 = vst [vmem:[%s6305_s10 + $0x100] sm:$0xff] %v4002_v62  ;;  %v4003_v63 = vmax.f32 %v3939_v42, 0.0  ;;  %v3743_v25 = vmul.f32 %v6263_v16, %v3395_v50  ;;  %v3398_v61 = vadd.f32 %v6340_v4, %v3397_v55  ;;  %v6782_v30 = vld [vmem:[#allocation12_spill] sm:$0xff]  ;;  %v3885_v50 = vld [vmem:[%s6268_s29 + $0x158] sm:$0xff] }
 0x2b7   : > { %4069 = vst [vmem:[%s6305_s10 + $0x118] sm:$0xff] %v4005_v58  ;;  %v3816_v28 = vadd.f32 %v6278_v22, %v3745_v46  ;;  %v3746_v36 = vmul.f32 %v6263_v16, %v3406_v52 }
 0x2b8   : > { %4067 = vst [vmem:[%s6305_s10 + $0x108] sm:$0xff] %v4003_v63  ;;  %v3814_v47 = vadd.f32 %v6278_v22, %v3743_v25  ;;  %v3744_v0 = vmul.f32 %v6263_v16, %v3398_v61 }
 0x2b9   : > { %v3944_v21 = vadd.f32 %v3880_v39, %v3816_v28  ;;  %v3817_v8 = vadd.f32 %v6278_v22, %v3746_v36 }
 0x2ba   : > { %v3942_v10 = vadd.f32 %v3878_v41, %v3814_v47  ;;  %v3815_v4 = vadd.f32 %v6278_v22, %v3744_v0  ;;  %v4650_v57 = vpop.f32.mrb[168].mxu1  ;;  %v3169_v34 = vpop.f32.mrb[104].mxu0  ;;  %v6783_v41 = vld [vmem:[#allocation13_spill] sm:$0xff] }
 0x2bb   : > { %v4008_v11 = vmax.f32 %v3944_v21, 0.0  ;;  %v3945_v54 = vadd.f32 %v3881_v48, %v3817_v8  ;;  %v3419_v51 = vadd.f32 %v6408_v6, %v4650_v57  ;;  %v3410_v43 = vpop.f32.mrb[169].mxu1  ;;  %v6538_v56 = vadd.f32 %v3169_v34, %v6781_v59  ;;  %v3171_v29 = vpop.f32.mrb[105].mxu0  ;;  %v3888_v57 = vld [vmem:[%s6268_s29 + $0x170] sm:$0xff]  ;;  %v3889_v59 = vld [vmem:[%s6268_s29 + $0x178] sm:$0xff] }
 0x2bc   : > { %v4006_v19 = vmax.f32 %v3942_v10, 0.0  ;;  %v3943_v12 = vadd.f32 %v3879_v44, %v3815_v4  ;;  %v3411_v14 = vadd.f32 %v6382_v60, %v3410_v43  ;;  %v4651_v7 = vpop.f32.mrb[170].mxu1  ;;  %v3172_v13 = vpop.f32.mrb[106].mxu0 }
 0x2bd   : > { %4072 = vst [vmem:[%s6305_s10 + $0x130] sm:$0xff] %v4008_v11  ;;  %v4009_v9 = vmax.f32 %v3945_v54, 0.0  ;;  %v3749_v35 = vmul.f32 %v6263_v16, %v3419_v51  ;;  %v3422_v6 = vadd.f32 %v6418_v5, %v4651_v7  ;;  %v3413_v18 = vpop.f32.mrb[171].mxu1  ;;  %v6548_v60 = vadd.f32 %v3172_v13, %v6782_v30  ;;  %v3174_v49 = vpop.f32.mrb[107].mxu0  ;;  %v6784_v54 = vld [vmem:[#allocation14_spill] sm:$0xff] }
 0x2be   : > { %4070 = vst [vmem:[%s6305_s10 + $0x120] sm:$0xff] %v4006_v19  ;;  %v4007_v1 = vmax.f32 %v3943_v12, 0.0  ;;  %v3747_v17 = vmul.f32 %v6263_v16, %v3411_v14  ;;  %v3414_v62 = vadd.f32 %v6392_v33, %v3413_v18  ;;  %v3886_v19 = vld [vmem:[%s6268_s29 + $0x160] sm:$0xff] }
 0x2bf   : > { %4073 = vst [vmem:[%s6305_s10 + $0x138] sm:$0xff] %v4009_v9  ;;  %v3820_v42 = vadd.f32 %v6278_v22, %v3749_v35  ;;  %v3750_v26 = vmul.f32 %v6263_v16, %v3422_v6  ;;  %v3887_v9 = vld [vmem:[%s6268_s29 + $0x168] sm:$0xff] }
 0x2c0   : > { %4071 = vst [vmem:[%s6305_s10 + $0x128] sm:$0xff] %v4007_v1  ;;  %v3818_v5 = vadd.f32 %v6278_v22, %v3747_v17  ;;  %v3748_v32 = vmul.f32 %v6263_v16, %v3414_v62  ;;  %v6785_v62 = vld [vmem:[#allocation15_spill] sm:$0xff] }
 0x2c1   : > { %v3948_v58 = vadd.f32 %v3884_v53, %v3820_v42  ;;  %v3821_v46 = vadd.f32 %v6278_v22, %v3750_v26 }
 0x2c2   : > { %v3946_v52 = vadd.f32 %v3882_v31, %v3818_v5  ;;  %v3819_v33 = vadd.f32 %v6278_v22, %v3748_v32  ;;  %v4654_v55 = vpop.f32.mrb[172].mxu1  ;;  %v3177_v25 = vpop.f32.mrb[108].mxu0 }
 0x2c3   : > { %v4012_v63 = vmax.f32 %v3948_v58, 0.0  ;;  %v3949_v39 = vadd.f32 %v3885_v50, %v3821_v46  ;;  %v3435_v23 = vadd.f32 %v6460_v37, %v4654_v55  ;;  %v3426_v38 = vpop.f32.mrb[173].mxu1  ;;  %v6564_v36 = vadd.f32 %v3177_v25, %v6783_v41  ;;  %v3179_v47 = vpop.f32.mrb[109].mxu0  ;;  %v6786_v55 = vld [vmem:[#allocation16_spill] sm:$0xff] }
 0x2c4   : > { %v4010_v61 = vmax.f32 %v3946_v52, 0.0  ;;  %v3947_v28 = vadd.f32 %v3883_v2, %v3819_v33  ;;  %v3427_v48 = vadd.f32 %v6434_v27, %v3426_v38  ;;  %v4655_v0 = vpop.f32.mrb[174].mxu1  ;;  %v3180_v44 = vpop.f32.mrb[110].mxu0  ;;  %v3892_v52 = vld [vmem:[%s6268_s29 + $0x190] sm:$0xff] }
 0x2c5   : > { %4076 = vst [vmem:[%s6305_s10 + $0x150] sm:$0xff] %v4012_v63  ;;  %v4013_v21 = vmax.f32 %v3949_v39, 0.0  ;;  %v3753_v8 = vmul.f32 %v6263_v16, %v3435_v23  ;;  %v3438_v37 = vadd.f32 %v6470_v45, %v4655_v0  ;;  %v3429_v10 = vpop.f32.mrb[175].mxu1  ;;  %v6574_v27 = vadd.f32 %v3180_v44, %v6784_v54  ;;  %v3182_v34 = vpop.f32.mrb[111].mxu0  ;;  %v3890_v23 = vld [vmem:[%s6268_s29 + $0x180] sm:$0xff]  ;;  %v6787_v54 = vld [vmem:[#allocation17_spill] sm:$0xff] }
 0x2c6   : > { %4074 = vst [vmem:[%s6305_s10 + $0x140] sm:$0xff] %v4010_v61  ;;  %v4011_v4 = vmax.f32 %v3947_v28, 0.0  ;;  %v3751_v11 = vmul.f32 %v6263_v16, %v3427_v48  ;;  %v3430_v51 = vadd.f32 %v6444_v20, %v3429_v10  ;;  %v3893_v61 = vld [vmem:[%s6268_s29 + $0x198] sm:$0xff]  ;;  %v3891_v48 = vld [vmem:[%s6268_s29 + $0x188] sm:$0xff] }
 0x2c7   : > { %4077 = vst [vmem:[%s6305_s10 + $0x158] sm:$0xff] %v4013_v21  ;;  %v3824_v43 = vadd.f32 %v6278_v22, %v3753_v8  ;;  %v3754_v12 = vmul.f32 %v6263_v16, %v3438_v37 }
 0x2c8   : > { %4075 = vst [vmem:[%s6305_s10 + $0x148] sm:$0xff] %v4011_v4  ;;  %v3822_v45 = vadd.f32 %v6278_v22, %v3751_v11  ;;  %v3752_v29 = vmul.f32 %v6263_v16, %v3430_v51 }
 0x2c9   : > { %v3952_v14 = vadd.f32 %v3888_v57, %v3824_v43  ;;  %v3825_v7 = vadd.f32 %v6278_v22, %v3754_v12 }
 0x2ca   : > { %v3950_v35 = vadd.f32 %v3886_v19, %v3822_v45  ;;  %v3823_v20 = vadd.f32 %v6278_v22, %v3752_v29  ;;  %v4658_v13 = vpop.f32.mrb[176].mxu1  ;;  %v3185_v1 = vpop.f32.mrb[112].mxu0 }
 0x2cb   : > { %v4016_v6 = vmax.f32 %v3952_v14, 0.0  ;;  %v3953_v18 = vadd.f32 %v3889_v59, %v3825_v7  ;;  %v3451_v53 = vadd.f32 %v6512_v40, %v4658_v13  ;;  %v3442_v17 = vpop.f32.mrb[177].mxu1  ;;  %v6590_v42 = vadd.f32 %v3185_v1, %v6785_v62  ;;  %v3187_v31 = vpop.f32.mrb[113].mxu0  ;;  %v3896_v7 = vld [vmem:[%s6268_s29 + $0x1b0] sm:$0xff] }
 0x2cc   : > { %v4014_v30 = vmax.f32 %v3950_v35, 0.0  ;;  %v3951_v49 = vadd.f32 %v3887_v9, %v3823_v20  ;;  %v3443_v26 = vadd.f32 %v6486_v3, %v3442_v17  ;;  %v4659_v5 = vpop.f32.mrb[178].mxu1  ;;  %v3188_v58 = vpop.f32.mrb[114].mxu0  ;;  %v6788_v35 = vld [vmem:[#allocation18_spill] sm:$0xff] }
 0x2cd   : > { %4080 = vst [vmem:[%s6305_s10 + $0x170] sm:$0xff] %v4016_v6  ;;  %v4017_v50 = vmax.f32 %v3953_v18, 0.0  ;;  %v3757_v32 = vmul.f32 %v6263_v16, %v3451_v53  ;;  %v3454_v40 = vadd.f32 %v6522_v24, %v4659_v5  ;;  %v3445_v46 = vpop.f32.mrb[179].mxu1  ;;  %v6600_v3 = vadd.f32 %v3188_v58, %v6786_v55  ;;  %v3190_v63 = vpop.f32.mrb[115].mxu0  ;;  %v3894_v18 = vld [vmem:[%s6268_s29 + $0x1a0] sm:$0xff] }
 0x2ce   : > { %4078 = vst [vmem:[%s6305_s10 + $0x160] sm:$0xff] %v4014_v30  ;;  %v4015_v2 = vmax.f32 %v3951_v49, 0.0  ;;  %v3755_v33 = vmul.f32 %v6263_v16, %v3443_v26  ;;  %v3446_v39 = vadd.f32 %v6496_v15, %v3445_v46  ;;  %v3895_v49 = vld [vmem:[%s6268_s29 + $0x1a8] sm:$0xff] }
 0x2cf   : > { %4081 = vst [vmem:[%s6305_s10 + $0x178] sm:$0xff] %v4017_v50  ;;  %v3828_v25 = vadd.f32 %v6278_v22, %v3757_v32  ;;  %v3758_v38 = vmul.f32 %v6263_v16, %v3454_v40 }
 0x2d0   : > { %4079 = vst [vmem:[%s6305_s10 + $0x168] sm:$0xff] %v4015_v2  ;;  %v3826_v24 = vadd.f32 %v6278_v22, %v3755_v33  ;;  %v3756_v28 = vmul.f32 %v6263_v16, %v3446_v39 }
 0x2d1   : > { %v3956_v41 = vadd.f32 %v3892_v52, %v3828_v25  ;;  %v3829_v47 = vadd.f32 %v6278_v22, %v3758_v38  ;;  %v6789_v52 = vld [vmem:[#allocation19_spill] sm:$0xff] }
 0x2d2   : > { %v3954_v0 = vadd.f32 %v3890_v23, %v3826_v24  ;;  %v3827_v15 = vadd.f32 %v6278_v22, %v3756_v28  ;;  %v4662_v21 = vpop.f32.mrb[180].mxu1  ;;  %v3193_v37 = vpop.f32.mrb[116].mxu0 }
 0x2d3   : > { %v4020_v8 = vmax.f32 %v3956_v41, 0.0  ;;  %v3957_v44 = vadd.f32 %v3893_v61, %v3829_v47  ;;  %v3467_v10 = vadd.f32 %v6564_v36, %v4662_v21  ;;  %v3458_v4 = vpop.f32.mrb[181].mxu1  ;;  %v4762_v34 = vadd.f32 %v3193_v37, %v6787_v54  ;;  %v3195_v51 = vpop.f32.mrb[117].mxu0  ;;  %v3900_v41 = vld [vmem:[%s6268_s29 + $0x1d0] sm:$0xff]  ;;  %v3899_v54 = vld [vmem:[%s6268_s29 + $0x1c8] sm:$0xff] }
 0x2d4   : > { %v4018_v57 = vmax.f32 %v3954_v0, 0.0  ;;  %v3955_v11 = vadd.f32 %v3891_v48, %v3827_v15  ;;  %v3459_v43 = vadd.f32 %v6538_v56, %v3458_v4  ;;  %v4663_v19 = vpop.f32.mrb[182].mxu1  ;;  %v3196_v59 = vpop.f32.mrb[118].mxu0  ;;  %v6790_v48 = vld [vmem:[#allocation20_spill] sm:$0xff] }
 0x2d5   : > { %4084 = vst [vmem:[%s6305_s10 + $0x190] sm:$0xff] %v4020_v8  ;;  %v4021_v12 = vmax.f32 %v3957_v44, 0.0  ;;  %v3761_v45 = vmul.f32 %v6263_v16, %v3467_v10  ;;  %v3470_v36 = vadd.f32 %v6574_v27, %v4663_v19  ;;  %v3461_v29 = vpop.f32.mrb[183].mxu1  ;;  %v4763_v56 = vadd.f32 %v3196_v59, %v6788_v35  ;;  %v3198_v20 = vpop.f32.mrb[119].mxu0  ;;  %v6631_v27 = vld [vmem:[%s6747_s2] ss:$0 sm:$0xff] }
 0x2d6   : > { %4082 = vst [vmem:[%s6305_s10 + $0x180] sm:$0xff] %v4018_v57  ;;  %v4019_v14 = vmax.f32 %v3955_v11, 0.0  ;;  %v3759_v9 = vmul.f32 %v6263_v16, %v3459_v43  ;;  %v3462_v13 = vadd.f32 %v6548_v60, %v3461_v29  ;;  %v6638_v16 = vld [vmem:[%s6748_s3] ss:$0 sm:$0xff]  ;;  %v3897_v60 = vld [vmem:[%s6268_s29 + $0x1b8] sm:$0xff] }
 0x2d7   : > { %4085 = vst [vmem:[%s6305_s10 + $0x198] sm:$0xff] %v4021_v12  ;;  %v3832_v6 = vadd.f32 %v6278_v22, %v3761_v45  ;;  %v3762_v1 = vmul.f32 %v6631_v27, %v3470_v36  ;;  %v3898_v8 = vld [vmem:[%s6268_s29 + $0x1c0] sm:$0xff]  ;;  %v3901_v10 = vld [vmem:[%s6268_s29 + $0x1d8] sm:$0xff] }
 0x2d8   : > { %4083 = vst [vmem:[%s6305_s10 + $0x188] sm:$0xff] %v4019_v14  ;;  %v3830_v53 = vadd.f32 %v6638_v16, %v3759_v9  ;;  %v3760_v17 = vmul.f32 %v6631_v27, %v3462_v13  ;;  %v6791_v29 = vld [vmem:[#allocation22_spill] sm:$0xff] }
 0x2d9   : > { %v3960_v22 = vadd.f32 %v3896_v7, %v3832_v6  ;;  %v3833_v30 = vadd.f32 %v6638_v16, %v3762_v1 }
 0x2da   : > { %v3958_v62 = vadd.f32 %v3894_v18, %v3830_v53  ;;  %v3831_v31 = vadd.f32 %v6638_v16, %v3760_v17  ;;  %v4666_v26 = vpop.f32.mrb[184].mxu1  ;;  %v3201_v32 = vpop.f32.mrb[120].mxu0  ;;  %v6792_v53 = vld [vmem:[#allocation23_spill] sm:$0xff] }
 0x2db   : > { %v4024_v5 = vmax.f32 %v3960_v22, 0.0  ;;  %v3961_v50 = vadd.f32 %v3897_v60, %v3833_v30  ;;  %v3483_v58 = vadd.f32 %v4762_v34, %v4666_v26  ;;  %v3474_v40 = vpop.f32.mrb[185].mxu1  ;;  %v4764_v33 = vadd.f32 %v3201_v32, %v6789_v52  ;;  %v3203_v55 = vpop.f32.mrb[121].mxu0  ;;  %v3902_v22 = vld [vmem:[%s6268_s29 + $0x1e0] sm:$0xff]  ;;  %v3904_v26 = vld [vmem:[%s6268_s29 + $0x1f0] sm:$0xff] }
 0x2dc   : > { %v4022_v46 = vmax.f32 %v3958_v62, 0.0  ;;  %v3959_v2 = vadd.f32 %v3895_v49, %v3831_v31  ;;  %v3475_v63 = vadd.f32 %v6590_v42, %v3474_v40  ;;  %v4667_v39 = vpop.f32.mrb[186].mxu1  ;;  %v3204_v38 = vpop.f32.mrb[122].mxu0  ;;  %v3903_v40 = vld [vmem:[%s6268_s29 + $0x1e8] sm:$0xff] }
 0x2dd   : > { %4088 = vst [vmem:[%s6305_s10 + $0x1b0] sm:$0xff] %v4024_v5  ;;  %v4025_v25 = vmax.f32 %v3961_v50, 0.0  ;;  %v3765_v23 = vmul.f32 %v6631_v27, %v3483_v58  ;;  %v3486_v24 = vadd.f32 %v4763_v56, %v4667_v39  ;;  %v3477_v61 = vpop.f32.mrb[187].mxu1  ;;  %v4765_v0 = vadd.f32 %v3204_v38, %v6790_v48  ;;  %v3206_v42 = vpop.f32.mrb[123].mxu0 }
 0x2de   : > { %4086 = vst [vmem:[%s6305_s10 + $0x1a0] sm:$0xff] %v4022_v46  ;;  %v4023_v28 = vmax.f32 %v3959_v2, 0.0  ;;  %v3763_v47 = vmul.f32 %v6631_v27, %v3475_v63  ;;  %v3478_v15 = vadd.f32 %v6600_v3, %v3477_v61  ;;  %v3905_v46 = vld [vmem:[%s6268_s29 + $0x1f8] sm:$0xff]  ;;  %s5333_s29 = scalar_lea.vmem %s6692_s17, 8192 }
 0x2df   : > { %4089 = vst [vmem:[%s6305_s10 + $0x1b8] sm:$0xff] %v4025_v25  ;;  %v3836_v21 = vadd.f32 %v6638_v16, %v3765_v23  ;;  %v3766_v44 = vmul.f32 %v6631_v27, %v3486_v24  ;;  %p5334_p12 = scmp.ne.s32.totalorder %s6692_s17, %s5333_s29  ;;  %p5341_p2 = scmp.lt.s32.totalorder %s5339_s9, %s5333_s29 }
 0x2e0   : > { %4087 = vst [vmem:[%s6305_s10 + $0x1a8] sm:$0xff] %v4023_v28  ;;  %v3834_v37 = vadd.f32 %v6638_v16, %v3763_v47  ;;  %v3764_v4 = vmul.f32 %v6631_v27, %v3478_v15 }
 0x2e1   : > { %v3964_v57 = vadd.f32 %v3900_v41, %v3836_v21  ;;  %v3837_v11 = vadd.f32 %v6638_v16, %v3766_v44  ;;  %p5335_p13 = pnand %p5334_p12, %p5487_p4  ;;  %p5342_p3 = por %p5341_p2, %p5340_p1 }
 0x2e2   : > { %v3962_v34 = vadd.f32 %v3898_v8, %v3834_v37  ;;  %v3835_v3 = vadd.f32 %v6638_v16, %v3764_v4  ;;  %v4670_v51 = vpop.f32.mrb[188].mxu1  ;;  %v3209_v12 = vpop.f32.mrb[124].mxu0 }
 0x2e3   : > { %v4028_v43 = vmax.f32 %v3964_v57, 0.0  ;;  %v3965_v19 = vadd.f32 %v3901_v10, %v3837_v11  ;;  %v3490_v45 = vpop.f32.mrb[189].mxu1  ;;  %v4766_v14 = vadd.f32 %v3209_v12, %v6791_v29  ;;  %v3211_v7 = vpop.f32.mrb[125].mxu0  ;;  %p5336_p0 = pneg %p5335_p13 }
 0x2e4   : > { %v4026_v59 = vmax.f32 %v3962_v34, 0.0  ;;  %v3963_v36 = vadd.f32 %v3899_v54, %v3835_v3  ;;  %v3491_v9 = vadd.f32 %v4764_v33, %v3490_v45  ;;  %v4671_v35 = vpop.f32.mrb[190].mxu1  ;;  %v3212_v20 = vpop.f32.mrb[126].mxu0 }
 0x2e5   : > { %4092 = vst [vmem:[%s6305_s10 + $0x1d0] sm:$0xff] %v4028_v43  ;;  %v4029_v56 = vmax.f32 %v3965_v19, 0.0  ;;  %v3493_v13 = vpop.f32.mrb[191].mxu1  ;;  %v3499_v18 = vadd.f32 %v4766_v14, %v4670_v51  ;;  %v4767_v60 = vadd.f32 %v3212_v20, %v6792_v53  ;;  %v3214_v17 = vpop.f32.mrb[127].mxu0  ;;  %p5343_p5 = pnand %p5342_p3, %p5336_p0 }
 0x2e6   : > { %4090 = vst [vmem:[%s6305_s10 + $0x1c0] sm:$0xff] %v4026_v59  ;;  %v4027_v6 = vmax.f32 %v3963_v36, 0.0  ;;  %v3767_v1 = vmul.f32 %v6631_v27, %v3491_v9  ;;  %v3494_v30 = vadd.f32 %v4765_v0, %v3493_v13 }
 0x2e7   : > { %4093 = vst [vmem:[%s6305_s10 + $0x1d8] sm:$0xff] %v4029_v56  ;;  %v3769_v49 = vmul.f32 %v6631_v27, %v3499_v18  ;;  %v3502_v31 = vadd.f32 %v4767_v60, %v4671_v35 }
 0x2e8   : > { %4091 = vst [vmem:[%s6305_s10 + $0x1c8] sm:$0xff] %v4027_v6  ;;  %v3838_v62 = vadd.f32 %v6638_v16, %v3767_v1  ;;  %v3768_v5 = vmul.f32 %v6631_v27, %v3494_v30 }
 0x2e9   : > { %v3840_v50 = vadd.f32 %v6638_v16, %v3769_v49  ;;  %v3770_v58 = vmul.f32 %v6631_v27, %v3502_v31 }
 0x2ea   : > { %v3966_v32 = vadd.f32 %v3902_v22, %v3838_v62  ;;  %v3839_v2 = vadd.f32 %v6638_v16, %v3768_v5 }
 0x2eb   : > { %v3968_v52 = vadd.f32 %v3904_v26, %v3840_v50  ;;  %v3841_v55 = vadd.f32 %v6638_v16, %v3770_v58 }
 0x2ec   : > { %v4030_v33 = vmax.f32 %v3966_v32, 0.0  ;;  %v3967_v63 = vadd.f32 %v3903_v40, %v3839_v2 }
 0x2ed   : > { %v4032_v39 = vmax.f32 %v3968_v52, 0.0  ;;  %v3969_v25 = vadd.f32 %v3905_v46, %v3841_v55 }
 0x2ee   : > { %4094 = vst [vmem:[%s6305_s10 + $0x1e0] sm:$0xff] %v4030_v33  ;;  %v4031_v27 = vmax.f32 %v3967_v63, 0.0 }
 0x2ef   : > { %4096 = vst [vmem:[%s6305_s10 + $0x1f0] sm:$0xff] %v4032_v39  ;;  %v4033_v16 = vmax.f32 %v3969_v25, 0.0 }
 0x2f0   : > { %4095 = vst [vmem:[%s6305_s10 + $0x1e8] sm:$0xff] %v4031_v27 }
 0x2f1   : > { %4097 = vst [vmem:[%s6305_s10 + $0x1f8] sm:$0xff] %v4033_v16 }
 0x2f2   : > { %5346 = shalt.err (!%p5343_p5)
}
 0x2f3   : > { %s5347_s12 = scalar_lea.hbm %s6690_s27, 8192  ;;  %s5351_s13 = scalar_lea.hbm %s6750_s5, 16384 }
 0x2f4   : > { %p5348_p6 = scmp.ne.s32.totalorder %s6690_s27, %s5347_s12  ;;  %p5352_p10 = scmp.lt.u32.totalorder %s6690_s27, %s6750_s5 }
 0x2f5   : > { %p5353_p11 = scmp.lt.u32.totalorder %s5351_s13, %s5347_s12  ;;  %p5355_p13 = scmp.lt.u32.totalorder %s5347_s12, %s6690_s27 }
 0x2f6   : > { %p5349_p7 = pnand %p5348_p6, %p5487_p4 }
 0x2f7   : > { %p5354_p12 = por %p5353_p11, %p5352_p10 }
 0x2f8   : > { %p5350_p9 = pneg %p5349_p7 }
 0x2f9   : > { %p5356_p0 = por %p5355_p13, %p5354_p12 }
 0x2fb   : > { %p5357_p1 = pnand %p5356_p0, %p5350_p9 }
 0x2fd   : > { %5360 = shalt.err (!%p5357_p1)
}
 0x2fe   : > { %s5415_s16 = smov 128   ;;  %s5416_s24 = smov 8  }
 0x2ff   : > { %4897 = dma.vmem_to_hbm [thread:$0]  (%p5487_p4), %s6692_s17, 8192, %s6690_s27, %s6699_s21, %s5415_s16, %s5415_s16, %s5416_s24  }
 0x300 PF: > { %p4903_p2 = scmp.ge.s32.totalorder %s5411_s23, 2  ;;  %s4128_s25 = sand.u32 1, %s5391_s18  }
 0x301   : > { %s4129_s29 = scalar_lea.sflag [#allocation4], %s4128_s25 }
 0x302   : > { %p4900_p3 = pnand %p4903_p2, %p5494_p8 }
 0x304   : > { %5386 = dma.done.wait (!%p4900_p3), %s4129_s29, 8192  }
 0x305   : > { %5388 = vsyncadd (!%p4900_p3), %s4129_s29, 4294959104  ;;  %s18_s23 = sadd.s32 1, %s5411_s23   ;;  %s6793_s18 = smov %s5395_s19 }
 0x306   : > { %p15_p5 = scmp.ge.s32.totalorder %s18_s23, 4   ;;  %s6794_s19 = smov %s5399_s20 }
 0x307   : > { %s6795_s20 = smov %s5500_s6  ;;  %s6796_s21 = smov %s5407_s22 }
 0x308   : > { %s6797_s22 = smov %s6799_s26  ;;  %17 = sbr.rel (!%p15_p5) target bundleno = 4 (0x4), region = 95 }
 0x30f   :  { %4134 = vsyncpa [#allocation4], 1 }
 0x310   :  { %4136 = vsyncpa [#allocation4 + $0x1], 1 }

</bundles_post_ra>
